<compile_context>
chip_gen: v5e
topology: v5e:2x2
jax: 0.10.0
libtpu: 0.0.40
codegen_flags: <defaults>
</compile_context>

<pallas_src>
import jax
import jax.numpy as jnp
from jax import lax
from jax.experimental import pallas as pl
from jax.experimental.pallas import tpu as pltpu

FLAT_K = 92416   # 256 * 19 * 19, fixed by nn.Linear(92416, 28)
N_OUT = 28       # out_features of nn.Linear(92416, 28)
TK = 46208       # K / 2 = 361 * 128 -> 2 grid steps, lane-aligned K tiles


def _head_kernel(x_ref, w_ref, b_ref, o_ref):
    """One K-tile of sigmoid(x @ W^T + b), accumulated in the output block.

    x_ref: (B, TK)    f32  activations tile
    w_ref: (N, TK)    f32  weight tile (native PyTorch [out, in] layout)
    b_ref: (1, N)     f32  bias (same block every step)
    o_ref: (B, N)     f32  output; same block for every k -> VMEM-resident
                           accumulator across the reduction axis.
    """
    k = pl.program_id(0)

    @pl.when(k == 0)
    def _():
        o_ref[...] = jnp.zeros_like(o_ref)

    # Contract the last dims of both operands (bk,nk->bn). The MXU handles the
    # transposed RHS natively, so no XLU transpose and no padding of N to 128.
    o_ref[...] += lax.dot_general(
        x_ref[...],
        w_ref[...],
        dimension_numbers=(((1,), (1,)), ((), ())),
        preferred_element_type=jnp.float32,
    )

    @pl.when(k == pl.num_programs(0) - 1)
    def _():
        o_ref[...] = jax.nn.sigmoid(o_ref[...] + b_ref[...]).astype(o_ref.dtype)


def res_sim_z_head(feats_nchw, weight, bias):
    """feats_nchw: [B, 256, 19, 19] f32
       weight:     [28, 92416]      f32  (PyTorch nn.Linear layout: [out, in])
       bias:       [28]             f32
       returns:    [B, 28]          f32  = sigmoid(flatten(feats) @ W^T + b)
    """
    B = feats_nchw.shape[0]
    x = feats_nchw.reshape(B, -1).astype(jnp.float32)   # matches PyTorch .view order
    K = x.shape[1]
    assert K == FLAT_K, f"expected {FLAT_K} flattened features, got {K}"
    N = weight.shape[0]
    assert N == N_OUT, f"expected {N_OUT} output features, got {N}"
    assert K % TK == 0

    w = weight.astype(jnp.float32)                  # native [N, K]; no transpose/pad
    b = bias.astype(jnp.float32).reshape(1, N)

    grid = (K // TK,)

    cost = pl.CostEstimate(
        flops=2 * B * K * N,
        transcendentals=B * N,
        bytes_accessed=4 * (B * K + N * K + N + B * N),
    )

    out = pl.pallas_call(
        _head_kernel,
        out_shape=jax.ShapeDtypeStruct((B, N), jnp.float32),
        grid_spec=pltpu.PrefetchScalarGridSpec(
            num_scalar_prefetch=0,
            grid=grid,
            in_specs=[
                # Full-extent second-to-last dims (B and N=28) are legal block dims.
                pl.BlockSpec((B, TK), lambda k: (0, k)),
                pl.BlockSpec((N, TK), lambda k: (0, k)),
                pl.BlockSpec((1, N), lambda k: (0, 0)),
            ],
            out_specs=pl.BlockSpec((B, N), lambda k: (0, 0)),
        ),
        compiler_params=pltpu.CompilerParams(
            dimension_semantics=("arbitrary",),
        ),
        cost_estimate=cost,
    )(x, w, b)

    return out


def init_params(key):
    """Deterministic Linear(92416, 28) params, PyTorch-style U(-1/sqrt(fan_in), +)."""
    k_w, k_b = jax.random.split(key)
    bound = 1.0 / (FLAT_K ** 0.5)
    weight = jax.random.uniform(
        k_w, (N_OUT, FLAT_K), jnp.float32, minval=-bound, maxval=bound
    )
    bias = jax.random.uniform(
        k_b, (N_OUT,), jnp.float32, minval=-bound, maxval=bound
    )
    return weight, bias


if __name__ == "__main__":
    key = jax.random.PRNGKey(0)
    k_feat, k_param = jax.random.split(key)

    # Backbone output feature map (NCHW), 256 * 19 * 19 = 92416 flattened features,
    # consistent with nn.Linear(92416, 28). Batch = 2.
    feats = jax.random.normal(k_feat, (2, 256, 19, 19), jnp.float32)
    weight, bias = init_params(k_param)

    out = res_sim_z_head(feats, weight, bias)
    out = jax.block_until_ready(out)

    # Reference check in plain JAX (flatten -> linear -> sigmoid).
    ref = jax.nn.sigmoid(feats.reshape(2, -1) @ weight.T + bias)
    assert out.shape == (2, 28), out.shape
    assert jnp.allclose(out, ref, atol=1e-5, rtol=1e-5), float(
        jnp.max(jnp.abs(out - ref))
    )

    print("KERNEL_OK")
</pallas_src>

<mosaic_0001>
module attributes {stable_mosaic.version = 11 : i64} {
  func.func @_head_kernel(%arg0: i32, %arg1: memref<2x46208xf32, #tpu.memory_space<vmem>>, %arg2: memref<28x46208xf32, #tpu.memory_space<vmem>>, %arg3: memref<1x28xf32, #tpu.memory_space<vmem>>, %arg4: memref<2x28xf32, #tpu.memory_space<vmem>>) attributes {dimension_semantics = [#tpu.dimension_semantics<arbitrary>], iteration_bounds = array<i64: 2>, scalar_prefetch = 0 : i64, scratch_operands = 0 : i64, tpu.core_type = #tpu.core_type<tc>, window_params = [{transform_indices = @transform_0, window_bounds = array<i64: 2, 46208>}, {transform_indices = @transform_1, window_bounds = array<i64: 28, 46208>}, {pipeline_mode = #tpu.pipeline_mode<synchronous>, transform_indices = @transform_2, window_bounds = array<i64: 1, 28>}, {pipeline_mode = #tpu.pipeline_mode<synchronous>, transform_indices = @transform_3, window_bounds = array<i64: 2, 28>}]} {
    %c0_i32 = arith.constant 0 : i32
    %0 = arith.cmpi eq, %arg0, %c0_i32 : i32
    %1 = arith.extui %0 : i1 to i32
    %c0_i32_0 = arith.constant 0 : i32
    %2 = arith.cmpi ne, %1, %c0_i32_0 : i32
    scf.if %2 {
      %cst_9 = arith.constant 0.000000e+00 : f32
      %12 = vector.broadcast %cst_9 : f32 to vector<2x28xf32>
      %c0_10 = arith.constant 0 : index
      %c0_11 = arith.constant 0 : index
      %13 = vector.load %arg4[%c0_10, %c0_11] : memref<2x28xf32, #tpu.memory_space<vmem>>, vector<2x28xf32>
      tpu.vector_store %arg4[%c0_10, %c0_11], %12 {strides = array<i32>} : memref<2x28xf32, #tpu.memory_space<vmem>>, vector<2x28xf32>,
    } else {
    }
    %c0 = arith.constant 0 : index
    %c0_1 = arith.constant 0 : index
    %3 = vector.load %arg4[%c0, %c0_1] : memref<2x28xf32, #tpu.memory_space<vmem>>, vector<2x28xf32>
    %c0_2 = arith.constant 0 : index
    %c0_3 = arith.constant 0 : index
    %4 = vector.load %arg1[%c0_2, %c0_3] : memref<2x46208xf32, #tpu.memory_space<vmem>>, vector<2x46208xf32>
    %c0_4 = arith.constant 0 : index
    %c0_5 = arith.constant 0 : index
    %5 = vector.load %arg2[%c0_4, %c0_5] : memref<28x46208xf32, #tpu.memory_space<vmem>>, vector<28x46208xf32>
    %cst = arith.constant dense<0.000000e+00> : vector<2x28xf32>
    %6 = tpu.matmul %4, %5, %cst {dimension_numbers = #tpu.dot_dimension_numbers<[1], [1], [0], [0], [0, 0, 1, 0], [], []>} : vector<2x46208xf32>, vector<28x46208xf32>, vector<2x28xf32> -> vector<2x28xf32>
    %7 = arith.addf %3, %6 : vector<2x28xf32>
    %c0_6 = arith.constant 0 : index
    %c0_7 = arith.constant 0 : index
    %8 = vector.load %arg4[%c0_6, %c0_7] : memref<2x28xf32, #tpu.memory_space<vmem>>, vector<2x28xf32>
    tpu.vector_store %arg4[%c0_6, %c0_7], %7 {strides = array<i32>} : memref<2x28xf32, #tpu.memory_space<vmem>>, vector<2x28xf32>,
    %c1_i32 = arith.constant 1 : i32
    %9 = arith.cmpi eq, %arg0, %c1_i32 : i32
    %10 = arith.extui %9 : i1 to i32
    %c0_i32_8 = arith.constant 0 : i32
    %11 = arith.cmpi ne, %10, %c0_i32_8 : i32
    scf.if %11 {
      %c0_9 = arith.constant 0 : index
      %c0_10 = arith.constant 0 : index
      %12 = vector.load %arg4[%c0_9, %c0_10] : memref<2x28xf32, #tpu.memory_space<vmem>>, vector<2x28xf32>
      %c0_11 = arith.constant 0 : index
      %c0_12 = arith.constant 0 : index
      %13 = vector.load %arg3[%c0_11, %c0_12] : memref<1x28xf32, #tpu.memory_space<vmem>>, vector<1x28xf32>
      %14 = vector.broadcast %13 : vector<1x28xf32> to vector<2x28xf32>
      %15 = arith.addf %12, %14 : vector<2x28xf32>
      %16 = arith.negf %15 : vector<2x28xf32>
      %17 = math.exp %16 : vector<2x28xf32>
      %cst_13 = arith.constant 1.000000e+00 : f32
      %18 = vector.broadcast %cst_13 : f32 to vector<2x28xf32>
      %19 = arith.addf %18, %17 : vector<2x28xf32>
      %20 = arith.divf %18, %19 : vector<2x28xf32>
      %c0_14 = arith.constant 0 : index
      %c0_15 = arith.constant 0 : index
      %21 = vector.load %arg4[%c0_14, %c0_15] : memref<2x28xf32, #tpu.memory_space<vmem>>, vector<2x28xf32>
      tpu.vector_store %arg4[%c0_14, %c0_15], %20 {strides = array<i32>} : memref<2x28xf32, #tpu.memory_space<vmem>>, vector<2x28xf32>,
    } else {
    }
    return
  }
  func.func @transform_0(%arg0: i32) -> (i32, i32) {
    %c0_i32 = arith.constant 0 : i32
    %c0_i32_0 = arith.constant 0 : i32
    return %c0_i32, %arg0 : i32, i32
  }
  func.func @transform_1(%arg0: i32) -> (i32, i32) {
    %c0_i32 = arith.constant 0 : i32
    %c0_i32_0 = arith.constant 0 : i32
    return %c0_i32, %arg0 : i32, i32
  }
  func.func @transform_2(%arg0: i32) -> (i32, i32) {
    %c0_i32 = arith.constant 0 : i32
    %c0_i32_0 = arith.constant 0 : i32
    %c0_i32_1 = arith.constant 0 : i32
    return %c0_i32, %c0_i32_0 : i32, i32
  }
  func.func @transform_3(%arg0: i32) -> (i32, i32) {
    %c0_i32 = arith.constant 0 : i32
    %c0_i32_0 = arith.constant 0 : i32
    %c0_i32_1 = arith.constant 0 : i32
    return %c0_i32, %c0_i32_0 : i32, i32
  }
}

</mosaic_0001>

<bundles_post_ra>
// kernel: tpu_custom_call.1
= control target key start
LH: loop header
LB: loop body
LE: loop exit
PB: predicated region body
PF: predicated region fallthrough
CT: control target
= control target key end

     0   :  { %8 = vsyncpa [#allocation3], 0  ;;  %s11981_s0 = inlined_call_operand.hbm [shape: f32[2,92416], index: 0, kind: input, shape index: {}]   ;;  %s11982_s1 = inlined_call_operand.hbm [shape: f32[28,92416], index: 1, kind: input, shape index: {}]   ;;  %s11983_s2 = inlined_call_operand.hbm [shape: f32[1,28], index: 2, kind: input, shape index: {}]   ;;  %s11984_s3 = inlined_call_operand.hbm [shape: f32[2,28], index: 3, kind: output, shape index: {}]  }
   0x1   :  { %10 = vsyncpa [#allocation3 + $0x1], 0 }
   0x2   :  { %11 = vsyncpa [#allocation6], 0 }
   0x3   :  { %13 = vsyncpa [#allocation6 + $0x1], 0 }
   0x4   :  { %14 = vsyncpa [#allocation4], 0  ;;  %s10310_s12 = smov 0   ;;  %s10312_s13 = smov 0  }
   0x5   :  { %s10314_s14 = smov 0   ;;  %s10316_s15 = smov 0  }
   0x6 LB: > { %s10329_s16 = sadd.s32 4294967295, %s10282_s15   ;;  %p40_p0 = scmp.ne.s32.totalorder %s10274_s13, %s10270_s12  ;;  %s10282_s15 = sphi %s10316_s15, %s11991_s15   ;;  %s10278_s14 = sphi %s10314_s14, %s11990_s14   ;;  %s10274_s13 = sphi %s10312_s13, %s11989_s13   ;;  %s10270_s12 = sphi %s10310_s12, %s11988_s12  }
   0x7   : > { %p41_p1 = scmp.eq.s32.totalorder %s10329_s16, 0  ;;  %p10027_p2 = scmp.ge.s32.totalorder %s10282_s15, 1 }
   0x8   : > { %p119_p3 = scmp.lt.s32.totalorder %s10282_s15, 3  ;;  %p10028_p4 = scmp.ne.s32.totalorder %s10329_s16, 0 }
   0x9   : > { %p10338_p5 = por %p41_p1, %p40_p0  ;;  %s131_s20 = sshll.u32 %s11983_s2, 4  ;;  %s132_s20 = int_to_ptr.hbm [resolvable:$true] %s131_s20 }
   0xa   : > { %p10345_p6 = pnand %p10027_p2, %p119_p3  ;;  %s10284_s22 = smov [#allocation7]  }
   0xb   : > { %s133_s23 = sshll.u32 %s10284_s22, 4  ;;  %s10354_s24 = sadd.s32 1, %s10282_s15   ;;  %s134_s23 = int_to_ptr.vmem [resolvable:$true] %s133_s23 }
   0xc   : > { %p10059_p7 = pneg %p10345_p6  ;;  %s27_s25 = sadd.s32 1, %s10278_s14 }
   0xd   : > { %s24_s26 = ssub.s32 %s10282_s15, %s10354_s24  ;;  %p34_p10 = scmp.ne.s32.totalorder %s10278_s14, %s10274_s13 }
   0xe   : > { %p10060_p8 = pnand %p10059_p7, %p41_p1  ;;  %p25_p9 = scmp.eq.s32.totalorder %s24_s26, 0 }
   0xf   : > { %p35_p11 = scmp.eq.s32.totalorder %s10282_s15, 0  ;;  %p10071_p12 = scmp.lt.s32.totalorder %s10282_s15, 2 }
  0x10   : > { %10062 = dma.hbm_to_vmem [thread:$0]  (!%p10060_p8), %s132_s20, 16, %s134_s23, [#allocation6]  }
  0x11   : > { %s10364_s27 = scalar_select %p25_p9, %s10278_s14, %s27_s25  }
  0x12   : > { %p36_p13 = por %p35_p11, %p34_p10  ;;  %s144_s28 = sand.u32 1, %s10278_s14  }
  0x13   : > { %s10043_s29 = smul.u32 722, %s144_s28  ;;  %s145_s12 = scalar_lea.sflag [#allocation3], %s144_s28 }
  0x14   : > { %s10041_s30 = smul.u32 722, %s10282_s15  ;;  %p10368_p0 = pnand %p10071_p12, %p36_p13 }
  0x15   : > { %s10044_s5 = smul.u32 11552, %s144_s28  ;;  %s148_s9 = scalar_lea.vmem [#allocation2], %s10043_s29 }
  0x16   : > { %s153_s8 = scalar_lea.hbm %s11981_s0, %s10041_s30  ;;  %s157_s10 = sshll.u32 %s148_s9, 4  ;;  %s158_s10 = int_to_ptr.vmem [resolvable:$true] %s157_s10 }
  0x17   : > { %s155_s11 = sshll.u32 %s153_s8, 4  ;;  %p10152_p3 = pneg %p10368_p0  ;;  %s156_s11 = int_to_ptr.hbm [resolvable:$true] %s155_s11 }
  0x18   : > { %s10148_s18 = sshra.s32 %s156_s11, 4  ;;  %s10155_s23 = scalar_lea.hbm %s11981_s0, 1444  ;;  %s10149_s18 = int_to_ptr.hbm [resolvable:$true] %s10148_s18 }
  0x19   : > { %s10150_s19 = scalar_lea.hbm %s10149_s18, 722  ;;  %p10156_p9 = scmp.lt.s32.totalorder %s10149_s18, %s11981_s0 }
  0x1a   : > { %p10151_p2 = scmp.ne.s32.totalorder %s10149_s18, %s10150_s19  ;;  %p10157_p10 = scmp.lt.s32.totalorder %s10155_s23, %s10150_s19 }
  0x1c   : > { %p10153_p7 = pnand %p10152_p3, %p10151_p2  ;;  %p10158_p11 = por %p10157_p10, %p10156_p9 }
  0x1e   : > { %p10154_p8 = pneg %p10153_p7 }
  0x20   : > { %p10159_p12 = pnand %p10158_p11, %p10154_p8 }
  0x22   : > { %10162 = shalt.err (!%p10159_p12)
}
  0x23   : > { %10066 = dma.hbm_to_vmem [thread:$0]  (!%p10368_p0), %s156_s11, 11552, %s158_s10, %s145_s12  }
  0x24   : > { %s164_s28 = sand.u32 1, %s10282_s15   ;;  %s168_s29 = scalar_lea.vmem [#allocation5], %s10044_s5 }
  0x25   : > { %s176_s30 = sshll.u32 %s168_s29, 4  ;;  %s10042_s6 = smul.u32 2888, %s10282_s15  ;;  %s177_s30 = int_to_ptr.vmem [resolvable:$true] %s176_s30 }
  0x26   : > { %s165_s19 = scalar_lea.sflag [#allocation6], %s164_s28  ;;  %s10185_s11 = scalar_lea.hbm %s11982_s1, 23104 }
  0x27   : > { %s173_s9 = scalar_lea.hbm %s11982_s1, %s10042_s6 }
  0x28   : > { %s174_s18 = sshll.u32 %s173_s9, 4  ;;  %s175_s18 = int_to_ptr.hbm [resolvable:$true] %s174_s18 }
  0x29   : > { %s10178_s20 = sshra.s32 %s175_s18, 4  ;;  %s10179_s20 = int_to_ptr.hbm [resolvable:$true] %s10178_s20 }
  0x2a   : > { %s10180_s22 = scalar_lea.hbm %s10179_s20, 11552  ;;  %p10186_p8 = scmp.lt.s32.totalorder %s10179_s20, %s11982_s1 }
  0x2b   : > { %p10181_p13 = scmp.ne.s32.totalorder %s10179_s20, %s10180_s22  ;;  %p10187_p9 = scmp.lt.s32.totalorder %s10185_s11, %s10180_s22 }
  0x2d   : > { %p10183_p2 = pnand %p10181_p13, %p10152_p3  ;;  %p10188_p10 = por %p10187_p9, %p10186_p8 }
  0x2f   : > { %p10184_p7 = pneg %p10183_p2 }
  0x31   : > { %p10189_p11 = pnand %p10188_p10, %p10184_p7 }
  0x33   : > { %10192 = shalt.err (!%p10189_p11)
}
  0x34   : > { %s10285_s23 = smov 92416   ;;  %s10286_s25 = smov 46208  }
  0x35   : > { %s10287_s26 = smov 2888   ;;  %188 = sbr.rel (%p10345_p6) target bundleno = 1703 (0x6a7), region = 32 }
  0x36   : > { %10069 = dma.hbm_to_vmem [thread:$0]  (!%p10368_p0), %s175_s18, 184832, %s177_s30, %s165_s19, %s10285_s23, %s10286_s25, %s10287_s26  }
  0x37   : > { %s190_s28 = sand.u32 (!%p10345_p6), 1, %s10274_s13  }
  0x38   : > { %s10045_s29 = smul.u32 (!%p10345_p6), 722, %s190_s28  ;;  %s191_s6 = scalar_lea.sflag (!%p10345_p6), [#allocation3], %s190_s28 }
  0x3a   : > { %s10407_s7 = scalar_lea.vmem [#allocation2], %s10045_s29 }
  0x3b   : > { %10253 = dma.done.wait (%p10338_p5), %s191_s6, 11552  }
  0x3c   : > { %10255 = vsyncadd (%p10338_p5), %s191_s6, 4294955744  ;;  %s200_s8 = sand.u32 1, %s10329_s16   ;;  %s10046_s4 = smul.u32 11552, %s190_s28 }
  0x3d   : > { %s201_s30 = scalar_lea.sflag [#allocation6], %s200_s8 }
  0x3e   : > { %s10414_s9 = scalar_lea.vmem [#allocation5], %s10046_s4 }
  0x3f   : > { %10257 = dma.done.wait (%p10338_p5), %s201_s30, 184832  }
  0x40   : > { %10259 = vsyncadd (%p10338_p5), %s201_s30, 4294782464 }
  0x41   : > { %10261 = dma.done.wait (%p41_p1), [#allocation6], 16  }
  0x42   : > { %10263 = vsyncadd (%p41_p1), [#allocation6], 4294967280  ;;  %238 = sbr.rel (%p10028_p4) target bundleno = 73 (0x49), region = 48 }
  0x47   : > { %vm239_vm0 = vcmask 222208   ;;  %v10288_v0 = vmov 0.0  }
  0x48   : > { %240 = vst.msk [vmem:[#allocation8] sm:$0x3] %vm239_vm0, %v10288_v0 }
  0x49 PF: > { %v1416_v1 = vld [vmem:[%s10414_s9 + $0x21d8] sm:$0xf]  ;;  %v1418_v2 = vld [vmem:[%s10414_s9 + $0x21e8] sm:$0xf]  ;;  %v1417_v3 = vld [vmem:[%s10414_s9 + $0x21e0] sm:$0xf] }
  0x4a   : > { %2694 = vmatpush.xpose.msra.mxu0 %v1416_v1  ;;  %2734 = vmatpush.xpose.msra.mxu2 %v1418_v2  ;;  %v1419_v4 = vld [vmem:[%s10414_s9 + $0x21f0] sm:$0xf]  ;;  %v1057_v6 = vld [vmem:[%s10414_s9 + $0x16a0] sm:$0xff]  ;;  %v1056_v7 = vld [vmem:[%s10414_s9 + $0x1698] sm:$0xff]  ;;  %vm9903_vm1 = vcmask 222208   ;;  %p10035_p1 = scmp.ne.s32.totalorder %s10329_s16, 1 }
  0x4b   : > { %2714 = vmatpush.xpose.msra.mxu1 %v1417_v3  ;;  %2754 = vmatpush.xpose.msra.mxu3 %v1419_v4  ;;  %v1055_v5 = vld [vmem:[%s10414_s9 + $0x1690] sm:$0xff]  ;;  %v1058_v8 = vld [vmem:[%s10414_s9 + $0x16a8] sm:$0xff]  ;;  %v696_v10 = vld [vmem:[%s10414_s9 + $0xb58] sm:$0xff] }
  0x4c   : > { %v694_v9 = vld [vmem:[%s10414_s9 + $0xb48] sm:$0xff]  ;;  %v695_v11 = vld [vmem:[%s10414_s9 + $0xb50] sm:$0xff]  ;;  %v697_v12 = vld [vmem:[%s10414_s9 + $0xb60] sm:$0xff] }
  0x4d   : > { %v242_v13 = vld [vmem:[%s10407_s7] sm:$0xff]  ;;  %v1420_v16 = vld [vmem:[%s10414_s9 + $0x21f8] sm:$0xf]  ;;  %v1422_v17 = vld [vmem:[%s10414_s9 + $0x2208] sm:$0xf] }
  0x4e   : > { %2695 = vmatpush.xpose.msra.mxu0 %v1055_v5  ;;  %2735 = vmatpush.xpose.msra.mxu2 %v1057_v6  ;;  %1868 = vst [vmem:[#allocation1] ss:$4 sm:$0xff] %v242_v13  ;;  %v333_v14 = vld [vmem:[%s10414_s9] sm:$0xff]  ;;  %v335_v15 = vld [vmem:[%s10414_s9 + $0x10] sm:$0xff]  ;;  %v334_v18 = vld [vmem:[%s10414_s9 + $0x8] sm:$0xff] }
  0x4f   : > { %2715 = vmatpush.xpose.msra.mxu1 %v1056_v7  ;;  %2755 = vmatpush.xpose.msra.mxu3 %v1058_v8  ;;  %v336_v19 = vld [vmem:[%s10414_s9 + $0x18] sm:$0xff]  ;;  %v1421_v21 = vld [vmem:[%s10414_s9 + $0x2200] sm:$0xf]  ;;  %v1423_v22 = vld [vmem:[%s10414_s9 + $0x2210] sm:$0xf] }
  0x50   : > { %v243_v20 = vld [vmem:[%s10407_s7 + $0x8] sm:$0xff]  ;;  %v244_v33 = vld [vmem:[%s10407_s7 + $0x10] sm:$0xff]  ;;  %v245_v48 = vld [vmem:[%s10407_s7 + $0x18] sm:$0xff] }
  0x51   : > { %1870 = vst [vmem:[#allocation1 + $0x20] ss:$4 sm:$0xff] %v243_v20  ;;  %v1059_v23 = vld [vmem:[%s10414_s9 + $0x16b0] sm:$0xff]  ;;  %v1061_v24 = vld [vmem:[%s10414_s9 + $0x16c0] sm:$0xff]  ;;  %v1060_v25 = vld [vmem:[%s10414_s9 + $0x16b8] sm:$0xff] }
  0x52   : > { %2696 = vmatpush.xpose.msra.mxu0 %v694_v9  ;;  %2736 = vmatpush.xpose.msra.mxu2 %v696_v10  ;;  %v1062_v26 = vld [vmem:[%s10414_s9 + $0x16c8] sm:$0xff]  ;;  %v700_v32 = vld [vmem:[%s10414_s9 + $0xb78] sm:$0xff]  ;;  %v699_v34 = vld [vmem:[%s10414_s9 + $0xb70] sm:$0xff] }
  0x53   : > { %2716 = vmatpush.xpose.msra.mxu1 %v695_v11  ;;  %2756 = vmatpush.xpose.msra.mxu3 %v697_v12  ;;  %v698_v31 = vld [vmem:[%s10414_s9 + $0xb68] sm:$0xff]  ;;  %v701_v35 = vld [vmem:[%s10414_s9 + $0xb80] sm:$0xff]  ;;  %v339_v37 = vld [vmem:[%s10414_s9 + $0x30] sm:$0xff] }
  0x54   : > { %v337_v36 = vld [vmem:[%s10414_s9 + $0x20] sm:$0xff]  ;;  %v1424_v38 = vld [vmem:[%s10414_s9 + $0x2218] sm:$0xf]  ;;  %v1426_v39 = vld [vmem:[%s10414_s9 + $0x2228] sm:$0xf] }
  0x55   : > { %v1873_v27 = vld.sshfl [vmem:[#allocation1 + $0x10] sm:$0xff pattern:$0x73625140]  ;;  %v1871_v28 = vld.sshfl [vmem:[#allocation1] sm:$0xff pattern:$0x73625140] }
  0x56   : > { %2697 = vmatpush.xpose.msra.mxu0 %v333_v14  ;;  %2737 = vmatpush.xpose.msra.mxu2 %v335_v15  ;;  %v1874_v29 = vld.sshfl [vmem:[#allocation1 + $0x18] sm:$0xff pattern:$0x73625140]  ;;  %v1872_v30 = vld.sshfl [vmem:[#allocation1 + $0x8] sm:$0xff pattern:$0x73625140] }
  0x57   : > { %2717 = vmatpush.xpose.msra.mxu1 %v334_v18  ;;  %2757 = vmatpush.xpose.msra.mxu3 %v336_v19  ;;  %1879 = vst [vmem:[#allocation1] ss:$4 sm:$0xff] %v244_v33  ;;  %v338_v40 = vld [vmem:[%s10414_s9 + $0x28] sm:$0xff]  ;;  %v1425_v41 = vld [vmem:[%s10414_s9 + $0x2220] sm:$0xf]  ;;  %v340_v42 = vld [vmem:[%s10414_s9 + $0x38] sm:$0xff] }
  0x58   : > { %v1427_v43 = vld [vmem:[%s10414_s9 + $0x2230] sm:$0xf]  ;;  %v1877_v44 = vld.sshfl [vmem:[#allocation1 + $0x30] sm:$0xff pattern:$0x73625140]  ;;  %v1064_v51 = vld [vmem:[%s10414_s9 + $0x16d8] sm:$0xff] }
  0x59   : > { %2738 = vmatmul.f32.vlgmr.msra.gmra.mxu2 %v1873_v27  ;;  %2698 = vmatmul.f32.vlgmr.msra.gmra.mxu0 %v1871_v28  ;;  %v1875_v45 = vld.sshfl [vmem:[#allocation1 + $0x20] sm:$0xff pattern:$0x73625140]  ;;  %v1878_v46 = vld.sshfl [vmem:[#allocation1 + $0x38] sm:$0xff pattern:$0x73625140] }
  0x5a   : > { %2774 = vmatpush.xpose.msrb.mxu0 %v1420_v16  ;;  %2814 = vmatpush.xpose.msrb.mxu2 %v1422_v17  ;;  %v1876_v47 = vld.sshfl [vmem:[#allocation1 + $0x28] sm:$0xff pattern:$0x73625140]  ;;  %v1063_v49 = vld [vmem:[%s10414_s9 + $0x16d0] sm:$0xff]  ;;  %v1066_v52 = vld [vmem:[%s10414_s9 + $0x16e8] sm:$0xff] }
  0x5b   : > { %2794 = vmatpush.xpose.msrb.mxu1 %v1421_v21  ;;  %2834 = vmatpush.xpose.msrb.mxu3 %v1423_v22  ;;  %v1065_v50 = vld [vmem:[%s10414_s9 + $0x16e0] sm:$0xff]  ;;  %1880 = vst [vmem:[#allocation1 + $0x20] ss:$4 sm:$0xff] %v245_v48  ;;  %v702_v53 = vld [vmem:[%s10414_s9 + $0xb88] sm:$0xff]  ;;  %v704_v57 = vld [vmem:[%s10414_s9 + $0xb98] sm:$0xff] }
  0x5c   : > { %2758 = vmatmul.f32.vlgmr.msra.gmra.mxu3 %v1874_v29  ;;  %2718 = vmatmul.f32.vlgmr.msra.gmra.mxu1 %v1872_v30  ;;  %v246_v59 = vld [vmem:[%s10407_s7 + $0x20] sm:$0xff]  ;;  %v1428_v0 = vld [vmem:[%s10414_s9 + $0x2238] sm:$0xf]  ;;  %v1430_v1 = vld [vmem:[%s10414_s9 + $0x2248] sm:$0xf] }
  0x5d   : > { %v703_v60 = vld [vmem:[%s10414_s9 + $0xb90] sm:$0xff]  ;;  %v705_v61 = vld [vmem:[%s10414_s9 + $0xba0] sm:$0xff]  ;;  %v342_v2 = vld [vmem:[%s10414_s9 + $0x48] sm:$0xff] }
  0x5e   : > { %2775 = vmatpush.xpose.msrb.mxu0 %v1059_v23  ;;  %2815 = vmatpush.xpose.msrb.mxu2 %v1061_v24  ;;  %v1881_v54 = vld.sshfl [vmem:[#allocation1] sm:$0xff pattern:$0x73625140]  ;;  %v1883_v55 = vld.sshfl [vmem:[#allocation1 + $0x10] sm:$0xff pattern:$0x73625140] }
  0x5f   : > { %2795 = vmatpush.xpose.msrb.mxu1 %v1060_v25  ;;  %2835 = vmatpush.xpose.msrb.mxu3 %v1062_v26  ;;  %v1882_v56 = vld.sshfl [vmem:[#allocation1 + $0x8] sm:$0xff pattern:$0x73625140]  ;;  %v1884_v58 = vld.sshfl [vmem:[#allocation1 + $0x18] sm:$0xff pattern:$0x73625140] }
  0x60   : > { %1889 = vst [vmem:[#allocation1] ss:$4 sm:$0xff] %v246_v59  ;;  %v341_v62 = vld [vmem:[%s10414_s9 + $0x40] sm:$0xff]  ;;  %v343_v63 = vld [vmem:[%s10414_s9 + $0x50] sm:$0xff]  ;;  %v344_v3 = vld [vmem:[%s10414_s9 + $0x58] sm:$0xff] }
  0x61   : > { %v1429_v4 = vld [vmem:[%s10414_s9 + $0x2240] sm:$0xf]  ;;  %v1431_v5 = vld [vmem:[%s10414_s9 + $0x2250] sm:$0xf]  ;;  %v247_v12 = vld [vmem:[%s10407_s7 + $0x28] sm:$0xff] }
  0x62   : > { %2776 = vmatpush.xpose.msrb.mxu0 %v698_v31  ;;  %2816 = vmatpush.xpose.msrb.mxu2 %v700_v32  ;;  %v1067_v6 = vld [vmem:[%s10414_s9 + $0x16f0] sm:$0xff]  ;;  %v1069_v7 = vld [vmem:[%s10414_s9 + $0x1700] sm:$0xff]  ;;  %v1068_v13 = vld [vmem:[%s10414_s9 + $0x16f8] sm:$0xff] }
  0x63   : > { %2796 = vmatpush.xpose.msrb.mxu1 %v699_v34  ;;  %2836 = vmatpush.xpose.msrb.mxu3 %v701_v35  ;;  %v1885_v8 = vld.sshfl [vmem:[#allocation1 + $0x20] sm:$0xff pattern:$0x73625140]  ;;  %v1887_v9 = vld.sshfl [vmem:[#allocation1 + $0x30] sm:$0xff pattern:$0x73625140] }
  0x64   : > { %v1886_v10 = vld.sshfl [vmem:[#allocation1 + $0x28] sm:$0xff pattern:$0x73625140]  ;;  %v1888_v11 = vld.sshfl [vmem:[#allocation1 + $0x38] sm:$0xff pattern:$0x73625140] }
  0x65   : > { %v1070_v14 = vld [vmem:[%s10414_s9 + $0x1708] sm:$0xff]  ;;  %1890 = vst [vmem:[#allocation1 + $0x20] ss:$4 sm:$0xff] %v247_v12  ;;  %v708_v16 = vld [vmem:[%s10414_s9 + $0xbb8] sm:$0xff]  ;;  %v707_v17 = vld [vmem:[%s10414_s9 + $0xbb0] sm:$0xff] }
  0x66   : > { %2777 = vmatpush.xpose.msrb.mxu0 %v337_v36  ;;  %2817 = vmatpush.xpose.msrb.mxu2 %v339_v37  ;;  %v706_v15 = vld [vmem:[%s10414_s9 + $0xba8] sm:$0xff]  ;;  %v709_v18 = vld [vmem:[%s10414_s9 + $0xbc0] sm:$0xff]  ;;  %v347_v20 = vld [vmem:[%s10414_s9 + $0x70] sm:$0xff] }
  0x67   : > { %2797 = vmatpush.xpose.msrb.mxu1 %v338_v40  ;;  %2837 = vmatpush.xpose.msrb.mxu3 %v340_v42  ;;  %v345_v19 = vld [vmem:[%s10414_s9 + $0x60] sm:$0xff]  ;;  %v1432_v21 = vld [vmem:[%s10414_s9 + $0x2258] sm:$0xf]  ;;  %v1434_v22 = vld [vmem:[%s10414_s9 + $0x2268] sm:$0xf] }
  0x68   : > { %v346_v23 = vld [vmem:[%s10414_s9 + $0x68] sm:$0xff]  ;;  %v348_v24 = vld [vmem:[%s10414_s9 + $0x78] sm:$0xff]  ;;  %v1433_v25 = vld [vmem:[%s10414_s9 + $0x2260] sm:$0xf] }
  0x69   : > { %2818 = vmatmul.f32.vlgmr.msrb.gmra.mxu2 %v1877_v44  ;;  %2778 = vmatmul.f32.vlgmr.msrb.gmra.mxu0 %v1875_v45  ;;  %v1435_v26 = vld [vmem:[%s10414_s9 + $0x2270] sm:$0xf]  ;;  %v1073_v28 = vld [vmem:[%s10414_s9 + $0x1720] sm:$0xff]  ;;  %v1891_v29 = vld.sshfl [vmem:[#allocation1] sm:$0xff pattern:$0x73625140] }
  0x6a   : > { %2854 = vmatpush.xpose.msra.mxu0 %v1424_v38  ;;  %2894 = vmatpush.xpose.msra.mxu2 %v1426_v39  ;;  %v1071_v27 = vld [vmem:[%s10414_s9 + $0x1710] sm:$0xff]  ;;  %v1893_v30 = vld.sshfl [vmem:[#allocation1 + $0x10] sm:$0xff pattern:$0x73625140]  ;;  %v1072_v34 = vld [vmem:[%s10414_s9 + $0x1718] sm:$0xff] }
  0x6b   : > { %2874 = vmatpush.xpose.msra.mxu1 %v1425_v41  ;;  %2914 = vmatpush.xpose.msra.mxu3 %v1427_v43  ;;  %v1892_v31 = vld.sshfl [vmem:[#allocation1 + $0x8] sm:$0xff pattern:$0x73625140]  ;;  %v1894_v32 = vld.sshfl [vmem:[#allocation1 + $0x18] sm:$0xff pattern:$0x73625140] }
  0x6c   : > { %2838 = vmatmul.f32.vlgmr.msrb.gmra.mxu3 %v1878_v46  ;;  %2798 = vmatmul.f32.vlgmr.msrb.gmra.mxu1 %v1876_v47  ;;  %v248_v33 = vld [vmem:[%s10407_s7 + $0x30] sm:$0xff]  ;;  %v1436_v42 = vld [vmem:[%s10414_s9 + $0x2278] sm:$0xf]  ;;  %v1438_v43 = vld [vmem:[%s10414_s9 + $0x2288] sm:$0xf] }
  0x6d   : > { %v1074_v35 = vld [vmem:[%s10414_s9 + $0x1728] sm:$0xff]  ;;  %1899 = vst [vmem:[#allocation1] ss:$4 sm:$0xff] %v248_v33  ;;  %v712_v37 = vld [vmem:[%s10414_s9 + $0xbd8] sm:$0xff]  ;;  %v711_v38 = vld [vmem:[%s10414_s9 + $0xbd0] sm:$0xff] }
  0x6e   : > { %2855 = vmatpush.xpose.msra.mxu0 %v1063_v49  ;;  %2895 = vmatpush.xpose.msra.mxu2 %v1065_v50  ;;  %v710_v36 = vld [vmem:[%s10414_s9 + $0xbc8] sm:$0xff]  ;;  %v713_v39 = vld [vmem:[%s10414_s9 + $0xbe0] sm:$0xff]  ;;  %v351_v41 = vld [vmem:[%s10414_s9 + $0x90] sm:$0xff] }
  0x6f   : > { %2875 = vmatpush.xpose.msra.mxu1 %v1064_v51  ;;  %2915 = vmatpush.xpose.msra.mxu3 %v1066_v52  ;;  %v349_v40 = vld [vmem:[%s10414_s9 + $0x80] sm:$0xff]  ;;  %v350_v44 = vld [vmem:[%s10414_s9 + $0x88] sm:$0xff]  ;;  %v352_v45 = vld [vmem:[%s10414_s9 + $0x98] sm:$0xff] }
  0x70   : > { %v1437_v46 = vld [vmem:[%s10414_s9 + $0x2280] sm:$0xf]  ;;  %v1439_v47 = vld [vmem:[%s10414_s9 + $0x2290] sm:$0xf]  ;;  %v1080_v12 = vld [vmem:[%s10414_s9 + $0x1758] sm:$0xff] }
  0x71   : > { %v1075_v48 = vld [vmem:[%s10414_s9 + $0x1730] sm:$0xff]  ;;  %v1077_v49 = vld [vmem:[%s10414_s9 + $0x1740] sm:$0xff]  ;;  %v1084_v33 = vld [vmem:[%s10414_s9 + $0x1778] sm:$0xff] }
  0x72   : > { %2856 = vmatpush.xpose.msra.mxu0 %v702_v53  ;;  %2896 = vmatpush.xpose.msra.mxu2 %v704_v57  ;;  %v1895_v50 = vld.sshfl [vmem:[#allocation1 + $0x20] sm:$0xff pattern:$0x73625140]  ;;  %v1897_v51 = vld.sshfl [vmem:[#allocation1 + $0x30] sm:$0xff pattern:$0x73625140] }
  0x73   : > { %2876 = vmatpush.xpose.msra.mxu1 %v703_v60  ;;  %2916 = vmatpush.xpose.msra.mxu3 %v705_v61  ;;  %v1896_v52 = vld.sshfl [vmem:[#allocation1 + $0x28] sm:$0xff pattern:$0x73625140]  ;;  %v1898_v53 = vld.sshfl [vmem:[#allocation1 + $0x38] sm:$0xff pattern:$0x73625140] }
  0x74   : > { %v714_v57 = vld [vmem:[%s10414_s9 + $0xbe8] sm:$0xff]  ;;  %v715_v59 = vld [vmem:[%s10414_s9 + $0xbf0] sm:$0xff]  ;;  %v717_v60 = vld [vmem:[%s10414_s9 + $0xc00] sm:$0xff] }
  0x75   : > { %v353_v61 = vld [vmem:[%s10414_s9 + $0xa0] sm:$0xff] }
  0x76   : > { %2857 = vmatpush.xpose.msra.mxu0 %v341_v62  ;;  %2897 = vmatpush.xpose.msra.mxu2 %v343_v63  ;;  %v355_v62 = vld [vmem:[%s10414_s9 + $0xb0] sm:$0xff]  ;;  %v1440_v63 = vld [vmem:[%s10414_s9 + $0x2298] sm:$0xf] }
  0x77   : > { %2877 = vmatpush.xpose.msra.mxu1 %v342_v2  ;;  %2917 = vmatpush.xpose.msra.mxu3 %v344_v3  ;;  %v356_v2 = vld [vmem:[%s10414_s9 + $0xb8] sm:$0xff]  ;;  %v1441_v3 = vld [vmem:[%s10414_s9 + $0x22a0] sm:$0xf] }
  0x79   : > { %2858 = vmatmul.f32.vlgmr.msra.gmra.mxu0 %v1881_v54  ;;  %2898 = vmatmul.f32.vlgmr.msra.gmra.mxu2 %v1883_v55  ;;  %v249_v54 = vld [vmem:[%s10407_s7 + $0x38] sm:$0xff] }
  0x7a   : > { %2934 = vmatpush.xpose.msrb.mxu0 %v1428_v0  ;;  %2974 = vmatpush.xpose.msrb.mxu2 %v1430_v1  ;;  %v1076_v55 = vld [vmem:[%s10414_s9 + $0x1738] sm:$0xff]  ;;  %1900 = vst [vmem:[#allocation1 + $0x20] ss:$4 sm:$0xff] %v249_v54  ;;  %v1442_v0 = vld [vmem:[%s10414_s9 + $0x22a8] sm:$0xf] }
  0x7b   : > { %2954 = vmatpush.xpose.msrb.mxu1 %v1429_v4  ;;  %2994 = vmatpush.xpose.msrb.mxu3 %v1431_v5  ;;  %v354_v1 = vld [vmem:[%s10414_s9 + $0xa8] sm:$0xff]  ;;  %v1443_v4 = vld [vmem:[%s10414_s9 + $0x22b0] sm:$0xf]  ;;  %v1088_v54 = vld [vmem:[%s10414_s9 + $0x1798] sm:$0xff] }
  0x7c   : > { %2878 = vmatmul.f32.vlgmr.msra.gmra.mxu1 %v1882_v56  ;;  %2918 = vmatmul.f32.vlgmr.msra.gmra.mxu3 %v1884_v58  ;;  %v1078_v56 = vld [vmem:[%s10414_s9 + $0x1748] sm:$0xff]  ;;  %v716_v58 = vld [vmem:[%s10414_s9 + $0xbf8] sm:$0xff]  ;;  %v1079_v5 = vld [vmem:[%s10414_s9 + $0x1750] sm:$0xff] }
  0x7e   : > { %2935 = vmatpush.xpose.msrb.mxu0 %v1067_v6  ;;  %2975 = vmatpush.xpose.msrb.mxu2 %v1069_v7  ;;  %v1081_v6 = vld [vmem:[%s10414_s9 + $0x1760] sm:$0xff]  ;;  %v1901_v7 = vld.sshfl [vmem:[#allocation1] sm:$0xff pattern:$0x73625140] }
  0x7f   : > { %2955 = vmatpush.xpose.msrb.mxu1 %v1068_v13  ;;  %2995 = vmatpush.xpose.msrb.mxu3 %v1070_v14  ;;  %v1082_v13 = vld [vmem:[%s10414_s9 + $0x1768] sm:$0xff] }
  0x80   : > { %v718_v14 = vld [vmem:[%s10414_s9 + $0xc08] sm:$0xff] }
  0x82   : > { %2936 = vmatpush.xpose.msrb.mxu0 %v706_v15  ;;  %2976 = vmatpush.xpose.msrb.mxu2 %v708_v16  ;;  %v720_v15 = vld [vmem:[%s10414_s9 + $0xc18] sm:$0xff]  ;;  %v719_v16 = vld [vmem:[%s10414_s9 + $0xc10] sm:$0xff] }
  0x83   : > { %2956 = vmatpush.xpose.msrb.mxu1 %v707_v17  ;;  %2996 = vmatpush.xpose.msrb.mxu3 %v709_v18  ;;  %v721_v17 = vld [vmem:[%s10414_s9 + $0xc20] sm:$0xff] }
  0x84   : > { %v357_v18 = vld [vmem:[%s10414_s9 + $0xc0] sm:$0xff] }
  0x86   : > { %2937 = vmatpush.xpose.msrb.mxu0 %v345_v19  ;;  %2977 = vmatpush.xpose.msrb.mxu2 %v347_v20  ;;  %v359_v19 = vld [vmem:[%s10414_s9 + $0xd0] sm:$0xff]  ;;  %v1444_v20 = vld [vmem:[%s10414_s9 + $0x22b8] sm:$0xf] }
  0x87   : > { %2957 = vmatpush.xpose.msrb.mxu1 %v346_v23  ;;  %2997 = vmatpush.xpose.msrb.mxu3 %v348_v24  ;;  %v360_v23 = vld [vmem:[%s10414_s9 + $0xd8] sm:$0xff]  ;;  %v1445_v24 = vld [vmem:[%s10414_s9 + $0x22c0] sm:$0xf] }
  0x89   : > { %2938 = vmatmul.f32.vlgmr.msrb.gmra.mxu0 %v1885_v8  ;;  %2978 = vmatmul.f32.vlgmr.msrb.gmra.mxu2 %v1887_v9  ;;  %v1903_v8 = vld.sshfl [vmem:[#allocation1 + $0x10] sm:$0xff pattern:$0x73625140]  ;;  %v1902_v9 = vld.sshfl [vmem:[#allocation1 + $0x8] sm:$0xff pattern:$0x73625140] }
  0x8a   : > { %3014 = vmatpush.xpose.msra.mxu0 %v1432_v21  ;;  %3054 = vmatpush.xpose.msra.mxu2 %v1434_v22  ;;  %v1446_v21 = vld [vmem:[%s10414_s9 + $0x22c8] sm:$0xf] }
  0x8b   : > { %3034 = vmatpush.xpose.msra.mxu1 %v1433_v25  ;;  %3074 = vmatpush.xpose.msra.mxu3 %v1435_v26  ;;  %v358_v22 = vld [vmem:[%s10414_s9 + $0xc8] sm:$0xff]  ;;  %v1447_v25 = vld [vmem:[%s10414_s9 + $0x22d0] sm:$0xf] }
  0x8c   : > { %2958 = vmatmul.f32.vlgmr.msrb.gmra.mxu1 %v1886_v10  ;;  %2998 = vmatmul.f32.vlgmr.msrb.gmra.mxu3 %v1888_v11  ;;  %v1904_v10 = vld.sshfl [vmem:[#allocation1 + $0x18] sm:$0xff pattern:$0x73625140] }
  0x8d   : > { %v250_v11 = vld [vmem:[%s10407_s7 + $0x40] sm:$0xff] }
  0x8e   : > { %3015 = vmatpush.xpose.msra.mxu0 %v1071_v27  ;;  %3055 = vmatpush.xpose.msra.mxu2 %v1073_v28  ;;  %1909 = vst [vmem:[#allocation1] ss:$4 sm:$0xff] %v250_v11  ;;  %v1083_v26 = vld [vmem:[%s10414_s9 + $0x1770] sm:$0xff]  ;;  %v1085_v27 = vld [vmem:[%s10414_s9 + $0x1780] sm:$0xff]  ;;  %v1092_v11 = vld [vmem:[%s10414_s9 + $0x17b8] sm:$0xff] }
  0x8f   : > { %3035 = vmatpush.xpose.msra.mxu1 %v1072_v34  ;;  %3075 = vmatpush.xpose.msra.mxu3 %v1074_v35  ;;  %v1905_v28 = vld.sshfl [vmem:[#allocation1 + $0x20] sm:$0xff pattern:$0x73625140]  ;;  %v1086_v34 = vld [vmem:[%s10414_s9 + $0x1788] sm:$0xff] }
  0x90   : > { %v722_v35 = vld [vmem:[%s10414_s9 + $0xc28] sm:$0xff] }
  0x92   : > { %3016 = vmatpush.xpose.msra.mxu0 %v710_v36  ;;  %3056 = vmatpush.xpose.msra.mxu2 %v712_v37  ;;  %v724_v36 = vld [vmem:[%s10414_s9 + $0xc38] sm:$0xff]  ;;  %v723_v37 = vld [vmem:[%s10414_s9 + $0xc30] sm:$0xff] }
  0x93   : > { %3036 = vmatpush.xpose.msra.mxu1 %v711_v38  ;;  %3076 = vmatpush.xpose.msra.mxu3 %v713_v39  ;;  %v725_v38 = vld [vmem:[%s10414_s9 + $0xc40] sm:$0xff] }
  0x94   : > { %v361_v39 = vld [vmem:[%s10414_s9 + $0xe0] sm:$0xff] }
  0x96   : > { %3017 = vmatpush.xpose.msra.mxu0 %v349_v40  ;;  %3057 = vmatpush.xpose.msra.mxu2 %v351_v41  ;;  %v363_v40 = vld [vmem:[%s10414_s9 + $0xf0] sm:$0xff]  ;;  %v1448_v41 = vld [vmem:[%s10414_s9 + $0x22d8] sm:$0xf] }
  0x97   : > { %3037 = vmatpush.xpose.msra.mxu1 %v350_v44  ;;  %3077 = vmatpush.xpose.msra.mxu3 %v352_v45  ;;  %v364_v44 = vld [vmem:[%s10414_s9 + $0xf8] sm:$0xff]  ;;  %v1449_v45 = vld [vmem:[%s10414_s9 + $0x22e0] sm:$0xf] }
  0x99   : > { %3018 = vmatmul.f32.vlgmr.msra.gmra.mxu0 %v1891_v29  ;;  %3058 = vmatmul.f32.vlgmr.msra.gmra.mxu2 %v1893_v30  ;;  %v1907_v29 = vld.sshfl [vmem:[#allocation1 + $0x30] sm:$0xff pattern:$0x73625140]  ;;  %v1906_v30 = vld.sshfl [vmem:[#allocation1 + $0x28] sm:$0xff pattern:$0x73625140] }
  0x9a   : > { %3094 = vmatpush.xpose.msrb.mxu0 %v1436_v42  ;;  %3134 = vmatpush.xpose.msrb.mxu2 %v1438_v43  ;;  %v1450_v42 = vld [vmem:[%s10414_s9 + $0x22e8] sm:$0xf] }
  0x9b   : > { %3114 = vmatpush.xpose.msrb.mxu1 %v1437_v46  ;;  %3154 = vmatpush.xpose.msrb.mxu3 %v1439_v47  ;;  %v362_v43 = vld [vmem:[%s10414_s9 + $0xe8] sm:$0xff]  ;;  %v1451_v46 = vld [vmem:[%s10414_s9 + $0x22f0] sm:$0xf] }
  0x9c   : > { %3038 = vmatmul.f32.vlgmr.msra.gmra.mxu1 %v1892_v31  ;;  %3078 = vmatmul.f32.vlgmr.msra.gmra.mxu3 %v1894_v32  ;;  %v1908_v31 = vld.sshfl [vmem:[#allocation1 + $0x38] sm:$0xff pattern:$0x73625140]  ;;  %v251_v32 = vld [vmem:[%s10407_s7 + $0x48] sm:$0xff] }
  0x9d   : > { %1910 = vst [vmem:[#allocation1 + $0x20] ss:$4 sm:$0xff] %v251_v32  ;;  %v1087_v47 = vld [vmem:[%s10414_s9 + $0x1790] sm:$0xff]  ;;  %v1096_v32 = vld [vmem:[%s10414_s9 + $0x17d8] sm:$0xff] }
  0x9e   : > { %3095 = vmatpush.xpose.msrb.mxu0 %v1075_v48  ;;  %3135 = vmatpush.xpose.msrb.mxu2 %v1077_v49  ;;  %v1089_v48 = vld [vmem:[%s10414_s9 + $0x17a0] sm:$0xff]  ;;  %v1911_v49 = vld.sshfl [vmem:[#allocation1] sm:$0xff pattern:$0x73625140] }
  0x9f   : > { %3115 = vmatpush.xpose.msrb.mxu1 %v1076_v55  ;;  %3155 = vmatpush.xpose.msrb.mxu3 %v1078_v56  ;;  %v1090_v55 = vld [vmem:[%s10414_s9 + $0x17a8] sm:$0xff] }
  0xa0   : > { %v726_v56 = vld [vmem:[%s10414_s9 + $0xc48] sm:$0xff] }
  0xa2   : > { %3096 = vmatpush.xpose.msrb.mxu0 %v714_v57  ;;  %3136 = vmatpush.xpose.msrb.mxu2 %v716_v58  ;;  %v728_v57 = vld [vmem:[%s10414_s9 + $0xc58] sm:$0xff]  ;;  %v727_v58 = vld [vmem:[%s10414_s9 + $0xc50] sm:$0xff] }
  0xa3   : > { %3116 = vmatpush.xpose.msrb.mxu1 %v715_v59  ;;  %3156 = vmatpush.xpose.msrb.mxu3 %v717_v60  ;;  %v729_v59 = vld [vmem:[%s10414_s9 + $0xc60] sm:$0xff] }
  0xa4   : > { %v365_v60 = vld [vmem:[%s10414_s9 + $0x100] sm:$0xff] }
  0xa6   : > { %3097 = vmatpush.xpose.msrb.mxu0 %v353_v61  ;;  %3137 = vmatpush.xpose.msrb.mxu2 %v355_v62  ;;  %v367_v61 = vld [vmem:[%s10414_s9 + $0x110] sm:$0xff]  ;;  %v1452_v62 = vld [vmem:[%s10414_s9 + $0x22f8] sm:$0xf] }
  0xa7   : > { %3117 = vmatpush.xpose.msrb.mxu1 %v354_v1  ;;  %3157 = vmatpush.xpose.msrb.mxu3 %v356_v2  ;;  %v368_v1 = vld [vmem:[%s10414_s9 + $0x118] sm:$0xff]  ;;  %v1453_v2 = vld [vmem:[%s10414_s9 + $0x2300] sm:$0xf] }
  0xa9   : > { %3098 = vmatmul.f32.vlgmr.msrb.gmra.mxu0 %v1895_v50  ;;  %3138 = vmatmul.f32.vlgmr.msrb.gmra.mxu2 %v1897_v51  ;;  %v1913_v50 = vld.sshfl [vmem:[#allocation1 + $0x10] sm:$0xff pattern:$0x73625140]  ;;  %v1912_v51 = vld.sshfl [vmem:[#allocation1 + $0x8] sm:$0xff pattern:$0x73625140] }
  0xaa   : > { %3174 = vmatpush.xpose.msra.mxu0 %v1440_v63  ;;  %3214 = vmatpush.xpose.msra.mxu2 %v1442_v0  ;;  %v1454_v63 = vld [vmem:[%s10414_s9 + $0x2308] sm:$0xf] }
  0xab   : > { %3194 = vmatpush.xpose.msra.mxu1 %v1441_v3  ;;  %3234 = vmatpush.xpose.msra.mxu3 %v1443_v4  ;;  %v366_v0 = vld [vmem:[%s10414_s9 + $0x108] sm:$0xff]  ;;  %v1455_v3 = vld [vmem:[%s10414_s9 + $0x2310] sm:$0xf] }
  0xac   : > { %3118 = vmatmul.f32.vlgmr.msrb.gmra.mxu1 %v1896_v52  ;;  %3158 = vmatmul.f32.vlgmr.msrb.gmra.mxu3 %v1898_v53  ;;  %v1914_v52 = vld.sshfl [vmem:[#allocation1 + $0x18] sm:$0xff pattern:$0x73625140] }
  0xad   : > { %v252_v53 = vld [vmem:[%s10407_s7 + $0x50] sm:$0xff] }
  0xae   : > { %3175 = vmatpush.xpose.msra.mxu0 %v1079_v5  ;;  %3215 = vmatpush.xpose.msra.mxu2 %v1081_v6  ;;  %1919 = vst [vmem:[#allocation1] ss:$4 sm:$0xff] %v252_v53  ;;  %v1091_v4 = vld [vmem:[%s10414_s9 + $0x17b0] sm:$0xff]  ;;  %v1093_v5 = vld [vmem:[%s10414_s9 + $0x17c0] sm:$0xff]  ;;  %v1100_v53 = vld [vmem:[%s10414_s9 + $0x17f8] sm:$0xff] }
  0xaf   : > { %3195 = vmatpush.xpose.msra.mxu1 %v1080_v12  ;;  %3235 = vmatpush.xpose.msra.mxu3 %v1082_v13  ;;  %v1915_v6 = vld.sshfl [vmem:[#allocation1 + $0x20] sm:$0xff pattern:$0x73625140]  ;;  %v1094_v12 = vld [vmem:[%s10414_s9 + $0x17c8] sm:$0xff] }
  0xb0   : > { %v730_v13 = vld [vmem:[%s10414_s9 + $0xc68] sm:$0xff] }
  0xb2   : > { %3176 = vmatpush.xpose.msra.mxu0 %v718_v14  ;;  %3216 = vmatpush.xpose.msra.mxu2 %v720_v15  ;;  %v732_v14 = vld [vmem:[%s10414_s9 + $0xc78] sm:$0xff]  ;;  %v731_v15 = vld [vmem:[%s10414_s9 + $0xc70] sm:$0xff] }
  0xb3   : > { %3196 = vmatpush.xpose.msra.mxu1 %v719_v16  ;;  %3236 = vmatpush.xpose.msra.mxu3 %v721_v17  ;;  %v733_v16 = vld [vmem:[%s10414_s9 + $0xc80] sm:$0xff] }
  0xb4   : > { %v369_v17 = vld [vmem:[%s10414_s9 + $0x120] sm:$0xff] }
  0xb6   : > { %3177 = vmatpush.xpose.msra.mxu0 %v357_v18  ;;  %3217 = vmatpush.xpose.msra.mxu2 %v359_v19  ;;  %v371_v18 = vld [vmem:[%s10414_s9 + $0x130] sm:$0xff]  ;;  %v1456_v19 = vld [vmem:[%s10414_s9 + $0x2318] sm:$0xf] }
  0xb7   : > { %3197 = vmatpush.xpose.msra.mxu1 %v358_v22  ;;  %3237 = vmatpush.xpose.msra.mxu3 %v360_v23  ;;  %v372_v22 = vld [vmem:[%s10414_s9 + $0x138] sm:$0xff]  ;;  %v1457_v23 = vld [vmem:[%s10414_s9 + $0x2320] sm:$0xf] }
  0xb9   : > { %3178 = vmatmul.f32.vlgmr.msra.gmra.mxu0 %v1901_v7  ;;  %3218 = vmatmul.f32.vlgmr.msra.gmra.mxu2 %v1903_v8  ;;  %v1917_v7 = vld.sshfl [vmem:[#allocation1 + $0x30] sm:$0xff pattern:$0x73625140]  ;;  %v1916_v8 = vld.sshfl [vmem:[#allocation1 + $0x28] sm:$0xff pattern:$0x73625140] }
  0xba   : > { %3254 = vmatpush.xpose.msrb.mxu0 %v1444_v20  ;;  %3294 = vmatpush.xpose.msrb.mxu2 %v1446_v21  ;;  %v1458_v20 = vld [vmem:[%s10414_s9 + $0x2328] sm:$0xf] }
  0xbb   : > { %3274 = vmatpush.xpose.msrb.mxu1 %v1445_v24  ;;  %3314 = vmatpush.xpose.msrb.mxu3 %v1447_v25  ;;  %v370_v21 = vld [vmem:[%s10414_s9 + $0x128] sm:$0xff]  ;;  %v1459_v24 = vld [vmem:[%s10414_s9 + $0x2330] sm:$0xf] }
  0xbc   : > { %3198 = vmatmul.f32.vlgmr.msra.gmra.mxu1 %v1902_v9  ;;  %3238 = vmatmul.f32.vlgmr.msra.gmra.mxu3 %v1904_v10  ;;  %v1918_v9 = vld.sshfl [vmem:[#allocation1 + $0x38] sm:$0xff pattern:$0x73625140] }
  0xbd   : > { %v253_v10 = vld [vmem:[%s10407_s7 + $0x58] sm:$0xff] }
  0xbe   : > { %3255 = vmatpush.xpose.msrb.mxu0 %v1083_v26  ;;  %3295 = vmatpush.xpose.msrb.mxu2 %v1085_v27  ;;  %1920 = vst [vmem:[#allocation1 + $0x20] ss:$4 sm:$0xff] %v253_v10  ;;  %v1095_v25 = vld [vmem:[%s10414_s9 + $0x17d0] sm:$0xff]  ;;  %v1097_v26 = vld [vmem:[%s10414_s9 + $0x17e0] sm:$0xff]  ;;  %v1104_v10 = vld [vmem:[%s10414_s9 + $0x1818] sm:$0xff] }
  0xbf   : > { %3275 = vmatpush.xpose.msrb.mxu1 %v1084_v33  ;;  %3315 = vmatpush.xpose.msrb.mxu3 %v1086_v34  ;;  %v1921_v27 = vld.sshfl [vmem:[#allocation1] sm:$0xff pattern:$0x73625140]  ;;  %v1098_v33 = vld [vmem:[%s10414_s9 + $0x17e8] sm:$0xff] }
  0xc0   : > { %v734_v34 = vld [vmem:[%s10414_s9 + $0xc88] sm:$0xff] }
  0xc2   : > { %3256 = vmatpush.xpose.msrb.mxu0 %v722_v35  ;;  %3296 = vmatpush.xpose.msrb.mxu2 %v724_v36  ;;  %v736_v35 = vld [vmem:[%s10414_s9 + $0xc98] sm:$0xff]  ;;  %v735_v36 = vld [vmem:[%s10414_s9 + $0xc90] sm:$0xff] }
  0xc3   : > { %3276 = vmatpush.xpose.msrb.mxu1 %v723_v37  ;;  %3316 = vmatpush.xpose.msrb.mxu3 %v725_v38  ;;  %v737_v37 = vld [vmem:[%s10414_s9 + $0xca0] sm:$0xff] }
  0xc4   : > { %v373_v38 = vld [vmem:[%s10414_s9 + $0x140] sm:$0xff] }
  0xc6   : > { %3257 = vmatpush.xpose.msrb.mxu0 %v361_v39  ;;  %3297 = vmatpush.xpose.msrb.mxu2 %v363_v40  ;;  %v375_v39 = vld [vmem:[%s10414_s9 + $0x150] sm:$0xff]  ;;  %v1460_v40 = vld [vmem:[%s10414_s9 + $0x2338] sm:$0xf] }
  0xc7   : > { %3277 = vmatpush.xpose.msrb.mxu1 %v362_v43  ;;  %3317 = vmatpush.xpose.msrb.mxu3 %v364_v44  ;;  %v376_v43 = vld [vmem:[%s10414_s9 + $0x158] sm:$0xff]  ;;  %v1461_v44 = vld [vmem:[%s10414_s9 + $0x2340] sm:$0xf] }
  0xc9   : > { %3258 = vmatmul.f32.vlgmr.msrb.gmra.mxu0 %v1905_v28  ;;  %3298 = vmatmul.f32.vlgmr.msrb.gmra.mxu2 %v1907_v29  ;;  %v1923_v28 = vld.sshfl [vmem:[#allocation1 + $0x10] sm:$0xff pattern:$0x73625140]  ;;  %v1922_v29 = vld.sshfl [vmem:[#allocation1 + $0x8] sm:$0xff pattern:$0x73625140] }
  0xca   : > { %3334 = vmatpush.xpose.msra.mxu0 %v1448_v41  ;;  %3374 = vmatpush.xpose.msra.mxu2 %v1450_v42  ;;  %v1462_v41 = vld [vmem:[%s10414_s9 + $0x2348] sm:$0xf] }
  0xcb   : > { %3354 = vmatpush.xpose.msra.mxu1 %v1449_v45  ;;  %3394 = vmatpush.xpose.msra.mxu3 %v1451_v46  ;;  %v374_v42 = vld [vmem:[%s10414_s9 + $0x148] sm:$0xff]  ;;  %v1463_v45 = vld [vmem:[%s10414_s9 + $0x2350] sm:$0xf] }
  0xcc   : > { %3278 = vmatmul.f32.vlgmr.msrb.gmra.mxu1 %v1906_v30  ;;  %3318 = vmatmul.f32.vlgmr.msrb.gmra.mxu3 %v1908_v31  ;;  %v1924_v30 = vld.sshfl [vmem:[#allocation1 + $0x18] sm:$0xff pattern:$0x73625140] }
  0xcd   : > { %v254_v31 = vld [vmem:[%s10407_s7 + $0x60] sm:$0xff] }
  0xce   : > { %3335 = vmatpush.xpose.msra.mxu0 %v1087_v47  ;;  %3375 = vmatpush.xpose.msra.mxu2 %v1089_v48  ;;  %1929 = vst [vmem:[#allocation1] ss:$4 sm:$0xff] %v254_v31  ;;  %v1099_v46 = vld [vmem:[%s10414_s9 + $0x17f0] sm:$0xff]  ;;  %v1101_v47 = vld [vmem:[%s10414_s9 + $0x1800] sm:$0xff]  ;;  %v1108_v31 = vld [vmem:[%s10414_s9 + $0x1838] sm:$0xff] }
  0xcf   : > { %3355 = vmatpush.xpose.msra.mxu1 %v1088_v54  ;;  %3395 = vmatpush.xpose.msra.mxu3 %v1090_v55  ;;  %v1925_v48 = vld.sshfl [vmem:[#allocation1 + $0x20] sm:$0xff pattern:$0x73625140]  ;;  %v1102_v54 = vld [vmem:[%s10414_s9 + $0x1808] sm:$0xff] }
  0xd0   : > { %v738_v55 = vld [vmem:[%s10414_s9 + $0xca8] sm:$0xff] }
  0xd2   : > { %3336 = vmatpush.xpose.msra.mxu0 %v726_v56  ;;  %3376 = vmatpush.xpose.msra.mxu2 %v728_v57  ;;  %v740_v56 = vld [vmem:[%s10414_s9 + $0xcb8] sm:$0xff]  ;;  %v739_v57 = vld [vmem:[%s10414_s9 + $0xcb0] sm:$0xff] }
  0xd3   : > { %3356 = vmatpush.xpose.msra.mxu1 %v727_v58  ;;  %3396 = vmatpush.xpose.msra.mxu3 %v729_v59  ;;  %v741_v58 = vld [vmem:[%s10414_s9 + $0xcc0] sm:$0xff] }
  0xd4   : > { %v377_v59 = vld [vmem:[%s10414_s9 + $0x160] sm:$0xff] }
  0xd6   : > { %3337 = vmatpush.xpose.msra.mxu0 %v365_v60  ;;  %3377 = vmatpush.xpose.msra.mxu2 %v367_v61  ;;  %v379_v60 = vld [vmem:[%s10414_s9 + $0x170] sm:$0xff]  ;;  %v1464_v61 = vld [vmem:[%s10414_s9 + $0x2358] sm:$0xf] }
  0xd7   : > { %3357 = vmatpush.xpose.msra.mxu1 %v366_v0  ;;  %3397 = vmatpush.xpose.msra.mxu3 %v368_v1  ;;  %v380_v0 = vld [vmem:[%s10414_s9 + $0x178] sm:$0xff]  ;;  %v1465_v1 = vld [vmem:[%s10414_s9 + $0x2360] sm:$0xf] }
  0xd9   : > { %3338 = vmatmul.f32.vlgmr.msra.gmra.mxu0 %v1911_v49  ;;  %3378 = vmatmul.f32.vlgmr.msra.gmra.mxu2 %v1913_v50  ;;  %v1927_v49 = vld.sshfl [vmem:[#allocation1 + $0x30] sm:$0xff pattern:$0x73625140]  ;;  %v1926_v50 = vld.sshfl [vmem:[#allocation1 + $0x28] sm:$0xff pattern:$0x73625140] }
  0xda   : > { %3414 = vmatpush.xpose.msrb.mxu0 %v1452_v62  ;;  %3454 = vmatpush.xpose.msrb.mxu2 %v1454_v63  ;;  %v1466_v62 = vld [vmem:[%s10414_s9 + $0x2368] sm:$0xf] }
  0xdb   : > { %3434 = vmatpush.xpose.msrb.mxu1 %v1453_v2  ;;  %3474 = vmatpush.xpose.msrb.mxu3 %v1455_v3  ;;  %v378_v63 = vld [vmem:[%s10414_s9 + $0x168] sm:$0xff]  ;;  %v1467_v2 = vld [vmem:[%s10414_s9 + $0x2370] sm:$0xf] }
  0xdc   : > { %3358 = vmatmul.f32.vlgmr.msra.gmra.mxu1 %v1912_v51  ;;  %3398 = vmatmul.f32.vlgmr.msra.gmra.mxu3 %v1914_v52  ;;  %v1928_v51 = vld.sshfl [vmem:[#allocation1 + $0x38] sm:$0xff pattern:$0x73625140]  ;;  %v255_v52 = vld [vmem:[%s10407_s7 + $0x68] sm:$0xff] }
  0xdd   : > { %1930 = vst [vmem:[#allocation1 + $0x20] ss:$4 sm:$0xff] %v255_v52  ;;  %v1103_v3 = vld [vmem:[%s10414_s9 + $0x1810] sm:$0xff]  ;;  %v1112_v52 = vld [vmem:[%s10414_s9 + $0x1858] sm:$0xff] }
  0xde   : > { %3415 = vmatpush.xpose.msrb.mxu0 %v1091_v4  ;;  %3455 = vmatpush.xpose.msrb.mxu2 %v1093_v5  ;;  %v1105_v4 = vld [vmem:[%s10414_s9 + $0x1820] sm:$0xff]  ;;  %v1931_v5 = vld.sshfl [vmem:[#allocation1] sm:$0xff pattern:$0x73625140] }
  0xdf   : > { %3435 = vmatpush.xpose.msrb.mxu1 %v1092_v11  ;;  %3475 = vmatpush.xpose.msrb.mxu3 %v1094_v12  ;;  %v1106_v11 = vld [vmem:[%s10414_s9 + $0x1828] sm:$0xff] }
  0xe0   : > { %v742_v12 = vld [vmem:[%s10414_s9 + $0xcc8] sm:$0xff] }
  0xe2   : > { %3416 = vmatpush.xpose.msrb.mxu0 %v730_v13  ;;  %3456 = vmatpush.xpose.msrb.mxu2 %v732_v14  ;;  %v744_v13 = vld [vmem:[%s10414_s9 + $0xcd8] sm:$0xff]  ;;  %v743_v14 = vld [vmem:[%s10414_s9 + $0xcd0] sm:$0xff] }
  0xe3   : > { %3436 = vmatpush.xpose.msrb.mxu1 %v731_v15  ;;  %3476 = vmatpush.xpose.msrb.mxu3 %v733_v16  ;;  %v745_v15 = vld [vmem:[%s10414_s9 + $0xce0] sm:$0xff] }
  0xe4   : > { %v381_v16 = vld [vmem:[%s10414_s9 + $0x180] sm:$0xff] }
  0xe6   : > { %3417 = vmatpush.xpose.msrb.mxu0 %v369_v17  ;;  %3457 = vmatpush.xpose.msrb.mxu2 %v371_v18  ;;  %v383_v17 = vld [vmem:[%s10414_s9 + $0x190] sm:$0xff]  ;;  %v1468_v18 = vld [vmem:[%s10414_s9 + $0x2378] sm:$0xf] }
  0xe7   : > { %3437 = vmatpush.xpose.msrb.mxu1 %v370_v21  ;;  %3477 = vmatpush.xpose.msrb.mxu3 %v372_v22  ;;  %v384_v21 = vld [vmem:[%s10414_s9 + $0x198] sm:$0xff]  ;;  %v1469_v22 = vld [vmem:[%s10414_s9 + $0x2380] sm:$0xf] }
  0xe9   : > { %3418 = vmatmul.f32.vlgmr.msrb.gmra.mxu0 %v1915_v6  ;;  %3458 = vmatmul.f32.vlgmr.msrb.gmra.mxu2 %v1917_v7  ;;  %v1933_v6 = vld.sshfl [vmem:[#allocation1 + $0x10] sm:$0xff pattern:$0x73625140]  ;;  %v1932_v7 = vld.sshfl [vmem:[#allocation1 + $0x8] sm:$0xff pattern:$0x73625140] }
  0xea   : > { %3494 = vmatpush.xpose.msra.mxu0 %v1456_v19  ;;  %3534 = vmatpush.xpose.msra.mxu2 %v1458_v20  ;;  %v1470_v19 = vld [vmem:[%s10414_s9 + $0x2388] sm:$0xf] }
  0xeb   : > { %3514 = vmatpush.xpose.msra.mxu1 %v1457_v23  ;;  %3554 = vmatpush.xpose.msra.mxu3 %v1459_v24  ;;  %v382_v20 = vld [vmem:[%s10414_s9 + $0x188] sm:$0xff]  ;;  %v1471_v23 = vld [vmem:[%s10414_s9 + $0x2390] sm:$0xf] }
  0xec   : > { %3438 = vmatmul.f32.vlgmr.msrb.gmra.mxu1 %v1916_v8  ;;  %3478 = vmatmul.f32.vlgmr.msrb.gmra.mxu3 %v1918_v9  ;;  %v1934_v8 = vld.sshfl [vmem:[#allocation1 + $0x18] sm:$0xff pattern:$0x73625140] }
  0xed   : > { %v256_v9 = vld [vmem:[%s10407_s7 + $0x70] sm:$0xff] }
  0xee   : > { %3495 = vmatpush.xpose.msra.mxu0 %v1095_v25  ;;  %3535 = vmatpush.xpose.msra.mxu2 %v1097_v26  ;;  %1939 = vst [vmem:[#allocation1] ss:$4 sm:$0xff] %v256_v9  ;;  %v1107_v24 = vld [vmem:[%s10414_s9 + $0x1830] sm:$0xff]  ;;  %v1109_v25 = vld [vmem:[%s10414_s9 + $0x1840] sm:$0xff]  ;;  %v1116_v9 = vld [vmem:[%s10414_s9 + $0x1878] sm:$0xff] }
  0xef   : > { %3515 = vmatpush.xpose.msra.mxu1 %v1096_v32  ;;  %3555 = vmatpush.xpose.msra.mxu3 %v1098_v33  ;;  %v1935_v26 = vld.sshfl [vmem:[#allocation1 + $0x20] sm:$0xff pattern:$0x73625140]  ;;  %v1110_v32 = vld [vmem:[%s10414_s9 + $0x1848] sm:$0xff] }
  0xf0   : > { %v746_v33 = vld [vmem:[%s10414_s9 + $0xce8] sm:$0xff] }
  0xf2   : > { %3496 = vmatpush.xpose.msra.mxu0 %v734_v34  ;;  %3536 = vmatpush.xpose.msra.mxu2 %v736_v35  ;;  %v748_v34 = vld [vmem:[%s10414_s9 + $0xcf8] sm:$0xff]  ;;  %v747_v35 = vld [vmem:[%s10414_s9 + $0xcf0] sm:$0xff] }
  0xf3   : > { %3516 = vmatpush.xpose.msra.mxu1 %v735_v36  ;;  %3556 = vmatpush.xpose.msra.mxu3 %v737_v37  ;;  %v749_v36 = vld [vmem:[%s10414_s9 + $0xd00] sm:$0xff] }
  0xf4   : > { %v385_v37 = vld [vmem:[%s10414_s9 + $0x1a0] sm:$0xff] }
  0xf6   : > { %3497 = vmatpush.xpose.msra.mxu0 %v373_v38  ;;  %3537 = vmatpush.xpose.msra.mxu2 %v375_v39  ;;  %v387_v38 = vld [vmem:[%s10414_s9 + $0x1b0] sm:$0xff]  ;;  %v1472_v39 = vld [vmem:[%s10414_s9 + $0x2398] sm:$0xf] }
  0xf7   : > { %3517 = vmatpush.xpose.msra.mxu1 %v374_v42  ;;  %3557 = vmatpush.xpose.msra.mxu3 %v376_v43  ;;  %v388_v42 = vld [vmem:[%s10414_s9 + $0x1b8] sm:$0xff]  ;;  %v1473_v43 = vld [vmem:[%s10414_s9 + $0x23a0] sm:$0xf] }
  0xf9   : > { %3498 = vmatmul.f32.vlgmr.msra.gmra.mxu0 %v1921_v27  ;;  %3538 = vmatmul.f32.vlgmr.msra.gmra.mxu2 %v1923_v28  ;;  %v1937_v27 = vld.sshfl [vmem:[#allocation1 + $0x30] sm:$0xff pattern:$0x73625140]  ;;  %v1936_v28 = vld.sshfl [vmem:[#allocation1 + $0x28] sm:$0xff pattern:$0x73625140] }
  0xfa   : > { %3574 = vmatpush.xpose.msrb.mxu0 %v1460_v40  ;;  %3614 = vmatpush.xpose.msrb.mxu2 %v1462_v41  ;;  %v1474_v40 = vld [vmem:[%s10414_s9 + $0x23a8] sm:$0xf] }
  0xfb   : > { %3594 = vmatpush.xpose.msrb.mxu1 %v1461_v44  ;;  %3634 = vmatpush.xpose.msrb.mxu3 %v1463_v45  ;;  %v386_v41 = vld [vmem:[%s10414_s9 + $0x1a8] sm:$0xff]  ;;  %v1475_v44 = vld [vmem:[%s10414_s9 + $0x23b0] sm:$0xf] }
  0xfc   : > { %3518 = vmatmul.f32.vlgmr.msra.gmra.mxu1 %v1922_v29  ;;  %3558 = vmatmul.f32.vlgmr.msra.gmra.mxu3 %v1924_v30  ;;  %v1938_v29 = vld.sshfl [vmem:[#allocation1 + $0x38] sm:$0xff pattern:$0x73625140] }
  0xfd   : > { %v257_v30 = vld [vmem:[%s10407_s7 + $0x78] sm:$0xff] }
  0xfe   : > { %3575 = vmatpush.xpose.msrb.mxu0 %v1099_v46  ;;  %3615 = vmatpush.xpose.msrb.mxu2 %v1101_v47  ;;  %1940 = vst [vmem:[#allocation1 + $0x20] ss:$4 sm:$0xff] %v257_v30  ;;  %v1111_v45 = vld [vmem:[%s10414_s9 + $0x1850] sm:$0xff]  ;;  %v1113_v46 = vld [vmem:[%s10414_s9 + $0x1860] sm:$0xff]  ;;  %v1120_v30 = vld [vmem:[%s10414_s9 + $0x1898] sm:$0xff] }
  0xff   : > { %3595 = vmatpush.xpose.msrb.mxu1 %v1100_v53  ;;  %3635 = vmatpush.xpose.msrb.mxu3 %v1102_v54  ;;  %v1941_v47 = vld.sshfl [vmem:[#allocation1] sm:$0xff pattern:$0x73625140]  ;;  %v1114_v53 = vld [vmem:[%s10414_s9 + $0x1868] sm:$0xff] }
 0x100   : > { %v750_v54 = vld [vmem:[%s10414_s9 + $0xd08] sm:$0xff] }
 0x102   : > { %3576 = vmatpush.xpose.msrb.mxu0 %v738_v55  ;;  %3616 = vmatpush.xpose.msrb.mxu2 %v740_v56  ;;  %v752_v55 = vld [vmem:[%s10414_s9 + $0xd18] sm:$0xff]  ;;  %v751_v56 = vld [vmem:[%s10414_s9 + $0xd10] sm:$0xff] }
 0x103   : > { %3596 = vmatpush.xpose.msrb.mxu1 %v739_v57  ;;  %3636 = vmatpush.xpose.msrb.mxu3 %v741_v58  ;;  %v753_v57 = vld [vmem:[%s10414_s9 + $0xd20] sm:$0xff] }
 0x104   : > { %v389_v58 = vld [vmem:[%s10414_s9 + $0x1c0] sm:$0xff] }
 0x106   : > { %3577 = vmatpush.xpose.msrb.mxu0 %v377_v59  ;;  %3617 = vmatpush.xpose.msrb.mxu2 %v379_v60  ;;  %v391_v59 = vld [vmem:[%s10414_s9 + $0x1d0] sm:$0xff]  ;;  %v1476_v60 = vld [vmem:[%s10414_s9 + $0x23b8] sm:$0xf] }
 0x107   : > { %3597 = vmatpush.xpose.msrb.mxu1 %v378_v63  ;;  %3637 = vmatpush.xpose.msrb.mxu3 %v380_v0  ;;  %v392_v63 = vld [vmem:[%s10414_s9 + $0x1d8] sm:$0xff]  ;;  %v1477_v0 = vld [vmem:[%s10414_s9 + $0x23c0] sm:$0xf] }
 0x109   : > { %3578 = vmatmul.f32.vlgmr.msrb.gmra.mxu0 %v1925_v48  ;;  %3618 = vmatmul.f32.vlgmr.msrb.gmra.mxu2 %v1927_v49  ;;  %v1943_v48 = vld.sshfl [vmem:[#allocation1 + $0x10] sm:$0xff pattern:$0x73625140]  ;;  %v1942_v49 = vld.sshfl [vmem:[#allocation1 + $0x8] sm:$0xff pattern:$0x73625140] }
 0x10a   : > { %3654 = vmatpush.xpose.msra.mxu0 %v1464_v61  ;;  %3694 = vmatpush.xpose.msra.mxu2 %v1466_v62  ;;  %v1478_v61 = vld [vmem:[%s10414_s9 + $0x23c8] sm:$0xf] }
 0x10b   : > { %3674 = vmatpush.xpose.msra.mxu1 %v1465_v1  ;;  %3714 = vmatpush.xpose.msra.mxu3 %v1467_v2  ;;  %v390_v62 = vld [vmem:[%s10414_s9 + $0x1c8] sm:$0xff]  ;;  %v1479_v1 = vld [vmem:[%s10414_s9 + $0x23d0] sm:$0xf] }
 0x10c   : > { %3598 = vmatmul.f32.vlgmr.msrb.gmra.mxu1 %v1926_v50  ;;  %3638 = vmatmul.f32.vlgmr.msrb.gmra.mxu3 %v1928_v51  ;;  %v1944_v50 = vld.sshfl [vmem:[#allocation1 + $0x18] sm:$0xff pattern:$0x73625140] }
 0x10d   : > { %v258_v51 = vld [vmem:[%s10407_s7 + $0x80] sm:$0xff] }
 0x10e   : > { %3655 = vmatpush.xpose.msra.mxu0 %v1103_v3  ;;  %3695 = vmatpush.xpose.msra.mxu2 %v1105_v4  ;;  %1949 = vst [vmem:[#allocation1] ss:$4 sm:$0xff] %v258_v51  ;;  %v1115_v2 = vld [vmem:[%s10414_s9 + $0x1870] sm:$0xff]  ;;  %v1117_v3 = vld [vmem:[%s10414_s9 + $0x1880] sm:$0xff]  ;;  %v1124_v51 = vld [vmem:[%s10414_s9 + $0x18b8] sm:$0xff] }
 0x10f   : > { %3675 = vmatpush.xpose.msra.mxu1 %v1104_v10  ;;  %3715 = vmatpush.xpose.msra.mxu3 %v1106_v11  ;;  %v1945_v4 = vld.sshfl [vmem:[#allocation1 + $0x20] sm:$0xff pattern:$0x73625140]  ;;  %v1118_v10 = vld [vmem:[%s10414_s9 + $0x1888] sm:$0xff] }
 0x110   : > { %v754_v11 = vld [vmem:[%s10414_s9 + $0xd28] sm:$0xff] }
 0x112   : > { %3656 = vmatpush.xpose.msra.mxu0 %v742_v12  ;;  %3696 = vmatpush.xpose.msra.mxu2 %v744_v13  ;;  %v756_v12 = vld [vmem:[%s10414_s9 + $0xd38] sm:$0xff]  ;;  %v755_v13 = vld [vmem:[%s10414_s9 + $0xd30] sm:$0xff] }
 0x113   : > { %3676 = vmatpush.xpose.msra.mxu1 %v743_v14  ;;  %3716 = vmatpush.xpose.msra.mxu3 %v745_v15  ;;  %v757_v14 = vld [vmem:[%s10414_s9 + $0xd40] sm:$0xff] }
 0x114   : > { %v393_v15 = vld [vmem:[%s10414_s9 + $0x1e0] sm:$0xff] }
 0x116   : > { %3657 = vmatpush.xpose.msra.mxu0 %v381_v16  ;;  %3697 = vmatpush.xpose.msra.mxu2 %v383_v17  ;;  %v395_v16 = vld [vmem:[%s10414_s9 + $0x1f0] sm:$0xff]  ;;  %v1480_v17 = vld [vmem:[%s10414_s9 + $0x23d8] sm:$0xf] }
 0x117   : > { %3677 = vmatpush.xpose.msra.mxu1 %v382_v20  ;;  %3717 = vmatpush.xpose.msra.mxu3 %v384_v21  ;;  %v396_v20 = vld [vmem:[%s10414_s9 + $0x1f8] sm:$0xff]  ;;  %v1481_v21 = vld [vmem:[%s10414_s9 + $0x23e0] sm:$0xf] }
 0x119   : > { %3658 = vmatmul.f32.vlgmr.msra.gmra.mxu0 %v1931_v5  ;;  %3698 = vmatmul.f32.vlgmr.msra.gmra.mxu2 %v1933_v6  ;;  %v1947_v5 = vld.sshfl [vmem:[#allocation1 + $0x30] sm:$0xff pattern:$0x73625140]  ;;  %v1946_v6 = vld.sshfl [vmem:[#allocation1 + $0x28] sm:$0xff pattern:$0x73625140] }
 0x11a   : > { %3734 = vmatpush.xpose.msrb.mxu0 %v1468_v18  ;;  %3774 = vmatpush.xpose.msrb.mxu2 %v1470_v19  ;;  %v1482_v18 = vld [vmem:[%s10414_s9 + $0x23e8] sm:$0xf] }
 0x11b   : > { %3754 = vmatpush.xpose.msrb.mxu1 %v1469_v22  ;;  %3794 = vmatpush.xpose.msrb.mxu3 %v1471_v23  ;;  %v394_v19 = vld [vmem:[%s10414_s9 + $0x1e8] sm:$0xff]  ;;  %v1483_v22 = vld [vmem:[%s10414_s9 + $0x23f0] sm:$0xf] }
 0x11c   : > { %3678 = vmatmul.f32.vlgmr.msra.gmra.mxu1 %v1932_v7  ;;  %3718 = vmatmul.f32.vlgmr.msra.gmra.mxu3 %v1934_v8  ;;  %v1948_v7 = vld.sshfl [vmem:[#allocation1 + $0x38] sm:$0xff pattern:$0x73625140]  ;;  %v259_v8 = vld [vmem:[%s10407_s7 + $0x88] sm:$0xff] }
 0x11d   : > { %1950 = vst [vmem:[#allocation1 + $0x20] ss:$4 sm:$0xff] %v259_v8  ;;  %v1119_v23 = vld [vmem:[%s10414_s9 + $0x1890] sm:$0xff]  ;;  %v1128_v8 = vld [vmem:[%s10414_s9 + $0x18d8] sm:$0xff] }
 0x11e   : > { %3735 = vmatpush.xpose.msrb.mxu0 %v1107_v24  ;;  %3775 = vmatpush.xpose.msrb.mxu2 %v1109_v25  ;;  %v1121_v24 = vld [vmem:[%s10414_s9 + $0x18a0] sm:$0xff]  ;;  %v1951_v25 = vld.sshfl [vmem:[#allocation1] sm:$0xff pattern:$0x73625140] }
 0x11f   : > { %3755 = vmatpush.xpose.msrb.mxu1 %v1108_v31  ;;  %3795 = vmatpush.xpose.msrb.mxu3 %v1110_v32  ;;  %v1122_v31 = vld [vmem:[%s10414_s9 + $0x18a8] sm:$0xff] }
 0x120   : > { %v758_v32 = vld [vmem:[%s10414_s9 + $0xd48] sm:$0xff] }
 0x122   : > { %3736 = vmatpush.xpose.msrb.mxu0 %v746_v33  ;;  %3776 = vmatpush.xpose.msrb.mxu2 %v748_v34  ;;  %v760_v33 = vld [vmem:[%s10414_s9 + $0xd58] sm:$0xff]  ;;  %v759_v34 = vld [vmem:[%s10414_s9 + $0xd50] sm:$0xff] }
 0x123   : > { %3756 = vmatpush.xpose.msrb.mxu1 %v747_v35  ;;  %3796 = vmatpush.xpose.msrb.mxu3 %v749_v36  ;;  %v761_v35 = vld [vmem:[%s10414_s9 + $0xd60] sm:$0xff] }
 0x124   : > { %v397_v36 = vld [vmem:[%s10414_s9 + $0x200] sm:$0xff] }
 0x126   : > { %3737 = vmatpush.xpose.msrb.mxu0 %v385_v37  ;;  %3777 = vmatpush.xpose.msrb.mxu2 %v387_v38  ;;  %v399_v37 = vld [vmem:[%s10414_s9 + $0x210] sm:$0xff]  ;;  %v1484_v38 = vld [vmem:[%s10414_s9 + $0x23f8] sm:$0xf] }
 0x127   : > { %3757 = vmatpush.xpose.msrb.mxu1 %v386_v41  ;;  %3797 = vmatpush.xpose.msrb.mxu3 %v388_v42  ;;  %v400_v41 = vld [vmem:[%s10414_s9 + $0x218] sm:$0xff]  ;;  %v1485_v42 = vld [vmem:[%s10414_s9 + $0x2400] sm:$0xf] }
 0x129   : > { %3738 = vmatmul.f32.vlgmr.msrb.gmra.mxu0 %v1935_v26  ;;  %3778 = vmatmul.f32.vlgmr.msrb.gmra.mxu2 %v1937_v27  ;;  %v1953_v26 = vld.sshfl [vmem:[#allocation1 + $0x10] sm:$0xff pattern:$0x73625140]  ;;  %v1952_v27 = vld.sshfl [vmem:[#allocation1 + $0x8] sm:$0xff pattern:$0x73625140] }
 0x12a   : > { %3814 = vmatpush.xpose.msra.mxu0 %v1472_v39  ;;  %3854 = vmatpush.xpose.msra.mxu2 %v1474_v40  ;;  %v1486_v39 = vld [vmem:[%s10414_s9 + $0x2408] sm:$0xf] }
 0x12b   : > { %3834 = vmatpush.xpose.msra.mxu1 %v1473_v43  ;;  %3874 = vmatpush.xpose.msra.mxu3 %v1475_v44  ;;  %v398_v40 = vld [vmem:[%s10414_s9 + $0x208] sm:$0xff]  ;;  %v1487_v43 = vld [vmem:[%s10414_s9 + $0x2410] sm:$0xf] }
 0x12c   : > { %3758 = vmatmul.f32.vlgmr.msrb.gmra.mxu1 %v1936_v28  ;;  %3798 = vmatmul.f32.vlgmr.msrb.gmra.mxu3 %v1938_v29  ;;  %v1954_v28 = vld.sshfl [vmem:[#allocation1 + $0x18] sm:$0xff pattern:$0x73625140] }
 0x12d   : > { %v260_v29 = vld [vmem:[%s10407_s7 + $0x90] sm:$0xff] }
 0x12e   : > { %3815 = vmatpush.xpose.msra.mxu0 %v1111_v45  ;;  %3855 = vmatpush.xpose.msra.mxu2 %v1113_v46  ;;  %1959 = vst [vmem:[#allocation1] ss:$4 sm:$0xff] %v260_v29  ;;  %v1123_v44 = vld [vmem:[%s10414_s9 + $0x18b0] sm:$0xff]  ;;  %v1125_v45 = vld [vmem:[%s10414_s9 + $0x18c0] sm:$0xff]  ;;  %v1132_v29 = vld [vmem:[%s10414_s9 + $0x18f8] sm:$0xff] }
 0x12f   : > { %3835 = vmatpush.xpose.msra.mxu1 %v1112_v52  ;;  %3875 = vmatpush.xpose.msra.mxu3 %v1114_v53  ;;  %v1955_v46 = vld.sshfl [vmem:[#allocation1 + $0x20] sm:$0xff pattern:$0x73625140]  ;;  %v1126_v52 = vld [vmem:[%s10414_s9 + $0x18c8] sm:$0xff] }
 0x130   : > { %v762_v53 = vld [vmem:[%s10414_s9 + $0xd68] sm:$0xff] }
 0x132   : > { %3816 = vmatpush.xpose.msra.mxu0 %v750_v54  ;;  %3856 = vmatpush.xpose.msra.mxu2 %v752_v55  ;;  %v764_v54 = vld [vmem:[%s10414_s9 + $0xd78] sm:$0xff]  ;;  %v763_v55 = vld [vmem:[%s10414_s9 + $0xd70] sm:$0xff] }
 0x133   : > { %3836 = vmatpush.xpose.msra.mxu1 %v751_v56  ;;  %3876 = vmatpush.xpose.msra.mxu3 %v753_v57  ;;  %v765_v56 = vld [vmem:[%s10414_s9 + $0xd80] sm:$0xff] }
 0x134   : > { %v401_v57 = vld [vmem:[%s10414_s9 + $0x220] sm:$0xff] }
 0x136   : > { %3817 = vmatpush.xpose.msra.mxu0 %v389_v58  ;;  %3857 = vmatpush.xpose.msra.mxu2 %v391_v59  ;;  %v403_v58 = vld [vmem:[%s10414_s9 + $0x230] sm:$0xff]  ;;  %v1488_v59 = vld [vmem:[%s10414_s9 + $0x2418] sm:$0xf] }
 0x137   : > { %3837 = vmatpush.xpose.msra.mxu1 %v390_v62  ;;  %3877 = vmatpush.xpose.msra.mxu3 %v392_v63  ;;  %v404_v62 = vld [vmem:[%s10414_s9 + $0x238] sm:$0xff]  ;;  %v1489_v63 = vld [vmem:[%s10414_s9 + $0x2420] sm:$0xf] }
 0x139   : > { %3818 = vmatmul.f32.vlgmr.msra.gmra.mxu0 %v1941_v47  ;;  %3858 = vmatmul.f32.vlgmr.msra.gmra.mxu2 %v1943_v48  ;;  %v1957_v47 = vld.sshfl [vmem:[#allocation1 + $0x30] sm:$0xff pattern:$0x73625140]  ;;  %v1956_v48 = vld.sshfl [vmem:[#allocation1 + $0x28] sm:$0xff pattern:$0x73625140] }
 0x13a   : > { %3894 = vmatpush.xpose.msrb.mxu0 %v1476_v60  ;;  %3934 = vmatpush.xpose.msrb.mxu2 %v1478_v61  ;;  %v1490_v60 = vld [vmem:[%s10414_s9 + $0x2428] sm:$0xf] }
 0x13b   : > { %3914 = vmatpush.xpose.msrb.mxu1 %v1477_v0  ;;  %3954 = vmatpush.xpose.msrb.mxu3 %v1479_v1  ;;  %v402_v61 = vld [vmem:[%s10414_s9 + $0x228] sm:$0xff]  ;;  %v1491_v0 = vld [vmem:[%s10414_s9 + $0x2430] sm:$0xf] }
 0x13c   : > { %3838 = vmatmul.f32.vlgmr.msra.gmra.mxu1 %v1942_v49  ;;  %3878 = vmatmul.f32.vlgmr.msra.gmra.mxu3 %v1944_v50  ;;  %v1958_v49 = vld.sshfl [vmem:[#allocation1 + $0x38] sm:$0xff pattern:$0x73625140] }
 0x13d   : > { %v261_v50 = vld [vmem:[%s10407_s7 + $0x98] sm:$0xff] }
 0x13e   : > { %3895 = vmatpush.xpose.msrb.mxu0 %v1115_v2  ;;  %3935 = vmatpush.xpose.msrb.mxu2 %v1117_v3  ;;  %1960 = vst [vmem:[#allocation1 + $0x20] ss:$4 sm:$0xff] %v261_v50  ;;  %v1127_v1 = vld [vmem:[%s10414_s9 + $0x18d0] sm:$0xff]  ;;  %v1129_v2 = vld [vmem:[%s10414_s9 + $0x18e0] sm:$0xff]  ;;  %v1136_v50 = vld [vmem:[%s10414_s9 + $0x1918] sm:$0xff] }
 0x13f   : > { %3915 = vmatpush.xpose.msrb.mxu1 %v1116_v9  ;;  %3955 = vmatpush.xpose.msrb.mxu3 %v1118_v10  ;;  %v1961_v3 = vld.sshfl [vmem:[#allocation1] sm:$0xff pattern:$0x73625140]  ;;  %v1130_v9 = vld [vmem:[%s10414_s9 + $0x18e8] sm:$0xff] }
 0x140   : > { %v766_v10 = vld [vmem:[%s10414_s9 + $0xd88] sm:$0xff] }
 0x142   : > { %3896 = vmatpush.xpose.msrb.mxu0 %v754_v11  ;;  %3936 = vmatpush.xpose.msrb.mxu2 %v756_v12  ;;  %v768_v11 = vld [vmem:[%s10414_s9 + $0xd98] sm:$0xff]  ;;  %v767_v12 = vld [vmem:[%s10414_s9 + $0xd90] sm:$0xff] }
 0x143   : > { %3916 = vmatpush.xpose.msrb.mxu1 %v755_v13  ;;  %3956 = vmatpush.xpose.msrb.mxu3 %v757_v14  ;;  %v769_v13 = vld [vmem:[%s10414_s9 + $0xda0] sm:$0xff] }
 0x144   : > { %v405_v14 = vld [vmem:[%s10414_s9 + $0x240] sm:$0xff] }
 0x146   : > { %3897 = vmatpush.xpose.msrb.mxu0 %v393_v15  ;;  %3937 = vmatpush.xpose.msrb.mxu2 %v395_v16  ;;  %v407_v15 = vld [vmem:[%s10414_s9 + $0x250] sm:$0xff]  ;;  %v1492_v16 = vld [vmem:[%s10414_s9 + $0x2438] sm:$0xf] }
 0x147   : > { %3917 = vmatpush.xpose.msrb.mxu1 %v394_v19  ;;  %3957 = vmatpush.xpose.msrb.mxu3 %v396_v20  ;;  %v408_v19 = vld [vmem:[%s10414_s9 + $0x258] sm:$0xff]  ;;  %v1493_v20 = vld [vmem:[%s10414_s9 + $0x2440] sm:$0xf] }
 0x149   : > { %3898 = vmatmul.f32.vlgmr.msrb.gmra.mxu0 %v1945_v4  ;;  %3938 = vmatmul.f32.vlgmr.msrb.gmra.mxu2 %v1947_v5  ;;  %v1963_v4 = vld.sshfl [vmem:[#allocation1 + $0x10] sm:$0xff pattern:$0x73625140]  ;;  %v1962_v5 = vld.sshfl [vmem:[#allocation1 + $0x8] sm:$0xff pattern:$0x73625140] }
 0x14a   : > { %3974 = vmatpush.xpose.msra.mxu0 %v1480_v17  ;;  %4014 = vmatpush.xpose.msra.mxu2 %v1482_v18  ;;  %v1494_v17 = vld [vmem:[%s10414_s9 + $0x2448] sm:$0xf] }
 0x14b   : > { %3994 = vmatpush.xpose.msra.mxu1 %v1481_v21  ;;  %4034 = vmatpush.xpose.msra.mxu3 %v1483_v22  ;;  %v406_v18 = vld [vmem:[%s10414_s9 + $0x248] sm:$0xff]  ;;  %v1495_v21 = vld [vmem:[%s10414_s9 + $0x2450] sm:$0xf] }
 0x14c   : > { %3918 = vmatmul.f32.vlgmr.msrb.gmra.mxu1 %v1946_v6  ;;  %3958 = vmatmul.f32.vlgmr.msrb.gmra.mxu3 %v1948_v7  ;;  %v1964_v6 = vld.sshfl [vmem:[#allocation1 + $0x18] sm:$0xff pattern:$0x73625140] }
 0x14d   : > { %v262_v7 = vld [vmem:[%s10407_s7 + $0xa0] sm:$0xff] }
 0x14e   : > { %3975 = vmatpush.xpose.msra.mxu0 %v1119_v23  ;;  %4015 = vmatpush.xpose.msra.mxu2 %v1121_v24  ;;  %1969 = vst [vmem:[#allocation1] ss:$4 sm:$0xff] %v262_v7  ;;  %v1131_v22 = vld [vmem:[%s10414_s9 + $0x18f0] sm:$0xff]  ;;  %v1133_v23 = vld [vmem:[%s10414_s9 + $0x1900] sm:$0xff]  ;;  %v1140_v7 = vld [vmem:[%s10414_s9 + $0x1938] sm:$0xff] }
 0x14f   : > { %3995 = vmatpush.xpose.msra.mxu1 %v1120_v30  ;;  %4035 = vmatpush.xpose.msra.mxu3 %v1122_v31  ;;  %v1965_v24 = vld.sshfl [vmem:[#allocation1 + $0x20] sm:$0xff pattern:$0x73625140]  ;;  %v1134_v30 = vld [vmem:[%s10414_s9 + $0x1908] sm:$0xff] }
 0x150   : > { %v770_v31 = vld [vmem:[%s10414_s9 + $0xda8] sm:$0xff] }
 0x152   : > { %3976 = vmatpush.xpose.msra.mxu0 %v758_v32  ;;  %4016 = vmatpush.xpose.msra.mxu2 %v760_v33  ;;  %v772_v32 = vld [vmem:[%s10414_s9 + $0xdb8] sm:$0xff]  ;;  %v771_v33 = vld [vmem:[%s10414_s9 + $0xdb0] sm:$0xff] }
 0x153   : > { %3996 = vmatpush.xpose.msra.mxu1 %v759_v34  ;;  %4036 = vmatpush.xpose.msra.mxu3 %v761_v35  ;;  %v773_v34 = vld [vmem:[%s10414_s9 + $0xdc0] sm:$0xff] }
 0x154   : > { %v409_v35 = vld [vmem:[%s10414_s9 + $0x260] sm:$0xff] }
 0x156   : > { %3977 = vmatpush.xpose.msra.mxu0 %v397_v36  ;;  %4017 = vmatpush.xpose.msra.mxu2 %v399_v37  ;;  %v411_v36 = vld [vmem:[%s10414_s9 + $0x270] sm:$0xff]  ;;  %v1496_v37 = vld [vmem:[%s10414_s9 + $0x2458] sm:$0xf] }
 0x157   : > { %3997 = vmatpush.xpose.msra.mxu1 %v398_v40  ;;  %4037 = vmatpush.xpose.msra.mxu3 %v400_v41  ;;  %v412_v40 = vld [vmem:[%s10414_s9 + $0x278] sm:$0xff]  ;;  %v1497_v41 = vld [vmem:[%s10414_s9 + $0x2460] sm:$0xf] }
 0x159   : > { %3978 = vmatmul.f32.vlgmr.msra.gmra.mxu0 %v1951_v25  ;;  %4018 = vmatmul.f32.vlgmr.msra.gmra.mxu2 %v1953_v26  ;;  %v1967_v25 = vld.sshfl [vmem:[#allocation1 + $0x30] sm:$0xff pattern:$0x73625140]  ;;  %v1966_v26 = vld.sshfl [vmem:[#allocation1 + $0x28] sm:$0xff pattern:$0x73625140] }
 0x15a   : > { %4054 = vmatpush.xpose.msrb.mxu0 %v1484_v38  ;;  %4094 = vmatpush.xpose.msrb.mxu2 %v1486_v39  ;;  %v1498_v38 = vld [vmem:[%s10414_s9 + $0x2468] sm:$0xf] }
 0x15b   : > { %4074 = vmatpush.xpose.msrb.mxu1 %v1485_v42  ;;  %4114 = vmatpush.xpose.msrb.mxu3 %v1487_v43  ;;  %v410_v39 = vld [vmem:[%s10414_s9 + $0x268] sm:$0xff]  ;;  %v1499_v42 = vld [vmem:[%s10414_s9 + $0x2470] sm:$0xf] }
 0x15c   : > { %3998 = vmatmul.f32.vlgmr.msra.gmra.mxu1 %v1952_v27  ;;  %4038 = vmatmul.f32.vlgmr.msra.gmra.mxu3 %v1954_v28  ;;  %v1968_v27 = vld.sshfl [vmem:[#allocation1 + $0x38] sm:$0xff pattern:$0x73625140]  ;;  %v263_v28 = vld [vmem:[%s10407_s7 + $0xa8] sm:$0xff] }
 0x15d   : > { %1970 = vst [vmem:[#allocation1 + $0x20] ss:$4 sm:$0xff] %v263_v28  ;;  %v1135_v43 = vld [vmem:[%s10414_s9 + $0x1910] sm:$0xff]  ;;  %v1144_v28 = vld [vmem:[%s10414_s9 + $0x1958] sm:$0xff] }
 0x15e   : > { %4055 = vmatpush.xpose.msrb.mxu0 %v1123_v44  ;;  %4095 = vmatpush.xpose.msrb.mxu2 %v1125_v45  ;;  %v1137_v44 = vld [vmem:[%s10414_s9 + $0x1920] sm:$0xff]  ;;  %v1971_v45 = vld.sshfl [vmem:[#allocation1] sm:$0xff pattern:$0x73625140] }
 0x15f   : > { %4075 = vmatpush.xpose.msrb.mxu1 %v1124_v51  ;;  %4115 = vmatpush.xpose.msrb.mxu3 %v1126_v52  ;;  %v1138_v51 = vld [vmem:[%s10414_s9 + $0x1928] sm:$0xff] }
 0x160   : > { %v774_v52 = vld [vmem:[%s10414_s9 + $0xdc8] sm:$0xff] }
 0x162   : > { %4056 = vmatpush.xpose.msrb.mxu0 %v762_v53  ;;  %4096 = vmatpush.xpose.msrb.mxu2 %v764_v54  ;;  %v776_v53 = vld [vmem:[%s10414_s9 + $0xdd8] sm:$0xff]  ;;  %v775_v54 = vld [vmem:[%s10414_s9 + $0xdd0] sm:$0xff] }
 0x163   : > { %4076 = vmatpush.xpose.msrb.mxu1 %v763_v55  ;;  %4116 = vmatpush.xpose.msrb.mxu3 %v765_v56  ;;  %v777_v55 = vld [vmem:[%s10414_s9 + $0xde0] sm:$0xff] }
 0x164   : > { %v413_v56 = vld [vmem:[%s10414_s9 + $0x280] sm:$0xff] }
 0x166   : > { %4057 = vmatpush.xpose.msrb.mxu0 %v401_v57  ;;  %4097 = vmatpush.xpose.msrb.mxu2 %v403_v58  ;;  %v415_v57 = vld [vmem:[%s10414_s9 + $0x290] sm:$0xff]  ;;  %v1500_v58 = vld [vmem:[%s10414_s9 + $0x2478] sm:$0xf] }
 0x167   : > { %4077 = vmatpush.xpose.msrb.mxu1 %v402_v61  ;;  %4117 = vmatpush.xpose.msrb.mxu3 %v404_v62  ;;  %v416_v61 = vld [vmem:[%s10414_s9 + $0x298] sm:$0xff]  ;;  %v1501_v62 = vld [vmem:[%s10414_s9 + $0x2480] sm:$0xf] }
 0x169   : > { %4058 = vmatmul.f32.vlgmr.msrb.gmra.mxu0 %v1955_v46  ;;  %4098 = vmatmul.f32.vlgmr.msrb.gmra.mxu2 %v1957_v47  ;;  %v1973_v46 = vld.sshfl [vmem:[#allocation1 + $0x10] sm:$0xff pattern:$0x73625140]  ;;  %v1972_v47 = vld.sshfl [vmem:[#allocation1 + $0x8] sm:$0xff pattern:$0x73625140] }
 0x16a   : > { %4134 = vmatpush.xpose.msra.mxu0 %v1488_v59  ;;  %4174 = vmatpush.xpose.msra.mxu2 %v1490_v60  ;;  %v1502_v59 = vld [vmem:[%s10414_s9 + $0x2488] sm:$0xf] }
 0x16b   : > { %4154 = vmatpush.xpose.msra.mxu1 %v1489_v63  ;;  %4194 = vmatpush.xpose.msra.mxu3 %v1491_v0  ;;  %v414_v60 = vld [vmem:[%s10414_s9 + $0x288] sm:$0xff]  ;;  %v1503_v63 = vld [vmem:[%s10414_s9 + $0x2490] sm:$0xf] }
 0x16c   : > { %4078 = vmatmul.f32.vlgmr.msrb.gmra.mxu1 %v1956_v48  ;;  %4118 = vmatmul.f32.vlgmr.msrb.gmra.mxu3 %v1958_v49  ;;  %v1974_v48 = vld.sshfl [vmem:[#allocation1 + $0x18] sm:$0xff pattern:$0x73625140] }
 0x16d   : > { %v264_v49 = vld [vmem:[%s10407_s7 + $0xb0] sm:$0xff] }
 0x16e   : > { %4135 = vmatpush.xpose.msra.mxu0 %v1127_v1  ;;  %4175 = vmatpush.xpose.msra.mxu2 %v1129_v2  ;;  %1979 = vst [vmem:[#allocation1] ss:$4 sm:$0xff] %v264_v49  ;;  %v1139_v0 = vld [vmem:[%s10414_s9 + $0x1930] sm:$0xff]  ;;  %v1141_v1 = vld [vmem:[%s10414_s9 + $0x1940] sm:$0xff] }
 0x16f   : > { %4155 = vmatpush.xpose.msra.mxu1 %v1128_v8  ;;  %4195 = vmatpush.xpose.msra.mxu3 %v1130_v9  ;;  %v1975_v2 = vld.sshfl [vmem:[#allocation1 + $0x20] sm:$0xff pattern:$0x73625140]  ;;  %v1142_v8 = vld [vmem:[%s10414_s9 + $0x1948] sm:$0xff]  ;;  %v1149_v49 = vld [vmem:[%s10414_s9 + $0x1980] sm:$0xff] }
 0x170   : > { %v778_v9 = vld [vmem:[%s10414_s9 + $0xde8] sm:$0xff] }
 0x172   : > { %4136 = vmatpush.xpose.msra.mxu0 %v766_v10  ;;  %4176 = vmatpush.xpose.msra.mxu2 %v768_v11  ;;  %v780_v10 = vld [vmem:[%s10414_s9 + $0xdf8] sm:$0xff]  ;;  %v779_v11 = vld [vmem:[%s10414_s9 + $0xdf0] sm:$0xff] }
 0x173   : > { %4156 = vmatpush.xpose.msra.mxu1 %v767_v12  ;;  %4196 = vmatpush.xpose.msra.mxu3 %v769_v13  ;;  %v781_v12 = vld [vmem:[%s10414_s9 + $0xe00] sm:$0xff] }
 0x174   : > { %v417_v13 = vld [vmem:[%s10414_s9 + $0x2a0] sm:$0xff] }
 0x176   : > { %4137 = vmatpush.xpose.msra.mxu0 %v405_v14  ;;  %4177 = vmatpush.xpose.msra.mxu2 %v407_v15  ;;  %v419_v14 = vld [vmem:[%s10414_s9 + $0x2b0] sm:$0xff]  ;;  %v1504_v15 = vld [vmem:[%s10414_s9 + $0x2498] sm:$0xf] }
 0x177   : > { %4157 = vmatpush.xpose.msra.mxu1 %v406_v18  ;;  %4197 = vmatpush.xpose.msra.mxu3 %v408_v19  ;;  %v420_v18 = vld [vmem:[%s10414_s9 + $0x2b8] sm:$0xff]  ;;  %v1505_v19 = vld [vmem:[%s10414_s9 + $0x24a0] sm:$0xf] }
 0x179   : > { %4138 = vmatmul.f32.vlgmr.msra.gmra.mxu0 %v1961_v3  ;;  %4178 = vmatmul.f32.vlgmr.msra.gmra.mxu2 %v1963_v4  ;;  %v1977_v3 = vld.sshfl [vmem:[#allocation1 + $0x30] sm:$0xff pattern:$0x73625140]  ;;  %v1976_v4 = vld.sshfl [vmem:[#allocation1 + $0x28] sm:$0xff pattern:$0x73625140] }
 0x17a   : > { %4214 = vmatpush.xpose.msrb.mxu0 %v1492_v16  ;;  %4254 = vmatpush.xpose.msrb.mxu2 %v1494_v17  ;;  %v1506_v16 = vld [vmem:[%s10414_s9 + $0x24a8] sm:$0xf] }
 0x17b   : > { %4234 = vmatpush.xpose.msrb.mxu1 %v1493_v20  ;;  %4274 = vmatpush.xpose.msrb.mxu3 %v1495_v21  ;;  %v418_v17 = vld [vmem:[%s10414_s9 + $0x2a8] sm:$0xff]  ;;  %v1507_v20 = vld [vmem:[%s10414_s9 + $0x24b0] sm:$0xf] }
 0x17c   : > { %4158 = vmatmul.f32.vlgmr.msra.gmra.mxu1 %v1962_v5  ;;  %4198 = vmatmul.f32.vlgmr.msra.gmra.mxu3 %v1964_v6  ;;  %v1978_v5 = vld.sshfl [vmem:[#allocation1 + $0x38] sm:$0xff pattern:$0x73625140] }
 0x17d   : > { %v265_v6 = vld [vmem:[%s10407_s7 + $0xb8] sm:$0xff] }
 0x17e   : > { %4215 = vmatpush.xpose.msrb.mxu0 %v1131_v22  ;;  %4255 = vmatpush.xpose.msrb.mxu2 %v1133_v23  ;;  %1980 = vst [vmem:[#allocation1 + $0x20] ss:$4 sm:$0xff] %v265_v6  ;;  %v1143_v21 = vld [vmem:[%s10414_s9 + $0x1950] sm:$0xff]  ;;  %v1145_v22 = vld [vmem:[%s10414_s9 + $0x1960] sm:$0xff]  ;;  %v426_v6 = vld [vmem:[%s10414_s9 + $0x2e8] sm:$0xff] }
 0x17f   : > { %4235 = vmatpush.xpose.msrb.mxu1 %v1132_v29  ;;  %4275 = vmatpush.xpose.msrb.mxu3 %v1134_v30  ;;  %v1981_v23 = vld.sshfl [vmem:[#allocation1] sm:$0xff pattern:$0x73625140]  ;;  %v1146_v29 = vld [vmem:[%s10414_s9 + $0x1968] sm:$0xff] }
 0x180   : > { %v782_v30 = vld [vmem:[%s10414_s9 + $0xe08] sm:$0xff] }
 0x182   : > { %4216 = vmatpush.xpose.msrb.mxu0 %v770_v31  ;;  %4256 = vmatpush.xpose.msrb.mxu2 %v772_v32  ;;  %v784_v31 = vld [vmem:[%s10414_s9 + $0xe18] sm:$0xff]  ;;  %v2719_v32 = vpop.f32.mrf.mxu1 }
 0x183   : > { %4236 = vmatpush.xpose.msrb.mxu1 %v771_v33  ;;  %4276 = vmatpush.xpose.msrb.mxu3 %v773_v34  ;;  %v783_v33 = vld [vmem:[%s10414_s9 + $0xe10] sm:$0xff]  ;;  %v785_v34 = vld [vmem:[%s10414_s9 + $0xe20] sm:$0xff] }
 0x186   : > { %4217 = vmatpush.xpose.msrb.mxu0 %v409_v35  ;;  %4257 = vmatpush.xpose.msrb.mxu2 %v411_v36  ;;  %v2699_v35 = vpop.f32.mrf.mxu0 }
 0x187   : > { %4237 = vmatpush.xpose.msrb.mxu1 %v410_v39  ;;  %4277 = vmatpush.xpose.msrb.mxu3 %v412_v40  ;;  %v2720_v36 = vadd.f32 %v2719_v32, %v2699_v35  ;;  %v2739_v39 = vpop.f32.mrf.mxu2  ;;  %v1508_v40 = vld [vmem:[%s10414_s9 + $0x24b8] sm:$0xf] }
 0x188   : > { %v1516_v32 = vld [vmem:[%s10414_s9 + $0x24f8] sm:$0xf] }
 0x189   : > { %4218 = vmatmul.f32.vlgmr.msrb.gmra.mxu0 %v1965_v24  ;;  %4258 = vmatmul.f32.vlgmr.msrb.gmra.mxu2 %v1967_v25  ;;  %v1983_v24 = vld.sshfl [vmem:[#allocation1 + $0x10] sm:$0xff pattern:$0x73625140]  ;;  %v1982_v25 = vld.sshfl [vmem:[#allocation1 + $0x8] sm:$0xff pattern:$0x73625140] }
 0x18a   : > { %4294 = vmatpush.xpose.msra.mxu0 %v1496_v37  ;;  %4334 = vmatpush.xpose.msra.mxu2 %v1498_v38  ;;  %v421_v37 = vld [vmem:[%s10414_s9 + $0x2c0] sm:$0xff]  ;;  %v423_v38 = vld [vmem:[%s10414_s9 + $0x2d0] sm:$0xff]  ;;  %v432_v35 = vld [vmem:[%s10414_s9 + $0x318] sm:$0xff] }
 0x18b   : > { %4314 = vmatpush.xpose.msra.mxu1 %v1497_v41  ;;  %4354 = vmatpush.xpose.msra.mxu3 %v1499_v42  ;;  %v1510_v41 = vld [vmem:[%s10414_s9 + $0x24c8] sm:$0xf] }
 0x18c   : > { %4238 = vmatmul.f32.vlgmr.msrb.gmra.mxu1 %v1966_v26  ;;  %4278 = vmatmul.f32.vlgmr.msrb.gmra.mxu3 %v1968_v27  ;;  %v1984_v26 = vld.sshfl [vmem:[#allocation1 + $0x18] sm:$0xff pattern:$0x73625140] }
 0x18d   : > { %v266_v27 = vld [vmem:[%s10407_s7 + $0xc0] sm:$0xff] }
 0x18e   : > { %4295 = vmatpush.xpose.msra.mxu0 %v1135_v43  ;;  %4335 = vmatpush.xpose.msra.mxu2 %v1137_v44  ;;  %1989 = vst [vmem:[#allocation1] ss:$4 sm:$0xff] %v266_v27  ;;  %v422_v42 = vld [vmem:[%s10414_s9 + $0x2c8] sm:$0xff]  ;;  %v424_v43 = vld [vmem:[%s10414_s9 + $0x2d8] sm:$0xff]  ;;  %v2740_v44 = vadd.f32 %v2739_v39, %v2720_v36  ;;  %v793_v27 = vld [vmem:[%s10414_s9 + $0xe60] sm:$0xff] }
 0x18f   : > { %4315 = vmatpush.xpose.msra.mxu1 %v1136_v50  ;;  %4355 = vmatpush.xpose.msra.mxu3 %v1138_v51  ;;  %v1985_v50 = vld.sshfl [vmem:[#allocation1 + $0x20] sm:$0xff pattern:$0x73625140]  ;;  %v1987_v51 = vld.sshfl [vmem:[#allocation1 + $0x30] sm:$0xff pattern:$0x73625140] }
 0x190   : > { %v1519_v39 = vld [vmem:[%s10414_s9 + $0x2510] sm:$0xf] }
 0x192   : > { %4296 = vmatpush.xpose.msra.mxu0 %v774_v52  ;;  %4336 = vmatpush.xpose.msra.mxu2 %v776_v53  ;;  %v1986_v52 = vld.sshfl [vmem:[#allocation1 + $0x28] sm:$0xff pattern:$0x73625140]  ;;  %v1988_v53 = vld.sshfl [vmem:[#allocation1 + $0x38] sm:$0xff pattern:$0x73625140] }
 0x193   : > { %4316 = vmatpush.xpose.msra.mxu1 %v775_v54  ;;  %4356 = vmatpush.xpose.msra.mxu3 %v777_v55  ;;  %v267_v54 = vld [vmem:[%s10407_s7 + $0xc8] sm:$0xff] }
 0x194   : > { %1990 = vst [vmem:[#allocation1 + $0x20] ss:$4 sm:$0xff] %v267_v54  ;;  %v796_v54 = vld [vmem:[%s10414_s9 + $0xe78] sm:$0xff] }
 0x196   : > { %4297 = vmatpush.xpose.msra.mxu0 %v413_v56  ;;  %4337 = vmatpush.xpose.msra.mxu2 %v415_v57  ;;  %v1148_v56 = vld [vmem:[%s10414_s9 + $0x1978] sm:$0xff]  ;;  %v1150_v57 = vld [vmem:[%s10414_s9 + $0x1988] sm:$0xff] }
 0x197   : > { %4317 = vmatpush.xpose.msra.mxu1 %v414_v60  ;;  %4357 = vmatpush.xpose.msra.mxu3 %v416_v61  ;;  %v788_v60 = vld [vmem:[%s10414_s9 + $0xe38] sm:$0xff] }
 0x199   : > { %4298 = vmatmul.f32.vlgmr.msra.gmra.mxu0 %v1971_v45  ;;  %4338 = vmatmul.f32.vlgmr.msra.gmra.mxu2 %v1973_v46  ;;  %v1509_v45 = vld [vmem:[%s10414_s9 + $0x24c0] sm:$0xf]  ;;  %v1511_v46 = vld [vmem:[%s10414_s9 + $0x24d0] sm:$0xf] }
 0x19a   : > { %4374 = vmatpush.xpose.msrb.mxu0 %v1500_v58  ;;  %4414 = vmatpush.xpose.msrb.mxu2 %v1502_v59  ;;  %v2779_v58 = vpop.f32.mrf.mxu0  ;;  %v786_v59 = vld [vmem:[%s10414_s9 + $0xe28] sm:$0xff] }
 0x19b   : > { %4394 = vmatpush.xpose.msrb.mxu1 %v1501_v62  ;;  %4434 = vmatpush.xpose.msrb.mxu3 %v1503_v63  ;;  %v787_v62 = vld [vmem:[%s10414_s9 + $0xe30] sm:$0xff]  ;;  %v789_v63 = vld [vmem:[%s10414_s9 + $0xe40] sm:$0xff] }
 0x19c   : > { %4318 = vmatmul.f32.vlgmr.msra.gmra.mxu1 %v1972_v47  ;;  %4358 = vmatmul.f32.vlgmr.msra.gmra.mxu3 %v1974_v48  ;;  %v2759_v47 = vpop.f32.mrf.mxu3  ;;  %v1147_v48 = vld [vmem:[%s10414_s9 + $0x1970] sm:$0xff] }
 0x19d   : > { %v2760_v55 = vadd.f32 %v2759_v47, %v2740_v44  ;;  %v1997_v44 = vld.sshfl [vmem:[#allocation1 + $0x30] sm:$0xff pattern:$0x73625140]  ;;  %v1998_v47 = vld.sshfl [vmem:[#allocation1 + $0x38] sm:$0xff pattern:$0x73625140] }
 0x19e   : > { %4375 = vmatpush.xpose.msrb.mxu0 %v1139_v0  ;;  %4415 = vmatpush.xpose.msrb.mxu2 %v1141_v1  ;;  %v2799_v0 = vpop.f32.mrf.mxu1  ;;  %v425_v1 = vld [vmem:[%s10414_s9 + $0x2e0] sm:$0xff] }
 0x19f   : > { %4395 = vmatpush.xpose.msrb.mxu1 %v1140_v7  ;;  %4435 = vmatpush.xpose.msrb.mxu3 %v1142_v8  ;;  %v2780_v61 = vadd.f32 %v2779_v58, %v2760_v55  ;;  %v428_v7 = vld [vmem:[%s10414_s9 + $0x2f8] sm:$0xff]  ;;  %v2819_v8 = vpop.f32.mrf.mxu2 }
 0x1a2   : > { %4376 = vmatpush.xpose.msrb.mxu0 %v778_v9  ;;  %4416 = vmatpush.xpose.msrb.mxu2 %v780_v10  ;;  %v1513_v9 = vld [vmem:[%s10414_s9 + $0x24e0] sm:$0xf]  ;;  %v1515_v10 = vld [vmem:[%s10414_s9 + $0x24f0] sm:$0xf] }
 0x1a3   : > { %4396 = vmatpush.xpose.msrb.mxu1 %v779_v11  ;;  %4436 = vmatpush.xpose.msrb.mxu3 %v781_v12  ;;  %v1151_v11 = vld [vmem:[%s10414_s9 + $0x1990] sm:$0xff]  ;;  %v1153_v12 = vld [vmem:[%s10414_s9 + $0x19a0] sm:$0xff] }
 0x1a6   : > { %4377 = vmatpush.xpose.msrb.mxu0 %v417_v13  ;;  %4417 = vmatpush.xpose.msrb.mxu2 %v419_v14  ;;  %v1991_v13 = vld.sshfl [vmem:[#allocation1] sm:$0xff pattern:$0x73625140] }
 0x1a7   : > { %4397 = vmatpush.xpose.msrb.mxu1 %v418_v17  ;;  %4437 = vmatpush.xpose.msrb.mxu3 %v420_v18  ;;  %v2839_v17 = vpop.f32.mrf.mxu3  ;;  %v1994_v18 = vld.sshfl [vmem:[#allocation1 + $0x18] sm:$0xff pattern:$0x73625140]  ;;  %v2899_v36 = vpop.f32.mrf.mxu2 }
 0x1a9   : > { %4378 = vmatmul.f32.vlgmr.msrb.gmra.mxu0 %v1975_v2  ;;  %4418 = vmatmul.f32.vlgmr.msrb.gmra.mxu2 %v1977_v3  ;;  %v427_v2 = vld [vmem:[%s10414_s9 + $0x2f0] sm:$0xff]  ;;  %v1512_v3 = vld [vmem:[%s10414_s9 + $0x24d8] sm:$0xf] }
 0x1aa   : > { %4454 = vmatpush.xpose.msra.mxu0 %v1504_v15  ;;  %4494 = vmatpush.xpose.msra.mxu2 %v1506_v16  ;;  %v1993_v15 = vld.sshfl [vmem:[#allocation1 + $0x10] sm:$0xff pattern:$0x73625140]  ;;  %v1992_v16 = vld.sshfl [vmem:[#allocation1 + $0x8] sm:$0xff pattern:$0x73625140] }
 0x1ab   : > { %4474 = vmatpush.xpose.msra.mxu1 %v1505_v19  ;;  %4514 = vmatpush.xpose.msra.mxu3 %v1507_v20  ;;  %v268_v19 = vld [vmem:[%s10407_s7 + $0xd0] sm:$0xff] }
 0x1ac   : > { %4398 = vmatmul.f32.vlgmr.msrb.gmra.mxu1 %v1976_v4  ;;  %4438 = vmatmul.f32.vlgmr.msrb.gmra.mxu3 %v1978_v5  ;;  %v1514_v4 = vld [vmem:[%s10414_s9 + $0x24e8] sm:$0xf]  ;;  %v2800_v5 = vadd.f32 %v2799_v0, %v2780_v61  ;;  %v1152_v20 = vld [vmem:[%s10414_s9 + $0x1998] sm:$0xff]  ;;  %1999 = vst [vmem:[#allocation1] ss:$4 sm:$0xff] %v268_v19 }
 0x1ad   : > { %v798_v19 = vld [vmem:[%s10414_s9 + $0xe88] sm:$0xff] }
 0x1ae   : > { %4455 = vmatpush.xpose.msra.mxu0 %v1143_v21  ;;  %4495 = vmatpush.xpose.msra.mxu2 %v1145_v22  ;;  %v2820_v14 = vadd.f32 %v2819_v8, %v2800_v5  ;;  %v1154_v21 = vld [vmem:[%s10414_s9 + $0x19a8] sm:$0xff]  ;;  %v1523_v5 = vld [vmem:[%s10414_s9 + $0x2530] sm:$0xf]  ;;  %v1161_v8 = vld [vmem:[%s10414_s9 + $0x19e0] sm:$0xff] }
 0x1af   : > { %4475 = vmatpush.xpose.msra.mxu1 %v1144_v28  ;;  %4515 = vmatpush.xpose.msra.mxu3 %v1146_v29  ;;  %v429_v29 = vld [vmem:[%s10414_s9 + $0x300] sm:$0xff]  ;;  %v2979_v61 = vpop.f32.mrf.mxu2 }
 0x1b0   : > { %v2840_v22 = vadd.f32 %v2839_v17, %v2820_v14  ;;  %v270_v14 = vld [vmem:[%s10407_s7 + $0xe0] sm:$0xff] }
 0x1b1   : > { %v1162_v17 = vld [vmem:[%s10414_s9 + $0x19e8] sm:$0xff] }
 0x1b2   : > { %4456 = vmatpush.xpose.msra.mxu0 %v782_v30  ;;  %4496 = vmatpush.xpose.msra.mxu2 %v784_v31  ;;  %v431_v30 = vld [vmem:[%s10414_s9 + $0x310] sm:$0xff]  ;;  %v2879_v31 = vpop.f32.mrf.mxu1 }
 0x1b3   : > { %4476 = vmatpush.xpose.msra.mxu1 %v783_v33  ;;  %4516 = vmatpush.xpose.msra.mxu3 %v785_v34  ;;  %v1518_v33 = vld [vmem:[%s10414_s9 + $0x2508] sm:$0xf] }
 0x1b4   : > { %v430_v34 = vld [vmem:[%s10414_s9 + $0x308] sm:$0xff] }
 0x1b6   : > { %4457 = vmatpush.xpose.msra.mxu0 %v421_v37  ;;  %4497 = vmatpush.xpose.msra.mxu2 %v423_v38  ;;  %v1517_v38 = vld [vmem:[%s10414_s9 + $0x2500] sm:$0xf] }
 0x1b7   : > { %4477 = vmatpush.xpose.msra.mxu1 %v422_v42  ;;  %4517 = vmatpush.xpose.msra.mxu3 %v424_v43  ;;  %v1995_v42 = vld.sshfl [vmem:[#allocation1 + $0x20] sm:$0xff pattern:$0x73625140] }
 0x1b9   : > { %4458 = vmatmul.f32.vlgmr.msra.gmra.mxu0 %v1981_v23  ;;  %4498 = vmatmul.f32.vlgmr.msra.gmra.mxu2 %v1983_v24  ;;  %v790_v23 = vld [vmem:[%s10414_s9 + $0xe48] sm:$0xff]  ;;  %v792_v24 = vld [vmem:[%s10414_s9 + $0xe58] sm:$0xff] }
 0x1ba   : > { %4534 = vmatpush.xpose.msrb.mxu0 %v1508_v40  ;;  %4574 = vmatpush.xpose.msrb.mxu2 %v1510_v41  ;;  %v1155_v40 = vld [vmem:[%s10414_s9 + $0x19b0] sm:$0xff]  ;;  %v1157_v41 = vld [vmem:[%s10414_s9 + $0x19c0] sm:$0xff]  ;;  %v2959_v58 = vpop.f32.mrf.mxu1 }
 0x1bb   : > { %4554 = vmatpush.xpose.msrb.mxu1 %v1509_v45  ;;  %4594 = vmatpush.xpose.msrb.mxu3 %v1511_v46  ;;  %v1996_v45 = vld.sshfl [vmem:[#allocation1 + $0x28] sm:$0xff pattern:$0x73625140]  ;;  %v2919_v46 = vpop.f32.mrf.mxu3 }
 0x1bc   : > { %4478 = vmatmul.f32.vlgmr.msra.gmra.mxu1 %v1982_v25  ;;  %4518 = vmatmul.f32.vlgmr.msra.gmra.mxu3 %v1984_v26  ;;  %v2859_v25 = vpop.f32.mrf.mxu0  ;;  %v791_v26 = vld [vmem:[%s10414_s9 + $0xe50] sm:$0xff] }
 0x1bd   : > { %v2860_v28 = vadd.f32 %v2859_v25, %v2840_v22  ;;  %v799_v22 = vld [vmem:[%s10414_s9 + $0xe90] sm:$0xff] }
 0x1be   : > { %4535 = vmatpush.xpose.msrb.mxu0 %v1147_v48  ;;  %4575 = vmatpush.xpose.msrb.mxu2 %v1149_v49  ;;  %v269_v48 = vld [vmem:[%s10407_s7 + $0xd8] sm:$0xff] }
 0x1bf   : > { %4555 = vmatpush.xpose.msrb.mxu1 %v1148_v56  ;;  %4595 = vmatpush.xpose.msrb.mxu3 %v1150_v57  ;;  %v2880_v37 = vadd.f32 %v2879_v31, %v2860_v28  ;;  %v1156_v49 = vld [vmem:[%s10414_s9 + $0x19b8] sm:$0xff]  ;;  %2000 = vst [vmem:[#allocation1 + $0x20] ss:$4 sm:$0xff] %v269_v48  ;;  %v795_v56 = vld [vmem:[%s10414_s9 + $0xe70] sm:$0xff]  ;;  %v797_v57 = vld [vmem:[%s10414_s9 + $0xe80] sm:$0xff] }
 0x1c0   : > { %v1524_v28 = vld [vmem:[%s10414_s9 + $0x2538] sm:$0xf]  ;;  %v438_v31 = vld [vmem:[%s10414_s9 + $0x348] sm:$0xff] }
 0x1c1   : > { %v2900_v43 = vadd.f32 %v2899_v36, %v2880_v37  ;;  %v1163_v37 = vld [vmem:[%s10414_s9 + $0x19f0] sm:$0xff] }
 0x1c2   : > { %4536 = vmatpush.xpose.msrb.mxu0 %v786_v59  ;;  %4576 = vmatpush.xpose.msrb.mxu2 %v788_v60  ;;  %v433_v59 = vld [vmem:[%s10414_s9 + $0x320] sm:$0xff]  ;;  %v435_v60 = vld [vmem:[%s10414_s9 + $0x330] sm:$0xff] }
 0x1c3   : > { %4556 = vmatpush.xpose.msrb.mxu1 %v787_v62  ;;  %4596 = vmatpush.xpose.msrb.mxu3 %v789_v63  ;;  %v1520_v62 = vld [vmem:[%s10414_s9 + $0x2518] sm:$0xf]  ;;  %v1522_v63 = vld [vmem:[%s10414_s9 + $0x2528] sm:$0xf] }
 0x1c6   : > { %4537 = vmatpush.xpose.msrb.mxu0 %v425_v1  ;;  %4577 = vmatpush.xpose.msrb.mxu2 %v427_v2  ;;  %v434_v1 = vld [vmem:[%s10414_s9 + $0x328] sm:$0xff]  ;;  %v436_v2 = vld [vmem:[%s10414_s9 + $0x338] sm:$0xff] }
 0x1c7   : > { %4557 = vmatpush.xpose.msrb.mxu1 %v426_v6  ;;  %4597 = vmatpush.xpose.msrb.mxu3 %v428_v7  ;;  %v2999_v6 = vpop.f32.mrf.mxu3  ;;  %v1159_v7 = vld [vmem:[%s10414_s9 + $0x19d0] sm:$0xff] }
 0x1c9   : > { %4538 = vmatmul.f32.vlgmr.msrb.gmra.mxu0 %v1985_v50  ;;  %4578 = vmatmul.f32.vlgmr.msrb.gmra.mxu2 %v1987_v51  ;;  %v1158_v50 = vld [vmem:[%s10414_s9 + $0x19c8] sm:$0xff]  ;;  %v2939_v51 = vpop.f32.mrf.mxu0 }
 0x1ca   : > { %4614 = vmatpush.xpose.msra.mxu0 %v1512_v3  ;;  %4654 = vmatpush.xpose.msra.mxu2 %v1514_v4  ;;  %v1521_v4 = vld [vmem:[%s10414_s9 + $0x2520] sm:$0xf] }
 0x1cb   : > { %4634 = vmatpush.xpose.msra.mxu1 %v1513_v9  ;;  %4674 = vmatpush.xpose.msra.mxu3 %v1515_v10  ;;  %v2001_v9 = vld.sshfl [vmem:[#allocation1] sm:$0xff pattern:$0x73625140]  ;;  %v2003_v10 = vld.sshfl [vmem:[#allocation1 + $0x10] sm:$0xff pattern:$0x73625140] }
 0x1cc   : > { %4558 = vmatmul.f32.vlgmr.msrb.gmra.mxu1 %v1986_v52  ;;  %4598 = vmatmul.f32.vlgmr.msrb.gmra.mxu3 %v1988_v53  ;;  %v2920_v52 = vadd.f32 %v2919_v46, %v2900_v43  ;;  %v794_v53 = vld [vmem:[%s10414_s9 + $0xe68] sm:$0xff]  ;;  %v1164_v46 = vld [vmem:[%s10414_s9 + $0x19f8] sm:$0xff] }
 0x1cd   : > { %v2008_v43 = vld.sshfl [vmem:[#allocation1 + $0x38] sm:$0xff pattern:$0x73625140] }
 0x1ce   : > { %4615 = vmatpush.xpose.msra.mxu0 %v1151_v11  ;;  %4655 = vmatpush.xpose.msra.mxu2 %v1153_v12  ;;  %v2940_v55 = vadd.f32 %v2939_v51, %v2920_v52  ;;  %v2002_v11 = vld.sshfl [vmem:[#allocation1 + $0x8] sm:$0xff pattern:$0x73625140] }
 0x1cf   : > { %4635 = vmatpush.xpose.msra.mxu1 %v1152_v20  ;;  %4675 = vmatpush.xpose.msra.mxu3 %v1154_v21  ;;  %v800_v20 = vld [vmem:[%s10414_s9 + $0xe98] sm:$0xff]  ;;  %v3039_v21 = vpop.f32.mrf.mxu1 }
 0x1d0   : > { %v2960_v0 = vadd.f32 %v2959_v58, %v2940_v55 }
 0x1d1   : > { %v3019_v12 = vpop.f32.mrf.mxu0 }
 0x1d2   : > { %4616 = vmatpush.xpose.msra.mxu0 %v790_v23  ;;  %4656 = vmatpush.xpose.msra.mxu2 %v792_v24  ;;  %v2980_v3 = vadd.f32 %v2979_v61, %v2960_v0  ;;  %v801_v23 = vld [vmem:[%s10414_s9 + $0xea0] sm:$0xff]  ;;  %v3059_v24 = vpop.f32.mrf.mxu2  ;;  %v442_v61 = vld [vmem:[%s10414_s9 + $0x368] sm:$0xff] }
 0x1d3   : > { %4636 = vmatpush.xpose.msra.mxu1 %v791_v26  ;;  %4676 = vmatpush.xpose.msra.mxu3 %v793_v27  ;;  %v437_v26 = vld [vmem:[%s10414_s9 + $0x340] sm:$0xff]  ;;  %v439_v27 = vld [vmem:[%s10414_s9 + $0x350] sm:$0xff] }
 0x1d6   : > { %4617 = vmatpush.xpose.msra.mxu0 %v429_v29  ;;  %4657 = vmatpush.xpose.msra.mxu2 %v431_v30  ;;  %v1526_v29 = vld [vmem:[%s10414_s9 + $0x2548] sm:$0xf] }
 0x1d7   : > { %4637 = vmatpush.xpose.msra.mxu1 %v430_v34  ;;  %4677 = vmatpush.xpose.msra.mxu3 %v432_v35  ;;  %v1525_v34 = vld [vmem:[%s10414_s9 + $0x2540] sm:$0xf]  ;;  %v1527_v35 = vld [vmem:[%s10414_s9 + $0x2550] sm:$0xf]  ;;  %v3119_v48 = vpop.f32.mrf.mxu1 }
 0x1d9   : > { %4618 = vmatmul.f32.vlgmr.msra.gmra.mxu0 %v1991_v13  ;;  %4658 = vmatmul.f32.vlgmr.msra.gmra.mxu2 %v1993_v15  ;;  %v2004_v13 = vld.sshfl [vmem:[#allocation1 + $0x18] sm:$0xff pattern:$0x73625140]  ;;  %v3000_v15 = vadd.f32 %v2999_v6, %v2980_v3  ;;  %v3099_v36 = vpop.f32.mrf.mxu0 }
 0x1da   : > { %4694 = vmatpush.xpose.msrb.mxu0 %v1516_v32  ;;  %4734 = vmatpush.xpose.msrb.mxu2 %v1518_v33  ;;  %2009 = vst [vmem:[#allocation1] ss:$4 sm:$0xff] %v270_v14  ;;  %v440_v32 = vld [vmem:[%s10414_s9 + $0x358] sm:$0xff]  ;;  %v3079_v33 = vpop.f32.mrf.mxu3  ;;  %v3139_v51 = vpop.f32.mrf.mxu2  ;;  %v1167_v3 = vld [vmem:[%s10414_s9 + $0x1a10] sm:$0xff] }
 0x1db   : > { %4714 = vmatpush.xpose.msrb.mxu1 %v1517_v38  ;;  %4754 = vmatpush.xpose.msrb.mxu3 %v1519_v39  ;;  %v1165_v38 = vld [vmem:[%s10414_s9 + $0x1a00] sm:$0xff]  ;;  %v2005_v39 = vld.sshfl [vmem:[#allocation1 + $0x20] sm:$0xff pattern:$0x73625140] }
 0x1dc   : > { %4638 = vmatmul.f32.vlgmr.msra.gmra.mxu1 %v1992_v16  ;;  %4678 = vmatmul.f32.vlgmr.msra.gmra.mxu3 %v1994_v18  ;;  %v1160_v16 = vld [vmem:[%s10414_s9 + $0x19d8] sm:$0xff]  ;;  %v3020_v18 = vadd.f32 %v3019_v12, %v3000_v15 }
 0x1dd   : > { %v1168_v12 = vld [vmem:[%s10414_s9 + $0x1a18] sm:$0xff] }
 0x1de   : > { %4695 = vmatpush.xpose.msrb.mxu0 %v1155_v40  ;;  %4735 = vmatpush.xpose.msrb.mxu2 %v1157_v41  ;;  %v3040_v25 = vadd.f32 %v3039_v21, %v3020_v18  ;;  %v2007_v41 = vld.sshfl [vmem:[#allocation1 + $0x30] sm:$0xff pattern:$0x73625140] }
 0x1df   : > { %4715 = vmatpush.xpose.msrb.mxu1 %v1156_v49  ;;  %4755 = vmatpush.xpose.msrb.mxu3 %v1158_v50  ;;  %v802_v49 = vld [vmem:[%s10414_s9 + $0xea8] sm:$0xff]  ;;  %v804_v50 = vld [vmem:[%s10414_s9 + $0xeb8] sm:$0xff] }
 0x1e0   : > { %v3060_v30 = vadd.f32 %v3059_v24, %v3040_v25  ;;  %v1532_v25 = vld [vmem:[%s10414_s9 + $0x2578] sm:$0xf] }
 0x1e2   : > { %4696 = vmatpush.xpose.msrb.mxu0 %v794_v53  ;;  %4736 = vmatpush.xpose.msrb.mxu2 %v796_v54  ;;  %v3080_v40 = vadd.f32 %v3079_v33, %v3060_v30  ;;  %v803_v53 = vld [vmem:[%s10414_s9 + $0xeb0] sm:$0xff]  ;;  %v805_v54 = vld [vmem:[%s10414_s9 + $0xec0] sm:$0xff]  ;;  %v3159_v58 = vpop.f32.mrf.mxu3  ;;  %v3219_v14 = vpop.f32.mrf.mxu2 }
 0x1e3   : > { %4716 = vmatpush.xpose.msrb.mxu1 %v795_v56  ;;  %4756 = vmatpush.xpose.msrb.mxu3 %v797_v57  ;;  %v441_v56 = vld [vmem:[%s10414_s9 + $0x360] sm:$0xff]  ;;  %v443_v57 = vld [vmem:[%s10414_s9 + $0x370] sm:$0xff] }
 0x1e6   : > { %4697 = vmatpush.xpose.msrb.mxu0 %v433_v59  ;;  %4737 = vmatpush.xpose.msrb.mxu2 %v435_v60  ;;  %v1528_v59 = vld [vmem:[%s10414_s9 + $0x2558] sm:$0xf]  ;;  %v1530_v60 = vld [vmem:[%s10414_s9 + $0x2568] sm:$0xf] }
 0x1e7   : > { %4717 = vmatpush.xpose.msrb.mxu1 %v434_v1  ;;  %4757 = vmatpush.xpose.msrb.mxu3 %v436_v2  ;;  %v1529_v1 = vld [vmem:[%s10414_s9 + $0x2560] sm:$0xf]  ;;  %v1531_v2 = vld [vmem:[%s10414_s9 + $0x2570] sm:$0xf] }
 0x1e9   : > { %4698 = vmatmul.f32.vlgmr.msrb.gmra.mxu0 %v1995_v42  ;;  %4738 = vmatmul.f32.vlgmr.msrb.gmra.mxu2 %v1997_v44  ;;  %v2006_v42 = vld.sshfl [vmem:[#allocation1 + $0x28] sm:$0xff pattern:$0x73625140] }
 0x1ea   : > { %4774 = vmatpush.xpose.msra.mxu0 %v1520_v62  ;;  %4814 = vmatpush.xpose.msra.mxu2 %v1522_v63  ;;  %v271_v44 = vld [vmem:[%s10407_s7 + $0xe8] sm:$0xff]  ;;  %v3179_v63 = vpop.f32.mrf.mxu0  ;;  %v3239_v21 = vpop.f32.mrf.mxu3 }
 0x1eb   : > { %4794 = vmatpush.xpose.msra.mxu1 %v1521_v4  ;;  %4834 = vmatpush.xpose.msra.mxu3 %v1523_v5  ;;  %2010 = vst [vmem:[#allocation1 + $0x20] ss:$4 sm:$0xff] %v271_v44  ;;  %v444_v62 = vld [vmem:[%s10414_s9 + $0x378] sm:$0xff]  ;;  %v1169_v4 = vld [vmem:[%s10414_s9 + $0x1a20] sm:$0xff]  ;;  %v1174_v44 = vld [vmem:[%s10414_s9 + $0x1a48] sm:$0xff] }
 0x1ec   : > { %4718 = vmatmul.f32.vlgmr.msrb.gmra.mxu1 %v1996_v45  ;;  %4758 = vmatmul.f32.vlgmr.msrb.gmra.mxu3 %v1998_v47  ;;  %v3100_v45 = vadd.f32 %v3099_v36, %v3080_v40  ;;  %v1166_v47 = vld [vmem:[%s10414_s9 + $0x1a08] sm:$0xff]  ;;  %v2011_v5 = vld.sshfl [vmem:[#allocation1] sm:$0xff pattern:$0x73625140] }
 0x1ee   : > { %4775 = vmatpush.xpose.msra.mxu0 %v1159_v7  ;;  %4815 = vmatpush.xpose.msra.mxu2 %v1161_v8  ;;  %v3120_v52 = vadd.f32 %v3119_v48, %v3100_v45  ;;  %v2013_v7 = vld.sshfl [vmem:[#allocation1 + $0x10] sm:$0xff pattern:$0x73625140]  ;;  %v2012_v8 = vld.sshfl [vmem:[#allocation1 + $0x8] sm:$0xff pattern:$0x73625140] }
 0x1ef   : > { %4795 = vmatpush.xpose.msra.mxu1 %v1160_v16  ;;  %4835 = vmatpush.xpose.msra.mxu3 %v1162_v17  ;;  %v806_v16 = vld [vmem:[%s10414_s9 + $0xec8] sm:$0xff]  ;;  %v808_v17 = vld [vmem:[%s10414_s9 + $0xed8] sm:$0xff] }
 0x1f0   : > { %v3140_v55 = vadd.f32 %v3139_v51, %v3120_v52 }
 0x1f2   : > { %4776 = vmatpush.xpose.msra.mxu0 %v798_v19  ;;  %4816 = vmatpush.xpose.msra.mxu2 %v800_v20  ;;  %v3160_v0 = vadd.f32 %v3159_v58, %v3140_v55  ;;  %v807_v19 = vld [vmem:[%s10414_s9 + $0xed0] sm:$0xff]  ;;  %v809_v20 = vld [vmem:[%s10414_s9 + $0xee0] sm:$0xff]  ;;  %v3259_v24 = vpop.f32.mrf.mxu0  ;;  %v3319_v48 = vpop.f32.mrf.mxu3  ;;  %v1536_v55 = vld [vmem:[%s10414_s9 + $0x2598] sm:$0xf] }
 0x1f3   : > { %4796 = vmatpush.xpose.msra.mxu1 %v799_v22  ;;  %4836 = vmatpush.xpose.msra.mxu3 %v801_v23  ;;  %v445_v22 = vld [vmem:[%s10414_s9 + $0x380] sm:$0xff]  ;;  %v447_v23 = vld [vmem:[%s10414_s9 + $0x390] sm:$0xff]  ;;  %v450_v58 = vld [vmem:[%s10414_s9 + $0x3a8] sm:$0xff] }
 0x1f4   : > { %v3180_v6 = vadd.f32 %v3179_v63, %v3160_v0  ;;  %v2015_v36 = vld.sshfl [vmem:[#allocation1 + $0x20] sm:$0xff pattern:$0x73625140]  ;;  %v2018_v40 = vld.sshfl [vmem:[#allocation1 + $0x38] sm:$0xff pattern:$0x73625140] }
 0x1f5   : > { %v1175_v0 = vld [vmem:[%s10414_s9 + $0x1a50] sm:$0xff] }
 0x1f6   : > { %4777 = vmatpush.xpose.msra.mxu0 %v437_v26  ;;  %4817 = vmatpush.xpose.msra.mxu2 %v439_v27  ;;  %v1534_v26 = vld [vmem:[%s10414_s9 + $0x2588] sm:$0xf] }
 0x1f7   : > { %4797 = vmatpush.xpose.msra.mxu1 %v438_v31  ;;  %4837 = vmatpush.xpose.msra.mxu3 %v440_v32  ;;  %v1533_v31 = vld [vmem:[%s10414_s9 + $0x2580] sm:$0xf]  ;;  %v1535_v32 = vld [vmem:[%s10414_s9 + $0x2590] sm:$0xf] }
 0x1f9   : > { %4778 = vmatmul.f32.vlgmr.msra.gmra.mxu0 %v2001_v9  ;;  %4818 = vmatmul.f32.vlgmr.msra.gmra.mxu2 %v2003_v10  ;;  %v3199_v9 = vpop.f32.mrf.mxu1  ;;  %v2014_v10 = vld.sshfl [vmem:[#allocation1 + $0x18] sm:$0xff pattern:$0x73625140] }
 0x1fa   : > { %4854 = vmatpush.xpose.msrb.mxu0 %v1524_v28  ;;  %4894 = vmatpush.xpose.msrb.mxu2 %v1526_v29  ;;  %v3200_v15 = vadd.f32 %v3199_v9, %v3180_v6  ;;  %v446_v28 = vld [vmem:[%s10414_s9 + $0x388] sm:$0xff]  ;;  %v448_v29 = vld [vmem:[%s10414_s9 + $0x398] sm:$0xff]  ;;  %v3339_v51 = vpop.f32.mrf.mxu0 }
 0x1fb   : > { %4874 = vmatpush.xpose.msrb.mxu1 %v1525_v34  ;;  %4914 = vmatpush.xpose.msrb.mxu3 %v1527_v35  ;;  %v1171_v34 = vld [vmem:[%s10414_s9 + $0x1a30] sm:$0xff]  ;;  %v1173_v35 = vld [vmem:[%s10414_s9 + $0x1a40] sm:$0xff]  ;;  %v1176_v9 = vld [vmem:[%s10414_s9 + $0x1a58] sm:$0xff] }
 0x1fc   : > { %4798 = vmatmul.f32.vlgmr.msra.gmra.mxu1 %v2002_v11  ;;  %4838 = vmatmul.f32.vlgmr.msra.gmra.mxu3 %v2004_v13  ;;  %v272_v11 = vld [vmem:[%s10407_s7 + $0xf0] sm:$0xff]  ;;  %v3220_v18 = vadd.f32 %v3219_v14, %v3200_v15 }
 0x1fd   : > { %v1170_v13 = vld [vmem:[%s10414_s9 + $0x1a28] sm:$0xff]  ;;  %2019 = vst [vmem:[#allocation1] ss:$4 sm:$0xff] %v272_v11  ;;  %v3399_v11 = vpop.f32.mrf.mxu3 }
 0x1fe   : > { %4855 = vmatpush.xpose.msrb.mxu0 %v1163_v37  ;;  %4895 = vmatpush.xpose.msrb.mxu2 %v1165_v38  ;;  %v3240_v27 = vadd.f32 %v3239_v21, %v3220_v18  ;;  %v2017_v37 = vld.sshfl [vmem:[#allocation1 + $0x30] sm:$0xff pattern:$0x73625140]  ;;  %v2016_v38 = vld.sshfl [vmem:[#allocation1 + $0x28] sm:$0xff pattern:$0x73625140] }
 0x1ff   : > { %4875 = vmatpush.xpose.msrb.mxu1 %v1164_v46  ;;  %4915 = vmatpush.xpose.msrb.mxu3 %v1166_v47  ;;  %v810_v46 = vld [vmem:[%s10414_s9 + $0xee8] sm:$0xff]  ;;  %v812_v47 = vld [vmem:[%s10414_s9 + $0xef8] sm:$0xff] }
 0x200   : > { %v3260_v30 = vadd.f32 %v3259_v24, %v3240_v27  ;;  %v454_v24 = vld [vmem:[%s10414_s9 + $0x3c8] sm:$0xff] }
 0x201   : > { %v3279_v33 = vpop.f32.mrf.mxu1 }
 0x202   : > { %4856 = vmatpush.xpose.msrb.mxu0 %v802_v49  ;;  %4896 = vmatpush.xpose.msrb.mxu2 %v804_v50  ;;  %v811_v49 = vld [vmem:[%s10414_s9 + $0xef0] sm:$0xff]  ;;  %v813_v50 = vld [vmem:[%s10414_s9 + $0xf00] sm:$0xff]  ;;  %v3419_v14 = vpop.f32.mrf.mxu0 }
 0x203   : > { %4876 = vmatpush.xpose.msrb.mxu1 %v803_v53  ;;  %4916 = vmatpush.xpose.msrb.mxu3 %v805_v54  ;;  %v449_v53 = vld [vmem:[%s10414_s9 + $0x3a0] sm:$0xff]  ;;  %v451_v54 = vld [vmem:[%s10414_s9 + $0x3b0] sm:$0xff] }
 0x204   : > { %v2024_v6 = vld.sshfl [vmem:[#allocation1 + $0x18] sm:$0xff pattern:$0x73625140] }
 0x206   : > { %4857 = vmatpush.xpose.msrb.mxu0 %v441_v56  ;;  %4897 = vmatpush.xpose.msrb.mxu2 %v443_v57  ;;  %v1538_v56 = vld [vmem:[%s10414_s9 + $0x25a8] sm:$0xf] }
 0x207   : > { %4877 = vmatpush.xpose.msrb.mxu1 %v442_v61  ;;  %4917 = vmatpush.xpose.msrb.mxu3 %v444_v62  ;;  %v1537_v61 = vld [vmem:[%s10414_s9 + $0x25a0] sm:$0xf]  ;;  %v1539_v62 = vld [vmem:[%s10414_s9 + $0x25b0] sm:$0xf] }
 0x209   : > { %4858 = vmatmul.f32.vlgmr.msrb.gmra.mxu0 %v2005_v39  ;;  %4898 = vmatmul.f32.vlgmr.msrb.gmra.mxu2 %v2007_v41  ;;  %v3299_v39 = vpop.f32.mrf.mxu2  ;;  %v273_v41 = vld [vmem:[%s10407_s7 + $0xf8] sm:$0xff] }
 0x20a   : > { %4934 = vmatpush.xpose.msra.mxu0 %v1528_v59  ;;  %4974 = vmatpush.xpose.msra.mxu2 %v1530_v60  ;;  %2020 = vst [vmem:[#allocation1 + $0x20] ss:$4 sm:$0xff] %v273_v41  ;;  %v452_v59 = vld [vmem:[%s10414_s9 + $0x3b8] sm:$0xff]  ;;  %v3359_v60 = vpop.f32.mrf.mxu1  ;;  %v3499_v41 = vpop.f32.mrf.mxu0 }
 0x20b   : > { %4954 = vmatpush.xpose.msra.mxu1 %v1529_v1  ;;  %4994 = vmatpush.xpose.msra.mxu3 %v1531_v2  ;;  %v1177_v1 = vld [vmem:[%s10414_s9 + $0x1a60] sm:$0xff]  ;;  %v2021_v2 = vld.sshfl [vmem:[#allocation1] sm:$0xff pattern:$0x73625140] }
 0x20c   : > { %4878 = vmatmul.f32.vlgmr.msrb.gmra.mxu1 %v2006_v42  ;;  %4918 = vmatmul.f32.vlgmr.msrb.gmra.mxu3 %v2008_v43  ;;  %v3280_v42 = vadd.f32 %v3279_v33, %v3260_v30  ;;  %v1172_v43 = vld [vmem:[%s10414_s9 + $0x1a38] sm:$0xff]  ;;  %v1179_v30 = vld [vmem:[%s10414_s9 + $0x1a70] sm:$0xff] }
 0x20e   : > { %4935 = vmatpush.xpose.msra.mxu0 %v1167_v3  ;;  %4975 = vmatpush.xpose.msra.mxu2 %v1169_v4  ;;  %v3300_v45 = vadd.f32 %v3299_v39, %v3280_v42  ;;  %v2023_v4 = vld.sshfl [vmem:[#allocation1 + $0x10] sm:$0xff pattern:$0x73625140]  ;;  %v1180_v39 = vld [vmem:[%s10414_s9 + $0x1a78] sm:$0xff] }
 0x20f   : > { %4955 = vmatpush.xpose.msra.mxu1 %v1168_v12  ;;  %4995 = vmatpush.xpose.msra.mxu3 %v1170_v13  ;;  %v814_v12 = vld [vmem:[%s10414_s9 + $0xf08] sm:$0xff]  ;;  %v816_v13 = vld [vmem:[%s10414_s9 + $0xf18] sm:$0xff] }
 0x210   : > { %v3320_v52 = vadd.f32 %v3319_v48, %v3300_v45 }
 0x211   : > { %v3379_v63 = vpop.f32.mrf.mxu2 }
 0x212   : > { %4936 = vmatpush.xpose.msra.mxu0 %v806_v16  ;;  %4976 = vmatpush.xpose.msra.mxu2 %v808_v17  ;;  %v3340_v57 = vadd.f32 %v3339_v51, %v3320_v52  ;;  %v815_v16 = vld [vmem:[%s10414_s9 + $0xf10] sm:$0xff]  ;;  %v817_v17 = vld [vmem:[%s10414_s9 + $0xf20] sm:$0xff]  ;;  %v3439_v21 = vpop.f32.mrf.mxu1  ;;  %v1544_v52 = vld [vmem:[%s10414_s9 + $0x25d8] sm:$0xf] }
 0x213   : > { %4956 = vmatpush.xpose.msra.mxu1 %v807_v19  ;;  %4996 = vmatpush.xpose.msra.mxu3 %v809_v20  ;;  %v453_v19 = vld [vmem:[%s10414_s9 + $0x3c0] sm:$0xff]  ;;  %v455_v20 = vld [vmem:[%s10414_s9 + $0x3d0] sm:$0xff] }
 0x214   : > { %v3360_v3 = vadd.f32 %v3359_v60, %v3340_v57 }
 0x216   : > { %4937 = vmatpush.xpose.msra.mxu0 %v445_v22  ;;  %4977 = vmatpush.xpose.msra.mxu2 %v447_v23  ;;  %v1540_v22 = vld [vmem:[%s10414_s9 + $0x25b8] sm:$0xf]  ;;  %v1542_v23 = vld [vmem:[%s10414_s9 + $0x25c8] sm:$0xf] }
 0x217   : > { %4957 = vmatpush.xpose.msra.mxu1 %v446_v28  ;;  %4997 = vmatpush.xpose.msra.mxu3 %v448_v29  ;;  %v1541_v28 = vld [vmem:[%s10414_s9 + $0x25c0] sm:$0xf]  ;;  %v1543_v29 = vld [vmem:[%s10414_s9 + $0x25d0] sm:$0xf] }
 0x219   : > { %4938 = vmatmul.f32.vlgmr.msra.gmra.mxu0 %v2011_v5  ;;  %4978 = vmatmul.f32.vlgmr.msra.gmra.mxu2 %v2013_v7  ;;  %v2022_v5 = vld.sshfl [vmem:[#allocation1 + $0x8] sm:$0xff pattern:$0x73625140] }
 0x21a   : > { %5014 = vmatpush.xpose.msrb.mxu0 %v1532_v25  ;;  %5054 = vmatpush.xpose.msrb.mxu2 %v1534_v26  ;;  %v274_v7 = vld [vmem:[%s10407_s7 + $0x100] sm:$0xff]  ;;  %v3459_v26 = vpop.f32.mrf.mxu2  ;;  %v3519_v48 = vpop.f32.mrf.mxu1 }
 0x21b   : > { %5034 = vmatpush.xpose.msrb.mxu1 %v1533_v31  ;;  %5074 = vmatpush.xpose.msrb.mxu3 %v1535_v32  ;;  %2029 = vst [vmem:[#allocation1] ss:$4 sm:$0xff] %v274_v7  ;;  %v456_v25 = vld [vmem:[%s10414_s9 + $0x3d8] sm:$0xff]  ;;  %v1181_v31 = vld [vmem:[%s10414_s9 + $0x1a80] sm:$0xff]  ;;  %v1186_v7 = vld [vmem:[%s10414_s9 + $0x1aa8] sm:$0xff] }
 0x21c   : > { %4958 = vmatmul.f32.vlgmr.msra.gmra.mxu1 %v2012_v8  ;;  %4998 = vmatmul.f32.vlgmr.msra.gmra.mxu3 %v2014_v10  ;;  %v3380_v8 = vadd.f32 %v3379_v63, %v3360_v3  ;;  %v1178_v10 = vld [vmem:[%s10414_s9 + $0x1a68] sm:$0xff]  ;;  %v2025_v32 = vld.sshfl [vmem:[#allocation1 + $0x20] sm:$0xff pattern:$0x73625140] }
 0x21e   : > { %5015 = vmatpush.xpose.msrb.mxu0 %v1171_v34  ;;  %5055 = vmatpush.xpose.msrb.mxu2 %v1173_v35  ;;  %v3400_v15 = vadd.f32 %v3399_v11, %v3380_v8  ;;  %v2027_v34 = vld.sshfl [vmem:[#allocation1 + $0x30] sm:$0xff pattern:$0x73625140]  ;;  %v2026_v35 = vld.sshfl [vmem:[#allocation1 + $0x28] sm:$0xff pattern:$0x73625140] }
 0x21f   : > { %5035 = vmatpush.xpose.msrb.mxu1 %v1172_v43  ;;  %5075 = vmatpush.xpose.msrb.mxu3 %v1174_v44  ;;  %v818_v43 = vld [vmem:[%s10414_s9 + $0xf28] sm:$0xff]  ;;  %v820_v44 = vld [vmem:[%s10414_s9 + $0xf38] sm:$0xff] }
 0x220   : > { %v3420_v18 = vadd.f32 %v3419_v14, %v3400_v15 }
 0x222   : > { %5016 = vmatpush.xpose.msrb.mxu0 %v810_v46  ;;  %5056 = vmatpush.xpose.msrb.mxu2 %v812_v47  ;;  %v3440_v27 = vadd.f32 %v3439_v21, %v3420_v18  ;;  %v819_v46 = vld [vmem:[%s10414_s9 + $0xf30] sm:$0xff]  ;;  %v821_v47 = vld [vmem:[%s10414_s9 + $0xf40] sm:$0xff]  ;;  %v3539_v51 = vpop.f32.mrf.mxu2  ;;  %v3599_v11 = vpop.f32.mrf.mxu1  ;;  %v1548_v18 = vld [vmem:[%s10414_s9 + $0x25f8] sm:$0xf] }
 0x223   : > { %5036 = vmatpush.xpose.msrb.mxu1 %v811_v49  ;;  %5076 = vmatpush.xpose.msrb.mxu3 %v813_v50  ;;  %v457_v49 = vld [vmem:[%s10414_s9 + $0x3e0] sm:$0xff]  ;;  %v459_v50 = vld [vmem:[%s10414_s9 + $0x3f0] sm:$0xff]  ;;  %v462_v21 = vld [vmem:[%s10414_s9 + $0x408] sm:$0xff] }
 0x224   : > { %v3460_v33 = vadd.f32 %v3459_v26, %v3440_v27  ;;  %v2031_v63 = vld.sshfl [vmem:[#allocation1] sm:$0xff pattern:$0x73625140]  ;;  %v2034_v3 = vld.sshfl [vmem:[#allocation1 + $0x18] sm:$0xff pattern:$0x73625140] }
 0x225   : > { %v1187_v27 = vld [vmem:[%s10414_s9 + $0x1ab0] sm:$0xff] }
 0x226   : > { %5017 = vmatpush.xpose.msrb.mxu0 %v449_v53  ;;  %5057 = vmatpush.xpose.msrb.mxu2 %v451_v54  ;;  %v1546_v53 = vld [vmem:[%s10414_s9 + $0x25e8] sm:$0xf] }
 0x227   : > { %5037 = vmatpush.xpose.msrb.mxu1 %v450_v58  ;;  %5077 = vmatpush.xpose.msrb.mxu3 %v452_v59  ;;  %v1545_v58 = vld [vmem:[%s10414_s9 + $0x25e0] sm:$0xf]  ;;  %v1547_v59 = vld [vmem:[%s10414_s9 + $0x25f0] sm:$0xf] }
 0x229   : > { %5018 = vmatmul.f32.vlgmr.msrb.gmra.mxu0 %v2015_v36  ;;  %5058 = vmatmul.f32.vlgmr.msrb.gmra.mxu2 %v2017_v37  ;;  %v3479_v36 = vpop.f32.mrf.mxu3  ;;  %v2028_v37 = vld.sshfl [vmem:[#allocation1 + $0x38] sm:$0xff pattern:$0x73625140] }
 0x22a   : > { %5094 = vmatpush.xpose.msra.mxu0 %v1536_v55  ;;  %5134 = vmatpush.xpose.msra.mxu2 %v1538_v56  ;;  %v3480_v42 = vadd.f32 %v3479_v36, %v3460_v33  ;;  %v458_v55 = vld [vmem:[%s10414_s9 + $0x3e8] sm:$0xff]  ;;  %v460_v56 = vld [vmem:[%s10414_s9 + $0x3f8] sm:$0xff]  ;;  %v3619_v14 = vpop.f32.mrf.mxu2 }
 0x22b   : > { %5114 = vmatpush.xpose.msra.mxu1 %v1537_v61  ;;  %5154 = vmatpush.xpose.msra.mxu3 %v1539_v62  ;;  %v1183_v61 = vld [vmem:[%s10414_s9 + $0x1a90] sm:$0xff]  ;;  %v1185_v62 = vld [vmem:[%s10414_s9 + $0x1aa0] sm:$0xff]  ;;  %v1188_v36 = vld [vmem:[%s10414_s9 + $0x1ab8] sm:$0xff] }
 0x22c   : > { %5038 = vmatmul.f32.vlgmr.msrb.gmra.mxu1 %v2016_v38  ;;  %5078 = vmatmul.f32.vlgmr.msrb.gmra.mxu3 %v2018_v40  ;;  %v275_v38 = vld [vmem:[%s10407_s7 + $0x108] sm:$0xff]  ;;  %v3500_v45 = vadd.f32 %v3499_v41, %v3480_v42 }
 0x22d   : > { %v1182_v40 = vld [vmem:[%s10414_s9 + $0x1a88] sm:$0xff]  ;;  %2030 = vst [vmem:[#allocation1 + $0x20] ss:$4 sm:$0xff] %v275_v38  ;;  %v3679_v38 = vpop.f32.mrf.mxu1 }
 0x22e   : > { %5095 = vmatpush.xpose.msra.mxu0 %v1175_v0  ;;  %5135 = vmatpush.xpose.msra.mxu2 %v1177_v1  ;;  %v3520_v54 = vadd.f32 %v3519_v48, %v3500_v45  ;;  %v2033_v0 = vld.sshfl [vmem:[#allocation1 + $0x10] sm:$0xff pattern:$0x73625140]  ;;  %v2032_v1 = vld.sshfl [vmem:[#allocation1 + $0x8] sm:$0xff pattern:$0x73625140] }
 0x22f   : > { %5115 = vmatpush.xpose.msra.mxu1 %v1176_v9  ;;  %5155 = vmatpush.xpose.msra.mxu3 %v1178_v10  ;;  %v822_v9 = vld [vmem:[%s10414_s9 + $0xf48] sm:$0xff]  ;;  %v824_v10 = vld [vmem:[%s10414_s9 + $0xf58] sm:$0xff] }
 0x230   : > { %v3540_v57 = vadd.f32 %v3539_v51, %v3520_v54  ;;  %v466_v51 = vld [vmem:[%s10414_s9 + $0x428] sm:$0xff] }
 0x231   : > { %v3559_v60 = vpop.f32.mrf.mxu3 }
 0x232   : > { %5096 = vmatpush.xpose.msra.mxu0 %v814_v12  ;;  %5136 = vmatpush.xpose.msra.mxu2 %v816_v13  ;;  %v823_v12 = vld [vmem:[%s10414_s9 + $0xf50] sm:$0xff]  ;;  %v825_v13 = vld [vmem:[%s10414_s9 + $0xf60] sm:$0xff]  ;;  %v3699_v41 = vpop.f32.mrf.mxu2 }
 0x233   : > { %5116 = vmatpush.xpose.msra.mxu1 %v815_v16  ;;  %5156 = vmatpush.xpose.msra.mxu3 %v817_v17  ;;  %v461_v16 = vld [vmem:[%s10414_s9 + $0x400] sm:$0xff]  ;;  %v463_v17 = vld [vmem:[%s10414_s9 + $0x410] sm:$0xff] }
 0x234   : > { %v2038_v33 = vld.sshfl [vmem:[#allocation1 + $0x38] sm:$0xff pattern:$0x73625140] }
 0x236   : > { %5097 = vmatpush.xpose.msra.mxu0 %v453_v19  ;;  %5137 = vmatpush.xpose.msra.mxu2 %v455_v20  ;;  %v1550_v19 = vld [vmem:[%s10414_s9 + $0x2608] sm:$0xf] }
 0x237   : > { %5117 = vmatpush.xpose.msra.mxu1 %v454_v24  ;;  %5157 = vmatpush.xpose.msra.mxu3 %v456_v25  ;;  %v1549_v24 = vld [vmem:[%s10414_s9 + $0x2600] sm:$0xf]  ;;  %v1551_v25 = vld [vmem:[%s10414_s9 + $0x2610] sm:$0xf] }
 0x239   : > { %5098 = vmatmul.f32.vlgmr.msra.gmra.mxu0 %v2021_v2  ;;  %5138 = vmatmul.f32.vlgmr.msra.gmra.mxu2 %v2023_v4  ;;  %v3579_v2 = vpop.f32.mrf.mxu0  ;;  %v276_v4 = vld [vmem:[%s10407_s7 + $0x110] sm:$0xff] }
 0x23a   : > { %5174 = vmatpush.xpose.msrb.mxu0 %v1540_v22  ;;  %5214 = vmatpush.xpose.msrb.mxu2 %v1542_v23  ;;  %2039 = vst [vmem:[#allocation1] ss:$4 sm:$0xff] %v276_v4  ;;  %v464_v22 = vld [vmem:[%s10414_s9 + $0x418] sm:$0xff]  ;;  %v3639_v23 = vpop.f32.mrf.mxu3  ;;  %v3779_v4 = vpop.f32.mrf.mxu2 }
 0x23b   : > { %5194 = vmatpush.xpose.msrb.mxu1 %v1541_v28  ;;  %5234 = vmatpush.xpose.msrb.mxu3 %v1543_v29  ;;  %v1189_v28 = vld [vmem:[%s10414_s9 + $0x1ac0] sm:$0xff]  ;;  %v2035_v29 = vld.sshfl [vmem:[#allocation1 + $0x20] sm:$0xff pattern:$0x73625140] }
 0x23c   : > { %5118 = vmatmul.f32.vlgmr.msra.gmra.mxu1 %v2022_v5  ;;  %5158 = vmatmul.f32.vlgmr.msra.gmra.mxu3 %v2024_v6  ;;  %v3560_v5 = vadd.f32 %v3559_v60, %v3540_v57  ;;  %v1184_v6 = vld [vmem:[%s10414_s9 + $0x1a98] sm:$0xff]  ;;  %v1191_v57 = vld [vmem:[%s10414_s9 + $0x1ad0] sm:$0xff] }
 0x23e   : > { %5175 = vmatpush.xpose.msrb.mxu0 %v1179_v30  ;;  %5215 = vmatpush.xpose.msrb.mxu2 %v1181_v31  ;;  %v3580_v8 = vadd.f32 %v3579_v2, %v3560_v5  ;;  %v2037_v31 = vld.sshfl [vmem:[#allocation1 + $0x30] sm:$0xff pattern:$0x73625140]  ;;  %v1192_v2 = vld [vmem:[%s10414_s9 + $0x1ad8] sm:$0xff] }
 0x23f   : > { %5195 = vmatpush.xpose.msrb.mxu1 %v1180_v39  ;;  %5235 = vmatpush.xpose.msrb.mxu3 %v1182_v40  ;;  %v826_v39 = vld [vmem:[%s10414_s9 + $0xf68] sm:$0xff]  ;;  %v828_v40 = vld [vmem:[%s10414_s9 + $0xf78] sm:$0xff] }
 0x240   : > { %v3600_v15 = vadd.f32 %v3599_v11, %v3580_v8 }
 0x241   : > { %v3659_v26 = vpop.f32.mrf.mxu0 }
 0x242   : > { %5176 = vmatpush.xpose.msrb.mxu0 %v818_v43  ;;  %5216 = vmatpush.xpose.msrb.mxu2 %v820_v44  ;;  %v3620_v20 = vadd.f32 %v3619_v14, %v3600_v15  ;;  %v827_v43 = vld [vmem:[%s10414_s9 + $0xf70] sm:$0xff]  ;;  %v829_v44 = vld [vmem:[%s10414_s9 + $0xf80] sm:$0xff]  ;;  %v3719_v48 = vpop.f32.mrf.mxu3  ;;  %v1556_v15 = vld [vmem:[%s10414_s9 + $0x2638] sm:$0xf] }
 0x243   : > { %5196 = vmatpush.xpose.msrb.mxu1 %v819_v46  ;;  %5236 = vmatpush.xpose.msrb.mxu3 %v821_v47  ;;  %v465_v46 = vld [vmem:[%s10414_s9 + $0x420] sm:$0xff]  ;;  %v467_v47 = vld [vmem:[%s10414_s9 + $0x430] sm:$0xff] }
 0x244   : > { %v3640_v30 = vadd.f32 %v3639_v23, %v3620_v20 }
 0x246   : > { %5177 = vmatpush.xpose.msrb.mxu0 %v457_v49  ;;  %5217 = vmatpush.xpose.msrb.mxu2 %v459_v50  ;;  %v1552_v49 = vld [vmem:[%s10414_s9 + $0x2618] sm:$0xf]  ;;  %v1554_v50 = vld [vmem:[%s10414_s9 + $0x2628] sm:$0xf] }
 0x247   : > { %5197 = vmatpush.xpose.msrb.mxu1 %v458_v55  ;;  %5237 = vmatpush.xpose.msrb.mxu3 %v460_v56  ;;  %v1553_v55 = vld [vmem:[%s10414_s9 + $0x2620] sm:$0xf]  ;;  %v1555_v56 = vld [vmem:[%s10414_s9 + $0x2630] sm:$0xf] }
 0x249   : > { %5178 = vmatmul.f32.vlgmr.msrb.gmra.mxu0 %v2025_v32  ;;  %5218 = vmatmul.f32.vlgmr.msrb.gmra.mxu2 %v2027_v34  ;;  %v2036_v32 = vld.sshfl [vmem:[#allocation1 + $0x28] sm:$0xff pattern:$0x73625140]  ;;  %v277_v34 = vld [vmem:[%s10407_s7 + $0x118] sm:$0xff] }
 0x24a   : > { %5254 = vmatpush.xpose.msra.mxu0 %v1544_v52  ;;  %5294 = vmatpush.xpose.msra.mxu2 %v1546_v53  ;;  %2040 = vst [vmem:[#allocation1 + $0x20] ss:$4 sm:$0xff] %v277_v34  ;;  %v468_v52 = vld [vmem:[%s10414_s9 + $0x438] sm:$0xff]  ;;  %v3739_v53 = vpop.f32.mrf.mxu0  ;;  %v3799_v11 = vpop.f32.mrf.mxu3  ;;  %v1198_v34 = vld [vmem:[%s10414_s9 + $0x1b08] sm:$0xff] }
 0x24b   : > { %5274 = vmatpush.xpose.msra.mxu1 %v1545_v58  ;;  %5314 = vmatpush.xpose.msra.mxu3 %v1547_v59  ;;  %v1193_v58 = vld [vmem:[%s10414_s9 + $0x1ae0] sm:$0xff]  ;;  %v2041_v59 = vld.sshfl [vmem:[#allocation1] sm:$0xff pattern:$0x73625140] }
 0x24c   : > { %5198 = vmatmul.f32.vlgmr.msrb.gmra.mxu1 %v2026_v35  ;;  %5238 = vmatmul.f32.vlgmr.msrb.gmra.mxu3 %v2028_v37  ;;  %v3660_v35 = vadd.f32 %v3659_v26, %v3640_v30  ;;  %v1190_v37 = vld [vmem:[%s10414_s9 + $0x1ac8] sm:$0xff] }
 0x24e   : > { %5255 = vmatpush.xpose.msra.mxu0 %v1183_v61  ;;  %5295 = vmatpush.xpose.msra.mxu2 %v1185_v62  ;;  %v3680_v42 = vadd.f32 %v3679_v38, %v3660_v35  ;;  %v2043_v61 = vld.sshfl [vmem:[#allocation1 + $0x10] sm:$0xff pattern:$0x73625140]  ;;  %v2042_v62 = vld.sshfl [vmem:[#allocation1 + $0x8] sm:$0xff pattern:$0x73625140] }
 0x24f   : > { %5275 = vmatpush.xpose.msra.mxu1 %v1184_v6  ;;  %5315 = vmatpush.xpose.msra.mxu3 %v1186_v7  ;;  %v830_v6 = vld [vmem:[%s10414_s9 + $0xf88] sm:$0xff]  ;;  %v832_v7 = vld [vmem:[%s10414_s9 + $0xf98] sm:$0xff] }
 0x250   : > { %v3700_v45 = vadd.f32 %v3699_v41, %v3680_v42 }
 0x251   : > { %v2045_v26 = vld.sshfl [vmem:[#allocation1 + $0x20] sm:$0xff pattern:$0x73625140]  ;;  %v2048_v30 = vld.sshfl [vmem:[#allocation1 + $0x38] sm:$0xff pattern:$0x73625140] }
 0x252   : > { %5256 = vmatpush.xpose.msra.mxu0 %v822_v9  ;;  %5296 = vmatpush.xpose.msra.mxu2 %v824_v10  ;;  %v3720_v54 = vadd.f32 %v3719_v48, %v3700_v45  ;;  %v831_v9 = vld [vmem:[%s10414_s9 + $0xf90] sm:$0xff]  ;;  %v833_v10 = vld [vmem:[%s10414_s9 + $0xfa0] sm:$0xff]  ;;  %v3819_v14 = vpop.f32.mrf.mxu0  ;;  %v3879_v38 = vpop.f32.mrf.mxu3  ;;  %v1560_v45 = vld [vmem:[%s10414_s9 + $0x2658] sm:$0xf] }
 0x253   : > { %5276 = vmatpush.xpose.msra.mxu1 %v823_v12  ;;  %5316 = vmatpush.xpose.msra.mxu3 %v825_v13  ;;  %v469_v12 = vld [vmem:[%s10414_s9 + $0x440] sm:$0xff]  ;;  %v471_v13 = vld [vmem:[%s10414_s9 + $0x450] sm:$0xff]  ;;  %v474_v48 = vld [vmem:[%s10414_s9 + $0x468] sm:$0xff] }
 0x254   : > { %v3740_v60 = vadd.f32 %v3739_v53, %v3720_v54  ;;  %v1199_v54 = vld [vmem:[%s10414_s9 + $0x1b10] sm:$0xff] }
 0x256   : > { %5257 = vmatpush.xpose.msra.mxu0 %v461_v16  ;;  %5297 = vmatpush.xpose.msra.mxu2 %v463_v17  ;;  %v1558_v16 = vld [vmem:[%s10414_s9 + $0x2648] sm:$0xf] }
 0x257   : > { %5277 = vmatpush.xpose.msra.mxu1 %v462_v21  ;;  %5317 = vmatpush.xpose.msra.mxu3 %v464_v22  ;;  %v1557_v21 = vld [vmem:[%s10414_s9 + $0x2640] sm:$0xf]  ;;  %v1559_v22 = vld [vmem:[%s10414_s9 + $0x2650] sm:$0xf] }
 0x259   : > { %5258 = vmatmul.f32.vlgmr.msra.gmra.mxu0 %v2031_v63  ;;  %5298 = vmatmul.f32.vlgmr.msra.gmra.mxu2 %v2033_v0  ;;  %v3759_v63 = vpop.f32.mrf.mxu1  ;;  %v2044_v0 = vld.sshfl [vmem:[#allocation1 + $0x18] sm:$0xff pattern:$0x73625140] }
 0x25a   : > { %5334 = vmatpush.xpose.msrb.mxu0 %v1548_v18  ;;  %5374 = vmatpush.xpose.msrb.mxu2 %v1550_v19  ;;  %v3760_v5 = vadd.f32 %v3759_v63, %v3740_v60  ;;  %v470_v18 = vld [vmem:[%s10414_s9 + $0x448] sm:$0xff]  ;;  %v472_v19 = vld [vmem:[%s10414_s9 + $0x458] sm:$0xff]  ;;  %v3899_v41 = vpop.f32.mrf.mxu0 }
 0x25b   : > { %5354 = vmatpush.xpose.msrb.mxu1 %v1549_v24  ;;  %5394 = vmatpush.xpose.msrb.mxu3 %v1551_v25  ;;  %v1195_v24 = vld [vmem:[%s10414_s9 + $0x1af0] sm:$0xff]  ;;  %v1197_v25 = vld [vmem:[%s10414_s9 + $0x1b00] sm:$0xff]  ;;  %v1200_v63 = vld [vmem:[%s10414_s9 + $0x1b18] sm:$0xff] }
 0x25c   : > { %5278 = vmatmul.f32.vlgmr.msra.gmra.mxu1 %v2032_v1  ;;  %5318 = vmatmul.f32.vlgmr.msra.gmra.mxu3 %v2034_v3  ;;  %v278_v1 = vld [vmem:[%s10407_s7 + $0x120] sm:$0xff]  ;;  %v3780_v8 = vadd.f32 %v3779_v4, %v3760_v5 }
 0x25d   : > { %v1194_v3 = vld [vmem:[%s10414_s9 + $0x1ae8] sm:$0xff]  ;;  %2049 = vst [vmem:[#allocation1] ss:$4 sm:$0xff] %v278_v1  ;;  %v3959_v1 = vpop.f32.mrf.mxu3 }
 0x25e   : > { %5335 = vmatpush.xpose.msrb.mxu0 %v1187_v27  ;;  %5375 = vmatpush.xpose.msrb.mxu2 %v1189_v28  ;;  %v3800_v17 = vadd.f32 %v3799_v11, %v3780_v8  ;;  %v2047_v27 = vld.sshfl [vmem:[#allocation1 + $0x30] sm:$0xff pattern:$0x73625140]  ;;  %v2046_v28 = vld.sshfl [vmem:[#allocation1 + $0x28] sm:$0xff pattern:$0x73625140] }
 0x25f   : > { %5355 = vmatpush.xpose.msrb.mxu1 %v1188_v36  ;;  %5395 = vmatpush.xpose.msrb.mxu3 %v1190_v37  ;;  %v834_v36 = vld [vmem:[%s10414_s9 + $0xfa8] sm:$0xff]  ;;  %v836_v37 = vld [vmem:[%s10414_s9 + $0xfb8] sm:$0xff] }
 0x260   : > { %v3820_v20 = vadd.f32 %v3819_v14, %v3800_v17  ;;  %v478_v14 = vld [vmem:[%s10414_s9 + $0x488] sm:$0xff] }
 0x261   : > { %v3839_v23 = vpop.f32.mrf.mxu1 }
 0x262   : > { %5336 = vmatpush.xpose.msrb.mxu0 %v826_v39  ;;  %5376 = vmatpush.xpose.msrb.mxu2 %v828_v40  ;;  %v835_v39 = vld [vmem:[%s10414_s9 + $0xfb0] sm:$0xff]  ;;  %v837_v40 = vld [vmem:[%s10414_s9 + $0xfc0] sm:$0xff]  ;;  %v3979_v4 = vpop.f32.mrf.mxu0 }
 0x263   : > { %5356 = vmatpush.xpose.msrb.mxu1 %v827_v43  ;;  %5396 = vmatpush.xpose.msrb.mxu3 %v829_v44  ;;  %v473_v43 = vld [vmem:[%s10414_s9 + $0x460] sm:$0xff]  ;;  %v475_v44 = vld [vmem:[%s10414_s9 + $0x470] sm:$0xff] }
 0x264   : > { %v2054_v60 = vld.sshfl [vmem:[#allocation1 + $0x18] sm:$0xff pattern:$0x73625140] }
 0x266   : > { %5337 = vmatpush.xpose.msrb.mxu0 %v465_v46  ;;  %5377 = vmatpush.xpose.msrb.mxu2 %v467_v47  ;;  %v1562_v46 = vld [vmem:[%s10414_s9 + $0x2668] sm:$0xf] }
 0x267   : > { %5357 = vmatpush.xpose.msrb.mxu1 %v466_v51  ;;  %5397 = vmatpush.xpose.msrb.mxu3 %v468_v52  ;;  %v1561_v51 = vld [vmem:[%s10414_s9 + $0x2660] sm:$0xf]  ;;  %v1563_v52 = vld [vmem:[%s10414_s9 + $0x2670] sm:$0xf] }
 0x269   : > { %5338 = vmatmul.f32.vlgmr.msrb.gmra.mxu0 %v2035_v29  ;;  %5378 = vmatmul.f32.vlgmr.msrb.gmra.mxu2 %v2037_v31  ;;  %v3859_v29 = vpop.f32.mrf.mxu2  ;;  %v279_v31 = vld [vmem:[%s10407_s7 + $0x128] sm:$0xff] }
 0x26a   : > { %5414 = vmatpush.xpose.msra.mxu0 %v1552_v49  ;;  %5454 = vmatpush.xpose.msra.mxu2 %v1554_v50  ;;  %2050 = vst [vmem:[#allocation1 + $0x20] ss:$4 sm:$0xff] %v279_v31  ;;  %v476_v49 = vld [vmem:[%s10414_s9 + $0x478] sm:$0xff]  ;;  %v3919_v50 = vpop.f32.mrf.mxu1  ;;  %v4059_v31 = vpop.f32.mrf.mxu0 }
 0x26b   : > { %5434 = vmatpush.xpose.msra.mxu1 %v1553_v55  ;;  %5474 = vmatpush.xpose.msra.mxu3 %v1555_v56  ;;  %v1201_v55 = vld [vmem:[%s10414_s9 + $0x1b20] sm:$0xff]  ;;  %v2051_v56 = vld.sshfl [vmem:[#allocation1] sm:$0xff pattern:$0x73625140] }
 0x26c   : > { %5358 = vmatmul.f32.vlgmr.msrb.gmra.mxu1 %v2036_v32  ;;  %5398 = vmatmul.f32.vlgmr.msrb.gmra.mxu3 %v2038_v33  ;;  %v3840_v32 = vadd.f32 %v3839_v23, %v3820_v20  ;;  %v1196_v33 = vld [vmem:[%s10414_s9 + $0x1af8] sm:$0xff]  ;;  %v1203_v20 = vld [vmem:[%s10414_s9 + $0x1b30] sm:$0xff] }
 0x26e   : > { %5415 = vmatpush.xpose.msra.mxu0 %v1191_v57  ;;  %5455 = vmatpush.xpose.msra.mxu2 %v1193_v58  ;;  %v3860_v35 = vadd.f32 %v3859_v29, %v3840_v32  ;;  %v2053_v58 = vld.sshfl [vmem:[#allocation1 + $0x10] sm:$0xff pattern:$0x73625140]  ;;  %v1204_v29 = vld [vmem:[%s10414_s9 + $0x1b38] sm:$0xff] }
 0x26f   : > { %5435 = vmatpush.xpose.msra.mxu1 %v1192_v2  ;;  %5475 = vmatpush.xpose.msra.mxu3 %v1194_v3  ;;  %v838_v2 = vld [vmem:[%s10414_s9 + $0xfc8] sm:$0xff]  ;;  %v840_v3 = vld [vmem:[%s10414_s9 + $0xfd8] sm:$0xff] }
 0x270   : > { %v3880_v42 = vadd.f32 %v3879_v38, %v3860_v35 }
 0x271   : > { %v3939_v53 = vpop.f32.mrf.mxu2 }
 0x272   : > { %5416 = vmatpush.xpose.msra.mxu0 %v830_v6  ;;  %5456 = vmatpush.xpose.msra.mxu2 %v832_v7  ;;  %v3900_v47 = vadd.f32 %v3899_v41, %v3880_v42  ;;  %v839_v6 = vld [vmem:[%s10414_s9 + $0xfd0] sm:$0xff]  ;;  %v841_v7 = vld [vmem:[%s10414_s9 + $0xfe0] sm:$0xff]  ;;  %v3999_v11 = vpop.f32.mrf.mxu1  ;;  %v1568_v42 = vld [vmem:[%s10414_s9 + $0x2698] sm:$0xf] }
 0x273   : > { %5436 = vmatpush.xpose.msra.mxu1 %v831_v9  ;;  %5476 = vmatpush.xpose.msra.mxu3 %v833_v10  ;;  %v477_v9 = vld [vmem:[%s10414_s9 + $0x480] sm:$0xff]  ;;  %v479_v10 = vld [vmem:[%s10414_s9 + $0x490] sm:$0xff] }
 0x274   : > { %v3920_v57 = vadd.f32 %v3919_v50, %v3900_v47 }
 0x276   : > { %5417 = vmatpush.xpose.msra.mxu0 %v469_v12  ;;  %5457 = vmatpush.xpose.msra.mxu2 %v471_v13  ;;  %v1564_v12 = vld [vmem:[%s10414_s9 + $0x2678] sm:$0xf]  ;;  %v1566_v13 = vld [vmem:[%s10414_s9 + $0x2688] sm:$0xf] }
 0x277   : > { %5437 = vmatpush.xpose.msra.mxu1 %v470_v18  ;;  %5477 = vmatpush.xpose.msra.mxu3 %v472_v19  ;;  %v1565_v18 = vld [vmem:[%s10414_s9 + $0x2680] sm:$0xf]  ;;  %v1567_v19 = vld [vmem:[%s10414_s9 + $0x2690] sm:$0xf] }
 0x279   : > { %5418 = vmatmul.f32.vlgmr.msra.gmra.mxu0 %v2041_v59  ;;  %5458 = vmatmul.f32.vlgmr.msra.gmra.mxu2 %v2043_v61  ;;  %v2052_v59 = vld.sshfl [vmem:[#allocation1 + $0x8] sm:$0xff pattern:$0x73625140] }
 0x27a   : > { %5494 = vmatpush.xpose.msrb.mxu0 %v1556_v15  ;;  %5534 = vmatpush.xpose.msrb.mxu2 %v1558_v16  ;;  %v280_v61 = vld [vmem:[%s10407_s7 + $0x130] sm:$0xff]  ;;  %v4019_v16 = vpop.f32.mrf.mxu2  ;;  %v4079_v38 = vpop.f32.mrf.mxu1 }
 0x27b   : > { %5514 = vmatpush.xpose.msrb.mxu1 %v1557_v21  ;;  %5554 = vmatpush.xpose.msrb.mxu3 %v1559_v22  ;;  %2059 = vst [vmem:[#allocation1] ss:$4 sm:$0xff] %v280_v61  ;;  %v480_v15 = vld [vmem:[%s10414_s9 + $0x498] sm:$0xff]  ;;  %v1205_v21 = vld [vmem:[%s10414_s9 + $0x1b40] sm:$0xff]  ;;  %v1210_v61 = vld [vmem:[%s10414_s9 + $0x1b68] sm:$0xff] }
 0x27c   : > { %5438 = vmatmul.f32.vlgmr.msra.gmra.mxu1 %v2042_v62  ;;  %5478 = vmatmul.f32.vlgmr.msra.gmra.mxu3 %v2044_v0  ;;  %v3940_v62 = vadd.f32 %v3939_v53, %v3920_v57  ;;  %v1202_v0 = vld [vmem:[%s10414_s9 + $0x1b28] sm:$0xff]  ;;  %v2055_v22 = vld.sshfl [vmem:[#allocation1 + $0x20] sm:$0xff pattern:$0x73625140] }
 0x27e   : > { %5495 = vmatpush.xpose.msrb.mxu0 %v1195_v24  ;;  %5535 = vmatpush.xpose.msrb.mxu2 %v1197_v25  ;;  %v3960_v5 = vadd.f32 %v3959_v1, %v3940_v62  ;;  %v2057_v24 = vld.sshfl [vmem:[#allocation1 + $0x30] sm:$0xff pattern:$0x73625140]  ;;  %v2056_v25 = vld.sshfl [vmem:[#allocation1 + $0x28] sm:$0xff pattern:$0x73625140] }
 0x27f   : > { %5515 = vmatpush.xpose.msrb.mxu1 %v1196_v33  ;;  %5555 = vmatpush.xpose.msrb.mxu3 %v1198_v34  ;;  %v842_v33 = vld [vmem:[%s10414_s9 + $0xfe8] sm:$0xff]  ;;  %v844_v34 = vld [vmem:[%s10414_s9 + $0xff8] sm:$0xff] }
 0x280   : > { %v3980_v8 = vadd.f32 %v3979_v4, %v3960_v5 }
 0x282   : > { %5496 = vmatpush.xpose.msrb.mxu0 %v834_v36  ;;  %5536 = vmatpush.xpose.msrb.mxu2 %v836_v37  ;;  %v4000_v17 = vadd.f32 %v3999_v11, %v3980_v8  ;;  %v843_v36 = vld [vmem:[%s10414_s9 + $0xff0] sm:$0xff]  ;;  %v845_v37 = vld [vmem:[%s10414_s9 + $0x1000] sm:$0xff]  ;;  %v4099_v41 = vpop.f32.mrf.mxu2  ;;  %v4159_v1 = vpop.f32.mrf.mxu1  ;;  %v1572_v8 = vld [vmem:[%s10414_s9 + $0x26b8] sm:$0xf] }
 0x283   : > { %5516 = vmatpush.xpose.msrb.mxu1 %v835_v39  ;;  %5556 = vmatpush.xpose.msrb.mxu3 %v837_v40  ;;  %v481_v39 = vld [vmem:[%s10414_s9 + $0x4a0] sm:$0xff]  ;;  %v483_v40 = vld [vmem:[%s10414_s9 + $0x4b0] sm:$0xff]  ;;  %v486_v11 = vld [vmem:[%s10414_s9 + $0x4c8] sm:$0xff] }
 0x284   : > { %v4020_v23 = vadd.f32 %v4019_v16, %v4000_v17  ;;  %v2061_v53 = vld.sshfl [vmem:[#allocation1] sm:$0xff pattern:$0x73625140]  ;;  %v2064_v57 = vld.sshfl [vmem:[#allocation1 + $0x18] sm:$0xff pattern:$0x73625140] }
 0x285   : > { %v1211_v17 = vld [vmem:[%s10414_s9 + $0x1b70] sm:$0xff] }
 0x286   : > { %5497 = vmatpush.xpose.msrb.mxu0 %v473_v43  ;;  %5537 = vmatpush.xpose.msrb.mxu2 %v475_v44  ;;  %v1570_v43 = vld [vmem:[%s10414_s9 + $0x26a8] sm:$0xf] }
 0x287   : > { %5517 = vmatpush.xpose.msrb.mxu1 %v474_v48  ;;  %5557 = vmatpush.xpose.msrb.mxu3 %v476_v49  ;;  %v1569_v48 = vld [vmem:[%s10414_s9 + $0x26a0] sm:$0xf]  ;;  %v1571_v49 = vld [vmem:[%s10414_s9 + $0x26b0] sm:$0xf] }
 0x289   : > { %5498 = vmatmul.f32.vlgmr.msrb.gmra.mxu0 %v2045_v26  ;;  %5538 = vmatmul.f32.vlgmr.msrb.gmra.mxu2 %v2047_v27  ;;  %v4039_v26 = vpop.f32.mrf.mxu3  ;;  %v2058_v27 = vld.sshfl [vmem:[#allocation1 + $0x38] sm:$0xff pattern:$0x73625140] }
 0x28a   : > { %5574 = vmatpush.xpose.msra.mxu0 %v1560_v45  ;;  %5614 = vmatpush.xpose.msra.mxu2 %v1562_v46  ;;  %v4040_v32 = vadd.f32 %v4039_v26, %v4020_v23  ;;  %v482_v45 = vld [vmem:[%s10414_s9 + $0x4a8] sm:$0xff]  ;;  %v484_v46 = vld [vmem:[%s10414_s9 + $0x4b8] sm:$0xff]  ;;  %v4179_v4 = vpop.f32.mrf.mxu2 }
 0x28b   : > { %5594 = vmatpush.xpose.msra.mxu1 %v1561_v51  ;;  %5634 = vmatpush.xpose.msra.mxu3 %v1563_v52  ;;  %v1207_v51 = vld [vmem:[%s10414_s9 + $0x1b50] sm:$0xff]  ;;  %v1209_v52 = vld [vmem:[%s10414_s9 + $0x1b60] sm:$0xff]  ;;  %v1212_v26 = vld [vmem:[%s10414_s9 + $0x1b78] sm:$0xff] }
 0x28c   : > { %5518 = vmatmul.f32.vlgmr.msrb.gmra.mxu1 %v2046_v28  ;;  %5558 = vmatmul.f32.vlgmr.msrb.gmra.mxu3 %v2048_v30  ;;  %v281_v28 = vld [vmem:[%s10407_s7 + $0x138] sm:$0xff]  ;;  %v4060_v35 = vadd.f32 %v4059_v31, %v4040_v32 }
 0x28d   : > { %v1206_v30 = vld [vmem:[%s10414_s9 + $0x1b48] sm:$0xff]  ;;  %2060 = vst [vmem:[#allocation1 + $0x20] ss:$4 sm:$0xff] %v281_v28  ;;  %v4239_v28 = vpop.f32.mrf.mxu1 }
 0x28e   : > { %5575 = vmatpush.xpose.msra.mxu0 %v1199_v54  ;;  %5615 = vmatpush.xpose.msra.mxu2 %v1201_v55  ;;  %v4080_v44 = vadd.f32 %v4079_v38, %v4060_v35  ;;  %v2063_v54 = vld.sshfl [vmem:[#allocation1 + $0x10] sm:$0xff pattern:$0x73625140]  ;;  %v2062_v55 = vld.sshfl [vmem:[#allocation1 + $0x8] sm:$0xff pattern:$0x73625140] }
 0x28f   : > { %5595 = vmatpush.xpose.msra.mxu1 %v1200_v63  ;;  %5635 = vmatpush.xpose.msra.mxu3 %v1202_v0  ;;  %v846_v63 = vld [vmem:[%s10414_s9 + $0x1008] sm:$0xff]  ;;  %v848_v0 = vld [vmem:[%s10414_s9 + $0x1018] sm:$0xff] }
 0x290   : > { %v4100_v47 = vadd.f32 %v4099_v41, %v4080_v44  ;;  %v490_v41 = vld [vmem:[%s10414_s9 + $0x4e8] sm:$0xff] }
 0x291   : > { %v4119_v50 = vpop.f32.mrf.mxu3 }
 0x292   : > { %5576 = vmatpush.xpose.msra.mxu0 %v838_v2  ;;  %5616 = vmatpush.xpose.msra.mxu2 %v840_v3  ;;  %v847_v2 = vld [vmem:[%s10414_s9 + $0x1010] sm:$0xff]  ;;  %v849_v3 = vld [vmem:[%s10414_s9 + $0x1020] sm:$0xff]  ;;  %v4259_v31 = vpop.f32.mrf.mxu2 }
 0x293   : > { %5596 = vmatpush.xpose.msra.mxu1 %v839_v6  ;;  %5636 = vmatpush.xpose.msra.mxu3 %v841_v7  ;;  %v485_v6 = vld [vmem:[%s10414_s9 + $0x4c0] sm:$0xff]  ;;  %v487_v7 = vld [vmem:[%s10414_s9 + $0x4d0] sm:$0xff] }
 0x294   : > { %v2068_v23 = vld.sshfl [vmem:[#allocation1 + $0x38] sm:$0xff pattern:$0x73625140] }
 0x296   : > { %5577 = vmatpush.xpose.msra.mxu0 %v477_v9  ;;  %5617 = vmatpush.xpose.msra.mxu2 %v479_v10  ;;  %v1574_v9 = vld [vmem:[%s10414_s9 + $0x26c8] sm:$0xf] }
 0x297   : > { %5597 = vmatpush.xpose.msra.mxu1 %v478_v14  ;;  %5637 = vmatpush.xpose.msra.mxu3 %v480_v15  ;;  %v1573_v14 = vld [vmem:[%s10414_s9 + $0x26c0] sm:$0xf]  ;;  %v1575_v15 = vld [vmem:[%s10414_s9 + $0x26d0] sm:$0xf] }
 0x299   : > { %5578 = vmatmul.f32.vlgmr.msra.gmra.mxu0 %v2051_v56  ;;  %5618 = vmatmul.f32.vlgmr.msra.gmra.mxu2 %v2053_v58  ;;  %v4139_v56 = vpop.f32.mrf.mxu0  ;;  %v282_v58 = vld [vmem:[%s10407_s7 + $0x140] sm:$0xff] }
 0x29a   : > { %5654 = vmatpush.xpose.msrb.mxu0 %v1564_v12  ;;  %5694 = vmatpush.xpose.msrb.mxu2 %v1566_v13  ;;  %2069 = vst [vmem:[#allocation1] ss:$4 sm:$0xff] %v282_v58  ;;  %v488_v12 = vld [vmem:[%s10414_s9 + $0x4d8] sm:$0xff]  ;;  %v4199_v13 = vpop.f32.mrf.mxu3  ;;  %v4339_v58 = vpop.f32.mrf.mxu2 }
 0x29b   : > { %5674 = vmatpush.xpose.msrb.mxu1 %v1565_v18  ;;  %5714 = vmatpush.xpose.msrb.mxu3 %v1567_v19  ;;  %v1213_v18 = vld [vmem:[%s10414_s9 + $0x1b80] sm:$0xff]  ;;  %v2065_v19 = vld.sshfl [vmem:[#allocation1 + $0x20] sm:$0xff pattern:$0x73625140] }
 0x29c   : > { %5598 = vmatmul.f32.vlgmr.msra.gmra.mxu1 %v2052_v59  ;;  %5638 = vmatmul.f32.vlgmr.msra.gmra.mxu3 %v2054_v60  ;;  %v4120_v59 = vadd.f32 %v4119_v50, %v4100_v47  ;;  %v1208_v60 = vld [vmem:[%s10414_s9 + $0x1b58] sm:$0xff]  ;;  %v1215_v47 = vld [vmem:[%s10414_s9 + $0x1b90] sm:$0xff] }
 0x29e   : > { %5655 = vmatpush.xpose.msrb.mxu0 %v1203_v20  ;;  %5695 = vmatpush.xpose.msrb.mxu2 %v1205_v21  ;;  %v4140_v62 = vadd.f32 %v4139_v56, %v4120_v59  ;;  %v2067_v21 = vld.sshfl [vmem:[#allocation1 + $0x30] sm:$0xff pattern:$0x73625140]  ;;  %v1216_v56 = vld [vmem:[%s10414_s9 + $0x1b98] sm:$0xff] }
 0x29f   : > { %5675 = vmatpush.xpose.msrb.mxu1 %v1204_v29  ;;  %5715 = vmatpush.xpose.msrb.mxu3 %v1206_v30  ;;  %v850_v29 = vld [vmem:[%s10414_s9 + $0x1028] sm:$0xff]  ;;  %v852_v30 = vld [vmem:[%s10414_s9 + $0x1038] sm:$0xff] }
 0x2a0   : > { %v4160_v5 = vadd.f32 %v4159_v1, %v4140_v62 }
 0x2a1   : > { %v4219_v16 = vpop.f32.mrf.mxu0 }
 0x2a2   : > { %5656 = vmatpush.xpose.msrb.mxu0 %v842_v33  ;;  %5696 = vmatpush.xpose.msrb.mxu2 %v844_v34  ;;  %v4180_v10 = vadd.f32 %v4179_v4, %v4160_v5  ;;  %v851_v33 = vld [vmem:[%s10414_s9 + $0x1030] sm:$0xff]  ;;  %v853_v34 = vld [vmem:[%s10414_s9 + $0x1040] sm:$0xff]  ;;  %v4279_v38 = vpop.f32.mrf.mxu3  ;;  %v1580_v5 = vld [vmem:[%s10414_s9 + $0x26f8] sm:$0xf] }
 0x2a3   : > { %5676 = vmatpush.xpose.msrb.mxu1 %v843_v36  ;;  %5716 = vmatpush.xpose.msrb.mxu3 %v845_v37  ;;  %v489_v36 = vld [vmem:[%s10414_s9 + $0x4e0] sm:$0xff]  ;;  %v491_v37 = vld [vmem:[%s10414_s9 + $0x4f0] sm:$0xff] }
 0x2a4   : > { %v4200_v20 = vadd.f32 %v4199_v13, %v4180_v10 }
 0x2a6   : > { %5657 = vmatpush.xpose.msrb.mxu0 %v481_v39  ;;  %5697 = vmatpush.xpose.msrb.mxu2 %v483_v40  ;;  %v1576_v39 = vld [vmem:[%s10414_s9 + $0x26d8] sm:$0xf]  ;;  %v1578_v40 = vld [vmem:[%s10414_s9 + $0x26e8] sm:$0xf] }
 0x2a7   : > { %5677 = vmatpush.xpose.msrb.mxu1 %v482_v45  ;;  %5717 = vmatpush.xpose.msrb.mxu3 %v484_v46  ;;  %v1577_v45 = vld [vmem:[%s10414_s9 + $0x26e0] sm:$0xf]  ;;  %v1579_v46 = vld [vmem:[%s10414_s9 + $0x26f0] sm:$0xf] }
 0x2a9   : > { %5658 = vmatmul.f32.vlgmr.msrb.gmra.mxu0 %v2055_v22  ;;  %5698 = vmatmul.f32.vlgmr.msrb.gmra.mxu2 %v2057_v24  ;;  %v2066_v22 = vld.sshfl [vmem:[#allocation1 + $0x28] sm:$0xff pattern:$0x73625140] }
 0x2aa   : > { %5734 = vmatpush.xpose.msra.mxu0 %v1568_v42  ;;  %5774 = vmatpush.xpose.msra.mxu2 %v1570_v43  ;;  %v283_v24 = vld [vmem:[%s10407_s7 + $0x148] sm:$0xff]  ;;  %v4299_v43 = vpop.f32.mrf.mxu0  ;;  %v4359_v1 = vpop.f32.mrf.mxu3 }
 0x2ab   : > { %5754 = vmatpush.xpose.msra.mxu1 %v1569_v48  ;;  %5794 = vmatpush.xpose.msra.mxu3 %v1571_v49  ;;  %2070 = vst [vmem:[#allocation1 + $0x20] ss:$4 sm:$0xff] %v283_v24  ;;  %v492_v42 = vld [vmem:[%s10414_s9 + $0x4f8] sm:$0xff]  ;;  %v1217_v48 = vld [vmem:[%s10414_s9 + $0x1ba0] sm:$0xff]  ;;  %v1222_v24 = vld [vmem:[%s10414_s9 + $0x1bc8] sm:$0xff] }
 0x2ac   : > { %5678 = vmatmul.f32.vlgmr.msrb.gmra.mxu1 %v2056_v25  ;;  %5718 = vmatmul.f32.vlgmr.msrb.gmra.mxu3 %v2058_v27  ;;  %v4220_v25 = vadd.f32 %v4219_v16, %v4200_v20  ;;  %v1214_v27 = vld [vmem:[%s10414_s9 + $0x1b88] sm:$0xff]  ;;  %v2071_v49 = vld.sshfl [vmem:[#allocation1] sm:$0xff pattern:$0x73625140] }
 0x2ae   : > { %5735 = vmatpush.xpose.msra.mxu0 %v1207_v51  ;;  %5775 = vmatpush.xpose.msra.mxu2 %v1209_v52  ;;  %v4240_v32 = vadd.f32 %v4239_v28, %v4220_v25  ;;  %v2073_v51 = vld.sshfl [vmem:[#allocation1 + $0x10] sm:$0xff pattern:$0x73625140]  ;;  %v2072_v52 = vld.sshfl [vmem:[#allocation1 + $0x8] sm:$0xff pattern:$0x73625140] }
 0x2af   : > { %5755 = vmatpush.xpose.msra.mxu1 %v1208_v60  ;;  %5795 = vmatpush.xpose.msra.mxu3 %v1210_v61  ;;  %v854_v60 = vld [vmem:[%s10414_s9 + $0x1048] sm:$0xff]  ;;  %v856_v61 = vld [vmem:[%s10414_s9 + $0x1058] sm:$0xff] }
 0x2b0   : > { %v4260_v35 = vadd.f32 %v4259_v31, %v4240_v32 }
 0x2b2   : > { %5736 = vmatpush.xpose.msra.mxu0 %v846_v63  ;;  %5776 = vmatpush.xpose.msra.mxu2 %v848_v0  ;;  %v4280_v44 = vadd.f32 %v4279_v38, %v4260_v35  ;;  %v855_v63 = vld [vmem:[%s10414_s9 + $0x1050] sm:$0xff]  ;;  %v857_v0 = vld [vmem:[%s10414_s9 + $0x1060] sm:$0xff]  ;;  %v4379_v4 = vpop.f32.mrf.mxu0  ;;  %v4439_v28 = vpop.f32.mrf.mxu3  ;;  %v1584_v35 = vld [vmem:[%s10414_s9 + $0x2718] sm:$0xf] }
 0x2b3   : > { %5756 = vmatpush.xpose.msra.mxu1 %v847_v2  ;;  %5796 = vmatpush.xpose.msra.mxu3 %v849_v3  ;;  %v493_v2 = vld [vmem:[%s10414_s9 + $0x500] sm:$0xff]  ;;  %v495_v3 = vld [vmem:[%s10414_s9 + $0x510] sm:$0xff]  ;;  %v498_v38 = vld [vmem:[%s10414_s9 + $0x528] sm:$0xff] }
 0x2b4   : > { %v4300_v50 = vadd.f32 %v4299_v43, %v4280_v44  ;;  %v2075_v16 = vld.sshfl [vmem:[#allocation1 + $0x20] sm:$0xff pattern:$0x73625140]  ;;  %v2078_v20 = vld.sshfl [vmem:[#allocation1 + $0x38] sm:$0xff pattern:$0x73625140] }
 0x2b5   : > { %v1223_v44 = vld [vmem:[%s10414_s9 + $0x1bd0] sm:$0xff] }
 0x2b6   : > { %5737 = vmatpush.xpose.msra.mxu0 %v485_v6  ;;  %5777 = vmatpush.xpose.msra.mxu2 %v487_v7  ;;  %v1582_v6 = vld [vmem:[%s10414_s9 + $0x2708] sm:$0xf] }
 0x2b7   : > { %5757 = vmatpush.xpose.msra.mxu1 %v486_v11  ;;  %5797 = vmatpush.xpose.msra.mxu3 %v488_v12  ;;  %v1581_v11 = vld [vmem:[%s10414_s9 + $0x2700] sm:$0xf]  ;;  %v1583_v12 = vld [vmem:[%s10414_s9 + $0x2710] sm:$0xf] }
 0x2b9   : > { %5738 = vmatmul.f32.vlgmr.msra.gmra.mxu0 %v2061_v53  ;;  %5778 = vmatmul.f32.vlgmr.msra.gmra.mxu2 %v2063_v54  ;;  %v4319_v53 = vpop.f32.mrf.mxu1  ;;  %v2074_v54 = vld.sshfl [vmem:[#allocation1 + $0x18] sm:$0xff pattern:$0x73625140] }
 0x2ba   : > { %5814 = vmatpush.xpose.msrb.mxu0 %v1572_v8  ;;  %5854 = vmatpush.xpose.msrb.mxu2 %v1574_v9  ;;  %v4320_v59 = vadd.f32 %v4319_v53, %v4300_v50  ;;  %v494_v8 = vld [vmem:[%s10414_s9 + $0x508] sm:$0xff]  ;;  %v496_v9 = vld [vmem:[%s10414_s9 + $0x518] sm:$0xff]  ;;  %v4459_v31 = vpop.f32.mrf.mxu0 }
 0x2bb   : > { %5834 = vmatpush.xpose.msrb.mxu1 %v1573_v14  ;;  %5874 = vmatpush.xpose.msrb.mxu3 %v1575_v15  ;;  %v1219_v14 = vld [vmem:[%s10414_s9 + $0x1bb0] sm:$0xff]  ;;  %v1221_v15 = vld [vmem:[%s10414_s9 + $0x1bc0] sm:$0xff]  ;;  %v1224_v53 = vld [vmem:[%s10414_s9 + $0x1bd8] sm:$0xff] }
 0x2bc   : > { %5758 = vmatmul.f32.vlgmr.msra.gmra.mxu1 %v2062_v55  ;;  %5798 = vmatmul.f32.vlgmr.msra.gmra.mxu3 %v2064_v57  ;;  %v284_v55 = vld [vmem:[%s10407_s7 + $0x150] sm:$0xff]  ;;  %v4340_v62 = vadd.f32 %v4339_v58, %v4320_v59 }
 0x2bd   : > { %v1218_v57 = vld [vmem:[%s10414_s9 + $0x1ba8] sm:$0xff]  ;;  %2079 = vst [vmem:[#allocation1] ss:$4 sm:$0xff] %v284_v55  ;;  %v4519_v55 = vpop.f32.mrf.mxu3 }
 0x2be   : > { %5815 = vmatpush.xpose.msrb.mxu0 %v1211_v17  ;;  %5855 = vmatpush.xpose.msrb.mxu2 %v1213_v18  ;;  %v4360_v7 = vadd.f32 %v4359_v1, %v4340_v62  ;;  %v2077_v17 = vld.sshfl [vmem:[#allocation1 + $0x30] sm:$0xff pattern:$0x73625140]  ;;  %v2076_v18 = vld.sshfl [vmem:[#allocation1 + $0x28] sm:$0xff pattern:$0x73625140] }
 0x2bf   : > { %5835 = vmatpush.xpose.msrb.mxu1 %v1212_v26  ;;  %5875 = vmatpush.xpose.msrb.mxu3 %v1214_v27  ;;  %v858_v26 = vld [vmem:[%s10414_s9 + $0x1068] sm:$0xff]  ;;  %v860_v27 = vld [vmem:[%s10414_s9 + $0x1078] sm:$0xff] }
 0x2c0   : > { %v4380_v10 = vadd.f32 %v4379_v4, %v4360_v7  ;;  %v502_v4 = vld [vmem:[%s10414_s9 + $0x548] sm:$0xff] }
 0x2c1   : > { %v4399_v13 = vpop.f32.mrf.mxu1 }
 0x2c2   : > { %5816 = vmatpush.xpose.msrb.mxu0 %v850_v29  ;;  %5856 = vmatpush.xpose.msrb.mxu2 %v852_v30  ;;  %v859_v29 = vld [vmem:[%s10414_s9 + $0x1070] sm:$0xff]  ;;  %v861_v30 = vld [vmem:[%s10414_s9 + $0x1080] sm:$0xff]  ;;  %v4539_v58 = vpop.f32.mrf.mxu0 }
 0x2c3   : > { %5836 = vmatpush.xpose.msrb.mxu1 %v851_v33  ;;  %5876 = vmatpush.xpose.msrb.mxu3 %v853_v34  ;;  %v497_v33 = vld [vmem:[%s10414_s9 + $0x520] sm:$0xff]  ;;  %v499_v34 = vld [vmem:[%s10414_s9 + $0x530] sm:$0xff] }
 0x2c4   : > { %v2084_v50 = vld.sshfl [vmem:[#allocation1 + $0x18] sm:$0xff pattern:$0x73625140] }
 0x2c6   : > { %5817 = vmatpush.xpose.msrb.mxu0 %v489_v36  ;;  %5857 = vmatpush.xpose.msrb.mxu2 %v491_v37  ;;  %v1586_v36 = vld [vmem:[%s10414_s9 + $0x2728] sm:$0xf] }
 0x2c7   : > { %5837 = vmatpush.xpose.msrb.mxu1 %v490_v41  ;;  %5877 = vmatpush.xpose.msrb.mxu3 %v492_v42  ;;  %v1585_v41 = vld [vmem:[%s10414_s9 + $0x2720] sm:$0xf]  ;;  %v1587_v42 = vld [vmem:[%s10414_s9 + $0x2730] sm:$0xf] }
 0x2c9   : > { %5818 = vmatmul.f32.vlgmr.msrb.gmra.mxu0 %v2065_v19  ;;  %5858 = vmatmul.f32.vlgmr.msrb.gmra.mxu2 %v2067_v21  ;;  %v4419_v19 = vpop.f32.mrf.mxu2  ;;  %v285_v21 = vld [vmem:[%s10407_s7 + $0x158] sm:$0xff] }
 0x2ca   : > { %5894 = vmatpush.xpose.msra.mxu0 %v1576_v39  ;;  %5934 = vmatpush.xpose.msra.mxu2 %v1578_v40  ;;  %2080 = vst [vmem:[#allocation1 + $0x20] ss:$4 sm:$0xff] %v285_v21  ;;  %v500_v39 = vld [vmem:[%s10414_s9 + $0x538] sm:$0xff]  ;;  %v4479_v40 = vpop.f32.mrf.mxu1  ;;  %v4619_v21 = vpop.f32.mrf.mxu0 }
 0x2cb   : > { %5914 = vmatpush.xpose.msra.mxu1 %v1577_v45  ;;  %5954 = vmatpush.xpose.msra.mxu3 %v1579_v46  ;;  %v1225_v45 = vld [vmem:[%s10414_s9 + $0x1be0] sm:$0xff]  ;;  %v2081_v46 = vld.sshfl [vmem:[#allocation1] sm:$0xff pattern:$0x73625140] }
 0x2cc   : > { %5838 = vmatmul.f32.vlgmr.msrb.gmra.mxu1 %v2066_v22  ;;  %5878 = vmatmul.f32.vlgmr.msrb.gmra.mxu3 %v2068_v23  ;;  %v4400_v22 = vadd.f32 %v4399_v13, %v4380_v10  ;;  %v1220_v23 = vld [vmem:[%s10414_s9 + $0x1bb8] sm:$0xff]  ;;  %v1227_v10 = vld [vmem:[%s10414_s9 + $0x1bf0] sm:$0xff] }
 0x2ce   : > { %5895 = vmatpush.xpose.msra.mxu0 %v1215_v47  ;;  %5935 = vmatpush.xpose.msra.mxu2 %v1217_v48  ;;  %v4420_v25 = vadd.f32 %v4419_v19, %v4400_v22  ;;  %v2083_v48 = vld.sshfl [vmem:[#allocation1 + $0x10] sm:$0xff pattern:$0x73625140]  ;;  %v1228_v19 = vld [vmem:[%s10414_s9 + $0x1bf8] sm:$0xff] }
 0x2cf   : > { %5915 = vmatpush.xpose.msra.mxu1 %v1216_v56  ;;  %5955 = vmatpush.xpose.msra.mxu3 %v1218_v57  ;;  %v862_v56 = vld [vmem:[%s10414_s9 + $0x1088] sm:$0xff]  ;;  %v864_v57 = vld [vmem:[%s10414_s9 + $0x1098] sm:$0xff] }
 0x2d0   : > { %v4440_v32 = vadd.f32 %v4439_v28, %v4420_v25 }
 0x2d1   : > { %v4499_v43 = vpop.f32.mrf.mxu2 }
 0x2d2   : > { %5896 = vmatpush.xpose.msra.mxu0 %v854_v60  ;;  %5936 = vmatpush.xpose.msra.mxu2 %v856_v61  ;;  %v4460_v37 = vadd.f32 %v4459_v31, %v4440_v32  ;;  %v863_v60 = vld [vmem:[%s10414_s9 + $0x1090] sm:$0xff]  ;;  %v865_v61 = vld [vmem:[%s10414_s9 + $0x10a0] sm:$0xff]  ;;  %v4559_v1 = vpop.f32.mrf.mxu1  ;;  %v1592_v32 = vld [vmem:[%s10414_s9 + $0x2758] sm:$0xf] }
 0x2d3   : > { %5916 = vmatpush.xpose.msra.mxu1 %v855_v63  ;;  %5956 = vmatpush.xpose.msra.mxu3 %v857_v0  ;;  %v501_v63 = vld [vmem:[%s10414_s9 + $0x540] sm:$0xff]  ;;  %v503_v0 = vld [vmem:[%s10414_s9 + $0x550] sm:$0xff] }
 0x2d4   : > { %v4480_v47 = vadd.f32 %v4479_v40, %v4460_v37 }
 0x2d6   : > { %5897 = vmatpush.xpose.msra.mxu0 %v493_v2  ;;  %5937 = vmatpush.xpose.msra.mxu2 %v495_v3  ;;  %v1588_v2 = vld [vmem:[%s10414_s9 + $0x2738] sm:$0xf]  ;;  %v1590_v3 = vld [vmem:[%s10414_s9 + $0x2748] sm:$0xf] }
 0x2d7   : > { %5917 = vmatpush.xpose.msra.mxu1 %v494_v8  ;;  %5957 = vmatpush.xpose.msra.mxu3 %v496_v9  ;;  %v1589_v8 = vld [vmem:[%s10414_s9 + $0x2740] sm:$0xf]  ;;  %v1591_v9 = vld [vmem:[%s10414_s9 + $0x2750] sm:$0xf] }
 0x2d9   : > { %5898 = vmatmul.f32.vlgmr.msra.gmra.mxu0 %v2071_v49  ;;  %5938 = vmatmul.f32.vlgmr.msra.gmra.mxu2 %v2073_v51  ;;  %v2082_v49 = vld.sshfl [vmem:[#allocation1 + $0x8] sm:$0xff pattern:$0x73625140] }
 0x2da   : > { %5974 = vmatpush.xpose.msrb.mxu0 %v1580_v5  ;;  %6014 = vmatpush.xpose.msrb.mxu2 %v1582_v6  ;;  %v286_v51 = vld [vmem:[%s10407_s7 + $0x160] sm:$0xff]  ;;  %v4579_v6 = vpop.f32.mrf.mxu2  ;;  %v4639_v28 = vpop.f32.mrf.mxu1 }
 0x2db   : > { %5994 = vmatpush.xpose.msrb.mxu1 %v1581_v11  ;;  %6034 = vmatpush.xpose.msrb.mxu3 %v1583_v12  ;;  %2089 = vst [vmem:[#allocation1] ss:$4 sm:$0xff] %v286_v51  ;;  %v504_v5 = vld [vmem:[%s10414_s9 + $0x558] sm:$0xff]  ;;  %v1229_v11 = vld [vmem:[%s10414_s9 + $0x1c00] sm:$0xff]  ;;  %v1234_v51 = vld [vmem:[%s10414_s9 + $0x1c28] sm:$0xff] }
 0x2dc   : > { %5918 = vmatmul.f32.vlgmr.msra.gmra.mxu1 %v2072_v52  ;;  %5958 = vmatmul.f32.vlgmr.msra.gmra.mxu3 %v2074_v54  ;;  %v4500_v52 = vadd.f32 %v4499_v43, %v4480_v47  ;;  %v1226_v54 = vld [vmem:[%s10414_s9 + $0x1be8] sm:$0xff]  ;;  %v2085_v12 = vld.sshfl [vmem:[#allocation1 + $0x20] sm:$0xff pattern:$0x73625140] }
 0x2de   : > { %5975 = vmatpush.xpose.msrb.mxu0 %v1219_v14  ;;  %6015 = vmatpush.xpose.msrb.mxu2 %v1221_v15  ;;  %v4520_v59 = vadd.f32 %v4519_v55, %v4500_v52  ;;  %v2087_v14 = vld.sshfl [vmem:[#allocation1 + $0x30] sm:$0xff pattern:$0x73625140]  ;;  %v2086_v15 = vld.sshfl [vmem:[#allocation1 + $0x28] sm:$0xff pattern:$0x73625140] }
 0x2df   : > { %5995 = vmatpush.xpose.msrb.mxu1 %v1220_v23  ;;  %6035 = vmatpush.xpose.msrb.mxu3 %v1222_v24  ;;  %v866_v23 = vld [vmem:[%s10414_s9 + $0x10a8] sm:$0xff]  ;;  %v868_v24 = vld [vmem:[%s10414_s9 + $0x10b8] sm:$0xff] }
 0x2e0   : > { %v4540_v62 = vadd.f32 %v4539_v58, %v4520_v59 }
 0x2e2   : > { %5976 = vmatpush.xpose.msrb.mxu0 %v858_v26  ;;  %6016 = vmatpush.xpose.msrb.mxu2 %v860_v27  ;;  %v4560_v7 = vadd.f32 %v4559_v1, %v4540_v62  ;;  %v867_v26 = vld [vmem:[%s10414_s9 + $0x10b0] sm:$0xff]  ;;  %v869_v27 = vld [vmem:[%s10414_s9 + $0x10c0] sm:$0xff]  ;;  %v4659_v31 = vpop.f32.mrf.mxu2  ;;  %v4719_v55 = vpop.f32.mrf.mxu1  ;;  %v1596_v62 = vld [vmem:[%s10414_s9 + $0x2778] sm:$0xf] }
 0x2e3   : > { %5996 = vmatpush.xpose.msrb.mxu1 %v859_v29  ;;  %6036 = vmatpush.xpose.msrb.mxu3 %v861_v30  ;;  %v505_v29 = vld [vmem:[%s10414_s9 + $0x560] sm:$0xff]  ;;  %v507_v30 = vld [vmem:[%s10414_s9 + $0x570] sm:$0xff]  ;;  %v510_v1 = vld [vmem:[%s10414_s9 + $0x588] sm:$0xff] }
 0x2e4   : > { %v4580_v13 = vadd.f32 %v4579_v6, %v4560_v7  ;;  %v2091_v43 = vld.sshfl [vmem:[#allocation1] sm:$0xff pattern:$0x73625140]  ;;  %v2094_v47 = vld.sshfl [vmem:[#allocation1 + $0x18] sm:$0xff pattern:$0x73625140] }
 0x2e5   : > { %v1235_v7 = vld [vmem:[%s10414_s9 + $0x1c30] sm:$0xff] }
 0x2e6   : > { %5977 = vmatpush.xpose.msrb.mxu0 %v497_v33  ;;  %6017 = vmatpush.xpose.msrb.mxu2 %v499_v34  ;;  %v1594_v33 = vld [vmem:[%s10414_s9 + $0x2768] sm:$0xf] }
 0x2e7   : > { %5997 = vmatpush.xpose.msrb.mxu1 %v498_v38  ;;  %6037 = vmatpush.xpose.msrb.mxu3 %v500_v39  ;;  %v1593_v38 = vld [vmem:[%s10414_s9 + $0x2760] sm:$0xf]  ;;  %v1595_v39 = vld [vmem:[%s10414_s9 + $0x2770] sm:$0xf] }
 0x2e9   : > { %5978 = vmatmul.f32.vlgmr.msrb.gmra.mxu0 %v2075_v16  ;;  %6018 = vmatmul.f32.vlgmr.msrb.gmra.mxu2 %v2077_v17  ;;  %v4599_v16 = vpop.f32.mrf.mxu3  ;;  %v2088_v17 = vld.sshfl [vmem:[#allocation1 + $0x38] sm:$0xff pattern:$0x73625140] }
 0x2ea   : > { %6054 = vmatpush.xpose.msra.mxu0 %v1584_v35  ;;  %6094 = vmatpush.xpose.msra.mxu2 %v1586_v36  ;;  %v4600_v22 = vadd.f32 %v4599_v16, %v4580_v13  ;;  %v506_v35 = vld [vmem:[%s10414_s9 + $0x568] sm:$0xff]  ;;  %v508_v36 = vld [vmem:[%s10414_s9 + $0x578] sm:$0xff]  ;;  %v4739_v58 = vpop.f32.mrf.mxu2 }
 0x2eb   : > { %6074 = vmatpush.xpose.msra.mxu1 %v1585_v41  ;;  %6114 = vmatpush.xpose.msra.mxu3 %v1587_v42  ;;  %v1231_v41 = vld [vmem:[%s10414_s9 + $0x1c10] sm:$0xff]  ;;  %v1233_v42 = vld [vmem:[%s10414_s9 + $0x1c20] sm:$0xff]  ;;  %v1236_v16 = vld [vmem:[%s10414_s9 + $0x1c38] sm:$0xff] }
 0x2ec   : > { %5998 = vmatmul.f32.vlgmr.msrb.gmra.mxu1 %v2076_v18  ;;  %6038 = vmatmul.f32.vlgmr.msrb.gmra.mxu3 %v2078_v20  ;;  %v287_v18 = vld [vmem:[%s10407_s7 + $0x168] sm:$0xff]  ;;  %v4620_v25 = vadd.f32 %v4619_v21, %v4600_v22 }
 0x2ed   : > { %v1230_v20 = vld [vmem:[%s10414_s9 + $0x1c08] sm:$0xff]  ;;  %2090 = vst [vmem:[#allocation1 + $0x20] ss:$4 sm:$0xff] %v287_v18  ;;  %v4799_v18 = vpop.f32.mrf.mxu1 }
 0x2ee   : > { %6055 = vmatpush.xpose.msra.mxu0 %v1223_v44  ;;  %6095 = vmatpush.xpose.msra.mxu2 %v1225_v45  ;;  %v4640_v34 = vadd.f32 %v4639_v28, %v4620_v25  ;;  %v2093_v44 = vld.sshfl [vmem:[#allocation1 + $0x10] sm:$0xff pattern:$0x73625140]  ;;  %v2092_v45 = vld.sshfl [vmem:[#allocation1 + $0x8] sm:$0xff pattern:$0x73625140] }
 0x2ef   : > { %6075 = vmatpush.xpose.msra.mxu1 %v1224_v53  ;;  %6115 = vmatpush.xpose.msra.mxu3 %v1226_v54  ;;  %v870_v53 = vld [vmem:[%s10414_s9 + $0x10c8] sm:$0xff]  ;;  %v872_v54 = vld [vmem:[%s10414_s9 + $0x10d8] sm:$0xff] }
 0x2f0   : > { %v4660_v37 = vadd.f32 %v4659_v31, %v4640_v34  ;;  %v514_v31 = vld [vmem:[%s10414_s9 + $0x5a8] sm:$0xff] }
 0x2f1   : > { %v4679_v40 = vpop.f32.mrf.mxu3 }
 0x2f2   : > { %6056 = vmatpush.xpose.msra.mxu0 %v862_v56  ;;  %6096 = vmatpush.xpose.msra.mxu2 %v864_v57  ;;  %v871_v56 = vld [vmem:[%s10414_s9 + $0x10d0] sm:$0xff]  ;;  %v873_v57 = vld [vmem:[%s10414_s9 + $0x10e0] sm:$0xff]  ;;  %v4819_v21 = vpop.f32.mrf.mxu2 }
 0x2f3   : > { %6076 = vmatpush.xpose.msra.mxu1 %v863_v60  ;;  %6116 = vmatpush.xpose.msra.mxu3 %v865_v61  ;;  %v509_v60 = vld [vmem:[%s10414_s9 + $0x580] sm:$0xff]  ;;  %v511_v61 = vld [vmem:[%s10414_s9 + $0x590] sm:$0xff] }
 0x2f4   : > { %v2098_v13 = vld.sshfl [vmem:[#allocation1 + $0x38] sm:$0xff pattern:$0x73625140] }
 0x2f6   : > { %6057 = vmatpush.xpose.msra.mxu0 %v501_v63  ;;  %6097 = vmatpush.xpose.msra.mxu2 %v503_v0  ;;  %v1598_v63 = vld [vmem:[%s10414_s9 + $0x2788] sm:$0xf] }
 0x2f7   : > { %6077 = vmatpush.xpose.msra.mxu1 %v502_v4  ;;  %6117 = vmatpush.xpose.msra.mxu3 %v504_v5  ;;  %v1597_v4 = vld [vmem:[%s10414_s9 + $0x2780] sm:$0xf]  ;;  %v1599_v5 = vld [vmem:[%s10414_s9 + $0x2790] sm:$0xf] }
 0x2f9   : > { %6058 = vmatmul.f32.vlgmr.msra.gmra.mxu0 %v2081_v46  ;;  %6098 = vmatmul.f32.vlgmr.msra.gmra.mxu2 %v2083_v48  ;;  %v4699_v46 = vpop.f32.mrf.mxu0  ;;  %v288_v48 = vld [vmem:[%s10407_s7 + $0x170] sm:$0xff] }
 0x2fa   : > { %6134 = vmatpush.xpose.msrb.mxu0 %v1588_v2  ;;  %6174 = vmatpush.xpose.msrb.mxu2 %v1590_v3  ;;  %2099 = vst [vmem:[#allocation1] ss:$4 sm:$0xff] %v288_v48  ;;  %v512_v2 = vld [vmem:[%s10414_s9 + $0x598] sm:$0xff]  ;;  %v4759_v3 = vpop.f32.mrf.mxu3  ;;  %v4899_v48 = vpop.f32.mrf.mxu2 }
 0x2fb   : > { %6154 = vmatpush.xpose.msrb.mxu1 %v1589_v8  ;;  %6194 = vmatpush.xpose.msrb.mxu3 %v1591_v9  ;;  %v1237_v8 = vld [vmem:[%s10414_s9 + $0x1c40] sm:$0xff]  ;;  %v2095_v9 = vld.sshfl [vmem:[#allocation1 + $0x20] sm:$0xff pattern:$0x73625140] }
 0x2fc   : > { %6078 = vmatmul.f32.vlgmr.msra.gmra.mxu1 %v2082_v49  ;;  %6118 = vmatmul.f32.vlgmr.msra.gmra.mxu3 %v2084_v50  ;;  %v4680_v49 = vadd.f32 %v4679_v40, %v4660_v37  ;;  %v1232_v50 = vld [vmem:[%s10414_s9 + $0x1c18] sm:$0xff]  ;;  %v1239_v37 = vld [vmem:[%s10414_s9 + $0x1c50] sm:$0xff] }
 0x2fe   : > { %6135 = vmatpush.xpose.msrb.mxu0 %v1227_v10  ;;  %6175 = vmatpush.xpose.msrb.mxu2 %v1229_v11  ;;  %v4700_v52 = vadd.f32 %v4699_v46, %v4680_v49  ;;  %v2097_v11 = vld.sshfl [vmem:[#allocation1 + $0x30] sm:$0xff pattern:$0x73625140]  ;;  %v1240_v46 = vld [vmem:[%s10414_s9 + $0x1c58] sm:$0xff] }
 0x2ff   : > { %6155 = vmatpush.xpose.msrb.mxu1 %v1228_v19  ;;  %6195 = vmatpush.xpose.msrb.mxu3 %v1230_v20  ;;  %v874_v19 = vld [vmem:[%s10414_s9 + $0x10e8] sm:$0xff]  ;;  %v876_v20 = vld [vmem:[%s10414_s9 + $0x10f8] sm:$0xff] }
 0x300   : > { %v4720_v59 = vadd.f32 %v4719_v55, %v4700_v52 }
 0x301   : > { %v4779_v6 = vpop.f32.mrf.mxu0 }
 0x302   : > { %6136 = vmatpush.xpose.msrb.mxu0 %v866_v23  ;;  %6176 = vmatpush.xpose.msrb.mxu2 %v868_v24  ;;  %v4740_v0 = vadd.f32 %v4739_v58, %v4720_v59  ;;  %v875_v23 = vld [vmem:[%s10414_s9 + $0x10f0] sm:$0xff]  ;;  %v877_v24 = vld [vmem:[%s10414_s9 + $0x1100] sm:$0xff]  ;;  %v4839_v28 = vpop.f32.mrf.mxu3  ;;  %v1604_v59 = vld [vmem:[%s10414_s9 + $0x27b8] sm:$0xf] }
 0x303   : > { %6156 = vmatpush.xpose.msrb.mxu1 %v867_v26  ;;  %6196 = vmatpush.xpose.msrb.mxu3 %v869_v27  ;;  %v513_v26 = vld [vmem:[%s10414_s9 + $0x5a0] sm:$0xff]  ;;  %v515_v27 = vld [vmem:[%s10414_s9 + $0x5b0] sm:$0xff] }
 0x304   : > { %v4760_v10 = vadd.f32 %v4759_v3, %v4740_v0 }
 0x306   : > { %6137 = vmatpush.xpose.msrb.mxu0 %v505_v29  ;;  %6177 = vmatpush.xpose.msrb.mxu2 %v507_v30  ;;  %v1600_v29 = vld [vmem:[%s10414_s9 + $0x2798] sm:$0xf]  ;;  %v1602_v30 = vld [vmem:[%s10414_s9 + $0x27a8] sm:$0xf] }
 0x307   : > { %6157 = vmatpush.xpose.msrb.mxu1 %v506_v35  ;;  %6197 = vmatpush.xpose.msrb.mxu3 %v508_v36  ;;  %v1601_v35 = vld [vmem:[%s10414_s9 + $0x27a0] sm:$0xf]  ;;  %v1603_v36 = vld [vmem:[%s10414_s9 + $0x27b0] sm:$0xf] }
 0x309   : > { %6138 = vmatmul.f32.vlgmr.msrb.gmra.mxu0 %v2085_v12  ;;  %6178 = vmatmul.f32.vlgmr.msrb.gmra.mxu2 %v2087_v14  ;;  %v2096_v12 = vld.sshfl [vmem:[#allocation1 + $0x28] sm:$0xff pattern:$0x73625140]  ;;  %v289_v14 = vld [vmem:[%s10407_s7 + $0x178] sm:$0xff] }
 0x30a   : > { %6214 = vmatpush.xpose.msra.mxu0 %v1592_v32  ;;  %6254 = vmatpush.xpose.msra.mxu2 %v1594_v33  ;;  %2100 = vst [vmem:[#allocation1 + $0x20] ss:$4 sm:$0xff] %v289_v14  ;;  %v516_v32 = vld [vmem:[%s10414_s9 + $0x5b8] sm:$0xff]  ;;  %v4859_v33 = vpop.f32.mrf.mxu0  ;;  %v4919_v55 = vpop.f32.mrf.mxu3  ;;  %v1246_v14 = vld [vmem:[%s10414_s9 + $0x1c88] sm:$0xff] }
 0x30b   : > { %6234 = vmatpush.xpose.msra.mxu1 %v1593_v38  ;;  %6274 = vmatpush.xpose.msra.mxu3 %v1595_v39  ;;  %v1241_v38 = vld [vmem:[%s10414_s9 + $0x1c60] sm:$0xff]  ;;  %v2101_v39 = vld.sshfl [vmem:[#allocation1] sm:$0xff pattern:$0x73625140] }
 0x30c   : > { %6158 = vmatmul.f32.vlgmr.msrb.gmra.mxu1 %v2086_v15  ;;  %6198 = vmatmul.f32.vlgmr.msrb.gmra.mxu3 %v2088_v17  ;;  %v4780_v15 = vadd.f32 %v4779_v6, %v4760_v10  ;;  %v1238_v17 = vld [vmem:[%s10414_s9 + $0x1c48] sm:$0xff] }
 0x30e   : > { %6215 = vmatpush.xpose.msra.mxu0 %v1231_v41  ;;  %6255 = vmatpush.xpose.msra.mxu2 %v1233_v42  ;;  %v4800_v22 = vadd.f32 %v4799_v18, %v4780_v15  ;;  %v2103_v41 = vld.sshfl [vmem:[#allocation1 + $0x10] sm:$0xff pattern:$0x73625140]  ;;  %v2102_v42 = vld.sshfl [vmem:[#allocation1 + $0x8] sm:$0xff pattern:$0x73625140] }
 0x30f   : > { %6235 = vmatpush.xpose.msra.mxu1 %v1232_v50  ;;  %6275 = vmatpush.xpose.msra.mxu3 %v1234_v51  ;;  %v878_v50 = vld [vmem:[%s10414_s9 + $0x1108] sm:$0xff]  ;;  %v880_v51 = vld [vmem:[%s10414_s9 + $0x1118] sm:$0xff] }
 0x310   : > { %v4820_v25 = vadd.f32 %v4819_v21, %v4800_v22 }
 0x311   : > { %v2105_v6 = vld.sshfl [vmem:[#allocation1 + $0x20] sm:$0xff pattern:$0x73625140]  ;;  %v2108_v10 = vld.sshfl [vmem:[#allocation1 + $0x38] sm:$0xff pattern:$0x73625140] }
 0x312   : > { %6216 = vmatpush.xpose.msra.mxu0 %v870_v53  ;;  %6256 = vmatpush.xpose.msra.mxu2 %v872_v54  ;;  %v4840_v34 = vadd.f32 %v4839_v28, %v4820_v25  ;;  %v879_v53 = vld [vmem:[%s10414_s9 + $0x1110] sm:$0xff]  ;;  %v881_v54 = vld [vmem:[%s10414_s9 + $0x1120] sm:$0xff]  ;;  %v4939_v58 = vpop.f32.mrf.mxu0  ;;  %v4999_v18 = vpop.f32.mrf.mxu3  ;;  %v1608_v25 = vld [vmem:[%s10414_s9 + $0x27d8] sm:$0xf] }
 0x313   : > { %6236 = vmatpush.xpose.msra.mxu1 %v871_v56  ;;  %6276 = vmatpush.xpose.msra.mxu3 %v873_v57  ;;  %v517_v56 = vld [vmem:[%s10414_s9 + $0x5c0] sm:$0xff]  ;;  %v519_v57 = vld [vmem:[%s10414_s9 + $0x5d0] sm:$0xff]  ;;  %v522_v28 = vld [vmem:[%s10414_s9 + $0x5e8] sm:$0xff] }
 0x314   : > { %v4860_v40 = vadd.f32 %v4859_v33, %v4840_v34  ;;  %v1247_v34 = vld [vmem:[%s10414_s9 + $0x1c90] sm:$0xff] }
 0x316   : > { %6217 = vmatpush.xpose.msra.mxu0 %v509_v60  ;;  %6257 = vmatpush.xpose.msra.mxu2 %v511_v61  ;;  %v1606_v60 = vld [vmem:[%s10414_s9 + $0x27c8] sm:$0xf] }
 0x317   : > { %6237 = vmatpush.xpose.msra.mxu1 %v510_v1  ;;  %6277 = vmatpush.xpose.msra.mxu3 %v512_v2  ;;  %v1605_v1 = vld [vmem:[%s10414_s9 + $0x27c0] sm:$0xf]  ;;  %v1607_v2 = vld [vmem:[%s10414_s9 + $0x27d0] sm:$0xf] }
 0x319   : > { %6218 = vmatmul.f32.vlgmr.msra.gmra.mxu0 %v2091_v43  ;;  %6258 = vmatmul.f32.vlgmr.msra.gmra.mxu2 %v2093_v44  ;;  %v4879_v43 = vpop.f32.mrf.mxu1  ;;  %v2104_v44 = vld.sshfl [vmem:[#allocation1 + $0x18] sm:$0xff pattern:$0x73625140] }
 0x31a   : > { %6294 = vmatpush.xpose.msrb.mxu0 %v1596_v62  ;;  %6334 = vmatpush.xpose.msrb.mxu2 %v1598_v63  ;;  %v4880_v49 = vadd.f32 %v4879_v43, %v4860_v40  ;;  %v518_v62 = vld [vmem:[%s10414_s9 + $0x5c8] sm:$0xff]  ;;  %v520_v63 = vld [vmem:[%s10414_s9 + $0x5d8] sm:$0xff]  ;;  %v5019_v21 = vpop.f32.mrf.mxu0 }
 0x31b   : > { %6314 = vmatpush.xpose.msrb.mxu1 %v1597_v4  ;;  %6354 = vmatpush.xpose.msrb.mxu3 %v1599_v5  ;;  %v1243_v4 = vld [vmem:[%s10414_s9 + $0x1c70] sm:$0xff]  ;;  %v1245_v5 = vld [vmem:[%s10414_s9 + $0x1c80] sm:$0xff]  ;;  %v1248_v43 = vld [vmem:[%s10414_s9 + $0x1c98] sm:$0xff] }
 0x31c   : > { %6238 = vmatmul.f32.vlgmr.msra.gmra.mxu1 %v2092_v45  ;;  %6278 = vmatmul.f32.vlgmr.msra.gmra.mxu3 %v2094_v47  ;;  %v290_v45 = vld [vmem:[%s10407_s7 + $0x180] sm:$0xff]  ;;  %v4900_v52 = vadd.f32 %v4899_v48, %v4880_v49 }
 0x31d   : > { %v1242_v47 = vld [vmem:[%s10414_s9 + $0x1c68] sm:$0xff]  ;;  %2109 = vst [vmem:[#allocation1] ss:$4 sm:$0xff] %v290_v45  ;;  %v5079_v45 = vpop.f32.mrf.mxu3 }
 0x31e   : > { %6295 = vmatpush.xpose.msrb.mxu0 %v1235_v7  ;;  %6335 = vmatpush.xpose.msrb.mxu2 %v1237_v8  ;;  %v4920_v61 = vadd.f32 %v4919_v55, %v4900_v52  ;;  %v2107_v7 = vld.sshfl [vmem:[#allocation1 + $0x30] sm:$0xff pattern:$0x73625140]  ;;  %v2106_v8 = vld.sshfl [vmem:[#allocation1 + $0x28] sm:$0xff pattern:$0x73625140] }
 0x31f   : > { %6315 = vmatpush.xpose.msrb.mxu1 %v1236_v16  ;;  %6355 = vmatpush.xpose.msrb.mxu3 %v1238_v17  ;;  %v882_v16 = vld [vmem:[%s10414_s9 + $0x1128] sm:$0xff]  ;;  %v884_v17 = vld [vmem:[%s10414_s9 + $0x1138] sm:$0xff] }
 0x320   : > { %v4940_v0 = vadd.f32 %v4939_v58, %v4920_v61  ;;  %v526_v58 = vld [vmem:[%s10414_s9 + $0x608] sm:$0xff] }
 0x321   : > { %v4959_v3 = vpop.f32.mrf.mxu1 }
 0x322   : > { %6296 = vmatpush.xpose.msrb.mxu0 %v874_v19  ;;  %6336 = vmatpush.xpose.msrb.mxu2 %v876_v20  ;;  %v883_v19 = vld [vmem:[%s10414_s9 + $0x1130] sm:$0xff]  ;;  %v885_v20 = vld [vmem:[%s10414_s9 + $0x1140] sm:$0xff]  ;;  %v5099_v48 = vpop.f32.mrf.mxu0 }
 0x323   : > { %6316 = vmatpush.xpose.msrb.mxu1 %v875_v23  ;;  %6356 = vmatpush.xpose.msrb.mxu3 %v877_v24  ;;  %v521_v23 = vld [vmem:[%s10414_s9 + $0x5e0] sm:$0xff]  ;;  %v523_v24 = vld [vmem:[%s10414_s9 + $0x5f0] sm:$0xff] }
 0x324   : > { %v2114_v40 = vld.sshfl [vmem:[#allocation1 + $0x18] sm:$0xff pattern:$0x73625140] }
 0x326   : > { %6297 = vmatpush.xpose.msrb.mxu0 %v513_v26  ;;  %6337 = vmatpush.xpose.msrb.mxu2 %v515_v27  ;;  %v1610_v26 = vld [vmem:[%s10414_s9 + $0x27e8] sm:$0xf] }
 0x327   : > { %6317 = vmatpush.xpose.msrb.mxu1 %v514_v31  ;;  %6357 = vmatpush.xpose.msrb.mxu3 %v516_v32  ;;  %v1609_v31 = vld [vmem:[%s10414_s9 + $0x27e0] sm:$0xf]  ;;  %v1611_v32 = vld [vmem:[%s10414_s9 + $0x27f0] sm:$0xf] }
 0x329   : > { %6298 = vmatmul.f32.vlgmr.msrb.gmra.mxu0 %v2095_v9  ;;  %6338 = vmatmul.f32.vlgmr.msrb.gmra.mxu2 %v2097_v11  ;;  %v4979_v9 = vpop.f32.mrf.mxu2  ;;  %v291_v11 = vld [vmem:[%s10407_s7 + $0x188] sm:$0xff] }
 0x32a   : > { %6374 = vmatpush.xpose.msra.mxu0 %v1600_v29  ;;  %6414 = vmatpush.xpose.msra.mxu2 %v1602_v30  ;;  %2110 = vst [vmem:[#allocation1 + $0x20] ss:$4 sm:$0xff] %v291_v11  ;;  %v524_v29 = vld [vmem:[%s10414_s9 + $0x5f8] sm:$0xff]  ;;  %v5039_v30 = vpop.f32.mrf.mxu1  ;;  %v5179_v11 = vpop.f32.mrf.mxu0 }
 0x32b   : > { %6394 = vmatpush.xpose.msra.mxu1 %v1601_v35  ;;  %6434 = vmatpush.xpose.msra.mxu3 %v1603_v36  ;;  %v1249_v35 = vld [vmem:[%s10414_s9 + $0x1ca0] sm:$0xff]  ;;  %v2111_v36 = vld.sshfl [vmem:[#allocation1] sm:$0xff pattern:$0x73625140] }
 0x32c   : > { %6318 = vmatmul.f32.vlgmr.msrb.gmra.mxu1 %v2096_v12  ;;  %6358 = vmatmul.f32.vlgmr.msrb.gmra.mxu3 %v2098_v13  ;;  %v4960_v12 = vadd.f32 %v4959_v3, %v4940_v0  ;;  %v1244_v13 = vld [vmem:[%s10414_s9 + $0x1c78] sm:$0xff]  ;;  %v1251_v0 = vld [vmem:[%s10414_s9 + $0x1cb0] sm:$0xff] }
 0x32e   : > { %6375 = vmatpush.xpose.msra.mxu0 %v1239_v37  ;;  %6415 = vmatpush.xpose.msra.mxu2 %v1241_v38  ;;  %v4980_v15 = vadd.f32 %v4979_v9, %v4960_v12  ;;  %v2113_v38 = vld.sshfl [vmem:[#allocation1 + $0x10] sm:$0xff pattern:$0x73625140]  ;;  %v1252_v9 = vld [vmem:[%s10414_s9 + $0x1cb8] sm:$0xff] }
 0x32f   : > { %6395 = vmatpush.xpose.msra.mxu1 %v1240_v46  ;;  %6435 = vmatpush.xpose.msra.mxu3 %v1242_v47  ;;  %v886_v46 = vld [vmem:[%s10414_s9 + $0x1148] sm:$0xff]  ;;  %v888_v47 = vld [vmem:[%s10414_s9 + $0x1158] sm:$0xff] }
 0x330   : > { %v5000_v22 = vadd.f32 %v4999_v18, %v4980_v15 }
 0x331   : > { %v5059_v33 = vpop.f32.mrf.mxu2 }
 0x332   : > { %6376 = vmatpush.xpose.msra.mxu0 %v878_v50  ;;  %6416 = vmatpush.xpose.msra.mxu2 %v880_v51  ;;  %v5020_v27 = vadd.f32 %v5019_v21, %v5000_v22  ;;  %v887_v50 = vld [vmem:[%s10414_s9 + $0x1150] sm:$0xff]  ;;  %v889_v51 = vld [vmem:[%s10414_s9 + $0x1160] sm:$0xff]  ;;  %v5119_v55 = vpop.f32.mrf.mxu1  ;;  %v1616_v22 = vld [vmem:[%s10414_s9 + $0x2818] sm:$0xf] }
 0x333   : > { %6396 = vmatpush.xpose.msra.mxu1 %v879_v53  ;;  %6436 = vmatpush.xpose.msra.mxu3 %v881_v54  ;;  %v525_v53 = vld [vmem:[%s10414_s9 + $0x600] sm:$0xff]  ;;  %v527_v54 = vld [vmem:[%s10414_s9 + $0x610] sm:$0xff] }
 0x334   : > { %v5040_v37 = vadd.f32 %v5039_v30, %v5020_v27 }
 0x336   : > { %6377 = vmatpush.xpose.msra.mxu0 %v517_v56  ;;  %6417 = vmatpush.xpose.msra.mxu2 %v519_v57  ;;  %v1612_v56 = vld [vmem:[%s10414_s9 + $0x27f8] sm:$0xf]  ;;  %v1614_v57 = vld [vmem:[%s10414_s9 + $0x2808] sm:$0xf] }
 0x337   : > { %6397 = vmatpush.xpose.msra.mxu1 %v518_v62  ;;  %6437 = vmatpush.xpose.msra.mxu3 %v520_v63  ;;  %v1613_v62 = vld [vmem:[%s10414_s9 + $0x2800] sm:$0xf]  ;;  %v1615_v63 = vld [vmem:[%s10414_s9 + $0x2810] sm:$0xf] }
 0x339   : > { %6378 = vmatmul.f32.vlgmr.msra.gmra.mxu0 %v2101_v39  ;;  %6418 = vmatmul.f32.vlgmr.msra.gmra.mxu2 %v2103_v41  ;;  %v2112_v39 = vld.sshfl [vmem:[#allocation1 + $0x8] sm:$0xff pattern:$0x73625140] }
 0x33a   : > { %6454 = vmatpush.xpose.msrb.mxu0 %v1604_v59  ;;  %6494 = vmatpush.xpose.msrb.mxu2 %v1606_v60  ;;  %v292_v41 = vld [vmem:[%s10407_s7 + $0x190] sm:$0xff]  ;;  %v5139_v60 = vpop.f32.mrf.mxu2  ;;  %v5199_v18 = vpop.f32.mrf.mxu1 }
 0x33b   : > { %6474 = vmatpush.xpose.msrb.mxu1 %v1605_v1  ;;  %6514 = vmatpush.xpose.msrb.mxu3 %v1607_v2  ;;  %2119 = vst [vmem:[#allocation1] ss:$4 sm:$0xff] %v292_v41  ;;  %v528_v59 = vld [vmem:[%s10414_s9 + $0x618] sm:$0xff]  ;;  %v1253_v1 = vld [vmem:[%s10414_s9 + $0x1cc0] sm:$0xff]  ;;  %v1258_v41 = vld [vmem:[%s10414_s9 + $0x1ce8] sm:$0xff] }
 0x33c   : > { %6398 = vmatmul.f32.vlgmr.msra.gmra.mxu1 %v2102_v42  ;;  %6438 = vmatmul.f32.vlgmr.msra.gmra.mxu3 %v2104_v44  ;;  %v5060_v42 = vadd.f32 %v5059_v33, %v5040_v37  ;;  %v1250_v44 = vld [vmem:[%s10414_s9 + $0x1ca8] sm:$0xff]  ;;  %v2115_v2 = vld.sshfl [vmem:[#allocation1 + $0x20] sm:$0xff pattern:$0x73625140] }
 0x33e   : > { %6455 = vmatpush.xpose.msrb.mxu0 %v1243_v4  ;;  %6495 = vmatpush.xpose.msrb.mxu2 %v1245_v5  ;;  %v5080_v49 = vadd.f32 %v5079_v45, %v5060_v42  ;;  %v2117_v4 = vld.sshfl [vmem:[#allocation1 + $0x30] sm:$0xff pattern:$0x73625140]  ;;  %v2116_v5 = vld.sshfl [vmem:[#allocation1 + $0x28] sm:$0xff pattern:$0x73625140] }
 0x33f   : > { %6475 = vmatpush.xpose.msrb.mxu1 %v1244_v13  ;;  %6515 = vmatpush.xpose.msrb.mxu3 %v1246_v14  ;;  %v890_v13 = vld [vmem:[%s10414_s9 + $0x1168] sm:$0xff]  ;;  %v892_v14 = vld [vmem:[%s10414_s9 + $0x1178] sm:$0xff] }
 0x340   : > { %v5100_v52 = vadd.f32 %v5099_v48, %v5080_v49 }
 0x342   : > { %6456 = vmatpush.xpose.msrb.mxu0 %v882_v16  ;;  %6496 = vmatpush.xpose.msrb.mxu2 %v884_v17  ;;  %v5120_v61 = vadd.f32 %v5119_v55, %v5100_v52  ;;  %v891_v16 = vld [vmem:[%s10414_s9 + $0x1170] sm:$0xff]  ;;  %v893_v17 = vld [vmem:[%s10414_s9 + $0x1180] sm:$0xff]  ;;  %v5219_v21 = vpop.f32.mrf.mxu2  ;;  %v5279_v45 = vpop.f32.mrf.mxu1  ;;  %v1620_v52 = vld [vmem:[%s10414_s9 + $0x2838] sm:$0xf] }
 0x343   : > { %6476 = vmatpush.xpose.msrb.mxu1 %v883_v19  ;;  %6516 = vmatpush.xpose.msrb.mxu3 %v885_v20  ;;  %v529_v19 = vld [vmem:[%s10414_s9 + $0x620] sm:$0xff]  ;;  %v531_v20 = vld [vmem:[%s10414_s9 + $0x630] sm:$0xff]  ;;  %v534_v55 = vld [vmem:[%s10414_s9 + $0x648] sm:$0xff] }
 0x344   : > { %v5140_v3 = vadd.f32 %v5139_v60, %v5120_v61  ;;  %v2121_v33 = vld.sshfl [vmem:[#allocation1] sm:$0xff pattern:$0x73625140]  ;;  %v2124_v37 = vld.sshfl [vmem:[#allocation1 + $0x18] sm:$0xff pattern:$0x73625140] }
 0x345   : > { %v1259_v61 = vld [vmem:[%s10414_s9 + $0x1cf0] sm:$0xff] }
 0x346   : > { %6457 = vmatpush.xpose.msrb.mxu0 %v521_v23  ;;  %6497 = vmatpush.xpose.msrb.mxu2 %v523_v24  ;;  %v1618_v23 = vld [vmem:[%s10414_s9 + $0x2828] sm:$0xf] }
 0x347   : > { %6477 = vmatpush.xpose.msrb.mxu1 %v522_v28  ;;  %6517 = vmatpush.xpose.msrb.mxu3 %v524_v29  ;;  %v1617_v28 = vld [vmem:[%s10414_s9 + $0x2820] sm:$0xf]  ;;  %v1619_v29 = vld [vmem:[%s10414_s9 + $0x2830] sm:$0xf] }
 0x349   : > { %6458 = vmatmul.f32.vlgmr.msrb.gmra.mxu0 %v2105_v6  ;;  %6498 = vmatmul.f32.vlgmr.msrb.gmra.mxu2 %v2107_v7  ;;  %v5159_v6 = vpop.f32.mrf.mxu3  ;;  %v2118_v7 = vld.sshfl [vmem:[#allocation1 + $0x38] sm:$0xff pattern:$0x73625140] }
 0x34a   : > { %6534 = vmatpush.xpose.msra.mxu0 %v1608_v25  ;;  %6574 = vmatpush.xpose.msra.mxu2 %v1610_v26  ;;  %v5160_v12 = vadd.f32 %v5159_v6, %v5140_v3  ;;  %v530_v25 = vld [vmem:[%s10414_s9 + $0x628] sm:$0xff]  ;;  %v532_v26 = vld [vmem:[%s10414_s9 + $0x638] sm:$0xff]  ;;  %v5299_v48 = vpop.f32.mrf.mxu2 }
 0x34b   : > { %6554 = vmatpush.xpose.msra.mxu1 %v1609_v31  ;;  %6594 = vmatpush.xpose.msra.mxu3 %v1611_v32  ;;  %v1255_v31 = vld [vmem:[%s10414_s9 + $0x1cd0] sm:$0xff]  ;;  %v1257_v32 = vld [vmem:[%s10414_s9 + $0x1ce0] sm:$0xff]  ;;  %v1260_v6 = vld [vmem:[%s10414_s9 + $0x1cf8] sm:$0xff] }
 0x34c   : > { %6478 = vmatmul.f32.vlgmr.msrb.gmra.mxu1 %v2106_v8  ;;  %6518 = vmatmul.f32.vlgmr.msrb.gmra.mxu3 %v2108_v10  ;;  %v293_v8 = vld [vmem:[%s10407_s7 + $0x198] sm:$0xff]  ;;  %v5180_v15 = vadd.f32 %v5179_v11, %v5160_v12 }
 0x34d   : > { %v1254_v10 = vld [vmem:[%s10414_s9 + $0x1cc8] sm:$0xff]  ;;  %2120 = vst [vmem:[#allocation1 + $0x20] ss:$4 sm:$0xff] %v293_v8  ;;  %v5359_v8 = vpop.f32.mrf.mxu1 }
 0x34e   : > { %6535 = vmatpush.xpose.msra.mxu0 %v1247_v34  ;;  %6575 = vmatpush.xpose.msra.mxu2 %v1249_v35  ;;  %v5200_v24 = vadd.f32 %v5199_v18, %v5180_v15  ;;  %v2123_v34 = vld.sshfl [vmem:[#allocation1 + $0x10] sm:$0xff pattern:$0x73625140]  ;;  %v2122_v35 = vld.sshfl [vmem:[#allocation1 + $0x8] sm:$0xff pattern:$0x73625140] }
 0x34f   : > { %6555 = vmatpush.xpose.msra.mxu1 %v1248_v43  ;;  %6595 = vmatpush.xpose.msra.mxu3 %v1250_v44  ;;  %v894_v43 = vld [vmem:[%s10414_s9 + $0x1188] sm:$0xff]  ;;  %v896_v44 = vld [vmem:[%s10414_s9 + $0x1198] sm:$0xff] }
 0x350   : > { %v5220_v27 = vadd.f32 %v5219_v21, %v5200_v24  ;;  %v538_v21 = vld [vmem:[%s10414_s9 + $0x668] sm:$0xff] }
 0x351   : > { %v5239_v30 = vpop.f32.mrf.mxu3 }
 0x352   : > { %6536 = vmatpush.xpose.msra.mxu0 %v886_v46  ;;  %6576 = vmatpush.xpose.msra.mxu2 %v888_v47  ;;  %v895_v46 = vld [vmem:[%s10414_s9 + $0x1190] sm:$0xff]  ;;  %v897_v47 = vld [vmem:[%s10414_s9 + $0x11a0] sm:$0xff]  ;;  %v5379_v11 = vpop.f32.mrf.mxu2 }
 0x353   : > { %6556 = vmatpush.xpose.msra.mxu1 %v887_v50  ;;  %6596 = vmatpush.xpose.msra.mxu3 %v889_v51  ;;  %v533_v50 = vld [vmem:[%s10414_s9 + $0x640] sm:$0xff]  ;;  %v535_v51 = vld [vmem:[%s10414_s9 + $0x650] sm:$0xff] }
 0x354   : > { %v2128_v3 = vld.sshfl [vmem:[#allocation1 + $0x38] sm:$0xff pattern:$0x73625140] }
 0x356   : > { %6537 = vmatpush.xpose.msra.mxu0 %v525_v53  ;;  %6577 = vmatpush.xpose.msra.mxu2 %v527_v54  ;;  %v1622_v53 = vld [vmem:[%s10414_s9 + $0x2848] sm:$0xf] }
 0x357   : > { %6557 = vmatpush.xpose.msra.mxu1 %v526_v58  ;;  %6597 = vmatpush.xpose.msra.mxu3 %v528_v59  ;;  %v1621_v58 = vld [vmem:[%s10414_s9 + $0x2840] sm:$0xf]  ;;  %v1623_v59 = vld [vmem:[%s10414_s9 + $0x2850] sm:$0xf] }
 0x359   : > { %6538 = vmatmul.f32.vlgmr.msra.gmra.mxu0 %v2111_v36  ;;  %6578 = vmatmul.f32.vlgmr.msra.gmra.mxu2 %v2113_v38  ;;  %v5259_v36 = vpop.f32.mrf.mxu0  ;;  %v294_v38 = vld [vmem:[%s10407_s7 + $0x1a0] sm:$0xff] }
 0x35a   : > { %6614 = vmatpush.xpose.msrb.mxu0 %v1612_v56  ;;  %6654 = vmatpush.xpose.msrb.mxu2 %v1614_v57  ;;  %2129 = vst [vmem:[#allocation1] ss:$4 sm:$0xff] %v294_v38  ;;  %v536_v56 = vld [vmem:[%s10414_s9 + $0x658] sm:$0xff]  ;;  %v5319_v57 = vpop.f32.mrf.mxu3  ;;  %v5459_v38 = vpop.f32.mrf.mxu2 }
 0x35b   : > { %6634 = vmatpush.xpose.msrb.mxu1 %v1613_v62  ;;  %6674 = vmatpush.xpose.msrb.mxu3 %v1615_v63  ;;  %v1261_v62 = vld [vmem:[%s10414_s9 + $0x1d00] sm:$0xff]  ;;  %v2125_v63 = vld.sshfl [vmem:[#allocation1 + $0x20] sm:$0xff pattern:$0x73625140] }
 0x35c   : > { %6558 = vmatmul.f32.vlgmr.msra.gmra.mxu1 %v2112_v39  ;;  %6598 = vmatmul.f32.vlgmr.msra.gmra.mxu3 %v2114_v40  ;;  %v5240_v39 = vadd.f32 %v5239_v30, %v5220_v27  ;;  %v1256_v40 = vld [vmem:[%s10414_s9 + $0x1cd8] sm:$0xff]  ;;  %v1263_v27 = vld [vmem:[%s10414_s9 + $0x1d10] sm:$0xff] }
 0x35e   : > { %6615 = vmatpush.xpose.msrb.mxu0 %v1251_v0  ;;  %6655 = vmatpush.xpose.msrb.mxu2 %v1253_v1  ;;  %v5260_v42 = vadd.f32 %v5259_v36, %v5240_v39  ;;  %v2127_v1 = vld.sshfl [vmem:[#allocation1 + $0x30] sm:$0xff pattern:$0x73625140]  ;;  %v1264_v36 = vld [vmem:[%s10414_s9 + $0x1d18] sm:$0xff] }
 0x35f   : > { %6635 = vmatpush.xpose.msrb.mxu1 %v1252_v9  ;;  %6675 = vmatpush.xpose.msrb.mxu3 %v1254_v10  ;;  %v898_v9 = vld [vmem:[%s10414_s9 + $0x11a8] sm:$0xff]  ;;  %v900_v10 = vld [vmem:[%s10414_s9 + $0x11b8] sm:$0xff] }
 0x360   : > { %v5280_v49 = vadd.f32 %v5279_v45, %v5260_v42 }
 0x361   : > { %v5339_v60 = vpop.f32.mrf.mxu0 }
 0x362   : > { %6616 = vmatpush.xpose.msrb.mxu0 %v890_v13  ;;  %6656 = vmatpush.xpose.msrb.mxu2 %v892_v14  ;;  %v5300_v54 = vadd.f32 %v5299_v48, %v5280_v49  ;;  %v899_v13 = vld [vmem:[%s10414_s9 + $0x11b0] sm:$0xff]  ;;  %v901_v14 = vld [vmem:[%s10414_s9 + $0x11c0] sm:$0xff]  ;;  %v5399_v18 = vpop.f32.mrf.mxu3  ;;  %v1628_v49 = vld [vmem:[%s10414_s9 + $0x2878] sm:$0xf] }
 0x363   : > { %6636 = vmatpush.xpose.msrb.mxu1 %v891_v16  ;;  %6676 = vmatpush.xpose.msrb.mxu3 %v893_v17  ;;  %v537_v16 = vld [vmem:[%s10414_s9 + $0x660] sm:$0xff]  ;;  %v539_v17 = vld [vmem:[%s10414_s9 + $0x670] sm:$0xff] }
 0x364   : > { %v5320_v0 = vadd.f32 %v5319_v57, %v5300_v54 }
 0x366   : > { %6617 = vmatpush.xpose.msrb.mxu0 %v529_v19  ;;  %6657 = vmatpush.xpose.msrb.mxu2 %v531_v20  ;;  %v1624_v19 = vld [vmem:[%s10414_s9 + $0x2858] sm:$0xf]  ;;  %v1626_v20 = vld [vmem:[%s10414_s9 + $0x2868] sm:$0xf] }
 0x367   : > { %6637 = vmatpush.xpose.msrb.mxu1 %v530_v25  ;;  %6677 = vmatpush.xpose.msrb.mxu3 %v532_v26  ;;  %v1625_v25 = vld [vmem:[%s10414_s9 + $0x2860] sm:$0xf]  ;;  %v1627_v26 = vld [vmem:[%s10414_s9 + $0x2870] sm:$0xf] }
 0x369   : > { %6618 = vmatmul.f32.vlgmr.msrb.gmra.mxu0 %v2115_v2  ;;  %6658 = vmatmul.f32.vlgmr.msrb.gmra.mxu2 %v2117_v4  ;;  %v2126_v2 = vld.sshfl [vmem:[#allocation1 + $0x28] sm:$0xff pattern:$0x73625140] }
 0x36a   : > { %6694 = vmatpush.xpose.msra.mxu0 %v1616_v22  ;;  %6734 = vmatpush.xpose.msra.mxu2 %v1618_v23  ;;  %v295_v4 = vld [vmem:[%s10407_s7 + $0x1a8] sm:$0xff]  ;;  %v5419_v23 = vpop.f32.mrf.mxu0  ;;  %v5479_v45 = vpop.f32.mrf.mxu3 }
 0x36b   : > { %6714 = vmatpush.xpose.msra.mxu1 %v1617_v28  ;;  %6754 = vmatpush.xpose.msra.mxu3 %v1619_v29  ;;  %2130 = vst [vmem:[#allocation1 + $0x20] ss:$4 sm:$0xff] %v295_v4  ;;  %v540_v22 = vld [vmem:[%s10414_s9 + $0x678] sm:$0xff]  ;;  %v1265_v28 = vld [vmem:[%s10414_s9 + $0x1d20] sm:$0xff]  ;;  %v1270_v4 = vld [vmem:[%s10414_s9 + $0x1d48] sm:$0xff] }
 0x36c   : > { %6638 = vmatmul.f32.vlgmr.msrb.gmra.mxu1 %v2116_v5  ;;  %6678 = vmatmul.f32.vlgmr.msrb.gmra.mxu3 %v2118_v7  ;;  %v5340_v5 = vadd.f32 %v5339_v60, %v5320_v0  ;;  %v1262_v7 = vld [vmem:[%s10414_s9 + $0x1d08] sm:$0xff]  ;;  %v2131_v29 = vld.sshfl [vmem:[#allocation1] sm:$0xff pattern:$0x73625140] }
 0x36e   : > { %6695 = vmatpush.xpose.msra.mxu0 %v1255_v31  ;;  %6735 = vmatpush.xpose.msra.mxu2 %v1257_v32  ;;  %v5360_v12 = vadd.f32 %v5359_v8, %v5340_v5  ;;  %v2133_v31 = vld.sshfl [vmem:[#allocation1 + $0x10] sm:$0xff pattern:$0x73625140]  ;;  %v2132_v32 = vld.sshfl [vmem:[#allocation1 + $0x8] sm:$0xff pattern:$0x73625140] }
 0x36f   : > { %6715 = vmatpush.xpose.msra.mxu1 %v1256_v40  ;;  %6755 = vmatpush.xpose.msra.mxu3 %v1258_v41  ;;  %v902_v40 = vld [vmem:[%s10414_s9 + $0x11c8] sm:$0xff]  ;;  %v904_v41 = vld [vmem:[%s10414_s9 + $0x11d8] sm:$0xff] }
 0x370   : > { %v5380_v15 = vadd.f32 %v5379_v11, %v5360_v12 }
 0x372   : > { %6696 = vmatpush.xpose.msra.mxu0 %v894_v43  ;;  %6736 = vmatpush.xpose.msra.mxu2 %v896_v44  ;;  %v5400_v24 = vadd.f32 %v5399_v18, %v5380_v15  ;;  %v903_v43 = vld [vmem:[%s10414_s9 + $0x11d0] sm:$0xff]  ;;  %v905_v44 = vld [vmem:[%s10414_s9 + $0x11e0] sm:$0xff]  ;;  %v5499_v48 = vpop.f32.mrf.mxu0  ;;  %v5559_v8 = vpop.f32.mrf.mxu3  ;;  %v1632_v15 = vld [vmem:[%s10414_s9 + $0x2898] sm:$0xf] }
 0x373   : > { %6716 = vmatpush.xpose.msra.mxu1 %v895_v46  ;;  %6756 = vmatpush.xpose.msra.mxu3 %v897_v47  ;;  %v541_v46 = vld [vmem:[%s10414_s9 + $0x680] sm:$0xff]  ;;  %v543_v47 = vld [vmem:[%s10414_s9 + $0x690] sm:$0xff]  ;;  %v546_v18 = vld [vmem:[%s10414_s9 + $0x6a8] sm:$0xff] }
 0x374   : > { %v5420_v30 = vadd.f32 %v5419_v23, %v5400_v24  ;;  %v2135_v60 = vld.sshfl [vmem:[#allocation1 + $0x20] sm:$0xff pattern:$0x73625140]  ;;  %v2138_v0 = vld.sshfl [vmem:[#allocation1 + $0x38] sm:$0xff pattern:$0x73625140] }
 0x375   : > { %v1271_v24 = vld [vmem:[%s10414_s9 + $0x1d50] sm:$0xff] }
 0x376   : > { %6697 = vmatpush.xpose.msra.mxu0 %v533_v50  ;;  %6737 = vmatpush.xpose.msra.mxu2 %v535_v51  ;;  %v1630_v50 = vld [vmem:[%s10414_s9 + $0x2888] sm:$0xf] }
 0x377   : > { %6717 = vmatpush.xpose.msra.mxu1 %v534_v55  ;;  %6757 = vmatpush.xpose.msra.mxu3 %v536_v56  ;;  %v1629_v55 = vld [vmem:[%s10414_s9 + $0x2880] sm:$0xf]  ;;  %v1631_v56 = vld [vmem:[%s10414_s9 + $0x2890] sm:$0xf] }
 0x379   : > { %6698 = vmatmul.f32.vlgmr.msra.gmra.mxu0 %v2121_v33  ;;  %6738 = vmatmul.f32.vlgmr.msra.gmra.mxu2 %v2123_v34  ;;  %v5439_v33 = vpop.f32.mrf.mxu1  ;;  %v2134_v34 = vld.sshfl [vmem:[#allocation1 + $0x18] sm:$0xff pattern:$0x73625140] }
 0x37a   : > { %6774 = vmatpush.xpose.msrb.mxu0 %v1620_v52  ;;  %6814 = vmatpush.xpose.msrb.mxu2 %v1622_v53  ;;  %v5440_v39 = vadd.f32 %v5439_v33, %v5420_v30  ;;  %v542_v52 = vld [vmem:[%s10414_s9 + $0x688] sm:$0xff]  ;;  %v544_v53 = vld [vmem:[%s10414_s9 + $0x698] sm:$0xff]  ;;  %v5579_v11 = vpop.f32.mrf.mxu0 }
 0x37b   : > { %6794 = vmatpush.xpose.msrb.mxu1 %v1621_v58  ;;  %6834 = vmatpush.xpose.msrb.mxu3 %v1623_v59  ;;  %v1267_v58 = vld [vmem:[%s10414_s9 + $0x1d30] sm:$0xff]  ;;  %v1269_v59 = vld [vmem:[%s10414_s9 + $0x1d40] sm:$0xff]  ;;  %v1272_v33 = vld [vmem:[%s10414_s9 + $0x1d58] sm:$0xff] }
 0x37c   : > { %6718 = vmatmul.f32.vlgmr.msra.gmra.mxu1 %v2122_v35  ;;  %6758 = vmatmul.f32.vlgmr.msra.gmra.mxu3 %v2124_v37  ;;  %v296_v35 = vld [vmem:[%s10407_s7 + $0x1b0] sm:$0xff]  ;;  %v5460_v42 = vadd.f32 %v5459_v38, %v5440_v39 }
 0x37d   : > { %v1266_v37 = vld [vmem:[%s10414_s9 + $0x1d28] sm:$0xff]  ;;  %2139 = vst [vmem:[#allocation1] ss:$4 sm:$0xff] %v296_v35  ;;  %v5639_v35 = vpop.f32.mrf.mxu3 }
 0x37e   : > { %6775 = vmatpush.xpose.msrb.mxu0 %v1259_v61  ;;  %6815 = vmatpush.xpose.msrb.mxu2 %v1261_v62  ;;  %v5480_v51 = vadd.f32 %v5479_v45, %v5460_v42  ;;  %v2137_v61 = vld.sshfl [vmem:[#allocation1 + $0x30] sm:$0xff pattern:$0x73625140]  ;;  %v2136_v62 = vld.sshfl [vmem:[#allocation1 + $0x28] sm:$0xff pattern:$0x73625140] }
 0x37f   : > { %6795 = vmatpush.xpose.msrb.mxu1 %v1260_v6  ;;  %6835 = vmatpush.xpose.msrb.mxu3 %v1262_v7  ;;  %v906_v6 = vld [vmem:[%s10414_s9 + $0x11e8] sm:$0xff]  ;;  %v908_v7 = vld [vmem:[%s10414_s9 + $0x11f8] sm:$0xff] }
 0x380   : > { %v5500_v54 = vadd.f32 %v5499_v48, %v5480_v51  ;;  %v550_v48 = vld [vmem:[%s10414_s9 + $0x6c8] sm:$0xff] }
 0x381   : > { %v5519_v57 = vpop.f32.mrf.mxu1 }
 0x382   : > { %6776 = vmatpush.xpose.msrb.mxu0 %v898_v9  ;;  %6816 = vmatpush.xpose.msrb.mxu2 %v900_v10  ;;  %v907_v9 = vld [vmem:[%s10414_s9 + $0x11f0] sm:$0xff]  ;;  %v909_v10 = vld [vmem:[%s10414_s9 + $0x1200] sm:$0xff]  ;;  %v5659_v38 = vpop.f32.mrf.mxu0 }
 0x383   : > { %6796 = vmatpush.xpose.msrb.mxu1 %v899_v13  ;;  %6836 = vmatpush.xpose.msrb.mxu3 %v901_v14  ;;  %v545_v13 = vld [vmem:[%s10414_s9 + $0x6a0] sm:$0xff]  ;;  %v547_v14 = vld [vmem:[%s10414_s9 + $0x6b0] sm:$0xff] }
 0x384   : > { %v2144_v30 = vld.sshfl [vmem:[#allocation1 + $0x18] sm:$0xff pattern:$0x73625140] }
 0x386   : > { %6777 = vmatpush.xpose.msrb.mxu0 %v537_v16  ;;  %6817 = vmatpush.xpose.msrb.mxu2 %v539_v17  ;;  %v1634_v16 = vld [vmem:[%s10414_s9 + $0x28a8] sm:$0xf] }
 0x387   : > { %6797 = vmatpush.xpose.msrb.mxu1 %v538_v21  ;;  %6837 = vmatpush.xpose.msrb.mxu3 %v540_v22  ;;  %v1633_v21 = vld [vmem:[%s10414_s9 + $0x28a0] sm:$0xf]  ;;  %v1635_v22 = vld [vmem:[%s10414_s9 + $0x28b0] sm:$0xf] }
 0x389   : > { %6778 = vmatmul.f32.vlgmr.msrb.gmra.mxu0 %v2125_v63  ;;  %6818 = vmatmul.f32.vlgmr.msrb.gmra.mxu2 %v2127_v1  ;;  %v5539_v63 = vpop.f32.mrf.mxu2  ;;  %v297_v1 = vld [vmem:[%s10407_s7 + $0x1b8] sm:$0xff] }
 0x38a   : > { %6854 = vmatpush.xpose.msra.mxu0 %v1624_v19  ;;  %6894 = vmatpush.xpose.msra.mxu2 %v1626_v20  ;;  %2140 = vst [vmem:[#allocation1 + $0x20] ss:$4 sm:$0xff] %v297_v1  ;;  %v548_v19 = vld [vmem:[%s10414_s9 + $0x6b8] sm:$0xff]  ;;  %v5599_v20 = vpop.f32.mrf.mxu1  ;;  %v5739_v1 = vpop.f32.mrf.mxu0 }
 0x38b   : > { %6874 = vmatpush.xpose.msra.mxu1 %v1625_v25  ;;  %6914 = vmatpush.xpose.msra.mxu3 %v1627_v26  ;;  %v1273_v25 = vld [vmem:[%s10414_s9 + $0x1d60] sm:$0xff]  ;;  %v2141_v26 = vld.sshfl [vmem:[#allocation1] sm:$0xff pattern:$0x73625140] }
 0x38c   : > { %6798 = vmatmul.f32.vlgmr.msrb.gmra.mxu1 %v2126_v2  ;;  %6838 = vmatmul.f32.vlgmr.msrb.gmra.mxu3 %v2128_v3  ;;  %v5520_v2 = vadd.f32 %v5519_v57, %v5500_v54  ;;  %v1268_v3 = vld [vmem:[%s10414_s9 + $0x1d38] sm:$0xff]  ;;  %v1275_v54 = vld [vmem:[%s10414_s9 + $0x1d70] sm:$0xff] }
 0x38e   : > { %6855 = vmatpush.xpose.msra.mxu0 %v1263_v27  ;;  %6895 = vmatpush.xpose.msra.mxu2 %v1265_v28  ;;  %v5540_v5 = vadd.f32 %v5539_v63, %v5520_v2  ;;  %v2143_v28 = vld.sshfl [vmem:[#allocation1 + $0x10] sm:$0xff pattern:$0x73625140]  ;;  %v1276_v63 = vld [vmem:[%s10414_s9 + $0x1d78] sm:$0xff] }
 0x38f   : > { %6875 = vmatpush.xpose.msra.mxu1 %v1264_v36  ;;  %6915 = vmatpush.xpose.msra.mxu3 %v1266_v37  ;;  %v910_v36 = vld [vmem:[%s10414_s9 + $0x1208] sm:$0xff]  ;;  %v912_v37 = vld [vmem:[%s10414_s9 + $0x1218] sm:$0xff] }
 0x390   : > { %v5560_v12 = vadd.f32 %v5559_v8, %v5540_v5 }
 0x391   : > { %v5619_v23 = vpop.f32.mrf.mxu2 }
 0x392   : > { %6856 = vmatpush.xpose.msra.mxu0 %v902_v40  ;;  %6896 = vmatpush.xpose.msra.mxu2 %v904_v41  ;;  %v5580_v17 = vadd.f32 %v5579_v11, %v5560_v12  ;;  %v911_v40 = vld [vmem:[%s10414_s9 + $0x1210] sm:$0xff]  ;;  %v913_v41 = vld [vmem:[%s10414_s9 + $0x1220] sm:$0xff]  ;;  %v5679_v45 = vpop.f32.mrf.mxu1  ;;  %v1640_v12 = vld [vmem:[%s10414_s9 + $0x28d8] sm:$0xf] }
 0x393   : > { %6876 = vmatpush.xpose.msra.mxu1 %v903_v43  ;;  %6916 = vmatpush.xpose.msra.mxu3 %v905_v44  ;;  %v549_v43 = vld [vmem:[%s10414_s9 + $0x6c0] sm:$0xff]  ;;  %v551_v44 = vld [vmem:[%s10414_s9 + $0x6d0] sm:$0xff] }
 0x394   : > { %v5600_v27 = vadd.f32 %v5599_v20, %v5580_v17 }
 0x396   : > { %6857 = vmatpush.xpose.msra.mxu0 %v541_v46  ;;  %6897 = vmatpush.xpose.msra.mxu2 %v543_v47  ;;  %v1636_v46 = vld [vmem:[%s10414_s9 + $0x28b8] sm:$0xf]  ;;  %v1638_v47 = vld [vmem:[%s10414_s9 + $0x28c8] sm:$0xf] }
 0x397   : > { %6877 = vmatpush.xpose.msra.mxu1 %v542_v52  ;;  %6917 = vmatpush.xpose.msra.mxu3 %v544_v53  ;;  %v1637_v52 = vld [vmem:[%s10414_s9 + $0x28c0] sm:$0xf]  ;;  %v1639_v53 = vld [vmem:[%s10414_s9 + $0x28d0] sm:$0xf] }
 0x399   : > { %6858 = vmatmul.f32.vlgmr.msra.gmra.mxu0 %v2131_v29  ;;  %6898 = vmatmul.f32.vlgmr.msra.gmra.mxu2 %v2133_v31  ;;  %v2142_v29 = vld.sshfl [vmem:[#allocation1 + $0x8] sm:$0xff pattern:$0x73625140] }
 0x39a   : > { %6934 = vmatpush.xpose.msrb.mxu0 %v1628_v49  ;;  %6974 = vmatpush.xpose.msrb.mxu2 %v1630_v50  ;;  %v298_v31 = vld [vmem:[%s10407_s7 + $0x1c0] sm:$0xff]  ;;  %v5699_v50 = vpop.f32.mrf.mxu2  ;;  %v5759_v8 = vpop.f32.mrf.mxu1 }
 0x39b   : > { %6954 = vmatpush.xpose.msrb.mxu1 %v1629_v55  ;;  %6994 = vmatpush.xpose.msrb.mxu3 %v1631_v56  ;;  %2149 = vst [vmem:[#allocation1] ss:$4 sm:$0xff] %v298_v31  ;;  %v552_v49 = vld [vmem:[%s10414_s9 + $0x6d8] sm:$0xff]  ;;  %v1277_v55 = vld [vmem:[%s10414_s9 + $0x1d80] sm:$0xff]  ;;  %v1282_v31 = vld [vmem:[%s10414_s9 + $0x1da8] sm:$0xff] }
 0x39c   : > { %6878 = vmatmul.f32.vlgmr.msra.gmra.mxu1 %v2132_v32  ;;  %6918 = vmatmul.f32.vlgmr.msra.gmra.mxu3 %v2134_v34  ;;  %v5620_v32 = vadd.f32 %v5619_v23, %v5600_v27  ;;  %v1274_v34 = vld [vmem:[%s10414_s9 + $0x1d68] sm:$0xff]  ;;  %v2145_v56 = vld.sshfl [vmem:[#allocation1 + $0x20] sm:$0xff pattern:$0x73625140] }
 0x39e   : > { %6935 = vmatpush.xpose.msrb.mxu0 %v1267_v58  ;;  %6975 = vmatpush.xpose.msrb.mxu2 %v1269_v59  ;;  %v5640_v39 = vadd.f32 %v5639_v35, %v5620_v32  ;;  %v2147_v58 = vld.sshfl [vmem:[#allocation1 + $0x30] sm:$0xff pattern:$0x73625140]  ;;  %v2146_v59 = vld.sshfl [vmem:[#allocation1 + $0x28] sm:$0xff pattern:$0x73625140] }
 0x39f   : > { %6955 = vmatpush.xpose.msrb.mxu1 %v1268_v3  ;;  %6995 = vmatpush.xpose.msrb.mxu3 %v1270_v4  ;;  %v914_v3 = vld [vmem:[%s10414_s9 + $0x1228] sm:$0xff]  ;;  %v916_v4 = vld [vmem:[%s10414_s9 + $0x1238] sm:$0xff] }
 0x3a0   : > { %v5660_v42 = vadd.f32 %v5659_v38, %v5640_v39 }
 0x3a2   : > { %6936 = vmatpush.xpose.msrb.mxu0 %v906_v6  ;;  %6976 = vmatpush.xpose.msrb.mxu2 %v908_v7  ;;  %v5680_v51 = vadd.f32 %v5679_v45, %v5660_v42  ;;  %v915_v6 = vld [vmem:[%s10414_s9 + $0x1230] sm:$0xff]  ;;  %v917_v7 = vld [vmem:[%s10414_s9 + $0x1240] sm:$0xff]  ;;  %v5779_v11 = vpop.f32.mrf.mxu2  ;;  %v5839_v35 = vpop.f32.mrf.mxu1  ;;  %v1644_v42 = vld [vmem:[%s10414_s9 + $0x28f8] sm:$0xf] }
 0x3a3   : > { %6956 = vmatpush.xpose.msrb.mxu1 %v907_v9  ;;  %6996 = vmatpush.xpose.msrb.mxu3 %v909_v10  ;;  %v553_v9 = vld [vmem:[%s10414_s9 + $0x6e0] sm:$0xff]  ;;  %v555_v10 = vld [vmem:[%s10414_s9 + $0x6f0] sm:$0xff]  ;;  %v558_v45 = vld [vmem:[%s10414_s9 + $0x708] sm:$0xff] }
 0x3a4   : > { %v5700_v57 = vadd.f32 %v5699_v50, %v5680_v51  ;;  %v2151_v23 = vld.sshfl [vmem:[#allocation1] sm:$0xff pattern:$0x73625140]  ;;  %v2154_v27 = vld.sshfl [vmem:[#allocation1 + $0x18] sm:$0xff pattern:$0x73625140] }
 0x3a5   : > { %v1283_v51 = vld [vmem:[%s10414_s9 + $0x1db0] sm:$0xff] }
 0x3a6   : > { %6937 = vmatpush.xpose.msrb.mxu0 %v545_v13  ;;  %6977 = vmatpush.xpose.msrb.mxu2 %v547_v14  ;;  %v1642_v13 = vld [vmem:[%s10414_s9 + $0x28e8] sm:$0xf] }
 0x3a7   : > { %6957 = vmatpush.xpose.msrb.mxu1 %v546_v18  ;;  %6997 = vmatpush.xpose.msrb.mxu3 %v548_v19  ;;  %v1641_v18 = vld [vmem:[%s10414_s9 + $0x28e0] sm:$0xf]  ;;  %v1643_v19 = vld [vmem:[%s10414_s9 + $0x28f0] sm:$0xf] }
 0x3a9   : > { %6938 = vmatmul.f32.vlgmr.msrb.gmra.mxu0 %v2135_v60  ;;  %6978 = vmatmul.f32.vlgmr.msrb.gmra.mxu2 %v2137_v61  ;;  %v5719_v60 = vpop.f32.mrf.mxu3  ;;  %v2148_v61 = vld.sshfl [vmem:[#allocation1 + $0x38] sm:$0xff pattern:$0x73625140] }
 0x3aa   : > { %7014 = vmatpush.xpose.msra.mxu0 %v1632_v15  ;;  %7054 = vmatpush.xpose.msra.mxu2 %v1634_v16  ;;  %v5720_v2 = vadd.f32 %v5719_v60, %v5700_v57  ;;  %v554_v15 = vld [vmem:[%s10414_s9 + $0x6e8] sm:$0xff]  ;;  %v556_v16 = vld [vmem:[%s10414_s9 + $0x6f8] sm:$0xff]  ;;  %v5859_v38 = vpop.f32.mrf.mxu2 }
 0x3ab   : > { %7034 = vmatpush.xpose.msra.mxu1 %v1633_v21  ;;  %7074 = vmatpush.xpose.msra.mxu3 %v1635_v22  ;;  %v1279_v21 = vld [vmem:[%s10414_s9 + $0x1d90] sm:$0xff]  ;;  %v1281_v22 = vld [vmem:[%s10414_s9 + $0x1da0] sm:$0xff]  ;;  %v1284_v60 = vld [vmem:[%s10414_s9 + $0x1db8] sm:$0xff] }
 0x3ac   : > { %6958 = vmatmul.f32.vlgmr.msrb.gmra.mxu1 %v2136_v62  ;;  %6998 = vmatmul.f32.vlgmr.msrb.gmra.mxu3 %v2138_v0  ;;  %v299_v62 = vld [vmem:[%s10407_s7 + $0x1c8] sm:$0xff]  ;;  %v5740_v5 = vadd.f32 %v5739_v1, %v5720_v2 }
 0x3ad   : > { %v1278_v0 = vld [vmem:[%s10414_s9 + $0x1d88] sm:$0xff]  ;;  %2150 = vst [vmem:[#allocation1 + $0x20] ss:$4 sm:$0xff] %v299_v62  ;;  %v5919_v62 = vpop.f32.mrf.mxu1 }
 0x3ae   : > { %7015 = vmatpush.xpose.msra.mxu0 %v1271_v24  ;;  %7055 = vmatpush.xpose.msra.mxu2 %v1273_v25  ;;  %v5760_v14 = vadd.f32 %v5759_v8, %v5740_v5  ;;  %v2153_v24 = vld.sshfl [vmem:[#allocation1 + $0x10] sm:$0xff pattern:$0x73625140]  ;;  %v2152_v25 = vld.sshfl [vmem:[#allocation1 + $0x8] sm:$0xff pattern:$0x73625140] }
 0x3af   : > { %7035 = vmatpush.xpose.msra.mxu1 %v1272_v33  ;;  %7075 = vmatpush.xpose.msra.mxu3 %v1274_v34  ;;  %v918_v33 = vld [vmem:[%s10414_s9 + $0x1248] sm:$0xff]  ;;  %v920_v34 = vld [vmem:[%s10414_s9 + $0x1258] sm:$0xff] }
 0x3b0   : > { %v5780_v17 = vadd.f32 %v5779_v11, %v5760_v14  ;;  %v562_v11 = vld [vmem:[%s10414_s9 + $0x728] sm:$0xff] }
 0x3b1   : > { %v5799_v20 = vpop.f32.mrf.mxu3 }
 0x3b2   : > { %7016 = vmatpush.xpose.msra.mxu0 %v910_v36  ;;  %7056 = vmatpush.xpose.msra.mxu2 %v912_v37  ;;  %v919_v36 = vld [vmem:[%s10414_s9 + $0x1250] sm:$0xff]  ;;  %v921_v37 = vld [vmem:[%s10414_s9 + $0x1260] sm:$0xff]  ;;  %v5939_v1 = vpop.f32.mrf.mxu2 }
 0x3b3   : > { %7036 = vmatpush.xpose.msra.mxu1 %v911_v40  ;;  %7076 = vmatpush.xpose.msra.mxu3 %v913_v41  ;;  %v557_v40 = vld [vmem:[%s10414_s9 + $0x700] sm:$0xff]  ;;  %v559_v41 = vld [vmem:[%s10414_s9 + $0x710] sm:$0xff] }
 0x3b4   : > { %v2158_v57 = vld.sshfl [vmem:[#allocation1 + $0x38] sm:$0xff pattern:$0x73625140] }
 0x3b6   : > { %7017 = vmatpush.xpose.msra.mxu0 %v549_v43  ;;  %7057 = vmatpush.xpose.msra.mxu2 %v551_v44  ;;  %v1646_v43 = vld [vmem:[%s10414_s9 + $0x2908] sm:$0xf] }
 0x3b7   : > { %7037 = vmatpush.xpose.msra.mxu1 %v550_v48  ;;  %7077 = vmatpush.xpose.msra.mxu3 %v552_v49  ;;  %v1645_v48 = vld [vmem:[%s10414_s9 + $0x2900] sm:$0xf]  ;;  %v1647_v49 = vld [vmem:[%s10414_s9 + $0x2910] sm:$0xf] }
 0x3b9   : > { %7018 = vmatmul.f32.vlgmr.msra.gmra.mxu0 %v2141_v26  ;;  %7058 = vmatmul.f32.vlgmr.msra.gmra.mxu2 %v2143_v28  ;;  %v5819_v26 = vpop.f32.mrf.mxu0  ;;  %v300_v28 = vld [vmem:[%s10407_s7 + $0x1d0] sm:$0xff] }
 0x3ba   : > { %7094 = vmatpush.xpose.msrb.mxu0 %v1636_v46  ;;  %7134 = vmatpush.xpose.msrb.mxu2 %v1638_v47  ;;  %2159 = vst [vmem:[#allocation1] ss:$4 sm:$0xff] %v300_v28  ;;  %v560_v46 = vld [vmem:[%s10414_s9 + $0x718] sm:$0xff]  ;;  %v5879_v47 = vpop.f32.mrf.mxu3  ;;  %v6019_v28 = vpop.f32.mrf.mxu2 }
 0x3bb   : > { %7114 = vmatpush.xpose.msrb.mxu1 %v1637_v52  ;;  %7154 = vmatpush.xpose.msrb.mxu3 %v1639_v53  ;;  %v1285_v52 = vld [vmem:[%s10414_s9 + $0x1dc0] sm:$0xff]  ;;  %v2155_v53 = vld.sshfl [vmem:[#allocation1 + $0x20] sm:$0xff pattern:$0x73625140] }
 0x3bc   : > { %7038 = vmatmul.f32.vlgmr.msra.gmra.mxu1 %v2142_v29  ;;  %7078 = vmatmul.f32.vlgmr.msra.gmra.mxu3 %v2144_v30  ;;  %v5800_v29 = vadd.f32 %v5799_v20, %v5780_v17  ;;  %v1280_v30 = vld [vmem:[%s10414_s9 + $0x1d98] sm:$0xff]  ;;  %v1287_v17 = vld [vmem:[%s10414_s9 + $0x1dd0] sm:$0xff] }
 0x3be   : > { %7095 = vmatpush.xpose.msrb.mxu0 %v1275_v54  ;;  %7135 = vmatpush.xpose.msrb.mxu2 %v1277_v55  ;;  %v5820_v32 = vadd.f32 %v5819_v26, %v5800_v29  ;;  %v2157_v55 = vld.sshfl [vmem:[#allocation1 + $0x30] sm:$0xff pattern:$0x73625140]  ;;  %v1288_v26 = vld [vmem:[%s10414_s9 + $0x1dd8] sm:$0xff] }
 0x3bf   : > { %7115 = vmatpush.xpose.msrb.mxu1 %v1276_v63  ;;  %7155 = vmatpush.xpose.msrb.mxu3 %v1278_v0  ;;  %v922_v63 = vld [vmem:[%s10414_s9 + $0x1268] sm:$0xff]  ;;  %v924_v0 = vld [vmem:[%s10414_s9 + $0x1278] sm:$0xff] }
 0x3c0   : > { %v5840_v39 = vadd.f32 %v5839_v35, %v5820_v32 }
 0x3c1   : > { %v5899_v50 = vpop.f32.mrf.mxu0 }
 0x3c2   : > { %7096 = vmatpush.xpose.msrb.mxu0 %v914_v3  ;;  %7136 = vmatpush.xpose.msrb.mxu2 %v916_v4  ;;  %v5860_v44 = vadd.f32 %v5859_v38, %v5840_v39  ;;  %v923_v3 = vld [vmem:[%s10414_s9 + $0x1270] sm:$0xff]  ;;  %v925_v4 = vld [vmem:[%s10414_s9 + $0x1280] sm:$0xff]  ;;  %v5959_v8 = vpop.f32.mrf.mxu3  ;;  %v1652_v39 = vld [vmem:[%s10414_s9 + $0x2938] sm:$0xf] }
 0x3c3   : > { %7116 = vmatpush.xpose.msrb.mxu1 %v915_v6  ;;  %7156 = vmatpush.xpose.msrb.mxu3 %v917_v7  ;;  %v561_v6 = vld [vmem:[%s10414_s9 + $0x720] sm:$0xff]  ;;  %v563_v7 = vld [vmem:[%s10414_s9 + $0x730] sm:$0xff] }
 0x3c4   : > { %v5880_v54 = vadd.f32 %v5879_v47, %v5860_v44 }
 0x3c6   : > { %7097 = vmatpush.xpose.msrb.mxu0 %v553_v9  ;;  %7137 = vmatpush.xpose.msrb.mxu2 %v555_v10  ;;  %v1648_v9 = vld [vmem:[%s10414_s9 + $0x2918] sm:$0xf]  ;;  %v1650_v10 = vld [vmem:[%s10414_s9 + $0x2928] sm:$0xf] }
 0x3c7   : > { %7117 = vmatpush.xpose.msrb.mxu1 %v554_v15  ;;  %7157 = vmatpush.xpose.msrb.mxu3 %v556_v16  ;;  %v1649_v15 = vld [vmem:[%s10414_s9 + $0x2920] sm:$0xf]  ;;  %v1651_v16 = vld [vmem:[%s10414_s9 + $0x2930] sm:$0xf] }
 0x3c9   : > { %7098 = vmatmul.f32.vlgmr.msrb.gmra.mxu0 %v2145_v56  ;;  %7138 = vmatmul.f32.vlgmr.msrb.gmra.mxu2 %v2147_v58  ;;  %v2156_v56 = vld.sshfl [vmem:[#allocation1 + $0x28] sm:$0xff pattern:$0x73625140]  ;;  %v301_v58 = vld [vmem:[%s10407_s7 + $0x1d8] sm:$0xff] }
 0x3ca   : > { %7174 = vmatpush.xpose.msra.mxu0 %v1640_v12  ;;  %7214 = vmatpush.xpose.msra.mxu2 %v1642_v13  ;;  %2160 = vst [vmem:[#allocation1 + $0x20] ss:$4 sm:$0xff] %v301_v58  ;;  %v564_v12 = vld [vmem:[%s10414_s9 + $0x738] sm:$0xff]  ;;  %v5979_v13 = vpop.f32.mrf.mxu0  ;;  %v6039_v35 = vpop.f32.mrf.mxu3  ;;  %v1294_v58 = vld [vmem:[%s10414_s9 + $0x1e08] sm:$0xff] }
 0x3cb   : > { %7194 = vmatpush.xpose.msra.mxu1 %v1641_v18  ;;  %7234 = vmatpush.xpose.msra.mxu3 %v1643_v19  ;;  %v1289_v18 = vld [vmem:[%s10414_s9 + $0x1de0] sm:$0xff]  ;;  %v2161_v19 = vld.sshfl [vmem:[#allocation1] sm:$0xff pattern:$0x73625140] }
 0x3cc   : > { %7118 = vmatmul.f32.vlgmr.msrb.gmra.mxu1 %v2146_v59  ;;  %7158 = vmatmul.f32.vlgmr.msrb.gmra.mxu3 %v2148_v61  ;;  %v5900_v59 = vadd.f32 %v5899_v50, %v5880_v54  ;;  %v1286_v61 = vld [vmem:[%s10414_s9 + $0x1dc8] sm:$0xff] }
 0x3ce   : > { %7175 = vmatpush.xpose.msra.mxu0 %v1279_v21  ;;  %7215 = vmatpush.xpose.msra.mxu2 %v1281_v22  ;;  %v5920_v2 = vadd.f32 %v5919_v62, %v5900_v59  ;;  %v2163_v21 = vld.sshfl [vmem:[#allocation1 + $0x10] sm:$0xff pattern:$0x73625140]  ;;  %v2162_v22 = vld.sshfl [vmem:[#allocation1 + $0x8] sm:$0xff pattern:$0x73625140] }
 0x3cf   : > { %7195 = vmatpush.xpose.msra.mxu1 %v1280_v30  ;;  %7235 = vmatpush.xpose.msra.mxu3 %v1282_v31  ;;  %v926_v30 = vld [vmem:[%s10414_s9 + $0x1288] sm:$0xff]  ;;  %v928_v31 = vld [vmem:[%s10414_s9 + $0x1298] sm:$0xff] }
 0x3d0   : > { %v5940_v5 = vadd.f32 %v5939_v1, %v5920_v2 }
 0x3d1   : > { %v2165_v50 = vld.sshfl [vmem:[#allocation1 + $0x20] sm:$0xff pattern:$0x73625140]  ;;  %v2168_v54 = vld.sshfl [vmem:[#allocation1 + $0x38] sm:$0xff pattern:$0x73625140] }
 0x3d2   : > { %7176 = vmatpush.xpose.msra.mxu0 %v918_v33  ;;  %7216 = vmatpush.xpose.msra.mxu2 %v920_v34  ;;  %v5960_v14 = vadd.f32 %v5959_v8, %v5940_v5  ;;  %v927_v33 = vld [vmem:[%s10414_s9 + $0x1290] sm:$0xff]  ;;  %v929_v34 = vld [vmem:[%s10414_s9 + $0x12a0] sm:$0xff]  ;;  %v6059_v38 = vpop.f32.mrf.mxu0  ;;  %v6119_v62 = vpop.f32.mrf.mxu3  ;;  %v1656_v5 = vld [vmem:[%s10414_s9 + $0x2958] sm:$0xf] }
 0x3d3   : > { %7196 = vmatpush.xpose.msra.mxu1 %v919_v36  ;;  %7236 = vmatpush.xpose.msra.mxu3 %v921_v37  ;;  %v565_v36 = vld [vmem:[%s10414_s9 + $0x740] sm:$0xff]  ;;  %v567_v37 = vld [vmem:[%s10414_s9 + $0x750] sm:$0xff]  ;;  %v570_v8 = vld [vmem:[%s10414_s9 + $0x768] sm:$0xff] }
 0x3d4   : > { %v5980_v20 = vadd.f32 %v5979_v13, %v5960_v14  ;;  %v1295_v14 = vld [vmem:[%s10414_s9 + $0x1e10] sm:$0xff] }
 0x3d6   : > { %7177 = vmatpush.xpose.msra.mxu0 %v557_v40  ;;  %7217 = vmatpush.xpose.msra.mxu2 %v559_v41  ;;  %v1654_v40 = vld [vmem:[%s10414_s9 + $0x2948] sm:$0xf] }
 0x3d7   : > { %7197 = vmatpush.xpose.msra.mxu1 %v558_v45  ;;  %7237 = vmatpush.xpose.msra.mxu3 %v560_v46  ;;  %v1653_v45 = vld [vmem:[%s10414_s9 + $0x2940] sm:$0xf]  ;;  %v1655_v46 = vld [vmem:[%s10414_s9 + $0x2950] sm:$0xf] }
 0x3d9   : > { %7178 = vmatmul.f32.vlgmr.msra.gmra.mxu0 %v2151_v23  ;;  %7218 = vmatmul.f32.vlgmr.msra.gmra.mxu2 %v2153_v24  ;;  %v5999_v23 = vpop.f32.mrf.mxu1  ;;  %v2164_v24 = vld.sshfl [vmem:[#allocation1 + $0x18] sm:$0xff pattern:$0x73625140] }
 0x3da   : > { %7254 = vmatpush.xpose.msrb.mxu0 %v1644_v42  ;;  %7294 = vmatpush.xpose.msrb.mxu2 %v1646_v43  ;;  %v6000_v29 = vadd.f32 %v5999_v23, %v5980_v20  ;;  %v566_v42 = vld [vmem:[%s10414_s9 + $0x748] sm:$0xff]  ;;  %v568_v43 = vld [vmem:[%s10414_s9 + $0x758] sm:$0xff]  ;;  %v6139_v1 = vpop.f32.mrf.mxu0 }
 0x3db   : > { %7274 = vmatpush.xpose.msrb.mxu1 %v1645_v48  ;;  %7314 = vmatpush.xpose.msrb.mxu3 %v1647_v49  ;;  %v1291_v48 = vld [vmem:[%s10414_s9 + $0x1df0] sm:$0xff]  ;;  %v1293_v49 = vld [vmem:[%s10414_s9 + $0x1e00] sm:$0xff]  ;;  %v1296_v23 = vld [vmem:[%s10414_s9 + $0x1e18] sm:$0xff] }
 0x3dc   : > { %7198 = vmatmul.f32.vlgmr.msra.gmra.mxu1 %v2152_v25  ;;  %7238 = vmatmul.f32.vlgmr.msra.gmra.mxu3 %v2154_v27  ;;  %v302_v25 = vld [vmem:[%s10407_s7 + $0x1e0] sm:$0xff]  ;;  %v6020_v32 = vadd.f32 %v6019_v28, %v6000_v29 }
 0x3dd   : > { %v1290_v27 = vld [vmem:[%s10414_s9 + $0x1de8] sm:$0xff]  ;;  %2169 = vst [vmem:[#allocation1] ss:$4 sm:$0xff] %v302_v25  ;;  %v6199_v25 = vpop.f32.mrf.mxu3 }
 0x3de   : > { %7255 = vmatpush.xpose.msrb.mxu0 %v1283_v51  ;;  %7295 = vmatpush.xpose.msrb.mxu2 %v1285_v52  ;;  %v6040_v41 = vadd.f32 %v6039_v35, %v6020_v32  ;;  %v2167_v51 = vld.sshfl [vmem:[#allocation1 + $0x30] sm:$0xff pattern:$0x73625140]  ;;  %v2166_v52 = vld.sshfl [vmem:[#allocation1 + $0x28] sm:$0xff pattern:$0x73625140] }
 0x3df   : > { %7275 = vmatpush.xpose.msrb.mxu1 %v1284_v60  ;;  %7315 = vmatpush.xpose.msrb.mxu3 %v1286_v61  ;;  %v930_v60 = vld [vmem:[%s10414_s9 + $0x12a8] sm:$0xff]  ;;  %v932_v61 = vld [vmem:[%s10414_s9 + $0x12b8] sm:$0xff] }
 0x3e0   : > { %v6060_v44 = vadd.f32 %v6059_v38, %v6040_v41  ;;  %v574_v38 = vld [vmem:[%s10414_s9 + $0x788] sm:$0xff] }
 0x3e1   : > { %v6079_v47 = vpop.f32.mrf.mxu1 }
 0x3e2   : > { %7256 = vmatpush.xpose.msrb.mxu0 %v922_v63  ;;  %7296 = vmatpush.xpose.msrb.mxu2 %v924_v0  ;;  %v931_v63 = vld [vmem:[%s10414_s9 + $0x12b0] sm:$0xff]  ;;  %v933_v0 = vld [vmem:[%s10414_s9 + $0x12c0] sm:$0xff]  ;;  %v6219_v28 = vpop.f32.mrf.mxu0 }
 0x3e3   : > { %7276 = vmatpush.xpose.msrb.mxu1 %v923_v3  ;;  %7316 = vmatpush.xpose.msrb.mxu3 %v925_v4  ;;  %v569_v3 = vld [vmem:[%s10414_s9 + $0x760] sm:$0xff]  ;;  %v571_v4 = vld [vmem:[%s10414_s9 + $0x770] sm:$0xff] }
 0x3e4   : > { %v2174_v20 = vld.sshfl [vmem:[#allocation1 + $0x18] sm:$0xff pattern:$0x73625140] }
 0x3e6   : > { %7257 = vmatpush.xpose.msrb.mxu0 %v561_v6  ;;  %7297 = vmatpush.xpose.msrb.mxu2 %v563_v7  ;;  %v1658_v6 = vld [vmem:[%s10414_s9 + $0x2968] sm:$0xf] }
 0x3e7   : > { %7277 = vmatpush.xpose.msrb.mxu1 %v562_v11  ;;  %7317 = vmatpush.xpose.msrb.mxu3 %v564_v12  ;;  %v1657_v11 = vld [vmem:[%s10414_s9 + $0x2960] sm:$0xf]  ;;  %v1659_v12 = vld [vmem:[%s10414_s9 + $0x2970] sm:$0xf] }
 0x3e9   : > { %7258 = vmatmul.f32.vlgmr.msrb.gmra.mxu0 %v2155_v53  ;;  %7298 = vmatmul.f32.vlgmr.msrb.gmra.mxu2 %v2157_v55  ;;  %v6099_v53 = vpop.f32.mrf.mxu2  ;;  %v303_v55 = vld [vmem:[%s10407_s7 + $0x1e8] sm:$0xff] }
 0x3ea   : > { %7334 = vmatpush.xpose.msra.mxu0 %v1648_v9  ;;  %7374 = vmatpush.xpose.msra.mxu2 %v1650_v10  ;;  %2170 = vst [vmem:[#allocation1 + $0x20] ss:$4 sm:$0xff] %v303_v55  ;;  %v572_v9 = vld [vmem:[%s10414_s9 + $0x778] sm:$0xff]  ;;  %v6159_v10 = vpop.f32.mrf.mxu1  ;;  %v6299_v55 = vpop.f32.mrf.mxu0 }
 0x3eb   : > { %7354 = vmatpush.xpose.msra.mxu1 %v1649_v15  ;;  %7394 = vmatpush.xpose.msra.mxu3 %v1651_v16  ;;  %v1297_v15 = vld [vmem:[%s10414_s9 + $0x1e20] sm:$0xff]  ;;  %v2171_v16 = vld.sshfl [vmem:[#allocation1] sm:$0xff pattern:$0x73625140] }
 0x3ec   : > { %7278 = vmatmul.f32.vlgmr.msrb.gmra.mxu1 %v2156_v56  ;;  %7318 = vmatmul.f32.vlgmr.msrb.gmra.mxu3 %v2158_v57  ;;  %v6080_v56 = vadd.f32 %v6079_v47, %v6060_v44  ;;  %v1292_v57 = vld [vmem:[%s10414_s9 + $0x1df8] sm:$0xff]  ;;  %v1299_v44 = vld [vmem:[%s10414_s9 + $0x1e30] sm:$0xff] }
 0x3ee   : > { %7335 = vmatpush.xpose.msra.mxu0 %v1287_v17  ;;  %7375 = vmatpush.xpose.msra.mxu2 %v1289_v18  ;;  %v6100_v59 = vadd.f32 %v6099_v53, %v6080_v56  ;;  %v2173_v18 = vld.sshfl [vmem:[#allocation1 + $0x10] sm:$0xff pattern:$0x73625140]  ;;  %v1300_v53 = vld [vmem:[%s10414_s9 + $0x1e38] sm:$0xff] }
 0x3ef   : > { %7355 = vmatpush.xpose.msra.mxu1 %v1288_v26  ;;  %7395 = vmatpush.xpose.msra.mxu3 %v1290_v27  ;;  %v934_v26 = vld [vmem:[%s10414_s9 + $0x12c8] sm:$0xff]  ;;  %v936_v27 = vld [vmem:[%s10414_s9 + $0x12d8] sm:$0xff] }
 0x3f0   : > { %v6120_v2 = vadd.f32 %v6119_v62, %v6100_v59 }
 0x3f1   : > { %v6179_v13 = vpop.f32.mrf.mxu2 }
 0x3f2   : > { %7336 = vmatpush.xpose.msra.mxu0 %v926_v30  ;;  %7376 = vmatpush.xpose.msra.mxu2 %v928_v31  ;;  %v6140_v7 = vadd.f32 %v6139_v1, %v6120_v2  ;;  %v935_v30 = vld [vmem:[%s10414_s9 + $0x12d0] sm:$0xff]  ;;  %v937_v31 = vld [vmem:[%s10414_s9 + $0x12e0] sm:$0xff]  ;;  %v6239_v35 = vpop.f32.mrf.mxu1  ;;  %v1664_v2 = vld [vmem:[%s10414_s9 + $0x2998] sm:$0xf] }
 0x3f3   : > { %7356 = vmatpush.xpose.msra.mxu1 %v927_v33  ;;  %7396 = vmatpush.xpose.msra.mxu3 %v929_v34  ;;  %v573_v33 = vld [vmem:[%s10414_s9 + $0x780] sm:$0xff]  ;;  %v575_v34 = vld [vmem:[%s10414_s9 + $0x790] sm:$0xff] }
 0x3f4   : > { %v6160_v17 = vadd.f32 %v6159_v10, %v6140_v7 }
 0x3f6   : > { %7337 = vmatpush.xpose.msra.mxu0 %v565_v36  ;;  %7377 = vmatpush.xpose.msra.mxu2 %v567_v37  ;;  %v1660_v36 = vld [vmem:[%s10414_s9 + $0x2978] sm:$0xf]  ;;  %v1662_v37 = vld [vmem:[%s10414_s9 + $0x2988] sm:$0xf] }
 0x3f7   : > { %7357 = vmatpush.xpose.msra.mxu1 %v566_v42  ;;  %7397 = vmatpush.xpose.msra.mxu3 %v568_v43  ;;  %v1661_v42 = vld [vmem:[%s10414_s9 + $0x2980] sm:$0xf]  ;;  %v1663_v43 = vld [vmem:[%s10414_s9 + $0x2990] sm:$0xf] }
 0x3f9   : > { %7338 = vmatmul.f32.vlgmr.msra.gmra.mxu0 %v2161_v19  ;;  %7378 = vmatmul.f32.vlgmr.msra.gmra.mxu2 %v2163_v21  ;;  %v2172_v19 = vld.sshfl [vmem:[#allocation1 + $0x8] sm:$0xff pattern:$0x73625140] }
 0x3fa   : > { %7414 = vmatpush.xpose.msrb.mxu0 %v1652_v39  ;;  %7454 = vmatpush.xpose.msrb.mxu2 %v1654_v40  ;;  %v304_v21 = vld [vmem:[%s10407_s7 + $0x1f0] sm:$0xff]  ;;  %v6259_v40 = vpop.f32.mrf.mxu2  ;;  %v6319_v62 = vpop.f32.mrf.mxu1 }
 0x3fb   : > { %7434 = vmatpush.xpose.msrb.mxu1 %v1653_v45  ;;  %7474 = vmatpush.xpose.msrb.mxu3 %v1655_v46  ;;  %2179 = vst [vmem:[#allocation1] ss:$4 sm:$0xff] %v304_v21  ;;  %v576_v39 = vld [vmem:[%s10414_s9 + $0x798] sm:$0xff]  ;;  %v1301_v45 = vld [vmem:[%s10414_s9 + $0x1e40] sm:$0xff]  ;;  %v1306_v21 = vld [vmem:[%s10414_s9 + $0x1e68] sm:$0xff] }
 0x3fc   : > { %7358 = vmatmul.f32.vlgmr.msra.gmra.mxu1 %v2162_v22  ;;  %7398 = vmatmul.f32.vlgmr.msra.gmra.mxu3 %v2164_v24  ;;  %v6180_v22 = vadd.f32 %v6179_v13, %v6160_v17  ;;  %v1298_v24 = vld [vmem:[%s10414_s9 + $0x1e28] sm:$0xff]  ;;  %v2175_v46 = vld.sshfl [vmem:[#allocation1 + $0x20] sm:$0xff pattern:$0x73625140] }
 0x3fe   : > { %7415 = vmatpush.xpose.msrb.mxu0 %v1291_v48  ;;  %7455 = vmatpush.xpose.msrb.mxu2 %v1293_v49  ;;  %v6200_v29 = vadd.f32 %v6199_v25, %v6180_v22  ;;  %v2177_v48 = vld.sshfl [vmem:[#allocation1 + $0x30] sm:$0xff pattern:$0x73625140]  ;;  %v2176_v49 = vld.sshfl [vmem:[#allocation1 + $0x28] sm:$0xff pattern:$0x73625140] }
 0x3ff   : > { %7435 = vmatpush.xpose.msrb.mxu1 %v1292_v57  ;;  %7475 = vmatpush.xpose.msrb.mxu3 %v1294_v58  ;;  %v938_v57 = vld [vmem:[%s10414_s9 + $0x12e8] sm:$0xff]  ;;  %v940_v58 = vld [vmem:[%s10414_s9 + $0x12f8] sm:$0xff] }
 0x400   : > { %v6220_v32 = vadd.f32 %v6219_v28, %v6200_v29 }
 0x402   : > { %7416 = vmatpush.xpose.msrb.mxu0 %v930_v60  ;;  %7456 = vmatpush.xpose.msrb.mxu2 %v932_v61  ;;  %v6240_v41 = vadd.f32 %v6239_v35, %v6220_v32  ;;  %v939_v60 = vld [vmem:[%s10414_s9 + $0x12f0] sm:$0xff]  ;;  %v941_v61 = vld [vmem:[%s10414_s9 + $0x1300] sm:$0xff]  ;;  %v6339_v1 = vpop.f32.mrf.mxu2  ;;  %v6399_v25 = vpop.f32.mrf.mxu1  ;;  %v1668_v32 = vld [vmem:[%s10414_s9 + $0x29b8] sm:$0xf] }
 0x403   : > { %7436 = vmatpush.xpose.msrb.mxu1 %v931_v63  ;;  %7476 = vmatpush.xpose.msrb.mxu3 %v933_v0  ;;  %v577_v63 = vld [vmem:[%s10414_s9 + $0x7a0] sm:$0xff]  ;;  %v579_v0 = vld [vmem:[%s10414_s9 + $0x7b0] sm:$0xff]  ;;  %v582_v35 = vld [vmem:[%s10414_s9 + $0x7c8] sm:$0xff] }
 0x404   : > { %v6260_v47 = vadd.f32 %v6259_v40, %v6240_v41  ;;  %v2181_v13 = vld.sshfl [vmem:[#allocation1] sm:$0xff pattern:$0x73625140]  ;;  %v2184_v17 = vld.sshfl [vmem:[#allocation1 + $0x18] sm:$0xff pattern:$0x73625140] }
 0x405   : > { %v1307_v41 = vld [vmem:[%s10414_s9 + $0x1e70] sm:$0xff] }
 0x406   : > { %7417 = vmatpush.xpose.msrb.mxu0 %v569_v3  ;;  %7457 = vmatpush.xpose.msrb.mxu2 %v571_v4  ;;  %v1666_v3 = vld [vmem:[%s10414_s9 + $0x29a8] sm:$0xf] }
 0x407   : > { %7437 = vmatpush.xpose.msrb.mxu1 %v570_v8  ;;  %7477 = vmatpush.xpose.msrb.mxu3 %v572_v9  ;;  %v1665_v8 = vld [vmem:[%s10414_s9 + $0x29a0] sm:$0xf]  ;;  %v1667_v9 = vld [vmem:[%s10414_s9 + $0x29b0] sm:$0xf] }
 0x409   : > { %7418 = vmatmul.f32.vlgmr.msrb.gmra.mxu0 %v2165_v50  ;;  %7458 = vmatmul.f32.vlgmr.msrb.gmra.mxu2 %v2167_v51  ;;  %v6279_v50 = vpop.f32.mrf.mxu3  ;;  %v2178_v51 = vld.sshfl [vmem:[#allocation1 + $0x38] sm:$0xff pattern:$0x73625140] }
 0x40a   : > { %7494 = vmatpush.xpose.msra.mxu0 %v1656_v5  ;;  %7534 = vmatpush.xpose.msra.mxu2 %v1658_v6  ;;  %v6280_v56 = vadd.f32 %v6279_v50, %v6260_v47  ;;  %v578_v5 = vld [vmem:[%s10414_s9 + $0x7a8] sm:$0xff]  ;;  %v580_v6 = vld [vmem:[%s10414_s9 + $0x7b8] sm:$0xff]  ;;  %v6419_v28 = vpop.f32.mrf.mxu2 }
 0x40b   : > { %7514 = vmatpush.xpose.msra.mxu1 %v1657_v11  ;;  %7554 = vmatpush.xpose.msra.mxu3 %v1659_v12  ;;  %v1303_v11 = vld [vmem:[%s10414_s9 + $0x1e50] sm:$0xff]  ;;  %v1305_v12 = vld [vmem:[%s10414_s9 + $0x1e60] sm:$0xff]  ;;  %v1308_v50 = vld [vmem:[%s10414_s9 + $0x1e78] sm:$0xff] }
 0x40c   : > { %7438 = vmatmul.f32.vlgmr.msrb.gmra.mxu1 %v2166_v52  ;;  %7478 = vmatmul.f32.vlgmr.msrb.gmra.mxu3 %v2168_v54  ;;  %v305_v52 = vld [vmem:[%s10407_s7 + $0x1f8] sm:$0xff]  ;;  %v6300_v59 = vadd.f32 %v6299_v55, %v6280_v56 }
 0x40d   : > { %v1302_v54 = vld [vmem:[%s10414_s9 + $0x1e48] sm:$0xff]  ;;  %2180 = vst [vmem:[#allocation1 + $0x20] ss:$4 sm:$0xff] %v305_v52  ;;  %v6479_v52 = vpop.f32.mrf.mxu1 }
 0x40e   : > { %7495 = vmatpush.xpose.msra.mxu0 %v1295_v14  ;;  %7535 = vmatpush.xpose.msra.mxu2 %v1297_v15  ;;  %v6320_v4 = vadd.f32 %v6319_v62, %v6300_v59  ;;  %v2183_v14 = vld.sshfl [vmem:[#allocation1 + $0x10] sm:$0xff pattern:$0x73625140]  ;;  %v2182_v15 = vld.sshfl [vmem:[#allocation1 + $0x8] sm:$0xff pattern:$0x73625140] }
 0x40f   : > { %7515 = vmatpush.xpose.msra.mxu1 %v1296_v23  ;;  %7555 = vmatpush.xpose.msra.mxu3 %v1298_v24  ;;  %v942_v23 = vld [vmem:[%s10414_s9 + $0x1308] sm:$0xff]  ;;  %v944_v24 = vld [vmem:[%s10414_s9 + $0x1318] sm:$0xff] }
 0x410   : > { %v6340_v7 = vadd.f32 %v6339_v1, %v6320_v4  ;;  %v586_v1 = vld [vmem:[%s10414_s9 + $0x7e8] sm:$0xff] }
 0x411   : > { %v6359_v10 = vpop.f32.mrf.mxu3 }
 0x412   : > { %7496 = vmatpush.xpose.msra.mxu0 %v934_v26  ;;  %7536 = vmatpush.xpose.msra.mxu2 %v936_v27  ;;  %v943_v26 = vld [vmem:[%s10414_s9 + $0x1310] sm:$0xff]  ;;  %v945_v27 = vld [vmem:[%s10414_s9 + $0x1320] sm:$0xff]  ;;  %v6499_v55 = vpop.f32.mrf.mxu2 }
 0x413   : > { %7516 = vmatpush.xpose.msra.mxu1 %v935_v30  ;;  %7556 = vmatpush.xpose.msra.mxu3 %v937_v31  ;;  %v581_v30 = vld [vmem:[%s10414_s9 + $0x7c0] sm:$0xff]  ;;  %v583_v31 = vld [vmem:[%s10414_s9 + $0x7d0] sm:$0xff] }
 0x414   : > { %v2188_v47 = vld.sshfl [vmem:[#allocation1 + $0x38] sm:$0xff pattern:$0x73625140] }
 0x416   : > { %7497 = vmatpush.xpose.msra.mxu0 %v573_v33  ;;  %7537 = vmatpush.xpose.msra.mxu2 %v575_v34  ;;  %v1670_v33 = vld [vmem:[%s10414_s9 + $0x29c8] sm:$0xf] }
 0x417   : > { %7517 = vmatpush.xpose.msra.mxu1 %v574_v38  ;;  %7557 = vmatpush.xpose.msra.mxu3 %v576_v39  ;;  %v1669_v38 = vld [vmem:[%s10414_s9 + $0x29c0] sm:$0xf]  ;;  %v1671_v39 = vld [vmem:[%s10414_s9 + $0x29d0] sm:$0xf] }
 0x419   : > { %7498 = vmatmul.f32.vlgmr.msra.gmra.mxu0 %v2171_v16  ;;  %7538 = vmatmul.f32.vlgmr.msra.gmra.mxu2 %v2173_v18  ;;  %v6379_v16 = vpop.f32.mrf.mxu0  ;;  %v306_v18 = vld [vmem:[%s10407_s7 + $0x200] sm:$0xff] }
 0x41a   : > { %7574 = vmatpush.xpose.msrb.mxu0 %v1660_v36  ;;  %7614 = vmatpush.xpose.msrb.mxu2 %v1662_v37  ;;  %2189 = vst [vmem:[#allocation1] ss:$4 sm:$0xff] %v306_v18  ;;  %v584_v36 = vld [vmem:[%s10414_s9 + $0x7d8] sm:$0xff]  ;;  %v6439_v37 = vpop.f32.mrf.mxu3  ;;  %v6579_v18 = vpop.f32.mrf.mxu2 }
 0x41b   : > { %7594 = vmatpush.xpose.msrb.mxu1 %v1661_v42  ;;  %7634 = vmatpush.xpose.msrb.mxu3 %v1663_v43  ;;  %v1309_v42 = vld [vmem:[%s10414_s9 + $0x1e80] sm:$0xff]  ;;  %v2185_v43 = vld.sshfl [vmem:[#allocation1 + $0x20] sm:$0xff pattern:$0x73625140] }
 0x41c   : > { %7518 = vmatmul.f32.vlgmr.msra.gmra.mxu1 %v2172_v19  ;;  %7558 = vmatmul.f32.vlgmr.msra.gmra.mxu3 %v2174_v20  ;;  %v6360_v19 = vadd.f32 %v6359_v10, %v6340_v7  ;;  %v1304_v20 = vld [vmem:[%s10414_s9 + $0x1e58] sm:$0xff]  ;;  %v1311_v7 = vld [vmem:[%s10414_s9 + $0x1e90] sm:$0xff] }
 0x41e   : > { %7575 = vmatpush.xpose.msrb.mxu0 %v1299_v44  ;;  %7615 = vmatpush.xpose.msrb.mxu2 %v1301_v45  ;;  %v6380_v22 = vadd.f32 %v6379_v16, %v6360_v19  ;;  %v2187_v45 = vld.sshfl [vmem:[#allocation1 + $0x30] sm:$0xff pattern:$0x73625140]  ;;  %v1312_v16 = vld [vmem:[%s10414_s9 + $0x1e98] sm:$0xff] }
 0x41f   : > { %7595 = vmatpush.xpose.msrb.mxu1 %v1300_v53  ;;  %7635 = vmatpush.xpose.msrb.mxu3 %v1302_v54  ;;  %v946_v53 = vld [vmem:[%s10414_s9 + $0x1328] sm:$0xff]  ;;  %v948_v54 = vld [vmem:[%s10414_s9 + $0x1338] sm:$0xff] }
 0x420   : > { %v6400_v29 = vadd.f32 %v6399_v25, %v6380_v22 }
 0x421   : > { %v6459_v40 = vpop.f32.mrf.mxu0 }
 0x422   : > { %7576 = vmatpush.xpose.msrb.mxu0 %v938_v57  ;;  %7616 = vmatpush.xpose.msrb.mxu2 %v940_v58  ;;  %v6420_v34 = vadd.f32 %v6419_v28, %v6400_v29  ;;  %v947_v57 = vld [vmem:[%s10414_s9 + $0x1330] sm:$0xff]  ;;  %v949_v58 = vld [vmem:[%s10414_s9 + $0x1340] sm:$0xff]  ;;  %v6519_v62 = vpop.f32.mrf.mxu3  ;;  %v1676_v29 = vld [vmem:[%s10414_s9 + $0x29f8] sm:$0xf] }
 0x423   : > { %7596 = vmatpush.xpose.msrb.mxu1 %v939_v60  ;;  %7636 = vmatpush.xpose.msrb.mxu3 %v941_v61  ;;  %v585_v60 = vld [vmem:[%s10414_s9 + $0x7e0] sm:$0xff]  ;;  %v587_v61 = vld [vmem:[%s10414_s9 + $0x7f0] sm:$0xff] }
 0x424   : > { %v6440_v44 = vadd.f32 %v6439_v37, %v6420_v34 }
 0x426   : > { %7577 = vmatpush.xpose.msrb.mxu0 %v577_v63  ;;  %7617 = vmatpush.xpose.msrb.mxu2 %v579_v0  ;;  %v1672_v63 = vld [vmem:[%s10414_s9 + $0x29d8] sm:$0xf]  ;;  %v1674_v0 = vld [vmem:[%s10414_s9 + $0x29e8] sm:$0xf] }
 0x427   : > { %7597 = vmatpush.xpose.msrb.mxu1 %v578_v5  ;;  %7637 = vmatpush.xpose.msrb.mxu3 %v580_v6  ;;  %v1673_v5 = vld [vmem:[%s10414_s9 + $0x29e0] sm:$0xf]  ;;  %v1675_v6 = vld [vmem:[%s10414_s9 + $0x29f0] sm:$0xf] }
 0x429   : > { %7578 = vmatmul.f32.vlgmr.msrb.gmra.mxu0 %v2175_v46  ;;  %7618 = vmatmul.f32.vlgmr.msrb.gmra.mxu2 %v2177_v48  ;;  %v2186_v46 = vld.sshfl [vmem:[#allocation1 + $0x28] sm:$0xff pattern:$0x73625140] }
 0x42a   : > { %7654 = vmatpush.xpose.msra.mxu0 %v1664_v2  ;;  %7694 = vmatpush.xpose.msra.mxu2 %v1666_v3  ;;  %v307_v48 = vld [vmem:[%s10407_s7 + $0x208] sm:$0xff]  ;;  %v6539_v3 = vpop.f32.mrf.mxu0  ;;  %v6599_v25 = vpop.f32.mrf.mxu3 }
 0x42b   : > { %7674 = vmatpush.xpose.msra.mxu1 %v1665_v8  ;;  %7714 = vmatpush.xpose.msra.mxu3 %v1667_v9  ;;  %2190 = vst [vmem:[#allocation1 + $0x20] ss:$4 sm:$0xff] %v307_v48  ;;  %v588_v2 = vld [vmem:[%s10414_s9 + $0x7f8] sm:$0xff]  ;;  %v1313_v8 = vld [vmem:[%s10414_s9 + $0x1ea0] sm:$0xff]  ;;  %v1318_v48 = vld [vmem:[%s10414_s9 + $0x1ec8] sm:$0xff] }
 0x42c   : > { %7598 = vmatmul.f32.vlgmr.msrb.gmra.mxu1 %v2176_v49  ;;  %7638 = vmatmul.f32.vlgmr.msrb.gmra.mxu3 %v2178_v51  ;;  %v6460_v49 = vadd.f32 %v6459_v40, %v6440_v44  ;;  %v1310_v51 = vld [vmem:[%s10414_s9 + $0x1e88] sm:$0xff]  ;;  %v2191_v9 = vld.sshfl [vmem:[#allocation1] sm:$0xff pattern:$0x73625140] }
 0x42e   : > { %7655 = vmatpush.xpose.msra.mxu0 %v1303_v11  ;;  %7695 = vmatpush.xpose.msra.mxu2 %v1305_v12  ;;  %v6480_v56 = vadd.f32 %v6479_v52, %v6460_v49  ;;  %v2193_v11 = vld.sshfl [vmem:[#allocation1 + $0x10] sm:$0xff pattern:$0x73625140]  ;;  %v2192_v12 = vld.sshfl [vmem:[#allocation1 + $0x8] sm:$0xff pattern:$0x73625140] }
 0x42f   : > { %7675 = vmatpush.xpose.msra.mxu1 %v1304_v20  ;;  %7715 = vmatpush.xpose.msra.mxu3 %v1306_v21  ;;  %v950_v20 = vld [vmem:[%s10414_s9 + $0x1348] sm:$0xff]  ;;  %v952_v21 = vld [vmem:[%s10414_s9 + $0x1358] sm:$0xff] }
 0x430   : > { %v6500_v59 = vadd.f32 %v6499_v55, %v6480_v56 }
 0x432   : > { %7656 = vmatpush.xpose.msra.mxu0 %v942_v23  ;;  %7696 = vmatpush.xpose.msra.mxu2 %v944_v24  ;;  %v6520_v4 = vadd.f32 %v6519_v62, %v6500_v59  ;;  %v951_v23 = vld [vmem:[%s10414_s9 + $0x1350] sm:$0xff]  ;;  %v953_v24 = vld [vmem:[%s10414_s9 + $0x1360] sm:$0xff]  ;;  %v6619_v28 = vpop.f32.mrf.mxu0  ;;  %v6679_v52 = vpop.f32.mrf.mxu3  ;;  %v1680_v59 = vld [vmem:[%s10414_s9 + $0x2a18] sm:$0xf] }
 0x433   : > { %7676 = vmatpush.xpose.msra.mxu1 %v943_v26  ;;  %7716 = vmatpush.xpose.msra.mxu3 %v945_v27  ;;  %v589_v26 = vld [vmem:[%s10414_s9 + $0x800] sm:$0xff]  ;;  %v591_v27 = vld [vmem:[%s10414_s9 + $0x810] sm:$0xff]  ;;  %v594_v62 = vld [vmem:[%s10414_s9 + $0x828] sm:$0xff] }
 0x434   : > { %v6540_v10 = vadd.f32 %v6539_v3, %v6520_v4  ;;  %v2195_v40 = vld.sshfl [vmem:[#allocation1 + $0x20] sm:$0xff pattern:$0x73625140]  ;;  %v2198_v44 = vld.sshfl [vmem:[#allocation1 + $0x38] sm:$0xff pattern:$0x73625140] }
 0x435   : > { %v1319_v4 = vld [vmem:[%s10414_s9 + $0x1ed0] sm:$0xff] }
 0x436   : > { %7657 = vmatpush.xpose.msra.mxu0 %v581_v30  ;;  %7697 = vmatpush.xpose.msra.mxu2 %v583_v31  ;;  %v1678_v30 = vld [vmem:[%s10414_s9 + $0x2a08] sm:$0xf] }
 0x437   : > { %7677 = vmatpush.xpose.msra.mxu1 %v582_v35  ;;  %7717 = vmatpush.xpose.msra.mxu3 %v584_v36  ;;  %v1677_v35 = vld [vmem:[%s10414_s9 + $0x2a00] sm:$0xf]  ;;  %v1679_v36 = vld [vmem:[%s10414_s9 + $0x2a10] sm:$0xf] }
 0x439   : > { %7658 = vmatmul.f32.vlgmr.msra.gmra.mxu0 %v2181_v13  ;;  %7698 = vmatmul.f32.vlgmr.msra.gmra.mxu2 %v2183_v14  ;;  %v6559_v13 = vpop.f32.mrf.mxu1  ;;  %v2194_v14 = vld.sshfl [vmem:[#allocation1 + $0x18] sm:$0xff pattern:$0x73625140] }
 0x43a   : > { %7734 = vmatpush.xpose.msrb.mxu0 %v1668_v32  ;;  %7774 = vmatpush.xpose.msrb.mxu2 %v1670_v33  ;;  %v6560_v19 = vadd.f32 %v6559_v13, %v6540_v10  ;;  %v590_v32 = vld [vmem:[%s10414_s9 + $0x808] sm:$0xff]  ;;  %v592_v33 = vld [vmem:[%s10414_s9 + $0x818] sm:$0xff]  ;;  %v6699_v55 = vpop.f32.mrf.mxu0 }
 0x43b   : > { %7754 = vmatpush.xpose.msrb.mxu1 %v1669_v38  ;;  %7794 = vmatpush.xpose.msrb.mxu3 %v1671_v39  ;;  %v1315_v38 = vld [vmem:[%s10414_s9 + $0x1eb0] sm:$0xff]  ;;  %v1317_v39 = vld [vmem:[%s10414_s9 + $0x1ec0] sm:$0xff]  ;;  %v1320_v13 = vld [vmem:[%s10414_s9 + $0x1ed8] sm:$0xff] }
 0x43c   : > { %7678 = vmatmul.f32.vlgmr.msra.gmra.mxu1 %v2182_v15  ;;  %7718 = vmatmul.f32.vlgmr.msra.gmra.mxu3 %v2184_v17  ;;  %v308_v15 = vld [vmem:[%s10407_s7 + $0x210] sm:$0xff]  ;;  %v6580_v22 = vadd.f32 %v6579_v18, %v6560_v19 }
 0x43d   : > { %v1314_v17 = vld [vmem:[%s10414_s9 + $0x1ea8] sm:$0xff]  ;;  %2199 = vst [vmem:[#allocation1] ss:$4 sm:$0xff] %v308_v15  ;;  %v6759_v15 = vpop.f32.mrf.mxu3 }
 0x43e   : > { %7735 = vmatpush.xpose.msrb.mxu0 %v1307_v41  ;;  %7775 = vmatpush.xpose.msrb.mxu2 %v1309_v42  ;;  %v6600_v31 = vadd.f32 %v6599_v25, %v6580_v22  ;;  %v2197_v41 = vld.sshfl [vmem:[#allocation1 + $0x30] sm:$0xff pattern:$0x73625140]  ;;  %v2196_v42 = vld.sshfl [vmem:[#allocation1 + $0x28] sm:$0xff pattern:$0x73625140] }
 0x43f   : > { %7755 = vmatpush.xpose.msrb.mxu1 %v1308_v50  ;;  %7795 = vmatpush.xpose.msrb.mxu3 %v1310_v51  ;;  %v954_v50 = vld [vmem:[%s10414_s9 + $0x1368] sm:$0xff]  ;;  %v956_v51 = vld [vmem:[%s10414_s9 + $0x1378] sm:$0xff] }
 0x440   : > { %v6620_v34 = vadd.f32 %v6619_v28, %v6600_v31  ;;  %v598_v28 = vld [vmem:[%s10414_s9 + $0x848] sm:$0xff] }
 0x441   : > { %v6639_v37 = vpop.f32.mrf.mxu1 }
 0x442   : > { %7736 = vmatpush.xpose.msrb.mxu0 %v946_v53  ;;  %7776 = vmatpush.xpose.msrb.mxu2 %v948_v54  ;;  %v955_v53 = vld [vmem:[%s10414_s9 + $0x1370] sm:$0xff]  ;;  %v957_v54 = vld [vmem:[%s10414_s9 + $0x1380] sm:$0xff]  ;;  %v6779_v18 = vpop.f32.mrf.mxu0 }
 0x443   : > { %7756 = vmatpush.xpose.msrb.mxu1 %v947_v57  ;;  %7796 = vmatpush.xpose.msrb.mxu3 %v949_v58  ;;  %v593_v57 = vld [vmem:[%s10414_s9 + $0x820] sm:$0xff]  ;;  %v595_v58 = vld [vmem:[%s10414_s9 + $0x830] sm:$0xff] }
 0x444   : > { %v2204_v10 = vld.sshfl [vmem:[#allocation1 + $0x18] sm:$0xff pattern:$0x73625140] }
 0x446   : > { %7737 = vmatpush.xpose.msrb.mxu0 %v585_v60  ;;  %7777 = vmatpush.xpose.msrb.mxu2 %v587_v61  ;;  %v1682_v60 = vld [vmem:[%s10414_s9 + $0x2a28] sm:$0xf] }
 0x447   : > { %7757 = vmatpush.xpose.msrb.mxu1 %v586_v1  ;;  %7797 = vmatpush.xpose.msrb.mxu3 %v588_v2  ;;  %v1681_v1 = vld [vmem:[%s10414_s9 + $0x2a20] sm:$0xf]  ;;  %v1683_v2 = vld [vmem:[%s10414_s9 + $0x2a30] sm:$0xf] }
 0x449   : > { %7738 = vmatmul.f32.vlgmr.msrb.gmra.mxu0 %v2185_v43  ;;  %7778 = vmatmul.f32.vlgmr.msrb.gmra.mxu2 %v2187_v45  ;;  %v6659_v43 = vpop.f32.mrf.mxu2  ;;  %v309_v45 = vld [vmem:[%s10407_s7 + $0x218] sm:$0xff] }
 0x44a   : > { %7814 = vmatpush.xpose.msra.mxu0 %v1672_v63  ;;  %7854 = vmatpush.xpose.msra.mxu2 %v1674_v0  ;;  %2200 = vst [vmem:[#allocation1 + $0x20] ss:$4 sm:$0xff] %v309_v45  ;;  %v596_v63 = vld [vmem:[%s10414_s9 + $0x838] sm:$0xff]  ;;  %v6719_v0 = vpop.f32.mrf.mxu1  ;;  %v6859_v45 = vpop.f32.mrf.mxu0 }
 0x44b   : > { %7834 = vmatpush.xpose.msra.mxu1 %v1673_v5  ;;  %7874 = vmatpush.xpose.msra.mxu3 %v1675_v6  ;;  %v1321_v5 = vld [vmem:[%s10414_s9 + $0x1ee0] sm:$0xff]  ;;  %v2201_v6 = vld.sshfl [vmem:[#allocation1] sm:$0xff pattern:$0x73625140] }
 0x44c   : > { %7758 = vmatmul.f32.vlgmr.msrb.gmra.mxu1 %v2186_v46  ;;  %7798 = vmatmul.f32.vlgmr.msrb.gmra.mxu3 %v2188_v47  ;;  %v6640_v46 = vadd.f32 %v6639_v37, %v6620_v34  ;;  %v1316_v47 = vld [vmem:[%s10414_s9 + $0x1eb8] sm:$0xff]  ;;  %v1323_v34 = vld [vmem:[%s10414_s9 + $0x1ef0] sm:$0xff] }
 0x44e   : > { %7815 = vmatpush.xpose.msra.mxu0 %v1311_v7  ;;  %7855 = vmatpush.xpose.msra.mxu2 %v1313_v8  ;;  %v6660_v49 = vadd.f32 %v6659_v43, %v6640_v46  ;;  %v2203_v8 = vld.sshfl [vmem:[#allocation1 + $0x10] sm:$0xff pattern:$0x73625140]  ;;  %v1324_v43 = vld [vmem:[%s10414_s9 + $0x1ef8] sm:$0xff] }
 0x44f   : > { %7835 = vmatpush.xpose.msra.mxu1 %v1312_v16  ;;  %7875 = vmatpush.xpose.msra.mxu3 %v1314_v17  ;;  %v958_v16 = vld [vmem:[%s10414_s9 + $0x1388] sm:$0xff]  ;;  %v960_v17 = vld [vmem:[%s10414_s9 + $0x1398] sm:$0xff] }
 0x450   : > { %v6680_v56 = vadd.f32 %v6679_v52, %v6660_v49 }
 0x451   : > { %v6739_v3 = vpop.f32.mrf.mxu2 }
 0x452   : > { %7816 = vmatpush.xpose.msra.mxu0 %v950_v20  ;;  %7856 = vmatpush.xpose.msra.mxu2 %v952_v21  ;;  %v6700_v61 = vadd.f32 %v6699_v55, %v6680_v56  ;;  %v959_v20 = vld [vmem:[%s10414_s9 + $0x1390] sm:$0xff]  ;;  %v961_v21 = vld [vmem:[%s10414_s9 + $0x13a0] sm:$0xff]  ;;  %v6799_v25 = vpop.f32.mrf.mxu1  ;;  %v1688_v56 = vld [vmem:[%s10414_s9 + $0x2a58] sm:$0xf] }
 0x453   : > { %7836 = vmatpush.xpose.msra.mxu1 %v951_v23  ;;  %7876 = vmatpush.xpose.msra.mxu3 %v953_v24  ;;  %v597_v23 = vld [vmem:[%s10414_s9 + $0x840] sm:$0xff]  ;;  %v599_v24 = vld [vmem:[%s10414_s9 + $0x850] sm:$0xff] }
 0x454   : > { %v6720_v7 = vadd.f32 %v6719_v0, %v6700_v61 }
 0x456   : > { %7817 = vmatpush.xpose.msra.mxu0 %v589_v26  ;;  %7857 = vmatpush.xpose.msra.mxu2 %v591_v27  ;;  %v1684_v26 = vld [vmem:[%s10414_s9 + $0x2a38] sm:$0xf]  ;;  %v1686_v27 = vld [vmem:[%s10414_s9 + $0x2a48] sm:$0xf] }
 0x457   : > { %7837 = vmatpush.xpose.msra.mxu1 %v590_v32  ;;  %7877 = vmatpush.xpose.msra.mxu3 %v592_v33  ;;  %v1685_v32 = vld [vmem:[%s10414_s9 + $0x2a40] sm:$0xf]  ;;  %v1687_v33 = vld [vmem:[%s10414_s9 + $0x2a50] sm:$0xf] }
 0x459   : > { %7818 = vmatmul.f32.vlgmr.msra.gmra.mxu0 %v2191_v9  ;;  %7858 = vmatmul.f32.vlgmr.msra.gmra.mxu2 %v2193_v11  ;;  %v2202_v9 = vld.sshfl [vmem:[#allocation1 + $0x8] sm:$0xff pattern:$0x73625140] }
 0x45a   : > { %7894 = vmatpush.xpose.msrb.mxu0 %v1676_v29  ;;  %7934 = vmatpush.xpose.msrb.mxu2 %v1678_v30  ;;  %v310_v11 = vld [vmem:[%s10407_s7 + $0x220] sm:$0xff]  ;;  %v6819_v30 = vpop.f32.mrf.mxu2  ;;  %v6879_v52 = vpop.f32.mrf.mxu1 }
 0x45b   : > { %7914 = vmatpush.xpose.msrb.mxu1 %v1677_v35  ;;  %7954 = vmatpush.xpose.msrb.mxu3 %v1679_v36  ;;  %2209 = vst [vmem:[#allocation1] ss:$4 sm:$0xff] %v310_v11  ;;  %v600_v29 = vld [vmem:[%s10414_s9 + $0x858] sm:$0xff]  ;;  %v1325_v35 = vld [vmem:[%s10414_s9 + $0x1f00] sm:$0xff]  ;;  %v1330_v11 = vld [vmem:[%s10414_s9 + $0x1f28] sm:$0xff] }
 0x45c   : > { %7838 = vmatmul.f32.vlgmr.msra.gmra.mxu1 %v2192_v12  ;;  %7878 = vmatmul.f32.vlgmr.msra.gmra.mxu3 %v2194_v14  ;;  %v6740_v12 = vadd.f32 %v6739_v3, %v6720_v7  ;;  %v1322_v14 = vld [vmem:[%s10414_s9 + $0x1ee8] sm:$0xff]  ;;  %v2205_v36 = vld.sshfl [vmem:[#allocation1 + $0x20] sm:$0xff pattern:$0x73625140] }
 0x45e   : > { %7895 = vmatpush.xpose.msrb.mxu0 %v1315_v38  ;;  %7935 = vmatpush.xpose.msrb.mxu2 %v1317_v39  ;;  %v6760_v19 = vadd.f32 %v6759_v15, %v6740_v12  ;;  %v2207_v38 = vld.sshfl [vmem:[#allocation1 + $0x30] sm:$0xff pattern:$0x73625140]  ;;  %v2206_v39 = vld.sshfl [vmem:[#allocation1 + $0x28] sm:$0xff pattern:$0x73625140] }
 0x45f   : > { %7915 = vmatpush.xpose.msrb.mxu1 %v1316_v47  ;;  %7955 = vmatpush.xpose.msrb.mxu3 %v1318_v48  ;;  %v962_v47 = vld [vmem:[%s10414_s9 + $0x13a8] sm:$0xff]  ;;  %v964_v48 = vld [vmem:[%s10414_s9 + $0x13b8] sm:$0xff] }
 0x460   : > { %v6780_v22 = vadd.f32 %v6779_v18, %v6760_v19 }
 0x462   : > { %7896 = vmatpush.xpose.msrb.mxu0 %v954_v50  ;;  %7936 = vmatpush.xpose.msrb.mxu2 %v956_v51  ;;  %v6800_v31 = vadd.f32 %v6799_v25, %v6780_v22  ;;  %v963_v50 = vld [vmem:[%s10414_s9 + $0x13b0] sm:$0xff]  ;;  %v965_v51 = vld [vmem:[%s10414_s9 + $0x13c0] sm:$0xff]  ;;  %v6899_v55 = vpop.f32.mrf.mxu2  ;;  %v6959_v15 = vpop.f32.mrf.mxu1  ;;  %v1692_v22 = vld [vmem:[%s10414_s9 + $0x2a78] sm:$0xf] }
 0x463   : > { %7916 = vmatpush.xpose.msrb.mxu1 %v955_v53  ;;  %7956 = vmatpush.xpose.msrb.mxu3 %v957_v54  ;;  %v601_v53 = vld [vmem:[%s10414_s9 + $0x860] sm:$0xff]  ;;  %v603_v54 = vld [vmem:[%s10414_s9 + $0x870] sm:$0xff]  ;;  %v606_v25 = vld [vmem:[%s10414_s9 + $0x888] sm:$0xff] }
 0x464   : > { %v6820_v37 = vadd.f32 %v6819_v30, %v6800_v31  ;;  %v2211_v3 = vld.sshfl [vmem:[#allocation1] sm:$0xff pattern:$0x73625140]  ;;  %v2214_v7 = vld.sshfl [vmem:[#allocation1 + $0x18] sm:$0xff pattern:$0x73625140] }
 0x465   : > { %v1331_v31 = vld [vmem:[%s10414_s9 + $0x1f30] sm:$0xff] }
 0x466   : > { %7897 = vmatpush.xpose.msrb.mxu0 %v593_v57  ;;  %7937 = vmatpush.xpose.msrb.mxu2 %v595_v58  ;;  %v1690_v57 = vld [vmem:[%s10414_s9 + $0x2a68] sm:$0xf] }
 0x467   : > { %7917 = vmatpush.xpose.msrb.mxu1 %v594_v62  ;;  %7957 = vmatpush.xpose.msrb.mxu3 %v596_v63  ;;  %v1689_v62 = vld [vmem:[%s10414_s9 + $0x2a60] sm:$0xf]  ;;  %v1691_v63 = vld [vmem:[%s10414_s9 + $0x2a70] sm:$0xf] }
 0x469   : > { %7898 = vmatmul.f32.vlgmr.msrb.gmra.mxu0 %v2195_v40  ;;  %7938 = vmatmul.f32.vlgmr.msrb.gmra.mxu2 %v2197_v41  ;;  %v6839_v40 = vpop.f32.mrf.mxu3  ;;  %v2208_v41 = vld.sshfl [vmem:[#allocation1 + $0x38] sm:$0xff pattern:$0x73625140] }
 0x46a   : > { %7974 = vmatpush.xpose.msra.mxu0 %v1680_v59  ;;  %8014 = vmatpush.xpose.msra.mxu2 %v1682_v60  ;;  %v6840_v46 = vadd.f32 %v6839_v40, %v6820_v37  ;;  %v602_v59 = vld [vmem:[%s10414_s9 + $0x868] sm:$0xff]  ;;  %v604_v60 = vld [vmem:[%s10414_s9 + $0x878] sm:$0xff]  ;;  %v6979_v18 = vpop.f32.mrf.mxu2 }
 0x46b   : > { %7994 = vmatpush.xpose.msra.mxu1 %v1681_v1  ;;  %8034 = vmatpush.xpose.msra.mxu3 %v1683_v2  ;;  %v1327_v1 = vld [vmem:[%s10414_s9 + $0x1f10] sm:$0xff]  ;;  %v1329_v2 = vld [vmem:[%s10414_s9 + $0x1f20] sm:$0xff]  ;;  %v1332_v40 = vld [vmem:[%s10414_s9 + $0x1f38] sm:$0xff] }
 0x46c   : > { %7918 = vmatmul.f32.vlgmr.msrb.gmra.mxu1 %v2196_v42  ;;  %7958 = vmatmul.f32.vlgmr.msrb.gmra.mxu3 %v2198_v44  ;;  %v311_v42 = vld [vmem:[%s10407_s7 + $0x228] sm:$0xff]  ;;  %v6860_v49 = vadd.f32 %v6859_v45, %v6840_v46 }
 0x46d   : > { %v1326_v44 = vld [vmem:[%s10414_s9 + $0x1f08] sm:$0xff]  ;;  %2210 = vst [vmem:[#allocation1 + $0x20] ss:$4 sm:$0xff] %v311_v42  ;;  %v7039_v42 = vpop.f32.mrf.mxu1 }
 0x46e   : > { %7975 = vmatpush.xpose.msra.mxu0 %v1319_v4  ;;  %8015 = vmatpush.xpose.msra.mxu2 %v1321_v5  ;;  %v6880_v58 = vadd.f32 %v6879_v52, %v6860_v49  ;;  %v2213_v4 = vld.sshfl [vmem:[#allocation1 + $0x10] sm:$0xff pattern:$0x73625140]  ;;  %v2212_v5 = vld.sshfl [vmem:[#allocation1 + $0x8] sm:$0xff pattern:$0x73625140] }
 0x46f   : > { %7995 = vmatpush.xpose.msra.mxu1 %v1320_v13  ;;  %8035 = vmatpush.xpose.msra.mxu3 %v1322_v14  ;;  %v966_v13 = vld [vmem:[%s10414_s9 + $0x13c8] sm:$0xff]  ;;  %v968_v14 = vld [vmem:[%s10414_s9 + $0x13d8] sm:$0xff] }
 0x470   : > { %v6900_v61 = vadd.f32 %v6899_v55, %v6880_v58  ;;  %v610_v55 = vld [vmem:[%s10414_s9 + $0x8a8] sm:$0xff] }
 0x471   : > { %v6919_v0 = vpop.f32.mrf.mxu3 }
 0x472   : > { %7976 = vmatpush.xpose.msra.mxu0 %v958_v16  ;;  %8016 = vmatpush.xpose.msra.mxu2 %v960_v17  ;;  %v967_v16 = vld [vmem:[%s10414_s9 + $0x13d0] sm:$0xff]  ;;  %v969_v17 = vld [vmem:[%s10414_s9 + $0x13e0] sm:$0xff]  ;;  %v7059_v45 = vpop.f32.mrf.mxu2 }
 0x473   : > { %7996 = vmatpush.xpose.msra.mxu1 %v959_v20  ;;  %8036 = vmatpush.xpose.msra.mxu3 %v961_v21  ;;  %v605_v20 = vld [vmem:[%s10414_s9 + $0x880] sm:$0xff]  ;;  %v607_v21 = vld [vmem:[%s10414_s9 + $0x890] sm:$0xff] }
 0x474   : > { %v2218_v37 = vld.sshfl [vmem:[#allocation1 + $0x38] sm:$0xff pattern:$0x73625140] }
 0x476   : > { %7977 = vmatpush.xpose.msra.mxu0 %v597_v23  ;;  %8017 = vmatpush.xpose.msra.mxu2 %v599_v24  ;;  %v1694_v23 = vld [vmem:[%s10414_s9 + $0x2a88] sm:$0xf] }
 0x477   : > { %7997 = vmatpush.xpose.msra.mxu1 %v598_v28  ;;  %8037 = vmatpush.xpose.msra.mxu3 %v600_v29  ;;  %v1693_v28 = vld [vmem:[%s10414_s9 + $0x2a80] sm:$0xf]  ;;  %v1695_v29 = vld [vmem:[%s10414_s9 + $0x2a90] sm:$0xf] }
 0x479   : > { %7978 = vmatmul.f32.vlgmr.msra.gmra.mxu0 %v2201_v6  ;;  %8018 = vmatmul.f32.vlgmr.msra.gmra.mxu2 %v2203_v8  ;;  %v6939_v6 = vpop.f32.mrf.mxu0  ;;  %v312_v8 = vld [vmem:[%s10407_s7 + $0x230] sm:$0xff] }
 0x47a   : > { %8054 = vmatpush.xpose.msrb.mxu0 %v1684_v26  ;;  %8094 = vmatpush.xpose.msrb.mxu2 %v1686_v27  ;;  %2219 = vst [vmem:[#allocation1] ss:$4 sm:$0xff] %v312_v8  ;;  %v608_v26 = vld [vmem:[%s10414_s9 + $0x898] sm:$0xff]  ;;  %v6999_v27 = vpop.f32.mrf.mxu3  ;;  %v7139_v8 = vpop.f32.mrf.mxu2 }
 0x47b   : > { %8074 = vmatpush.xpose.msrb.mxu1 %v1685_v32  ;;  %8114 = vmatpush.xpose.msrb.mxu3 %v1687_v33  ;;  %v1333_v32 = vld [vmem:[%s10414_s9 + $0x1f40] sm:$0xff]  ;;  %v2215_v33 = vld.sshfl [vmem:[#allocation1 + $0x20] sm:$0xff pattern:$0x73625140] }
 0x47c   : > { %7998 = vmatmul.f32.vlgmr.msra.gmra.mxu1 %v2202_v9  ;;  %8038 = vmatmul.f32.vlgmr.msra.gmra.mxu3 %v2204_v10  ;;  %v6920_v9 = vadd.f32 %v6919_v0, %v6900_v61  ;;  %v1328_v10 = vld [vmem:[%s10414_s9 + $0x1f18] sm:$0xff]  ;;  %v1335_v61 = vld [vmem:[%s10414_s9 + $0x1f50] sm:$0xff] }
 0x47e   : > { %8055 = vmatpush.xpose.msrb.mxu0 %v1323_v34  ;;  %8095 = vmatpush.xpose.msrb.mxu2 %v1325_v35  ;;  %v6940_v12 = vadd.f32 %v6939_v6, %v6920_v9  ;;  %v2217_v35 = vld.sshfl [vmem:[#allocation1 + $0x30] sm:$0xff pattern:$0x73625140]  ;;  %v1336_v6 = vld [vmem:[%s10414_s9 + $0x1f58] sm:$0xff] }
 0x47f   : > { %8075 = vmatpush.xpose.msrb.mxu1 %v1324_v43  ;;  %8115 = vmatpush.xpose.msrb.mxu3 %v1326_v44  ;;  %v970_v43 = vld [vmem:[%s10414_s9 + $0x13e8] sm:$0xff]  ;;  %v972_v44 = vld [vmem:[%s10414_s9 + $0x13f8] sm:$0xff] }
 0x480   : > { %v6960_v19 = vadd.f32 %v6959_v15, %v6940_v12 }
 0x481   : > { %v7019_v30 = vpop.f32.mrf.mxu0 }
 0x482   : > { %8056 = vmatpush.xpose.msrb.mxu0 %v962_v47  ;;  %8096 = vmatpush.xpose.msrb.mxu2 %v964_v48  ;;  %v6980_v24 = vadd.f32 %v6979_v18, %v6960_v19  ;;  %v971_v47 = vld [vmem:[%s10414_s9 + $0x13f0] sm:$0xff]  ;;  %v973_v48 = vld [vmem:[%s10414_s9 + $0x1400] sm:$0xff]  ;;  %v7079_v52 = vpop.f32.mrf.mxu3  ;;  %v1700_v19 = vld [vmem:[%s10414_s9 + $0x2ab8] sm:$0xf] }
 0x483   : > { %8076 = vmatpush.xpose.msrb.mxu1 %v963_v50  ;;  %8116 = vmatpush.xpose.msrb.mxu3 %v965_v51  ;;  %v609_v50 = vld [vmem:[%s10414_s9 + $0x8a0] sm:$0xff]  ;;  %v611_v51 = vld [vmem:[%s10414_s9 + $0x8b0] sm:$0xff] }
 0x484   : > { %v7000_v34 = vadd.f32 %v6999_v27, %v6980_v24 }
 0x486   : > { %8057 = vmatpush.xpose.msrb.mxu0 %v601_v53  ;;  %8097 = vmatpush.xpose.msrb.mxu2 %v603_v54  ;;  %v1696_v53 = vld [vmem:[%s10414_s9 + $0x2a98] sm:$0xf]  ;;  %v1698_v54 = vld [vmem:[%s10414_s9 + $0x2aa8] sm:$0xf] }
 0x487   : > { %8077 = vmatpush.xpose.msrb.mxu1 %v602_v59  ;;  %8117 = vmatpush.xpose.msrb.mxu3 %v604_v60  ;;  %v1697_v59 = vld [vmem:[%s10414_s9 + $0x2aa0] sm:$0xf]  ;;  %v1699_v60 = vld [vmem:[%s10414_s9 + $0x2ab0] sm:$0xf] }
 0x489   : > { %8058 = vmatmul.f32.vlgmr.msrb.gmra.mxu0 %v2205_v36  ;;  %8098 = vmatmul.f32.vlgmr.msrb.gmra.mxu2 %v2207_v38  ;;  %v2216_v36 = vld.sshfl [vmem:[#allocation1 + $0x28] sm:$0xff pattern:$0x73625140]  ;;  %v313_v38 = vld [vmem:[%s10407_s7 + $0x238] sm:$0xff] }
 0x48a   : > { %8134 = vmatpush.xpose.msra.mxu0 %v1688_v56  ;;  %8174 = vmatpush.xpose.msra.mxu2 %v1690_v57  ;;  %2220 = vst [vmem:[#allocation1 + $0x20] ss:$4 sm:$0xff] %v313_v38  ;;  %v612_v56 = vld [vmem:[%s10414_s9 + $0x8b8] sm:$0xff]  ;;  %v7099_v57 = vpop.f32.mrf.mxu0  ;;  %v7159_v15 = vpop.f32.mrf.mxu3  ;;  %v1342_v38 = vld [vmem:[%s10414_s9 + $0x1f88] sm:$0xff] }
 0x48b   : > { %8154 = vmatpush.xpose.msra.mxu1 %v1689_v62  ;;  %8194 = vmatpush.xpose.msra.mxu3 %v1691_v63  ;;  %v1337_v62 = vld [vmem:[%s10414_s9 + $0x1f60] sm:$0xff]  ;;  %v2221_v63 = vld.sshfl [vmem:[#allocation1] sm:$0xff pattern:$0x73625140] }
 0x48c   : > { %8078 = vmatmul.f32.vlgmr.msrb.gmra.mxu1 %v2206_v39  ;;  %8118 = vmatmul.f32.vlgmr.msrb.gmra.mxu3 %v2208_v41  ;;  %v7020_v39 = vadd.f32 %v7019_v30, %v7000_v34  ;;  %v1334_v41 = vld [vmem:[%s10414_s9 + $0x1f48] sm:$0xff] }
 0x48e   : > { %8135 = vmatpush.xpose.msra.mxu0 %v1327_v1  ;;  %8175 = vmatpush.xpose.msra.mxu2 %v1329_v2  ;;  %v7040_v46 = vadd.f32 %v7039_v42, %v7020_v39  ;;  %v2223_v1 = vld.sshfl [vmem:[#allocation1 + $0x10] sm:$0xff pattern:$0x73625140]  ;;  %v2222_v2 = vld.sshfl [vmem:[#allocation1 + $0x8] sm:$0xff pattern:$0x73625140] }
 0x48f   : > { %8155 = vmatpush.xpose.msra.mxu1 %v1328_v10  ;;  %8195 = vmatpush.xpose.msra.mxu3 %v1330_v11  ;;  %v974_v10 = vld [vmem:[%s10414_s9 + $0x1408] sm:$0xff]  ;;  %v976_v11 = vld [vmem:[%s10414_s9 + $0x1418] sm:$0xff] }
 0x490   : > { %v7060_v49 = vadd.f32 %v7059_v45, %v7040_v46 }
 0x491   : > { %v2225_v30 = vld.sshfl [vmem:[#allocation1 + $0x20] sm:$0xff pattern:$0x73625140]  ;;  %v2228_v34 = vld.sshfl [vmem:[#allocation1 + $0x38] sm:$0xff pattern:$0x73625140] }
 0x492   : > { %8136 = vmatpush.xpose.msra.mxu0 %v966_v13  ;;  %8176 = vmatpush.xpose.msra.mxu2 %v968_v14  ;;  %v7080_v58 = vadd.f32 %v7079_v52, %v7060_v49  ;;  %v975_v13 = vld [vmem:[%s10414_s9 + $0x1410] sm:$0xff]  ;;  %v977_v14 = vld [vmem:[%s10414_s9 + $0x1420] sm:$0xff]  ;;  %v7179_v18 = vpop.f32.mrf.mxu0  ;;  %v7239_v42 = vpop.f32.mrf.mxu3  ;;  %v1704_v49 = vld [vmem:[%s10414_s9 + $0x2ad8] sm:$0xf] }
 0x493   : > { %8156 = vmatpush.xpose.msra.mxu1 %v967_v16  ;;  %8196 = vmatpush.xpose.msra.mxu3 %v969_v17  ;;  %v613_v16 = vld [vmem:[%s10414_s9 + $0x8c0] sm:$0xff]  ;;  %v615_v17 = vld [vmem:[%s10414_s9 + $0x8d0] sm:$0xff]  ;;  %v618_v52 = vld [vmem:[%s10414_s9 + $0x8e8] sm:$0xff] }
 0x494   : > { %v7100_v0 = vadd.f32 %v7099_v57, %v7080_v58  ;;  %v1343_v58 = vld [vmem:[%s10414_s9 + $0x1f90] sm:$0xff] }
 0x496   : > { %8137 = vmatpush.xpose.msra.mxu0 %v605_v20  ;;  %8177 = vmatpush.xpose.msra.mxu2 %v607_v21  ;;  %v1702_v20 = vld [vmem:[%s10414_s9 + $0x2ac8] sm:$0xf] }
 0x497   : > { %8157 = vmatpush.xpose.msra.mxu1 %v606_v25  ;;  %8197 = vmatpush.xpose.msra.mxu3 %v608_v26  ;;  %v1701_v25 = vld [vmem:[%s10414_s9 + $0x2ac0] sm:$0xf]  ;;  %v1703_v26 = vld [vmem:[%s10414_s9 + $0x2ad0] sm:$0xf] }
 0x499   : > { %8138 = vmatmul.f32.vlgmr.msra.gmra.mxu0 %v2211_v3  ;;  %8178 = vmatmul.f32.vlgmr.msra.gmra.mxu2 %v2213_v4  ;;  %v7119_v3 = vpop.f32.mrf.mxu1  ;;  %v2224_v4 = vld.sshfl [vmem:[#allocation1 + $0x18] sm:$0xff pattern:$0x73625140] }
 0x49a   : > { %8214 = vmatpush.xpose.msrb.mxu0 %v1692_v22  ;;  %8254 = vmatpush.xpose.msrb.mxu2 %v1694_v23  ;;  %v7120_v9 = vadd.f32 %v7119_v3, %v7100_v0  ;;  %v614_v22 = vld [vmem:[%s10414_s9 + $0x8c8] sm:$0xff]  ;;  %v616_v23 = vld [vmem:[%s10414_s9 + $0x8d8] sm:$0xff]  ;;  %v7259_v45 = vpop.f32.mrf.mxu0 }
 0x49b   : > { %8234 = vmatpush.xpose.msrb.mxu1 %v1693_v28  ;;  %8274 = vmatpush.xpose.msrb.mxu3 %v1695_v29  ;;  %v1339_v28 = vld [vmem:[%s10414_s9 + $0x1f70] sm:$0xff]  ;;  %v1341_v29 = vld [vmem:[%s10414_s9 + $0x1f80] sm:$0xff]  ;;  %v1344_v3 = vld [vmem:[%s10414_s9 + $0x1f98] sm:$0xff] }
 0x49c   : > { %8158 = vmatmul.f32.vlgmr.msra.gmra.mxu1 %v2212_v5  ;;  %8198 = vmatmul.f32.vlgmr.msra.gmra.mxu3 %v2214_v7  ;;  %v314_v5 = vld [vmem:[%s10407_s7 + $0x240] sm:$0xff]  ;;  %v7140_v12 = vadd.f32 %v7139_v8, %v7120_v9 }
 0x49d   : > { %v1338_v7 = vld [vmem:[%s10414_s9 + $0x1f68] sm:$0xff]  ;;  %2229 = vst [vmem:[#allocation1] ss:$4 sm:$0xff] %v314_v5  ;;  %v7319_v5 = vpop.f32.mrf.mxu3 }
 0x49e   : > { %8215 = vmatpush.xpose.msrb.mxu0 %v1331_v31  ;;  %8255 = vmatpush.xpose.msrb.mxu2 %v1333_v32  ;;  %v7160_v21 = vadd.f32 %v7159_v15, %v7140_v12  ;;  %v2227_v31 = vld.sshfl [vmem:[#allocation1 + $0x30] sm:$0xff pattern:$0x73625140]  ;;  %v2226_v32 = vld.sshfl [vmem:[#allocation1 + $0x28] sm:$0xff pattern:$0x73625140] }
 0x49f   : > { %8235 = vmatpush.xpose.msrb.mxu1 %v1332_v40  ;;  %8275 = vmatpush.xpose.msrb.mxu3 %v1334_v41  ;;  %v978_v40 = vld [vmem:[%s10414_s9 + $0x1428] sm:$0xff]  ;;  %v980_v41 = vld [vmem:[%s10414_s9 + $0x1438] sm:$0xff] }
 0x4a0   : > { %v7180_v24 = vadd.f32 %v7179_v18, %v7160_v21  ;;  %v622_v18 = vld [vmem:[%s10414_s9 + $0x908] sm:$0xff] }
 0x4a1   : > { %v7199_v27 = vpop.f32.mrf.mxu1 }
 0x4a2   : > { %8216 = vmatpush.xpose.msrb.mxu0 %v970_v43  ;;  %8256 = vmatpush.xpose.msrb.mxu2 %v972_v44  ;;  %v979_v43 = vld [vmem:[%s10414_s9 + $0x1430] sm:$0xff]  ;;  %v981_v44 = vld [vmem:[%s10414_s9 + $0x1440] sm:$0xff]  ;;  %v7339_v8 = vpop.f32.mrf.mxu0 }
 0x4a3   : > { %8236 = vmatpush.xpose.msrb.mxu1 %v971_v47  ;;  %8276 = vmatpush.xpose.msrb.mxu3 %v973_v48  ;;  %v617_v47 = vld [vmem:[%s10414_s9 + $0x8e0] sm:$0xff]  ;;  %v619_v48 = vld [vmem:[%s10414_s9 + $0x8f0] sm:$0xff] }
 0x4a4   : > { %v2234_v0 = vld.sshfl [vmem:[#allocation1 + $0x18] sm:$0xff pattern:$0x73625140] }
 0x4a6   : > { %8217 = vmatpush.xpose.msrb.mxu0 %v609_v50  ;;  %8257 = vmatpush.xpose.msrb.mxu2 %v611_v51  ;;  %v1706_v50 = vld [vmem:[%s10414_s9 + $0x2ae8] sm:$0xf] }
 0x4a7   : > { %8237 = vmatpush.xpose.msrb.mxu1 %v610_v55  ;;  %8277 = vmatpush.xpose.msrb.mxu3 %v612_v56  ;;  %v1705_v55 = vld [vmem:[%s10414_s9 + $0x2ae0] sm:$0xf]  ;;  %v1707_v56 = vld [vmem:[%s10414_s9 + $0x2af0] sm:$0xf] }
 0x4a9   : > { %8218 = vmatmul.f32.vlgmr.msrb.gmra.mxu0 %v2215_v33  ;;  %8258 = vmatmul.f32.vlgmr.msrb.gmra.mxu2 %v2217_v35  ;;  %v7219_v33 = vpop.f32.mrf.mxu2  ;;  %v315_v35 = vld [vmem:[%s10407_s7 + $0x248] sm:$0xff] }
 0x4aa   : > { %8294 = vmatpush.xpose.msra.mxu0 %v1696_v53  ;;  %8334 = vmatpush.xpose.msra.mxu2 %v1698_v54  ;;  %2230 = vst [vmem:[#allocation1 + $0x20] ss:$4 sm:$0xff] %v315_v35  ;;  %v620_v53 = vld [vmem:[%s10414_s9 + $0x8f8] sm:$0xff]  ;;  %v7279_v54 = vpop.f32.mrf.mxu1  ;;  %v7419_v35 = vpop.f32.mrf.mxu0 }
 0x4ab   : > { %8314 = vmatpush.xpose.msra.mxu1 %v1697_v59  ;;  %8354 = vmatpush.xpose.msra.mxu3 %v1699_v60  ;;  %v1345_v59 = vld [vmem:[%s10414_s9 + $0x1fa0] sm:$0xff]  ;;  %v2231_v60 = vld.sshfl [vmem:[#allocation1] sm:$0xff pattern:$0x73625140] }
 0x4ac   : > { %8238 = vmatmul.f32.vlgmr.msrb.gmra.mxu1 %v2216_v36  ;;  %8278 = vmatmul.f32.vlgmr.msrb.gmra.mxu3 %v2218_v37  ;;  %v7200_v36 = vadd.f32 %v7199_v27, %v7180_v24  ;;  %v1340_v37 = vld [vmem:[%s10414_s9 + $0x1f78] sm:$0xff]  ;;  %v1347_v24 = vld [vmem:[%s10414_s9 + $0x1fb0] sm:$0xff] }
 0x4ae   : > { %8295 = vmatpush.xpose.msra.mxu0 %v1335_v61  ;;  %8335 = vmatpush.xpose.msra.mxu2 %v1337_v62  ;;  %v7220_v39 = vadd.f32 %v7219_v33, %v7200_v36  ;;  %v2233_v62 = vld.sshfl [vmem:[#allocation1 + $0x10] sm:$0xff pattern:$0x73625140]  ;;  %v1348_v33 = vld [vmem:[%s10414_s9 + $0x1fb8] sm:$0xff] }
 0x4af   : > { %8315 = vmatpush.xpose.msra.mxu1 %v1336_v6  ;;  %8355 = vmatpush.xpose.msra.mxu3 %v1338_v7  ;;  %v982_v6 = vld [vmem:[%s10414_s9 + $0x1448] sm:$0xff]  ;;  %v984_v7 = vld [vmem:[%s10414_s9 + $0x1458] sm:$0xff] }
 0x4b0   : > { %v7240_v46 = vadd.f32 %v7239_v42, %v7220_v39 }
 0x4b1   : > { %v7299_v57 = vpop.f32.mrf.mxu2 }
 0x4b2   : > { %8296 = vmatpush.xpose.msra.mxu0 %v974_v10  ;;  %8336 = vmatpush.xpose.msra.mxu2 %v976_v11  ;;  %v7260_v51 = vadd.f32 %v7259_v45, %v7240_v46  ;;  %v983_v10 = vld [vmem:[%s10414_s9 + $0x1450] sm:$0xff]  ;;  %v985_v11 = vld [vmem:[%s10414_s9 + $0x1460] sm:$0xff]  ;;  %v7359_v15 = vpop.f32.mrf.mxu1  ;;  %v1712_v46 = vld [vmem:[%s10414_s9 + $0x2b18] sm:$0xf] }
 0x4b3   : > { %8316 = vmatpush.xpose.msra.mxu1 %v975_v13  ;;  %8356 = vmatpush.xpose.msra.mxu3 %v977_v14  ;;  %v621_v13 = vld [vmem:[%s10414_s9 + $0x900] sm:$0xff]  ;;  %v623_v14 = vld [vmem:[%s10414_s9 + $0x910] sm:$0xff] }
 0x4b4   : > { %v7280_v61 = vadd.f32 %v7279_v54, %v7260_v51 }
 0x4b6   : > { %8297 = vmatpush.xpose.msra.mxu0 %v613_v16  ;;  %8337 = vmatpush.xpose.msra.mxu2 %v615_v17  ;;  %v1708_v16 = vld [vmem:[%s10414_s9 + $0x2af8] sm:$0xf]  ;;  %v1710_v17 = vld [vmem:[%s10414_s9 + $0x2b08] sm:$0xf] }
 0x4b7   : > { %8317 = vmatpush.xpose.msra.mxu1 %v614_v22  ;;  %8357 = vmatpush.xpose.msra.mxu3 %v616_v23  ;;  %v1709_v22 = vld [vmem:[%s10414_s9 + $0x2b00] sm:$0xf]  ;;  %v1711_v23 = vld [vmem:[%s10414_s9 + $0x2b10] sm:$0xf] }
 0x4b9   : > { %8298 = vmatmul.f32.vlgmr.msra.gmra.mxu0 %v2221_v63  ;;  %8338 = vmatmul.f32.vlgmr.msra.gmra.mxu2 %v2223_v1  ;;  %v2232_v63 = vld.sshfl [vmem:[#allocation1 + $0x8] sm:$0xff pattern:$0x73625140] }
 0x4ba   : > { %8374 = vmatpush.xpose.msrb.mxu0 %v1700_v19  ;;  %8414 = vmatpush.xpose.msrb.mxu2 %v1702_v20  ;;  %v316_v1 = vld [vmem:[%s10407_s7 + $0x250] sm:$0xff]  ;;  %v7379_v20 = vpop.f32.mrf.mxu2  ;;  %v7439_v42 = vpop.f32.mrf.mxu1 }
 0x4bb   : > { %8394 = vmatpush.xpose.msrb.mxu1 %v1701_v25  ;;  %8434 = vmatpush.xpose.msrb.mxu3 %v1703_v26  ;;  %2239 = vst [vmem:[#allocation1] ss:$4 sm:$0xff] %v316_v1  ;;  %v624_v19 = vld [vmem:[%s10414_s9 + $0x918] sm:$0xff]  ;;  %v1349_v25 = vld [vmem:[%s10414_s9 + $0x1fc0] sm:$0xff]  ;;  %v1354_v1 = vld [vmem:[%s10414_s9 + $0x1fe8] sm:$0xff] }
 0x4bc   : > { %8318 = vmatmul.f32.vlgmr.msra.gmra.mxu1 %v2222_v2  ;;  %8358 = vmatmul.f32.vlgmr.msra.gmra.mxu3 %v2224_v4  ;;  %v7300_v2 = vadd.f32 %v7299_v57, %v7280_v61  ;;  %v1346_v4 = vld [vmem:[%s10414_s9 + $0x1fa8] sm:$0xff]  ;;  %v2235_v26 = vld.sshfl [vmem:[#allocation1 + $0x20] sm:$0xff pattern:$0x73625140] }
 0x4be   : > { %8375 = vmatpush.xpose.msrb.mxu0 %v1339_v28  ;;  %8415 = vmatpush.xpose.msrb.mxu2 %v1341_v29  ;;  %v7320_v9 = vadd.f32 %v7319_v5, %v7300_v2  ;;  %v2237_v28 = vld.sshfl [vmem:[#allocation1 + $0x30] sm:$0xff pattern:$0x73625140]  ;;  %v2236_v29 = vld.sshfl [vmem:[#allocation1 + $0x28] sm:$0xff pattern:$0x73625140] }
 0x4bf   : > { %8395 = vmatpush.xpose.msrb.mxu1 %v1340_v37  ;;  %8435 = vmatpush.xpose.msrb.mxu3 %v1342_v38  ;;  %v986_v37 = vld [vmem:[%s10414_s9 + $0x1468] sm:$0xff]  ;;  %v988_v38 = vld [vmem:[%s10414_s9 + $0x1478] sm:$0xff] }
 0x4c0   : > { %v7340_v12 = vadd.f32 %v7339_v8, %v7320_v9 }
 0x4c2   : > { %8376 = vmatpush.xpose.msrb.mxu0 %v978_v40  ;;  %8416 = vmatpush.xpose.msrb.mxu2 %v980_v41  ;;  %v7360_v21 = vadd.f32 %v7359_v15, %v7340_v12  ;;  %v987_v40 = vld [vmem:[%s10414_s9 + $0x1470] sm:$0xff]  ;;  %v989_v41 = vld [vmem:[%s10414_s9 + $0x1480] sm:$0xff]  ;;  %v7459_v45 = vpop.f32.mrf.mxu2  ;;  %v7519_v5 = vpop.f32.mrf.mxu1  ;;  %v1716_v12 = vld [vmem:[%s10414_s9 + $0x2b38] sm:$0xf] }
 0x4c3   : > { %8396 = vmatpush.xpose.msrb.mxu1 %v979_v43  ;;  %8436 = vmatpush.xpose.msrb.mxu3 %v981_v44  ;;  %v625_v43 = vld [vmem:[%s10414_s9 + $0x920] sm:$0xff]  ;;  %v627_v44 = vld [vmem:[%s10414_s9 + $0x930] sm:$0xff]  ;;  %v630_v15 = vld [vmem:[%s10414_s9 + $0x948] sm:$0xff] }
 0x4c4   : > { %v7380_v27 = vadd.f32 %v7379_v20, %v7360_v21  ;;  %v2241_v57 = vld.sshfl [vmem:[#allocation1] sm:$0xff pattern:$0x73625140]  ;;  %v2244_v61 = vld.sshfl [vmem:[#allocation1 + $0x18] sm:$0xff pattern:$0x73625140] }
 0x4c5   : > { %v1355_v21 = vld [vmem:[%s10414_s9 + $0x1ff0] sm:$0xff] }
 0x4c6   : > { %8377 = vmatpush.xpose.msrb.mxu0 %v617_v47  ;;  %8417 = vmatpush.xpose.msrb.mxu2 %v619_v48  ;;  %v1714_v47 = vld [vmem:[%s10414_s9 + $0x2b28] sm:$0xf] }
 0x4c7   : > { %8397 = vmatpush.xpose.msrb.mxu1 %v618_v52  ;;  %8437 = vmatpush.xpose.msrb.mxu3 %v620_v53  ;;  %v1713_v52 = vld [vmem:[%s10414_s9 + $0x2b20] sm:$0xf]  ;;  %v1715_v53 = vld [vmem:[%s10414_s9 + $0x2b30] sm:$0xf] }
 0x4c9   : > { %8378 = vmatmul.f32.vlgmr.msrb.gmra.mxu0 %v2225_v30  ;;  %8418 = vmatmul.f32.vlgmr.msrb.gmra.mxu2 %v2227_v31  ;;  %v7399_v30 = vpop.f32.mrf.mxu3  ;;  %v2238_v31 = vld.sshfl [vmem:[#allocation1 + $0x38] sm:$0xff pattern:$0x73625140] }
 0x4ca   : > { %8454 = vmatpush.xpose.msra.mxu0 %v1704_v49  ;;  %8494 = vmatpush.xpose.msra.mxu2 %v1706_v50  ;;  %v7400_v36 = vadd.f32 %v7399_v30, %v7380_v27  ;;  %v626_v49 = vld [vmem:[%s10414_s9 + $0x928] sm:$0xff]  ;;  %v628_v50 = vld [vmem:[%s10414_s9 + $0x938] sm:$0xff]  ;;  %v7539_v8 = vpop.f32.mrf.mxu2 }
 0x4cb   : > { %8474 = vmatpush.xpose.msra.mxu1 %v1705_v55  ;;  %8514 = vmatpush.xpose.msra.mxu3 %v1707_v56  ;;  %v1351_v55 = vld [vmem:[%s10414_s9 + $0x1fd0] sm:$0xff]  ;;  %v1353_v56 = vld [vmem:[%s10414_s9 + $0x1fe0] sm:$0xff]  ;;  %v1356_v30 = vld [vmem:[%s10414_s9 + $0x1ff8] sm:$0xff] }
 0x4cc   : > { %8398 = vmatmul.f32.vlgmr.msrb.gmra.mxu1 %v2226_v32  ;;  %8438 = vmatmul.f32.vlgmr.msrb.gmra.mxu3 %v2228_v34  ;;  %v317_v32 = vld [vmem:[%s10407_s7 + $0x258] sm:$0xff]  ;;  %v7420_v39 = vadd.f32 %v7419_v35, %v7400_v36 }
 0x4cd   : > { %v1350_v34 = vld [vmem:[%s10414_s9 + $0x1fc8] sm:$0xff]  ;;  %2240 = vst [vmem:[#allocation1 + $0x20] ss:$4 sm:$0xff] %v317_v32  ;;  %v7599_v32 = vpop.f32.mrf.mxu1 }
 0x4ce   : > { %8455 = vmatpush.xpose.msra.mxu0 %v1343_v58  ;;  %8495 = vmatpush.xpose.msra.mxu2 %v1345_v59  ;;  %v7440_v48 = vadd.f32 %v7439_v42, %v7420_v39  ;;  %v2243_v58 = vld.sshfl [vmem:[#allocation1 + $0x10] sm:$0xff pattern:$0x73625140]  ;;  %v2242_v59 = vld.sshfl [vmem:[#allocation1 + $0x8] sm:$0xff pattern:$0x73625140] }
 0x4cf   : > { %8475 = vmatpush.xpose.msra.mxu1 %v1344_v3  ;;  %8515 = vmatpush.xpose.msra.mxu3 %v1346_v4  ;;  %v990_v3 = vld [vmem:[%s10414_s9 + $0x1488] sm:$0xff]  ;;  %v992_v4 = vld [vmem:[%s10414_s9 + $0x1498] sm:$0xff] }
 0x4d0   : > { %v7460_v51 = vadd.f32 %v7459_v45, %v7440_v48  ;;  %v634_v45 = vld [vmem:[%s10414_s9 + $0x968] sm:$0xff] }
 0x4d1   : > { %v7479_v54 = vpop.f32.mrf.mxu3 }
 0x4d2   : > { %8456 = vmatpush.xpose.msra.mxu0 %v982_v6  ;;  %8496 = vmatpush.xpose.msra.mxu2 %v984_v7  ;;  %v991_v6 = vld [vmem:[%s10414_s9 + $0x1490] sm:$0xff]  ;;  %v993_v7 = vld [vmem:[%s10414_s9 + $0x14a0] sm:$0xff]  ;;  %v7619_v35 = vpop.f32.mrf.mxu2 }
 0x4d3   : > { %8476 = vmatpush.xpose.msra.mxu1 %v983_v10  ;;  %8516 = vmatpush.xpose.msra.mxu3 %v985_v11  ;;  %v629_v10 = vld [vmem:[%s10414_s9 + $0x940] sm:$0xff]  ;;  %v631_v11 = vld [vmem:[%s10414_s9 + $0x950] sm:$0xff] }
 0x4d4   : > { %v2248_v27 = vld.sshfl [vmem:[#allocation1 + $0x38] sm:$0xff pattern:$0x73625140] }
 0x4d6   : > { %8457 = vmatpush.xpose.msra.mxu0 %v621_v13  ;;  %8497 = vmatpush.xpose.msra.mxu2 %v623_v14  ;;  %v1718_v13 = vld [vmem:[%s10414_s9 + $0x2b48] sm:$0xf] }
 0x4d7   : > { %8477 = vmatpush.xpose.msra.mxu1 %v622_v18  ;;  %8517 = vmatpush.xpose.msra.mxu3 %v624_v19  ;;  %v1717_v18 = vld [vmem:[%s10414_s9 + $0x2b40] sm:$0xf]  ;;  %v1719_v19 = vld [vmem:[%s10414_s9 + $0x2b50] sm:$0xf] }
 0x4d9   : > { %8458 = vmatmul.f32.vlgmr.msra.gmra.mxu0 %v2231_v60  ;;  %8498 = vmatmul.f32.vlgmr.msra.gmra.mxu2 %v2233_v62  ;;  %v7499_v60 = vpop.f32.mrf.mxu0  ;;  %v318_v62 = vld [vmem:[%s10407_s7 + $0x260] sm:$0xff] }
 0x4da   : > { %8534 = vmatpush.xpose.msrb.mxu0 %v1708_v16  ;;  %8574 = vmatpush.xpose.msrb.mxu2 %v1710_v17  ;;  %2249 = vst [vmem:[#allocation1] ss:$4 sm:$0xff] %v318_v62  ;;  %v632_v16 = vld [vmem:[%s10414_s9 + $0x958] sm:$0xff]  ;;  %v7559_v17 = vpop.f32.mrf.mxu3  ;;  %v7699_v62 = vpop.f32.mrf.mxu2 }
 0x4db   : > { %8554 = vmatpush.xpose.msrb.mxu1 %v1709_v22  ;;  %8594 = vmatpush.xpose.msrb.mxu3 %v1711_v23  ;;  %v1357_v22 = vld [vmem:[%s10414_s9 + $0x2000] sm:$0xff]  ;;  %v2245_v23 = vld.sshfl [vmem:[#allocation1 + $0x20] sm:$0xff pattern:$0x73625140] }
 0x4dc   : > { %8478 = vmatmul.f32.vlgmr.msra.gmra.mxu1 %v2232_v63  ;;  %8518 = vmatmul.f32.vlgmr.msra.gmra.mxu3 %v2234_v0  ;;  %v7480_v63 = vadd.f32 %v7479_v54, %v7460_v51  ;;  %v1352_v0 = vld [vmem:[%s10414_s9 + $0x1fd8] sm:$0xff]  ;;  %v1359_v51 = vld [vmem:[%s10414_s9 + $0x2010] sm:$0xff] }
 0x4de   : > { %8535 = vmatpush.xpose.msrb.mxu0 %v1347_v24  ;;  %8575 = vmatpush.xpose.msrb.mxu2 %v1349_v25  ;;  %v7500_v2 = vadd.f32 %v7499_v60, %v7480_v63  ;;  %v2247_v25 = vld.sshfl [vmem:[#allocation1 + $0x30] sm:$0xff pattern:$0x73625140]  ;;  %v1360_v60 = vld [vmem:[%s10414_s9 + $0x2018] sm:$0xff] }
 0x4df   : > { %8555 = vmatpush.xpose.msrb.mxu1 %v1348_v33  ;;  %8595 = vmatpush.xpose.msrb.mxu3 %v1350_v34  ;;  %v994_v33 = vld [vmem:[%s10414_s9 + $0x14a8] sm:$0xff]  ;;  %v996_v34 = vld [vmem:[%s10414_s9 + $0x14b8] sm:$0xff] }
 0x4e0   : > { %v7520_v9 = vadd.f32 %v7519_v5, %v7500_v2 }
 0x4e1   : > { %v7579_v20 = vpop.f32.mrf.mxu0 }
 0x4e2   : > { %8536 = vmatpush.xpose.msrb.mxu0 %v986_v37  ;;  %8576 = vmatpush.xpose.msrb.mxu2 %v988_v38  ;;  %v7540_v14 = vadd.f32 %v7539_v8, %v7520_v9  ;;  %v995_v37 = vld [vmem:[%s10414_s9 + $0x14b0] sm:$0xff]  ;;  %v997_v38 = vld [vmem:[%s10414_s9 + $0x14c0] sm:$0xff]  ;;  %v7639_v42 = vpop.f32.mrf.mxu3  ;;  %v1724_v9 = vld [vmem:[%s10414_s9 + $0x2b78] sm:$0xf] }
 0x4e3   : > { %8556 = vmatpush.xpose.msrb.mxu1 %v987_v40  ;;  %8596 = vmatpush.xpose.msrb.mxu3 %v989_v41  ;;  %v633_v40 = vld [vmem:[%s10414_s9 + $0x960] sm:$0xff]  ;;  %v635_v41 = vld [vmem:[%s10414_s9 + $0x970] sm:$0xff] }
 0x4e4   : > { %v7560_v24 = vadd.f32 %v7559_v17, %v7540_v14 }
 0x4e6   : > { %8537 = vmatpush.xpose.msrb.mxu0 %v625_v43  ;;  %8577 = vmatpush.xpose.msrb.mxu2 %v627_v44  ;;  %v1720_v43 = vld [vmem:[%s10414_s9 + $0x2b58] sm:$0xf]  ;;  %v1722_v44 = vld [vmem:[%s10414_s9 + $0x2b68] sm:$0xf] }
 0x4e7   : > { %8557 = vmatpush.xpose.msrb.mxu1 %v626_v49  ;;  %8597 = vmatpush.xpose.msrb.mxu3 %v628_v50  ;;  %v1721_v49 = vld [vmem:[%s10414_s9 + $0x2b60] sm:$0xf]  ;;  %v1723_v50 = vld [vmem:[%s10414_s9 + $0x2b70] sm:$0xf] }
 0x4e9   : > { %8538 = vmatmul.f32.vlgmr.msrb.gmra.mxu0 %v2235_v26  ;;  %8578 = vmatmul.f32.vlgmr.msrb.gmra.mxu2 %v2237_v28  ;;  %v2246_v26 = vld.sshfl [vmem:[#allocation1 + $0x28] sm:$0xff pattern:$0x73625140] }
 0x4ea   : > { %8614 = vmatpush.xpose.msra.mxu0 %v1712_v46  ;;  %8654 = vmatpush.xpose.msra.mxu2 %v1714_v47  ;;  %v319_v28 = vld [vmem:[%s10407_s7 + $0x268] sm:$0xff]  ;;  %v7659_v47 = vpop.f32.mrf.mxu0  ;;  %v7719_v5 = vpop.f32.mrf.mxu3 }
 0x4eb   : > { %8634 = vmatpush.xpose.msra.mxu1 %v1713_v52  ;;  %8674 = vmatpush.xpose.msra.mxu3 %v1715_v53  ;;  %2250 = vst [vmem:[#allocation1 + $0x20] ss:$4 sm:$0xff] %v319_v28  ;;  %v636_v46 = vld [vmem:[%s10414_s9 + $0x978] sm:$0xff]  ;;  %v1361_v52 = vld [vmem:[%s10414_s9 + $0x2020] sm:$0xff]  ;;  %v1366_v28 = vld [vmem:[%s10414_s9 + $0x2048] sm:$0xff] }
 0x4ec   : > { %8558 = vmatmul.f32.vlgmr.msrb.gmra.mxu1 %v2236_v29  ;;  %8598 = vmatmul.f32.vlgmr.msrb.gmra.mxu3 %v2238_v31  ;;  %v7580_v29 = vadd.f32 %v7579_v20, %v7560_v24  ;;  %v1358_v31 = vld [vmem:[%s10414_s9 + $0x2008] sm:$0xff]  ;;  %v2251_v53 = vld.sshfl [vmem:[#allocation1] sm:$0xff pattern:$0x73625140] }
 0x4ee   : > { %8615 = vmatpush.xpose.msra.mxu0 %v1351_v55  ;;  %8655 = vmatpush.xpose.msra.mxu2 %v1353_v56  ;;  %v7600_v36 = vadd.f32 %v7599_v32, %v7580_v29  ;;  %v2253_v55 = vld.sshfl [vmem:[#allocation1 + $0x10] sm:$0xff pattern:$0x73625140]  ;;  %v2252_v56 = vld.sshfl [vmem:[#allocation1 + $0x8] sm:$0xff pattern:$0x73625140] }
 0x4ef   : > { %8635 = vmatpush.xpose.msra.mxu1 %v1352_v0  ;;  %8675 = vmatpush.xpose.msra.mxu3 %v1354_v1  ;;  %v998_v0 = vld [vmem:[%s10414_s9 + $0x14c8] sm:$0xff]  ;;  %v1000_v1 = vld [vmem:[%s10414_s9 + $0x14d8] sm:$0xff] }
 0x4f0   : > { %v7620_v39 = vadd.f32 %v7619_v35, %v7600_v36 }
 0x4f2   : > { %8616 = vmatpush.xpose.msra.mxu0 %v990_v3  ;;  %8656 = vmatpush.xpose.msra.mxu2 %v992_v4  ;;  %v7640_v48 = vadd.f32 %v7639_v42, %v7620_v39  ;;  %v999_v3 = vld [vmem:[%s10414_s9 + $0x14d0] sm:$0xff]  ;;  %v1001_v4 = vld [vmem:[%s10414_s9 + $0x14e0] sm:$0xff]  ;;  %v7739_v8 = vpop.f32.mrf.mxu0  ;;  %v7799_v32 = vpop.f32.mrf.mxu3  ;;  %v1728_v39 = vld [vmem:[%s10414_s9 + $0x2b98] sm:$0xf] }
 0x4f3   : > { %8636 = vmatpush.xpose.msra.mxu1 %v991_v6  ;;  %8676 = vmatpush.xpose.msra.mxu3 %v993_v7  ;;  %v637_v6 = vld [vmem:[%s10414_s9 + $0x980] sm:$0xff]  ;;  %v639_v7 = vld [vmem:[%s10414_s9 + $0x990] sm:$0xff]  ;;  %v642_v42 = vld [vmem:[%s10414_s9 + $0x9a8] sm:$0xff] }
 0x4f4   : > { %v7660_v54 = vadd.f32 %v7659_v47, %v7640_v48  ;;  %v2255_v20 = vld.sshfl [vmem:[#allocation1 + $0x20] sm:$0xff pattern:$0x73625140]  ;;  %v2258_v24 = vld.sshfl [vmem:[#allocation1 + $0x38] sm:$0xff pattern:$0x73625140] }
 0x4f5   : > { %v1367_v48 = vld [vmem:[%s10414_s9 + $0x2050] sm:$0xff] }
 0x4f6   : > { %8617 = vmatpush.xpose.msra.mxu0 %v629_v10  ;;  %8657 = vmatpush.xpose.msra.mxu2 %v631_v11  ;;  %v1726_v10 = vld [vmem:[%s10414_s9 + $0x2b88] sm:$0xf] }
 0x4f7   : > { %8637 = vmatpush.xpose.msra.mxu1 %v630_v15  ;;  %8677 = vmatpush.xpose.msra.mxu3 %v632_v16  ;;  %v1725_v15 = vld [vmem:[%s10414_s9 + $0x2b80] sm:$0xf]  ;;  %v1727_v16 = vld [vmem:[%s10414_s9 + $0x2b90] sm:$0xf] }
 0x4f9   : > { %8618 = vmatmul.f32.vlgmr.msra.gmra.mxu0 %v2241_v57  ;;  %8658 = vmatmul.f32.vlgmr.msra.gmra.mxu2 %v2243_v58  ;;  %v7679_v57 = vpop.f32.mrf.mxu1  ;;  %v2254_v58 = vld.sshfl [vmem:[#allocation1 + $0x18] sm:$0xff pattern:$0x73625140] }
 0x4fa   : > { %8694 = vmatpush.xpose.msrb.mxu0 %v1716_v12  ;;  %8734 = vmatpush.xpose.msrb.mxu2 %v1718_v13  ;;  %v7680_v63 = vadd.f32 %v7679_v57, %v7660_v54  ;;  %v638_v12 = vld [vmem:[%s10414_s9 + $0x988] sm:$0xff]  ;;  %v640_v13 = vld [vmem:[%s10414_s9 + $0x998] sm:$0xff]  ;;  %v7819_v35 = vpop.f32.mrf.mxu0 }
 0x4fb   : > { %8714 = vmatpush.xpose.msrb.mxu1 %v1717_v18  ;;  %8754 = vmatpush.xpose.msrb.mxu3 %v1719_v19  ;;  %v1363_v18 = vld [vmem:[%s10414_s9 + $0x2030] sm:$0xff]  ;;  %v1365_v19 = vld [vmem:[%s10414_s9 + $0x2040] sm:$0xff]  ;;  %v1368_v57 = vld [vmem:[%s10414_s9 + $0x2058] sm:$0xff] }
 0x4fc   : > { %8638 = vmatmul.f32.vlgmr.msra.gmra.mxu1 %v2242_v59  ;;  %8678 = vmatmul.f32.vlgmr.msra.gmra.mxu3 %v2244_v61  ;;  %v320_v59 = vld [vmem:[%s10407_s7 + $0x270] sm:$0xff]  ;;  %v7700_v2 = vadd.f32 %v7699_v62, %v7680_v63 }
 0x4fd   : > { %v1362_v61 = vld [vmem:[%s10414_s9 + $0x2028] sm:$0xff]  ;;  %2259 = vst [vmem:[#allocation1] ss:$4 sm:$0xff] %v320_v59  ;;  %v7879_v59 = vpop.f32.mrf.mxu3 }
 0x4fe   : > { %8695 = vmatpush.xpose.msrb.mxu0 %v1355_v21  ;;  %8735 = vmatpush.xpose.msrb.mxu2 %v1357_v22  ;;  %v7720_v11 = vadd.f32 %v7719_v5, %v7700_v2  ;;  %v2257_v21 = vld.sshfl [vmem:[#allocation1 + $0x30] sm:$0xff pattern:$0x73625140]  ;;  %v2256_v22 = vld.sshfl [vmem:[#allocation1 + $0x28] sm:$0xff pattern:$0x73625140] }
 0x4ff   : > { %8715 = vmatpush.xpose.msrb.mxu1 %v1356_v30  ;;  %8755 = vmatpush.xpose.msrb.mxu3 %v1358_v31  ;;  %v1002_v30 = vld [vmem:[%s10414_s9 + $0x14e8] sm:$0xff]  ;;  %v1004_v31 = vld [vmem:[%s10414_s9 + $0x14f8] sm:$0xff] }
 0x500   : > { %v7740_v14 = vadd.f32 %v7739_v8, %v7720_v11  ;;  %v646_v8 = vld [vmem:[%s10414_s9 + $0x9c8] sm:$0xff] }
 0x501   : > { %v7759_v17 = vpop.f32.mrf.mxu1 }
 0x502   : > { %8696 = vmatpush.xpose.msrb.mxu0 %v994_v33  ;;  %8736 = vmatpush.xpose.msrb.mxu2 %v996_v34  ;;  %v1003_v33 = vld [vmem:[%s10414_s9 + $0x14f0] sm:$0xff]  ;;  %v1005_v34 = vld [vmem:[%s10414_s9 + $0x1500] sm:$0xff]  ;;  %v7899_v62 = vpop.f32.mrf.mxu0 }
 0x503   : > { %8716 = vmatpush.xpose.msrb.mxu1 %v995_v37  ;;  %8756 = vmatpush.xpose.msrb.mxu3 %v997_v38  ;;  %v641_v37 = vld [vmem:[%s10414_s9 + $0x9a0] sm:$0xff]  ;;  %v643_v38 = vld [vmem:[%s10414_s9 + $0x9b0] sm:$0xff] }
 0x504   : > { %v2264_v54 = vld.sshfl [vmem:[#allocation1 + $0x18] sm:$0xff pattern:$0x73625140] }
 0x506   : > { %8697 = vmatpush.xpose.msrb.mxu0 %v633_v40  ;;  %8737 = vmatpush.xpose.msrb.mxu2 %v635_v41  ;;  %v1730_v40 = vld [vmem:[%s10414_s9 + $0x2ba8] sm:$0xf] }
 0x507   : > { %8717 = vmatpush.xpose.msrb.mxu1 %v634_v45  ;;  %8757 = vmatpush.xpose.msrb.mxu3 %v636_v46  ;;  %v1729_v45 = vld [vmem:[%s10414_s9 + $0x2ba0] sm:$0xf]  ;;  %v1731_v46 = vld [vmem:[%s10414_s9 + $0x2bb0] sm:$0xf] }
 0x509   : > { %8698 = vmatmul.f32.vlgmr.msrb.gmra.mxu0 %v2245_v23  ;;  %8738 = vmatmul.f32.vlgmr.msrb.gmra.mxu2 %v2247_v25  ;;  %v7779_v23 = vpop.f32.mrf.mxu2  ;;  %v321_v25 = vld [vmem:[%s10407_s7 + $0x278] sm:$0xff] }
 0x50a   : > { %8774 = vmatpush.xpose.msra.mxu0 %v1720_v43  ;;  %8814 = vmatpush.xpose.msra.mxu2 %v1722_v44  ;;  %2260 = vst [vmem:[#allocation1 + $0x20] ss:$4 sm:$0xff] %v321_v25  ;;  %v644_v43 = vld [vmem:[%s10414_s9 + $0x9b8] sm:$0xff]  ;;  %v7839_v44 = vpop.f32.mrf.mxu1  ;;  %v7979_v25 = vpop.f32.mrf.mxu0 }
 0x50b   : > { %8794 = vmatpush.xpose.msra.mxu1 %v1721_v49  ;;  %8834 = vmatpush.xpose.msra.mxu3 %v1723_v50  ;;  %v1369_v49 = vld [vmem:[%s10414_s9 + $0x2060] sm:$0xff]  ;;  %v2261_v50 = vld.sshfl [vmem:[#allocation1] sm:$0xff pattern:$0x73625140] }
 0x50c   : > { %8718 = vmatmul.f32.vlgmr.msrb.gmra.mxu1 %v2246_v26  ;;  %8758 = vmatmul.f32.vlgmr.msrb.gmra.mxu3 %v2248_v27  ;;  %v7760_v26 = vadd.f32 %v7759_v17, %v7740_v14  ;;  %v1364_v27 = vld [vmem:[%s10414_s9 + $0x2038] sm:$0xff]  ;;  %v1371_v14 = vld [vmem:[%s10414_s9 + $0x2070] sm:$0xff] }
 0x50e   : > { %8775 = vmatpush.xpose.msra.mxu0 %v1359_v51  ;;  %8815 = vmatpush.xpose.msra.mxu2 %v1361_v52  ;;  %v7780_v29 = vadd.f32 %v7779_v23, %v7760_v26  ;;  %v2263_v52 = vld.sshfl [vmem:[#allocation1 + $0x10] sm:$0xff pattern:$0x73625140]  ;;  %v1372_v23 = vld [vmem:[%s10414_s9 + $0x2078] sm:$0xff] }
 0x50f   : > { %8795 = vmatpush.xpose.msra.mxu1 %v1360_v60  ;;  %8835 = vmatpush.xpose.msra.mxu3 %v1362_v61  ;;  %v1006_v60 = vld [vmem:[%s10414_s9 + $0x1508] sm:$0xff]  ;;  %v1008_v61 = vld [vmem:[%s10414_s9 + $0x1518] sm:$0xff] }
 0x510   : > { %v7800_v36 = vadd.f32 %v7799_v32, %v7780_v29 }
 0x511   : > { %v7859_v47 = vpop.f32.mrf.mxu2 }
 0x512   : > { %8776 = vmatpush.xpose.msra.mxu0 %v998_v0  ;;  %8816 = vmatpush.xpose.msra.mxu2 %v1000_v1  ;;  %v7820_v41 = vadd.f32 %v7819_v35, %v7800_v36  ;;  %v1007_v0 = vld [vmem:[%s10414_s9 + $0x1510] sm:$0xff]  ;;  %v1009_v1 = vld [vmem:[%s10414_s9 + $0x1520] sm:$0xff]  ;;  %v7919_v5 = vpop.f32.mrf.mxu1  ;;  %v1736_v36 = vld [vmem:[%s10414_s9 + $0x2bd8] sm:$0xf] }
 0x513   : > { %8796 = vmatpush.xpose.msra.mxu1 %v999_v3  ;;  %8836 = vmatpush.xpose.msra.mxu3 %v1001_v4  ;;  %v645_v3 = vld [vmem:[%s10414_s9 + $0x9c0] sm:$0xff]  ;;  %v647_v4 = vld [vmem:[%s10414_s9 + $0x9d0] sm:$0xff] }
 0x514   : > { %v7840_v51 = vadd.f32 %v7839_v44, %v7820_v41 }
 0x516   : > { %8777 = vmatpush.xpose.msra.mxu0 %v637_v6  ;;  %8817 = vmatpush.xpose.msra.mxu2 %v639_v7  ;;  %v1732_v6 = vld [vmem:[%s10414_s9 + $0x2bb8] sm:$0xf]  ;;  %v1734_v7 = vld [vmem:[%s10414_s9 + $0x2bc8] sm:$0xf] }
 0x517   : > { %8797 = vmatpush.xpose.msra.mxu1 %v638_v12  ;;  %8837 = vmatpush.xpose.msra.mxu3 %v640_v13  ;;  %v1733_v12 = vld [vmem:[%s10414_s9 + $0x2bc0] sm:$0xf]  ;;  %v1735_v13 = vld [vmem:[%s10414_s9 + $0x2bd0] sm:$0xf] }
 0x519   : > { %8778 = vmatmul.f32.vlgmr.msra.gmra.mxu0 %v2251_v53  ;;  %8818 = vmatmul.f32.vlgmr.msra.gmra.mxu2 %v2253_v55  ;;  %v2262_v53 = vld.sshfl [vmem:[#allocation1 + $0x8] sm:$0xff pattern:$0x73625140] }
 0x51a   : > { %8854 = vmatpush.xpose.msrb.mxu0 %v1724_v9  ;;  %8894 = vmatpush.xpose.msrb.mxu2 %v1726_v10  ;;  %v322_v55 = vld [vmem:[%s10407_s7 + $0x280] sm:$0xff]  ;;  %v7939_v10 = vpop.f32.mrf.mxu2  ;;  %v7999_v32 = vpop.f32.mrf.mxu1 }
 0x51b   : > { %8874 = vmatpush.xpose.msrb.mxu1 %v1725_v15  ;;  %8914 = vmatpush.xpose.msrb.mxu3 %v1727_v16  ;;  %2269 = vst [vmem:[#allocation1] ss:$4 sm:$0xff] %v322_v55  ;;  %v648_v9 = vld [vmem:[%s10414_s9 + $0x9d8] sm:$0xff]  ;;  %v1373_v15 = vld [vmem:[%s10414_s9 + $0x2080] sm:$0xff]  ;;  %v1378_v55 = vld [vmem:[%s10414_s9 + $0x20a8] sm:$0xff] }
 0x51c   : > { %8798 = vmatmul.f32.vlgmr.msra.gmra.mxu1 %v2252_v56  ;;  %8838 = vmatmul.f32.vlgmr.msra.gmra.mxu3 %v2254_v58  ;;  %v7860_v56 = vadd.f32 %v7859_v47, %v7840_v51  ;;  %v1370_v58 = vld [vmem:[%s10414_s9 + $0x2068] sm:$0xff]  ;;  %v2265_v16 = vld.sshfl [vmem:[#allocation1 + $0x20] sm:$0xff pattern:$0x73625140] }
 0x51e   : > { %8855 = vmatpush.xpose.msrb.mxu0 %v1363_v18  ;;  %8895 = vmatpush.xpose.msrb.mxu2 %v1365_v19  ;;  %v7880_v63 = vadd.f32 %v7879_v59, %v7860_v56  ;;  %v2267_v18 = vld.sshfl [vmem:[#allocation1 + $0x30] sm:$0xff pattern:$0x73625140]  ;;  %v2266_v19 = vld.sshfl [vmem:[#allocation1 + $0x28] sm:$0xff pattern:$0x73625140] }
 0x51f   : > { %8875 = vmatpush.xpose.msrb.mxu1 %v1364_v27  ;;  %8915 = vmatpush.xpose.msrb.mxu3 %v1366_v28  ;;  %v1010_v27 = vld [vmem:[%s10414_s9 + $0x1528] sm:$0xff]  ;;  %v1012_v28 = vld [vmem:[%s10414_s9 + $0x1538] sm:$0xff] }
 0x520   : > { %v7900_v2 = vadd.f32 %v7899_v62, %v7880_v63 }
 0x522   : > { %8856 = vmatpush.xpose.msrb.mxu0 %v1002_v30  ;;  %8896 = vmatpush.xpose.msrb.mxu2 %v1004_v31  ;;  %v7920_v11 = vadd.f32 %v7919_v5, %v7900_v2  ;;  %v1011_v30 = vld [vmem:[%s10414_s9 + $0x1530] sm:$0xff]  ;;  %v1013_v31 = vld [vmem:[%s10414_s9 + $0x1540] sm:$0xff]  ;;  %v8019_v35 = vpop.f32.mrf.mxu2  ;;  %v8079_v59 = vpop.f32.mrf.mxu1  ;;  %v1740_v2 = vld [vmem:[%s10414_s9 + $0x2bf8] sm:$0xf] }
 0x523   : > { %8876 = vmatpush.xpose.msrb.mxu1 %v1003_v33  ;;  %8916 = vmatpush.xpose.msrb.mxu3 %v1005_v34  ;;  %v649_v33 = vld [vmem:[%s10414_s9 + $0x9e0] sm:$0xff]  ;;  %v651_v34 = vld [vmem:[%s10414_s9 + $0x9f0] sm:$0xff]  ;;  %v654_v5 = vld [vmem:[%s10414_s9 + $0xa08] sm:$0xff] }
 0x524   : > { %v7940_v17 = vadd.f32 %v7939_v10, %v7920_v11  ;;  %v2271_v47 = vld.sshfl [vmem:[#allocation1] sm:$0xff pattern:$0x73625140]  ;;  %v2274_v51 = vld.sshfl [vmem:[#allocation1 + $0x18] sm:$0xff pattern:$0x73625140] }
 0x525   : > { %v1379_v11 = vld [vmem:[%s10414_s9 + $0x20b0] sm:$0xff] }
 0x526   : > { %8857 = vmatpush.xpose.msrb.mxu0 %v641_v37  ;;  %8897 = vmatpush.xpose.msrb.mxu2 %v643_v38  ;;  %v1738_v37 = vld [vmem:[%s10414_s9 + $0x2be8] sm:$0xf] }
 0x527   : > { %8877 = vmatpush.xpose.msrb.mxu1 %v642_v42  ;;  %8917 = vmatpush.xpose.msrb.mxu3 %v644_v43  ;;  %v1737_v42 = vld [vmem:[%s10414_s9 + $0x2be0] sm:$0xf]  ;;  %v1739_v43 = vld [vmem:[%s10414_s9 + $0x2bf0] sm:$0xf] }
 0x529   : > { %8858 = vmatmul.f32.vlgmr.msrb.gmra.mxu0 %v2255_v20  ;;  %8898 = vmatmul.f32.vlgmr.msrb.gmra.mxu2 %v2257_v21  ;;  %v7959_v20 = vpop.f32.mrf.mxu3  ;;  %v2268_v21 = vld.sshfl [vmem:[#allocation1 + $0x38] sm:$0xff pattern:$0x73625140] }
 0x52a   : > { %8934 = vmatpush.xpose.msra.mxu0 %v1728_v39  ;;  %8974 = vmatpush.xpose.msra.mxu2 %v1730_v40  ;;  %v7960_v26 = vadd.f32 %v7959_v20, %v7940_v17  ;;  %v650_v39 = vld [vmem:[%s10414_s9 + $0x9e8] sm:$0xff]  ;;  %v652_v40 = vld [vmem:[%s10414_s9 + $0x9f8] sm:$0xff]  ;;  %v8099_v62 = vpop.f32.mrf.mxu2 }
 0x52b   : > { %8954 = vmatpush.xpose.msra.mxu1 %v1729_v45  ;;  %8994 = vmatpush.xpose.msra.mxu3 %v1731_v46  ;;  %v1375_v45 = vld [vmem:[%s10414_s9 + $0x2090] sm:$0xff]  ;;  %v1377_v46 = vld [vmem:[%s10414_s9 + $0x20a0] sm:$0xff]  ;;  %v1380_v20 = vld [vmem:[%s10414_s9 + $0x20b8] sm:$0xff] }
 0x52c   : > { %8878 = vmatmul.f32.vlgmr.msrb.gmra.mxu1 %v2256_v22  ;;  %8918 = vmatmul.f32.vlgmr.msrb.gmra.mxu3 %v2258_v24  ;;  %v323_v22 = vld [vmem:[%s10407_s7 + $0x288] sm:$0xff]  ;;  %v7980_v29 = vadd.f32 %v7979_v25, %v7960_v26 }
 0x52d   : > { %v1374_v24 = vld [vmem:[%s10414_s9 + $0x2088] sm:$0xff]  ;;  %2270 = vst [vmem:[#allocation1 + $0x20] ss:$4 sm:$0xff] %v323_v22  ;;  %v8159_v22 = vpop.f32.mrf.mxu1 }
 0x52e   : > { %8935 = vmatpush.xpose.msra.mxu0 %v1367_v48  ;;  %8975 = vmatpush.xpose.msra.mxu2 %v1369_v49  ;;  %v8000_v38 = vadd.f32 %v7999_v32, %v7980_v29  ;;  %v2273_v48 = vld.sshfl [vmem:[#allocation1 + $0x10] sm:$0xff pattern:$0x73625140]  ;;  %v2272_v49 = vld.sshfl [vmem:[#allocation1 + $0x8] sm:$0xff pattern:$0x73625140] }
 0x52f   : > { %8955 = vmatpush.xpose.msra.mxu1 %v1368_v57  ;;  %8995 = vmatpush.xpose.msra.mxu3 %v1370_v58  ;;  %v1014_v57 = vld [vmem:[%s10414_s9 + $0x1548] sm:$0xff]  ;;  %v1016_v58 = vld [vmem:[%s10414_s9 + $0x1558] sm:$0xff] }
 0x530   : > { %v8020_v41 = vadd.f32 %v8019_v35, %v8000_v38  ;;  %v658_v35 = vld [vmem:[%s10414_s9 + $0xa28] sm:$0xff] }
 0x531   : > { %v8039_v44 = vpop.f32.mrf.mxu3 }
 0x532   : > { %8936 = vmatpush.xpose.msra.mxu0 %v1006_v60  ;;  %8976 = vmatpush.xpose.msra.mxu2 %v1008_v61  ;;  %v1015_v60 = vld [vmem:[%s10414_s9 + $0x1550] sm:$0xff]  ;;  %v1017_v61 = vld [vmem:[%s10414_s9 + $0x1560] sm:$0xff]  ;;  %v8179_v25 = vpop.f32.mrf.mxu2 }
 0x533   : > { %8956 = vmatpush.xpose.msra.mxu1 %v1007_v0  ;;  %8996 = vmatpush.xpose.msra.mxu3 %v1009_v1  ;;  %v653_v0 = vld [vmem:[%s10414_s9 + $0xa00] sm:$0xff]  ;;  %v655_v1 = vld [vmem:[%s10414_s9 + $0xa10] sm:$0xff] }
 0x534   : > { %v2278_v17 = vld.sshfl [vmem:[#allocation1 + $0x38] sm:$0xff pattern:$0x73625140] }
 0x536   : > { %8937 = vmatpush.xpose.msra.mxu0 %v645_v3  ;;  %8977 = vmatpush.xpose.msra.mxu2 %v647_v4  ;;  %v1742_v3 = vld [vmem:[%s10414_s9 + $0x2c08] sm:$0xf] }
 0x537   : > { %8957 = vmatpush.xpose.msra.mxu1 %v646_v8  ;;  %8997 = vmatpush.xpose.msra.mxu3 %v648_v9  ;;  %v1741_v8 = vld [vmem:[%s10414_s9 + $0x2c00] sm:$0xf]  ;;  %v1743_v9 = vld [vmem:[%s10414_s9 + $0x2c10] sm:$0xf] }
 0x539   : > { %8938 = vmatmul.f32.vlgmr.msra.gmra.mxu0 %v2261_v50  ;;  %8978 = vmatmul.f32.vlgmr.msra.gmra.mxu2 %v2263_v52  ;;  %v8059_v50 = vpop.f32.mrf.mxu0  ;;  %v324_v52 = vld [vmem:[%s10407_s7 + $0x290] sm:$0xff] }
 0x53a   : > { %9014 = vmatpush.xpose.msrb.mxu0 %v1732_v6  ;;  %9054 = vmatpush.xpose.msrb.mxu2 %v1734_v7  ;;  %2279 = vst [vmem:[#allocation1] ss:$4 sm:$0xff] %v324_v52  ;;  %v656_v6 = vld [vmem:[%s10414_s9 + $0xa18] sm:$0xff]  ;;  %v8119_v7 = vpop.f32.mrf.mxu3  ;;  %v8259_v52 = vpop.f32.mrf.mxu2 }
 0x53b   : > { %9034 = vmatpush.xpose.msrb.mxu1 %v1733_v12  ;;  %9074 = vmatpush.xpose.msrb.mxu3 %v1735_v13  ;;  %v1381_v12 = vld [vmem:[%s10414_s9 + $0x20c0] sm:$0xff]  ;;  %v2275_v13 = vld.sshfl [vmem:[#allocation1 + $0x20] sm:$0xff pattern:$0x73625140] }
 0x53c   : > { %8958 = vmatmul.f32.vlgmr.msra.gmra.mxu1 %v2262_v53  ;;  %8998 = vmatmul.f32.vlgmr.msra.gmra.mxu3 %v2264_v54  ;;  %v8040_v53 = vadd.f32 %v8039_v44, %v8020_v41  ;;  %v1376_v54 = vld [vmem:[%s10414_s9 + $0x2098] sm:$0xff]  ;;  %v1383_v41 = vld [vmem:[%s10414_s9 + $0x20d0] sm:$0xff] }
 0x53e   : > { %9015 = vmatpush.xpose.msrb.mxu0 %v1371_v14  ;;  %9055 = vmatpush.xpose.msrb.mxu2 %v1373_v15  ;;  %v8060_v56 = vadd.f32 %v8059_v50, %v8040_v53  ;;  %v2277_v15 = vld.sshfl [vmem:[#allocation1 + $0x30] sm:$0xff pattern:$0x73625140]  ;;  %v1384_v50 = vld [vmem:[%s10414_s9 + $0x20d8] sm:$0xff] }
 0x53f   : > { %9035 = vmatpush.xpose.msrb.mxu1 %v1372_v23  ;;  %9075 = vmatpush.xpose.msrb.mxu3 %v1374_v24  ;;  %v1018_v23 = vld [vmem:[%s10414_s9 + $0x1568] sm:$0xff]  ;;  %v1020_v24 = vld [vmem:[%s10414_s9 + $0x1578] sm:$0xff] }
 0x540   : > { %v8080_v63 = vadd.f32 %v8079_v59, %v8060_v56 }
 0x541   : > { %v8139_v10 = vpop.f32.mrf.mxu0 }
 0x542   : > { %9016 = vmatpush.xpose.msrb.mxu0 %v1010_v27  ;;  %9056 = vmatpush.xpose.msrb.mxu2 %v1012_v28  ;;  %v8100_v4 = vadd.f32 %v8099_v62, %v8080_v63  ;;  %v1019_v27 = vld [vmem:[%s10414_s9 + $0x1570] sm:$0xff]  ;;  %v1021_v28 = vld [vmem:[%s10414_s9 + $0x1580] sm:$0xff]  ;;  %v8199_v32 = vpop.f32.mrf.mxu3  ;;  %v1748_v63 = vld [vmem:[%s10414_s9 + $0x2c38] sm:$0xf] }
 0x543   : > { %9036 = vmatpush.xpose.msrb.mxu1 %v1011_v30  ;;  %9076 = vmatpush.xpose.msrb.mxu3 %v1013_v31  ;;  %v657_v30 = vld [vmem:[%s10414_s9 + $0xa20] sm:$0xff]  ;;  %v659_v31 = vld [vmem:[%s10414_s9 + $0xa30] sm:$0xff] }
 0x544   : > { %v8120_v14 = vadd.f32 %v8119_v7, %v8100_v4 }
 0x546   : > { %9017 = vmatpush.xpose.msrb.mxu0 %v649_v33  ;;  %9057 = vmatpush.xpose.msrb.mxu2 %v651_v34  ;;  %v1744_v33 = vld [vmem:[%s10414_s9 + $0x2c18] sm:$0xf]  ;;  %v1746_v34 = vld [vmem:[%s10414_s9 + $0x2c28] sm:$0xf] }
 0x547   : > { %9037 = vmatpush.xpose.msrb.mxu1 %v650_v39  ;;  %9077 = vmatpush.xpose.msrb.mxu3 %v652_v40  ;;  %v1745_v39 = vld [vmem:[%s10414_s9 + $0x2c20] sm:$0xf]  ;;  %v1747_v40 = vld [vmem:[%s10414_s9 + $0x2c30] sm:$0xf] }
 0x549   : > { %9018 = vmatmul.f32.vlgmr.msrb.gmra.mxu0 %v2265_v16  ;;  %9058 = vmatmul.f32.vlgmr.msrb.gmra.mxu2 %v2267_v18  ;;  %v2276_v16 = vld.sshfl [vmem:[#allocation1 + $0x28] sm:$0xff pattern:$0x73625140]  ;;  %v325_v18 = vld [vmem:[%s10407_s7 + $0x298] sm:$0xff] }
 0x54a   : > { %9094 = vmatpush.xpose.msra.mxu0 %v1736_v36  ;;  %9134 = vmatpush.xpose.msra.mxu2 %v1738_v37  ;;  %2280 = vst [vmem:[#allocation1 + $0x20] ss:$4 sm:$0xff] %v325_v18  ;;  %v660_v36 = vld [vmem:[%s10414_s9 + $0xa38] sm:$0xff]  ;;  %v8219_v37 = vpop.f32.mrf.mxu0  ;;  %v8279_v59 = vpop.f32.mrf.mxu3  ;;  %v1390_v18 = vld [vmem:[%s10414_s9 + $0x2108] sm:$0xff] }
 0x54b   : > { %9114 = vmatpush.xpose.msra.mxu1 %v1737_v42  ;;  %9154 = vmatpush.xpose.msra.mxu3 %v1739_v43  ;;  %v1385_v42 = vld [vmem:[%s10414_s9 + $0x20e0] sm:$0xff]  ;;  %v2281_v43 = vld.sshfl [vmem:[#allocation1] sm:$0xff pattern:$0x73625140] }
 0x54c   : > { %9038 = vmatmul.f32.vlgmr.msrb.gmra.mxu1 %v2266_v19  ;;  %9078 = vmatmul.f32.vlgmr.msrb.gmra.mxu3 %v2268_v21  ;;  %v8140_v19 = vadd.f32 %v8139_v10, %v8120_v14  ;;  %v1382_v21 = vld [vmem:[%s10414_s9 + $0x20c8] sm:$0xff] }
 0x54e   : > { %9095 = vmatpush.xpose.msra.mxu0 %v1375_v45  ;;  %9135 = vmatpush.xpose.msra.mxu2 %v1377_v46  ;;  %v8160_v26 = vadd.f32 %v8159_v22, %v8140_v19  ;;  %v2283_v45 = vld.sshfl [vmem:[#allocation1 + $0x10] sm:$0xff pattern:$0x73625140]  ;;  %v2282_v46 = vld.sshfl [vmem:[#allocation1 + $0x8] sm:$0xff pattern:$0x73625140] }
 0x54f   : > { %9115 = vmatpush.xpose.msra.mxu1 %v1376_v54  ;;  %9155 = vmatpush.xpose.msra.mxu3 %v1378_v55  ;;  %v1022_v54 = vld [vmem:[%s10414_s9 + $0x1588] sm:$0xff]  ;;  %v1024_v55 = vld [vmem:[%s10414_s9 + $0x1598] sm:$0xff] }
 0x550   : > { %v8180_v29 = vadd.f32 %v8179_v25, %v8160_v26 }
 0x551   : > { %v2285_v10 = vld.sshfl [vmem:[#allocation1 + $0x20] sm:$0xff pattern:$0x73625140]  ;;  %v2288_v14 = vld.sshfl [vmem:[#allocation1 + $0x38] sm:$0xff pattern:$0x73625140] }
 0x552   : > { %9096 = vmatpush.xpose.msra.mxu0 %v1014_v57  ;;  %9136 = vmatpush.xpose.msra.mxu2 %v1016_v58  ;;  %v8200_v38 = vadd.f32 %v8199_v32, %v8180_v29  ;;  %v1023_v57 = vld [vmem:[%s10414_s9 + $0x1590] sm:$0xff]  ;;  %v1025_v58 = vld [vmem:[%s10414_s9 + $0x15a0] sm:$0xff]  ;;  %v8299_v62 = vpop.f32.mrf.mxu0  ;;  %v8359_v22 = vpop.f32.mrf.mxu3  ;;  %v1752_v29 = vld [vmem:[%s10414_s9 + $0x2c58] sm:$0xf] }
 0x553   : > { %9116 = vmatpush.xpose.msra.mxu1 %v1015_v60  ;;  %9156 = vmatpush.xpose.msra.mxu3 %v1017_v61  ;;  %v661_v60 = vld [vmem:[%s10414_s9 + $0xa40] sm:$0xff]  ;;  %v663_v61 = vld [vmem:[%s10414_s9 + $0xa50] sm:$0xff]  ;;  %v666_v32 = vld [vmem:[%s10414_s9 + $0xa68] sm:$0xff] }
 0x554   : > { %v8220_v44 = vadd.f32 %v8219_v37, %v8200_v38  ;;  %v1391_v38 = vld [vmem:[%s10414_s9 + $0x2110] sm:$0xff] }
 0x556   : > { %9097 = vmatpush.xpose.msra.mxu0 %v653_v0  ;;  %9137 = vmatpush.xpose.msra.mxu2 %v655_v1  ;;  %v1750_v0 = vld [vmem:[%s10414_s9 + $0x2c48] sm:$0xf] }
 0x557   : > { %9117 = vmatpush.xpose.msra.mxu1 %v654_v5  ;;  %9157 = vmatpush.xpose.msra.mxu3 %v656_v6  ;;  %v1749_v5 = vld [vmem:[%s10414_s9 + $0x2c40] sm:$0xf]  ;;  %v1751_v6 = vld [vmem:[%s10414_s9 + $0x2c50] sm:$0xf] }
 0x559   : > { %9098 = vmatmul.f32.vlgmr.msra.gmra.mxu0 %v2271_v47  ;;  %9138 = vmatmul.f32.vlgmr.msra.gmra.mxu2 %v2273_v48  ;;  %v8239_v47 = vpop.f32.mrf.mxu1  ;;  %v2284_v48 = vld.sshfl [vmem:[#allocation1 + $0x18] sm:$0xff pattern:$0x73625140] }
 0x55a   : > { %9174 = vmatpush.xpose.msrb.mxu0 %v1740_v2  ;;  %9214 = vmatpush.xpose.msrb.mxu2 %v1742_v3  ;;  %v8240_v53 = vadd.f32 %v8239_v47, %v8220_v44  ;;  %v662_v2 = vld [vmem:[%s10414_s9 + $0xa48] sm:$0xff]  ;;  %v664_v3 = vld [vmem:[%s10414_s9 + $0xa58] sm:$0xff]  ;;  %v8379_v25 = vpop.f32.mrf.mxu0 }
 0x55b   : > { %9194 = vmatpush.xpose.msrb.mxu1 %v1741_v8  ;;  %9234 = vmatpush.xpose.msrb.mxu3 %v1743_v9  ;;  %v1387_v8 = vld [vmem:[%s10414_s9 + $0x20f0] sm:$0xff]  ;;  %v1389_v9 = vld [vmem:[%s10414_s9 + $0x2100] sm:$0xff]  ;;  %v1392_v47 = vld [vmem:[%s10414_s9 + $0x2118] sm:$0xff] }
 0x55c   : > { %9118 = vmatmul.f32.vlgmr.msra.gmra.mxu1 %v2272_v49  ;;  %9158 = vmatmul.f32.vlgmr.msra.gmra.mxu3 %v2274_v51  ;;  %v326_v49 = vld [vmem:[%s10407_s7 + $0x2a0] sm:$0xff]  ;;  %v8260_v56 = vadd.f32 %v8259_v52, %v8240_v53 }
 0x55d   : > { %v1386_v51 = vld [vmem:[%s10414_s9 + $0x20e8] sm:$0xff]  ;;  %2289 = vst [vmem:[#allocation1] ss:$4 sm:$0xff] %v326_v49  ;;  %v8439_v49 = vpop.f32.mrf.mxu3 }
 0x55e   : > { %9175 = vmatpush.xpose.msrb.mxu0 %v1379_v11  ;;  %9215 = vmatpush.xpose.msrb.mxu2 %v1381_v12  ;;  %v8280_v1 = vadd.f32 %v8279_v59, %v8260_v56  ;;  %v2287_v11 = vld.sshfl [vmem:[#allocation1 + $0x30] sm:$0xff pattern:$0x73625140]  ;;  %v2286_v12 = vld.sshfl [vmem:[#allocation1 + $0x28] sm:$0xff pattern:$0x73625140] }
 0x55f   : > { %9195 = vmatpush.xpose.msrb.mxu1 %v1380_v20  ;;  %9235 = vmatpush.xpose.msrb.mxu3 %v1382_v21  ;;  %v1026_v20 = vld [vmem:[%s10414_s9 + $0x15a8] sm:$0xff]  ;;  %v1028_v21 = vld [vmem:[%s10414_s9 + $0x15b8] sm:$0xff] }
 0x560   : > { %v8300_v4 = vadd.f32 %v8299_v62, %v8280_v1  ;;  %v670_v62 = vld [vmem:[%s10414_s9 + $0xa88] sm:$0xff] }
 0x561   : > { %v8319_v7 = vpop.f32.mrf.mxu1 }
 0x562   : > { %9176 = vmatpush.xpose.msrb.mxu0 %v1018_v23  ;;  %9216 = vmatpush.xpose.msrb.mxu2 %v1020_v24  ;;  %v1027_v23 = vld [vmem:[%s10414_s9 + $0x15b0] sm:$0xff]  ;;  %v1029_v24 = vld [vmem:[%s10414_s9 + $0x15c0] sm:$0xff]  ;;  %v8459_v52 = vpop.f32.mrf.mxu0 }
 0x563   : > { %9196 = vmatpush.xpose.msrb.mxu1 %v1019_v27  ;;  %9236 = vmatpush.xpose.msrb.mxu3 %v1021_v28  ;;  %v665_v27 = vld [vmem:[%s10414_s9 + $0xa60] sm:$0xff]  ;;  %v667_v28 = vld [vmem:[%s10414_s9 + $0xa70] sm:$0xff] }
 0x564   : > { %v2294_v44 = vld.sshfl [vmem:[#allocation1 + $0x18] sm:$0xff pattern:$0x73625140] }
 0x566   : > { %9177 = vmatpush.xpose.msrb.mxu0 %v657_v30  ;;  %9217 = vmatpush.xpose.msrb.mxu2 %v659_v31  ;;  %v1754_v30 = vld [vmem:[%s10414_s9 + $0x2c68] sm:$0xf] }
 0x567   : > { %9197 = vmatpush.xpose.msrb.mxu1 %v658_v35  ;;  %9237 = vmatpush.xpose.msrb.mxu3 %v660_v36  ;;  %v1753_v35 = vld [vmem:[%s10414_s9 + $0x2c60] sm:$0xf]  ;;  %v1755_v36 = vld [vmem:[%s10414_s9 + $0x2c70] sm:$0xf] }
 0x569   : > { %9178 = vmatmul.f32.vlgmr.msrb.gmra.mxu0 %v2275_v13  ;;  %9218 = vmatmul.f32.vlgmr.msrb.gmra.mxu2 %v2277_v15  ;;  %v8339_v13 = vpop.f32.mrf.mxu2  ;;  %v327_v15 = vld [vmem:[%s10407_s7 + $0x2a8] sm:$0xff] }
 0x56a   : > { %9254 = vmatpush.xpose.msra.mxu0 %v1744_v33  ;;  %9294 = vmatpush.xpose.msra.mxu2 %v1746_v34  ;;  %2290 = vst [vmem:[#allocation1 + $0x20] ss:$4 sm:$0xff] %v327_v15  ;;  %v668_v33 = vld [vmem:[%s10414_s9 + $0xa78] sm:$0xff]  ;;  %v8399_v34 = vpop.f32.mrf.mxu1  ;;  %v8539_v15 = vpop.f32.mrf.mxu0 }
 0x56b   : > { %9274 = vmatpush.xpose.msra.mxu1 %v1745_v39  ;;  %9314 = vmatpush.xpose.msra.mxu3 %v1747_v40  ;;  %v1393_v39 = vld [vmem:[%s10414_s9 + $0x2120] sm:$0xff]  ;;  %v2291_v40 = vld.sshfl [vmem:[#allocation1] sm:$0xff pattern:$0x73625140] }
 0x56c   : > { %9198 = vmatmul.f32.vlgmr.msrb.gmra.mxu1 %v2276_v16  ;;  %9238 = vmatmul.f32.vlgmr.msrb.gmra.mxu3 %v2278_v17  ;;  %v8320_v16 = vadd.f32 %v8319_v7, %v8300_v4  ;;  %v1388_v17 = vld [vmem:[%s10414_s9 + $0x20f8] sm:$0xff]  ;;  %v1395_v4 = vld [vmem:[%s10414_s9 + $0x2130] sm:$0xff] }
 0x56e   : > { %9255 = vmatpush.xpose.msra.mxu0 %v1383_v41  ;;  %9295 = vmatpush.xpose.msra.mxu2 %v1385_v42  ;;  %v8340_v19 = vadd.f32 %v8339_v13, %v8320_v16  ;;  %v2293_v42 = vld.sshfl [vmem:[#allocation1 + $0x10] sm:$0xff pattern:$0x73625140]  ;;  %v1396_v13 = vld [vmem:[%s10414_s9 + $0x2138] sm:$0xff] }
 0x56f   : > { %9275 = vmatpush.xpose.msra.mxu1 %v1384_v50  ;;  %9315 = vmatpush.xpose.msra.mxu3 %v1386_v51  ;;  %v1030_v50 = vld [vmem:[%s10414_s9 + $0x15c8] sm:$0xff]  ;;  %v1032_v51 = vld [vmem:[%s10414_s9 + $0x15d8] sm:$0xff] }
 0x570   : > { %v8360_v26 = vadd.f32 %v8359_v22, %v8340_v19 }
 0x571   : > { %v8419_v37 = vpop.f32.mrf.mxu2 }
 0x572   : > { %9256 = vmatpush.xpose.msra.mxu0 %v1022_v54  ;;  %9296 = vmatpush.xpose.msra.mxu2 %v1024_v55  ;;  %v8380_v31 = vadd.f32 %v8379_v25, %v8360_v26  ;;  %v1031_v54 = vld [vmem:[%s10414_s9 + $0x15d0] sm:$0xff]  ;;  %v1033_v55 = vld [vmem:[%s10414_s9 + $0x15e0] sm:$0xff]  ;;  %v8479_v59 = vpop.f32.mrf.mxu1  ;;  %v1760_v26 = vld [vmem:[%s10414_s9 + $0x2c98] sm:$0xf] }
 0x573   : > { %9276 = vmatpush.xpose.msra.mxu1 %v1023_v57  ;;  %9316 = vmatpush.xpose.msra.mxu3 %v1025_v58  ;;  %v669_v57 = vld [vmem:[%s10414_s9 + $0xa80] sm:$0xff]  ;;  %v671_v58 = vld [vmem:[%s10414_s9 + $0xa90] sm:$0xff] }
 0x574   : > { %v8400_v41 = vadd.f32 %v8399_v34, %v8380_v31 }
 0x576   : > { %9257 = vmatpush.xpose.msra.mxu0 %v661_v60  ;;  %9297 = vmatpush.xpose.msra.mxu2 %v663_v61  ;;  %v1756_v60 = vld [vmem:[%s10414_s9 + $0x2c78] sm:$0xf]  ;;  %v1758_v61 = vld [vmem:[%s10414_s9 + $0x2c88] sm:$0xf] }
 0x577   : > { %9277 = vmatpush.xpose.msra.mxu1 %v662_v2  ;;  %9317 = vmatpush.xpose.msra.mxu3 %v664_v3  ;;  %v1757_v2 = vld [vmem:[%s10414_s9 + $0x2c80] sm:$0xf]  ;;  %v1759_v3 = vld [vmem:[%s10414_s9 + $0x2c90] sm:$0xf] }
 0x579   : > { %9258 = vmatmul.f32.vlgmr.msra.gmra.mxu0 %v2281_v43  ;;  %9298 = vmatmul.f32.vlgmr.msra.gmra.mxu2 %v2283_v45  ;;  %v2292_v43 = vld.sshfl [vmem:[#allocation1 + $0x8] sm:$0xff pattern:$0x73625140] }
 0x57a   : > { %9334 = vmatpush.xpose.msrb.mxu0 %v1748_v63  ;;  %9374 = vmatpush.xpose.msrb.mxu2 %v1750_v0  ;;  %v328_v45 = vld [vmem:[%s10407_s7 + $0x2b0] sm:$0xff]  ;;  %v8499_v0 = vpop.f32.mrf.mxu2  ;;  %v8559_v22 = vpop.f32.mrf.mxu1 }
 0x57b   : > { %9354 = vmatpush.xpose.msrb.mxu1 %v1749_v5  ;;  %9394 = vmatpush.xpose.msrb.mxu3 %v1751_v6  ;;  %2299 = vst [vmem:[#allocation1] ss:$4 sm:$0xff] %v328_v45  ;;  %v672_v63 = vld [vmem:[%s10414_s9 + $0xa98] sm:$0xff]  ;;  %v1397_v5 = vld [vmem:[%s10414_s9 + $0x2140] sm:$0xff]  ;;  %v1402_v45 = vld [vmem:[%s10414_s9 + $0x2168] sm:$0xff] }
 0x57c   : > { %9278 = vmatmul.f32.vlgmr.msra.gmra.mxu1 %v2282_v46  ;;  %9318 = vmatmul.f32.vlgmr.msra.gmra.mxu3 %v2284_v48  ;;  %v8420_v46 = vadd.f32 %v8419_v37, %v8400_v41  ;;  %v1394_v48 = vld [vmem:[%s10414_s9 + $0x2128] sm:$0xff]  ;;  %v2295_v6 = vld.sshfl [vmem:[#allocation1 + $0x20] sm:$0xff pattern:$0x73625140] }
 0x57e   : > { %9335 = vmatpush.xpose.msrb.mxu0 %v1387_v8  ;;  %9375 = vmatpush.xpose.msrb.mxu2 %v1389_v9  ;;  %v8440_v53 = vadd.f32 %v8439_v49, %v8420_v46  ;;  %v2297_v8 = vld.sshfl [vmem:[#allocation1 + $0x30] sm:$0xff pattern:$0x73625140]  ;;  %v2296_v9 = vld.sshfl [vmem:[#allocation1 + $0x28] sm:$0xff pattern:$0x73625140] }
 0x57f   : > { %9355 = vmatpush.xpose.msrb.mxu1 %v1388_v17  ;;  %9395 = vmatpush.xpose.msrb.mxu3 %v1390_v18  ;;  %v1034_v17 = vld [vmem:[%s10414_s9 + $0x15e8] sm:$0xff]  ;;  %v1036_v18 = vld [vmem:[%s10414_s9 + $0x15f8] sm:$0xff] }
 0x580   : > { %v8460_v56 = vadd.f32 %v8459_v52, %v8440_v53 }
 0x582   : > { %9336 = vmatpush.xpose.msrb.mxu0 %v1026_v20  ;;  %9376 = vmatpush.xpose.msrb.mxu2 %v1028_v21  ;;  %v8480_v1 = vadd.f32 %v8479_v59, %v8460_v56  ;;  %v1035_v20 = vld [vmem:[%s10414_s9 + $0x15f0] sm:$0xff]  ;;  %v1037_v21 = vld [vmem:[%s10414_s9 + $0x1600] sm:$0xff]  ;;  %v8579_v25 = vpop.f32.mrf.mxu2  ;;  %v8639_v49 = vpop.f32.mrf.mxu1  ;;  %v1764_v56 = vld [vmem:[%s10414_s9 + $0x2cb8] sm:$0xf] }
 0x583   : > { %9356 = vmatpush.xpose.msrb.mxu1 %v1027_v23  ;;  %9396 = vmatpush.xpose.msrb.mxu3 %v1029_v24  ;;  %v673_v23 = vld [vmem:[%s10414_s9 + $0xaa0] sm:$0xff]  ;;  %v675_v24 = vld [vmem:[%s10414_s9 + $0xab0] sm:$0xff]  ;;  %v678_v59 = vld [vmem:[%s10414_s9 + $0xac8] sm:$0xff] }
 0x584   : > { %v8500_v7 = vadd.f32 %v8499_v0, %v8480_v1  ;;  %v2301_v37 = vld.sshfl [vmem:[#allocation1] sm:$0xff pattern:$0x73625140]  ;;  %v2304_v41 = vld.sshfl [vmem:[#allocation1 + $0x18] sm:$0xff pattern:$0x73625140] }
 0x585   : > { %v1403_v1 = vld [vmem:[%s10414_s9 + $0x2170] sm:$0xff] }
 0x586   : > { %9337 = vmatpush.xpose.msrb.mxu0 %v665_v27  ;;  %9377 = vmatpush.xpose.msrb.mxu2 %v667_v28  ;;  %v1762_v27 = vld [vmem:[%s10414_s9 + $0x2ca8] sm:$0xf] }
 0x587   : > { %9357 = vmatpush.xpose.msrb.mxu1 %v666_v32  ;;  %9397 = vmatpush.xpose.msrb.mxu3 %v668_v33  ;;  %v1761_v32 = vld [vmem:[%s10414_s9 + $0x2ca0] sm:$0xf]  ;;  %v1763_v33 = vld [vmem:[%s10414_s9 + $0x2cb0] sm:$0xf] }
 0x589   : > { %9338 = vmatmul.f32.vlgmr.msrb.gmra.mxu0 %v2285_v10  ;;  %9378 = vmatmul.f32.vlgmr.msrb.gmra.mxu2 %v2287_v11  ;;  %v8519_v10 = vpop.f32.mrf.mxu3  ;;  %v2298_v11 = vld.sshfl [vmem:[#allocation1 + $0x38] sm:$0xff pattern:$0x73625140] }
 0x58a   : > { %9414 = vmatpush.xpose.msra.mxu0 %v1752_v29  ;;  %9454 = vmatpush.xpose.msra.mxu2 %v1754_v30  ;;  %v8520_v16 = vadd.f32 %v8519_v10, %v8500_v7  ;;  %v674_v29 = vld [vmem:[%s10414_s9 + $0xaa8] sm:$0xff]  ;;  %v676_v30 = vld [vmem:[%s10414_s9 + $0xab8] sm:$0xff]  ;;  %v8659_v52 = vpop.f32.mrf.mxu2 }
 0x58b   : > { %9434 = vmatpush.xpose.msra.mxu1 %v1753_v35  ;;  %9474 = vmatpush.xpose.msra.mxu3 %v1755_v36  ;;  %v1399_v35 = vld [vmem:[%s10414_s9 + $0x2150] sm:$0xff]  ;;  %v1401_v36 = vld [vmem:[%s10414_s9 + $0x2160] sm:$0xff]  ;;  %v1404_v10 = vld [vmem:[%s10414_s9 + $0x2178] sm:$0xff] }
 0x58c   : > { %9358 = vmatmul.f32.vlgmr.msrb.gmra.mxu1 %v2286_v12  ;;  %9398 = vmatmul.f32.vlgmr.msrb.gmra.mxu3 %v2288_v14  ;;  %v329_v12 = vld [vmem:[%s10407_s7 + $0x2b8] sm:$0xff]  ;;  %v8540_v19 = vadd.f32 %v8539_v15, %v8520_v16 }
 0x58d   : > { %v1398_v14 = vld [vmem:[%s10414_s9 + $0x2148] sm:$0xff]  ;;  %2300 = vst [vmem:[#allocation1 + $0x20] ss:$4 sm:$0xff] %v329_v12  ;;  %v8719_v12 = vpop.f32.mrf.mxu1 }
 0x58e   : > { %9415 = vmatpush.xpose.msra.mxu0 %v1391_v38  ;;  %9455 = vmatpush.xpose.msra.mxu2 %v1393_v39  ;;  %v8560_v28 = vadd.f32 %v8559_v22, %v8540_v19  ;;  %v2303_v38 = vld.sshfl [vmem:[#allocation1 + $0x10] sm:$0xff pattern:$0x73625140]  ;;  %v2302_v39 = vld.sshfl [vmem:[#allocation1 + $0x8] sm:$0xff pattern:$0x73625140] }
 0x58f   : > { %9435 = vmatpush.xpose.msra.mxu1 %v1392_v47  ;;  %9475 = vmatpush.xpose.msra.mxu3 %v1394_v48  ;;  %v1038_v47 = vld [vmem:[%s10414_s9 + $0x1608] sm:$0xff]  ;;  %v1040_v48 = vld [vmem:[%s10414_s9 + $0x1618] sm:$0xff] }
 0x590   : > { %v8580_v31 = vadd.f32 %v8579_v25, %v8560_v28  ;;  %v682_v25 = vld [vmem:[%s10414_s9 + $0xae8] sm:$0xff] }
 0x591   : > { %v8599_v34 = vpop.f32.mrf.mxu3 }
 0x592   : > { %9416 = vmatpush.xpose.msra.mxu0 %v1030_v50  ;;  %9456 = vmatpush.xpose.msra.mxu2 %v1032_v51  ;;  %v1039_v50 = vld [vmem:[%s10414_s9 + $0x1610] sm:$0xff]  ;;  %v1041_v51 = vld [vmem:[%s10414_s9 + $0x1620] sm:$0xff]  ;;  %v8739_v15 = vpop.f32.mrf.mxu2 }
 0x593   : > { %9436 = vmatpush.xpose.msra.mxu1 %v1031_v54  ;;  %9476 = vmatpush.xpose.msra.mxu3 %v1033_v55  ;;  %v677_v54 = vld [vmem:[%s10414_s9 + $0xac0] sm:$0xff]  ;;  %v679_v55 = vld [vmem:[%s10414_s9 + $0xad0] sm:$0xff] }
 0x594   : > { %v2308_v7 = vld.sshfl [vmem:[#allocation1 + $0x38] sm:$0xff pattern:$0x73625140] }
 0x596   : > { %9417 = vmatpush.xpose.msra.mxu0 %v669_v57  ;;  %9457 = vmatpush.xpose.msra.mxu2 %v671_v58  ;;  %v1766_v57 = vld [vmem:[%s10414_s9 + $0x2cc8] sm:$0xf] }
 0x597   : > { %9437 = vmatpush.xpose.msra.mxu1 %v670_v62  ;;  %9477 = vmatpush.xpose.msra.mxu3 %v672_v63  ;;  %v1765_v62 = vld [vmem:[%s10414_s9 + $0x2cc0] sm:$0xf]  ;;  %v1767_v63 = vld [vmem:[%s10414_s9 + $0x2cd0] sm:$0xf] }
 0x599   : > { %9418 = vmatmul.f32.vlgmr.msra.gmra.mxu0 %v2291_v40  ;;  %9458 = vmatmul.f32.vlgmr.msra.gmra.mxu2 %v2293_v42  ;;  %v8619_v40 = vpop.f32.mrf.mxu0  ;;  %v330_v42 = vld [vmem:[%s10407_s7 + $0x2c0] sm:$0xff] }
 0x59a   : > { %9494 = vmatpush.xpose.msrb.mxu0 %v1756_v60  ;;  %9534 = vmatpush.xpose.msrb.mxu2 %v1758_v61  ;;  %2309 = vst [vmem:[#allocation1] ss:$4 sm:$0xff] %v330_v42  ;;  %v680_v60 = vld [vmem:[%s10414_s9 + $0xad8] sm:$0xff]  ;;  %v8679_v61 = vpop.f32.mrf.mxu3 }
 0x59b   : > { %9514 = vmatpush.xpose.msrb.mxu1 %v1757_v2  ;;  %9554 = vmatpush.xpose.msrb.mxu3 %v1759_v3  ;;  %v1405_v2 = vld [vmem:[%s10414_s9 + $0x2180] sm:$0xff]  ;;  %v2305_v3 = vld.sshfl [vmem:[#allocation1 + $0x20] sm:$0xff pattern:$0x73625140] }
 0x59c   : > { %9438 = vmatmul.f32.vlgmr.msra.gmra.mxu1 %v2292_v43  ;;  %9478 = vmatmul.f32.vlgmr.msra.gmra.mxu3 %v2294_v44  ;;  %v8600_v43 = vadd.f32 %v8599_v34, %v8580_v31  ;;  %v1400_v44 = vld [vmem:[%s10414_s9 + $0x2158] sm:$0xff]  ;;  %v1407_v31 = vld [vmem:[%s10414_s9 + $0x2190] sm:$0xff]  ;;  %v8819_v42 = vpop.f32.mrf.mxu2 }
 0x59e   : > { %9495 = vmatpush.xpose.msrb.mxu0 %v1395_v4  ;;  %9535 = vmatpush.xpose.msrb.mxu2 %v1397_v5  ;;  %v8620_v46 = vadd.f32 %v8619_v40, %v8600_v43  ;;  %v2307_v5 = vld.sshfl [vmem:[#allocation1 + $0x30] sm:$0xff pattern:$0x73625140]  ;;  %v1408_v40 = vld [vmem:[%s10414_s9 + $0x2198] sm:$0xff] }
 0x59f   : > { %9515 = vmatpush.xpose.msrb.mxu1 %v1396_v13  ;;  %9555 = vmatpush.xpose.msrb.mxu3 %v1398_v14  ;;  %v1042_v13 = vld [vmem:[%s10414_s9 + $0x1628] sm:$0xff]  ;;  %v1044_v14 = vld [vmem:[%s10414_s9 + $0x1638] sm:$0xff] }
 0x5a0   : > { %v8640_v53 = vadd.f32 %v8639_v49, %v8620_v46 }
 0x5a1   : > { %v8699_v0 = vpop.f32.mrf.mxu0 }
 0x5a2   : > { %9496 = vmatpush.xpose.msrb.mxu0 %v1034_v17  ;;  %9536 = vmatpush.xpose.msrb.mxu2 %v1036_v18  ;;  %v8660_v58 = vadd.f32 %v8659_v52, %v8640_v53  ;;  %v1043_v17 = vld [vmem:[%s10414_s9 + $0x1630] sm:$0xff]  ;;  %v1045_v18 = vld [vmem:[%s10414_s9 + $0x1640] sm:$0xff]  ;;  %v8759_v22 = vpop.f32.mrf.mxu3  ;;  %v1772_v53 = vld [vmem:[%s10414_s9 + $0x2cf8] sm:$0xf] }
 0x5a3   : > { %9516 = vmatpush.xpose.msrb.mxu1 %v1035_v20  ;;  %9556 = vmatpush.xpose.msrb.mxu3 %v1037_v21  ;;  %v681_v20 = vld [vmem:[%s10414_s9 + $0xae0] sm:$0xff]  ;;  %v683_v21 = vld [vmem:[%s10414_s9 + $0xaf0] sm:$0xff] }
 0x5a4   : > { %v8680_v4 = vadd.f32 %v8679_v61, %v8660_v58 }
 0x5a6   : > { %9497 = vmatpush.xpose.msrb.mxu0 %v673_v23  ;;  %9537 = vmatpush.xpose.msrb.mxu2 %v675_v24  ;;  %v1768_v23 = vld [vmem:[%s10414_s9 + $0x2cd8] sm:$0xf]  ;;  %v1770_v24 = vld [vmem:[%s10414_s9 + $0x2ce8] sm:$0xf] }
 0x5a7   : > { %9517 = vmatpush.xpose.msrb.mxu1 %v674_v29  ;;  %9557 = vmatpush.xpose.msrb.mxu3 %v676_v30  ;;  %v1769_v29 = vld [vmem:[%s10414_s9 + $0x2ce0] sm:$0xf]  ;;  %v1771_v30 = vld [vmem:[%s10414_s9 + $0x2cf0] sm:$0xf] }
 0x5a9   : > { %9498 = vmatmul.f32.vlgmr.msrb.gmra.mxu0 %v2295_v6  ;;  %9538 = vmatmul.f32.vlgmr.msrb.gmra.mxu2 %v2297_v8  ;;  %v2306_v6 = vld.sshfl [vmem:[#allocation1 + $0x28] sm:$0xff pattern:$0x73625140] }
 0x5aa   : > { %9574 = vmatpush.xpose.msra.mxu0 %v1760_v26  ;;  %9614 = vmatpush.xpose.msra.mxu2 %v1762_v27  ;;  %v331_v8 = vld [vmem:[%s10407_s7 + $0x2c8] sm:$0xff]  ;;  %v8779_v27 = vpop.f32.mrf.mxu0  ;;  %v8839_v49 = vpop.f32.mrf.mxu3 }
 0x5ab   : > { %9594 = vmatpush.xpose.msra.mxu1 %v1761_v32  ;;  %9634 = vmatpush.xpose.msra.mxu3 %v1763_v33  ;;  %2310 = vst [vmem:[#allocation1 + $0x20] ss:$4 sm:$0xff] %v331_v8  ;;  %v684_v26 = vld [vmem:[%s10414_s9 + $0xaf8] sm:$0xff]  ;;  %v1409_v32 = vld [vmem:[%s10414_s9 + $0x21a0] sm:$0xff]  ;;  %v1051_v8 = vld [vmem:[%s10414_s9 + $0x1670] sm:$0xff] }
 0x5ac   : > { %9518 = vmatmul.f32.vlgmr.msrb.gmra.mxu1 %v2296_v9  ;;  %9558 = vmatmul.f32.vlgmr.msrb.gmra.mxu3 %v2298_v11  ;;  %v8700_v9 = vadd.f32 %v8699_v0, %v8680_v4  ;;  %v1406_v11 = vld [vmem:[%s10414_s9 + $0x2188] sm:$0xff]  ;;  %v2311_v33 = vld.sshfl [vmem:[#allocation1] sm:$0xff pattern:$0x73625140]  ;;  %v8899_v0 = vpop.f32.mrf.mxu2 }
 0x5ae   : > { %9575 = vmatpush.xpose.msra.mxu0 %v1399_v35  ;;  %9615 = vmatpush.xpose.msra.mxu2 %v1401_v36  ;;  %v8720_v16 = vadd.f32 %v8719_v12, %v8700_v9  ;;  %v2313_v35 = vld.sshfl [vmem:[#allocation1 + $0x10] sm:$0xff pattern:$0x73625140]  ;;  %v2312_v36 = vld.sshfl [vmem:[#allocation1 + $0x8] sm:$0xff pattern:$0x73625140] }
 0x5af   : > { %9595 = vmatpush.xpose.msra.mxu1 %v1400_v44  ;;  %9635 = vmatpush.xpose.msra.mxu3 %v1402_v45  ;;  %v1046_v44 = vld [vmem:[%s10414_s9 + $0x1648] sm:$0xff]  ;;  %v1048_v45 = vld [vmem:[%s10414_s9 + $0x1658] sm:$0xff]  ;;  %v1053_v9 = vld [vmem:[%s10414_s9 + $0x1680] sm:$0xff] }
 0x5b0   : > { %v8740_v19 = vadd.f32 %v8739_v15, %v8720_v16  ;;  %v689_v12 = vld [vmem:[%s10414_s9 + $0xb20] sm:$0xff]  ;;  %v690_v16 = vld [vmem:[%s10414_s9 + $0xb28] sm:$0xff] }
 0x5b2   : > { %9576 = vmatpush.xpose.msra.mxu0 %v1038_v47  ;;  %9616 = vmatpush.xpose.msra.mxu2 %v1040_v48  ;;  %v8760_v28 = vadd.f32 %v8759_v22, %v8740_v19  ;;  %v1047_v47 = vld [vmem:[%s10414_s9 + $0x1650] sm:$0xff]  ;;  %v1049_v48 = vld [vmem:[%s10414_s9 + $0x1660] sm:$0xff]  ;;  %v8859_v52 = vpop.f32.mrf.mxu0 }
 0x5b3   : > { %9596 = vmatpush.xpose.msra.mxu1 %v1039_v50  ;;  %9636 = vmatpush.xpose.msra.mxu3 %v1041_v51  ;;  %v685_v50 = vld [vmem:[%s10414_s9 + $0xb00] sm:$0xff]  ;;  %v687_v51 = vld [vmem:[%s10414_s9 + $0xb10] sm:$0xff] }
 0x5b4   : > { %v8780_v34 = vadd.f32 %v8779_v27, %v8760_v28  ;;  %v2315_v19 = vld.sshfl [vmem:[#allocation1 + $0x20] sm:$0xff pattern:$0x73625140]  ;;  %v2316_v22 = vld.sshfl [vmem:[#allocation1 + $0x28] sm:$0xff pattern:$0x73625140] }
 0x5b5   : > { %v1054_v28 = vld [vmem:[%s10414_s9 + $0x1688] sm:$0xff] }
 0x5b6   : > { %9577 = vmatpush.xpose.msra.mxu0 %v677_v54  ;;  %9617 = vmatpush.xpose.msra.mxu2 %v679_v55  ;;  %v1774_v54 = vld [vmem:[%s10414_s9 + $0x2d08] sm:$0xf] }
 0x5b7   : > { %9597 = vmatpush.xpose.msra.mxu1 %v678_v59  ;;  %9637 = vmatpush.xpose.msra.mxu3 %v680_v60  ;;  %v1773_v59 = vld [vmem:[%s10414_s9 + $0x2d00] sm:$0xf]  ;;  %v1775_v60 = vld [vmem:[%s10414_s9 + $0x2d10] sm:$0xf] }
 0x5b9   : > { %9578 = vmatmul.f32.vlgmr.msra.gmra.mxu0 %v2301_v37  ;;  %9618 = vmatmul.f32.vlgmr.msra.gmra.mxu2 %v2303_v38  ;;  %v8799_v37 = vpop.f32.mrf.mxu1  ;;  %v2314_v38 = vld.sshfl [vmem:[#allocation1 + $0x18] sm:$0xff pattern:$0x73625140] }
 0x5ba   : > { %9654 = vmatpush.xpose.msrb.mxu0 %v1764_v56  ;;  %9694 = vmatpush.xpose.msrb.mxu2 %v1766_v57  ;;  %v8800_v43 = vadd.f32 %v8799_v37, %v8780_v34  ;;  %v686_v56 = vld [vmem:[%s10414_s9 + $0xb08] sm:$0xff]  ;;  %v688_v57 = vld [vmem:[%s10414_s9 + $0xb18] sm:$0xff] }
 0x5bb   : > { %9674 = vmatpush.xpose.msrb.mxu1 %v1765_v62  ;;  %9714 = vmatpush.xpose.msrb.mxu3 %v1767_v63  ;;  %v1411_v62 = vld [vmem:[%s10414_s9 + $0x21b0] sm:$0xff]  ;;  %v1413_v63 = vld [vmem:[%s10414_s9 + $0x21c0] sm:$0xff] }
 0x5bc   : > { %9598 = vmatmul.f32.vlgmr.msra.gmra.mxu1 %v2302_v39  ;;  %9638 = vmatmul.f32.vlgmr.msra.gmra.mxu3 %v2304_v41  ;;  %v332_v39 = vld [vmem:[%s10407_s7 + $0x2d0] sm:$0x3]  ;;  %v8820_v46 = vadd.f32 %v8819_v42, %v8800_v43 }
 0x5bd   : > { %v1410_v41 = vld [vmem:[%s10414_s9 + $0x21a8] sm:$0xff]  ;;  %2319 = vst [vmem:[#allocation1] ss:$4 sm:$0xff] %v332_v39 }
 0x5be   : > { %9655 = vmatpush.xpose.msrb.mxu0 %v1403_v1  ;;  %9695 = vmatpush.xpose.msrb.mxu2 %v1405_v2  ;;  %v8840_v55 = vadd.f32 %v8839_v49, %v8820_v46  ;;  %v1412_v2 = vld [vmem:[%s10414_s9 + $0x21b8] sm:$0xff] }
 0x5bf   : > { %9675 = vmatpush.xpose.msrb.mxu1 %v1404_v10  ;;  %9715 = vmatpush.xpose.msrb.mxu3 %v1406_v11  ;;  %v8939_v10 = vpop.f32.mrf.mxu0 }
 0x5c0   : > { %v8860_v58 = vadd.f32 %v8859_v52, %v8840_v55 }
 0x5c1   : > { %v8879_v61 = vpop.f32.mrf.mxu1 }
 0x5c2   : > { %9656 = vmatpush.xpose.msrb.mxu0 %v1042_v13  ;;  %9696 = vmatpush.xpose.msrb.mxu2 %v1044_v14  ;;  %v8880_v1 = vadd.f32 %v8879_v61, %v8860_v58  ;;  %v691_v13 = vld [vmem:[%s10414_s9 + $0xb30] sm:$0xff]  ;;  %v1776_v14 = vld [vmem:[%s10414_s9 + $0x2d18] sm:$0xf] }
 0x5c3   : > { %9676 = vmatpush.xpose.msrb.mxu1 %v1043_v17  ;;  %9716 = vmatpush.xpose.msrb.mxu3 %v1045_v18  ;;  %v692_v17 = vld [vmem:[%s10414_s9 + $0xb38] sm:$0xff] }
 0x5c4   : > { %v8900_v4 = vadd.f32 %v8899_v0, %v8880_v1 }
 0x5c6   : > { %9657 = vmatpush.xpose.msrb.mxu0 %v681_v20  ;;  %9697 = vmatpush.xpose.msrb.mxu2 %v683_v21  ;;  %v2317_v20 = vld.sshfl [vmem:[#allocation1 + $0x30] sm:$0xff pattern:$0x73625140]  ;;  %v8979_v21 = vpop.f32.mrf.mxu2 }
 0x5c7   : > { %9677 = vmatpush.xpose.msrb.mxu1 %v682_v25  ;;  %9717 = vmatpush.xpose.msrb.mxu3 %v684_v26  ;;  %v1415_v25 = vld [vmem:[%s10414_s9 + $0x21d0] sm:$0xff] }
 0x5c9   : > { %9658 = vmatmul.f32.vlgmr.msrb.gmra.mxu0 %v2305_v3  ;;  %9698 = vmatmul.f32.vlgmr.msrb.gmra.mxu2 %v2307_v5  ;;  %v1414_v3 = vld [vmem:[%s10414_s9 + $0x21c8] sm:$0xff]  ;;  %v8959_v18 = vpop.f32.mrf.mxu1 }
 0x5ca   : > { %9734 = vmatpush.xpose.msra.mxu0 %v1768_v23  ;;  %9774 = vmatpush.xpose.msra.mxu2 %v1770_v24  ;;  %v1050_v5 = vld [vmem:[%s10414_s9 + $0x1668] sm:$0xff] }
 0x5cb   : > { %9754 = vmatpush.xpose.msra.mxu1 %v1769_v29  ;;  %9794 = vmatpush.xpose.msra.mxu3 %v1771_v30  ;;  %v2318_v23 = vld.sshfl [vmem:[#allocation1 + $0x38] sm:$0xff pattern:$0x73625140]  ;;  %v9019_v29 = vpop.f32.mrf.mxu0 }
 0x5cc   : > { %9678 = vmatmul.f32.vlgmr.msrb.gmra.mxu1 %v2306_v6  ;;  %9718 = vmatmul.f32.vlgmr.msrb.gmra.mxu3 %v2308_v7  ;;  %v1052_v6 = vld [vmem:[%s10414_s9 + $0x1678] sm:$0xff]  ;;  %v8919_v7 = vpop.f32.mrf.mxu3 }
 0x5cd   : > { %v8920_v11 = vadd.f32 %v8919_v7, %v8900_v4 }
 0x5ce   : > { %9735 = vmatpush.xpose.msra.mxu0 %v1407_v31  ;;  %9775 = vmatpush.xpose.msra.mxu2 %v1409_v32  ;;  %v693_v32 = vld [vmem:[%s10414_s9 + $0xb40] sm:$0xff]  ;;  %v9059_v34 = vpop.f32.mrf.mxu2 }
 0x5cf   : > { %9755 = vmatpush.xpose.msra.mxu1 %v1408_v40  ;;  %9795 = vmatpush.xpose.msra.mxu3 %v1410_v41  ;;  %v8940_v15 = vadd.f32 %v8939_v10, %v8920_v11 }
 0x5d1   : > { %v8960_v24 = vadd.f32 %v8959_v18, %v8940_v15 }
 0x5d2   : > { %9736 = vmatpush.xpose.msra.mxu0 %v1046_v44  ;;  %9776 = vmatpush.xpose.msra.mxu2 %v1048_v45 }
 0x5d3   : > { %9756 = vmatpush.xpose.msra.mxu1 %v1047_v47  ;;  %9796 = vmatpush.xpose.msra.mxu3 %v1049_v48  ;;  %v8980_v26 = vadd.f32 %v8979_v21, %v8960_v24 }
 0x5d4   : > { %v8999_v27 = vpop.f32.mrf.mxu3 }
 0x5d5   : > { %v9000_v30 = vadd.f32 %v8999_v27, %v8980_v26 }
 0x5d6   : > { %9737 = vmatpush.xpose.msra.mxu0 %v685_v50  ;;  %9777 = vmatpush.xpose.msra.mxu2 %v687_v51  ;;  %v9099_v39 = vpop.f32.mrf.mxu0 }
 0x5d7   : > { %9757 = vmatpush.xpose.msra.mxu1 %v686_v56  ;;  %9797 = vmatpush.xpose.msra.mxu3 %v688_v57  ;;  %v9020_v31 = vadd.f32 %v9019_v29, %v9000_v30 }
 0x5d9   : > { %9738 = vmatmul.f32.vlgmr.msra.gmra.mxu0 %v2311_v33  ;;  %9778 = vmatmul.f32.vlgmr.msra.gmra.mxu2 %v2313_v35  ;;  %v9039_v33 = vpop.f32.mrf.mxu1  ;;  %v2320_v35 = vld.sshfl [vmem:[#allocation1] sm:$0xff pattern:$0x73625140] }
 0x5da   : > { %9814 = vmatpush.xpose.msrb.mxu0 %v1772_v53  ;;  %9854 = vmatpush.xpose.msrb.mxu2 %v1774_v54 }
 0x5db   : > { %9834 = vmatpush.xpose.msrb.mxu1 %v1773_v59  ;;  %9874 = vmatpush.xpose.msrb.mxu3 %v1775_v60 }
 0x5dc   : > { %9758 = vmatmul.f32.vlgmr.msra.gmra.mxu1 %v2312_v36  ;;  %9798 = vmatmul.f32.vlgmr.msra.gmra.mxu3 %v2314_v38  ;;  %v9040_v36 = vadd.f32 %v9039_v33, %v9020_v31  ;;  %v9079_v38 = vpop.f32.mrf.mxu3  ;;  %v9139_v43 = vpop.f32.mrf.mxu2 }
 0x5de   : > { %9815 = vmatpush.xpose.msrb.mxu0 %v1411_v62  ;;  %9855 = vmatpush.xpose.msrb.mxu2 %v1413_v63  ;;  %v9060_v37 = vadd.f32 %v9059_v34, %v9040_v36 }
 0x5df   : > { %9835 = vmatpush.xpose.msrb.mxu1 %v1412_v2  ;;  %9875 = vmatpush.xpose.msrb.mxu3 %v1414_v3 }
 0x5e0   : > { %v9080_v40 = vadd.f32 %v9079_v38, %v9060_v37 }
 0x5e1   : > { %v9119_v42 = vpop.f32.mrf.mxu1 }
 0x5e2   : > { %9816 = vmatpush.xpose.msrb.mxu0 %v1050_v5  ;;  %9856 = vmatpush.xpose.msrb.mxu2 %v1052_v6  ;;  %v9100_v41 = vadd.f32 %v9099_v39, %v9080_v40 }
 0x5e3   : > { %9836 = vmatpush.xpose.msrb.mxu1 %v1051_v8  ;;  %9876 = vmatpush.xpose.msrb.mxu3 %v1053_v9 }
 0x5e4   : > { %v9120_v44 = vadd.f32 %v9119_v42, %v9100_v41  ;;  %v9159_v46 = vpop.f32.mrf.mxu3 }
 0x5e6   : > { %9817 = vmatpush.xpose.msrb.mxu0 %v689_v12  ;;  %9857 = vmatpush.xpose.msrb.mxu2 %v691_v13  ;;  %v9140_v45 = vadd.f32 %v9139_v43, %v9120_v44  ;;  %v9179_v47 = vpop.f32.mrf.mxu0 }
 0x5e7   : > { %9837 = vmatpush.xpose.msrb.mxu1 %v690_v16  ;;  %9877 = vmatpush.xpose.msrb.mxu3 %v692_v17 }
 0x5e8   : > { %v9160_v48 = vadd.f32 %v9159_v46, %v9140_v45 }
 0x5e9   : > { %9818 = vmatmul.f32.vlgmr.msrb.gmra.mxu0 %v2315_v19  ;;  %9858 = vmatmul.f32.vlgmr.msrb.gmra.mxu2 %v2317_v20  ;;  %v9199_v50 = vpop.f32.mrf.mxu1 }
 0x5ea   : > { %9894 = vmatpush.xpose.msra.mxu0 %v1776_v14  ;;  %9838 = vmatmul.f32.vlgmr.msrb.gmra.mxu1 %v2316_v22  ;;  %v9180_v49 = vadd.f32 %v9179_v47, %v9160_v48 }
 0x5eb   : > { %9878 = vmatmul.f32.vlgmr.msrb.gmra.mxu3 %v2318_v23 }
 0x5ec   : > { %v9219_v51 = vpop.f32.mrf.mxu2  ;;  %v9200_v52 = vadd.f32 %v9199_v50, %v9180_v49 }
 0x5ee   : > { %9895 = vmatpush.xpose.msra.mxu0 %v1415_v25  ;;  %v9220_v53 = vadd.f32 %v9219_v51, %v9200_v52 }
 0x5ef   : > { %v9239_v54 = vpop.f32.mrf.mxu3 }
 0x5f0   : > { %v9240_v56 = vadd.f32 %v9239_v54, %v9220_v53 }
 0x5f2   : > { %9896 = vmatpush.xpose.msra.mxu0 %v1054_v28 }
 0x5f6   : > { %9897 = vmatpush.xpose.msra.mxu0 %v693_v32  ;;  %v9259_v55 = vpop.f32.mrf.mxu0 }
 0x5f7   : > { %v9260_v57 = vadd.f32 %v9259_v55, %v9240_v56  ;;  %v241_v56 = vld [vmem:[#allocation8] sm:$0x3] }
 0x5f9   : > { %9898 = vmatmul.f32.vlgmr.msra.gmra.mxu0 %v2320_v35  ;;  %v9279_v58 = vpop.f32.mrf.mxu1 }
 0x5fa   : > { %v9280_v60 = vadd.f32 %v9279_v58, %v9260_v57 }
 0x5fc   : > { %v9299_v59 = vpop.f32.mrf.mxu2 }
 0x5fd   : > { %v9300_v61 = vadd.f32 %v9299_v59, %v9280_v60 }
 0x5ff   : > { %v9319_v62 = vpop.f32.mrf.mxu3 }
 0x600   : > { %v9320_v0 = vadd.f32 %v9319_v62, %v9300_v61 }
 0x606   : > { %v9339_v63 = vpop.f32.mrf.mxu0 }
 0x607   : > { %v9340_v1 = vadd.f32 %v9339_v63, %v9320_v0 }
 0x609   : > { %v9359_v2 = vpop.f32.mrf.mxu1 }
 0x60a   : > { %v9360_v4 = vadd.f32 %v9359_v2, %v9340_v1 }
 0x60c   : > { %v9379_v3 = vpop.f32.mrf.mxu2 }
 0x60d   : > { %v9380_v5 = vadd.f32 %v9379_v3, %v9360_v4 }
 0x60f   : > { %v9399_v6 = vpop.f32.mrf.mxu3 }
 0x610   : > { %v9400_v8 = vadd.f32 %v9399_v6, %v9380_v5 }
 0x616   : > { %v9419_v7 = vpop.f32.mrf.mxu0 }
 0x617   : > { %v9420_v9 = vadd.f32 %v9419_v7, %v9400_v8 }
 0x619   : > { %v9439_v10 = vpop.f32.mrf.mxu1 }
 0x61a   : > { %v9440_v12 = vadd.f32 %v9439_v10, %v9420_v9 }
 0x61c   : > { %v9459_v11 = vpop.f32.mrf.mxu2 }
 0x61d   : > { %v9460_v13 = vadd.f32 %v9459_v11, %v9440_v12 }
 0x61f   : > { %v9479_v14 = vpop.f32.mrf.mxu3 }
 0x620   : > { %v9480_v16 = vadd.f32 %v9479_v14, %v9460_v13 }
 0x626   : > { %v9499_v15 = vpop.f32.mrf.mxu0 }
 0x627   : > { %v9500_v17 = vadd.f32 %v9499_v15, %v9480_v16 }
 0x629   : > { %v9519_v18 = vpop.f32.mrf.mxu1 }
 0x62a   : > { %v9520_v20 = vadd.f32 %v9519_v18, %v9500_v17 }
 0x62c   : > { %v9539_v19 = vpop.f32.mrf.mxu2 }
 0x62d   : > { %v9540_v21 = vadd.f32 %v9539_v19, %v9520_v20 }
 0x62f   : > { %v9559_v22 = vpop.f32.mrf.mxu3 }
 0x630   : > { %v9560_v24 = vadd.f32 %v9559_v22, %v9540_v21 }
 0x636   : > { %v9579_v23 = vpop.f32.mrf.mxu0 }
 0x637   : > { %v9580_v25 = vadd.f32 %v9579_v23, %v9560_v24 }
 0x639   : > { %v9599_v26 = vpop.f32.mrf.mxu1 }
 0x63a   : > { %v9600_v28 = vadd.f32 %v9599_v26, %v9580_v25 }
 0x63c   : > { %v9619_v27 = vpop.f32.mrf.mxu2 }
 0x63d   : > { %v9620_v29 = vadd.f32 %v9619_v27, %v9600_v28 }
 0x63f   : > { %v9639_v30 = vpop.f32.mrf.mxu3 }
 0x640   : > { %v9640_v32 = vadd.f32 %v9639_v30, %v9620_v29 }
 0x646   : > { %v9659_v31 = vpop.f32.mrf.mxu0 }
 0x647   : > { %v9660_v33 = vadd.f32 %v9659_v31, %v9640_v32 }
 0x649   : > { %v9679_v34 = vpop.f32.mrf.mxu1 }
 0x64a   : > { %v9680_v36 = vadd.f32 %v9679_v34, %v9660_v33 }
 0x64c   : > { %v9699_v35 = vpop.f32.mrf.mxu2 }
 0x64d   : > { %v9700_v37 = vadd.f32 %v9699_v35, %v9680_v36 }
 0x64f   : > { %v9719_v38 = vpop.f32.mrf.mxu3 }
 0x650   : > { %v9720_v40 = vadd.f32 %v9719_v38, %v9700_v37 }
 0x656   : > { %v9739_v39 = vpop.f32.mrf.mxu0 }
 0x657   : > { %v9740_v41 = vadd.f32 %v9739_v39, %v9720_v40 }
 0x659   : > { %v9759_v42 = vpop.f32.mrf.mxu1 }
 0x65a   : > { %v9760_v44 = vadd.f32 %v9759_v42, %v9740_v41 }
 0x65c   : > { %v9779_v43 = vpop.f32.mrf.mxu2 }
 0x65d   : > { %v9780_v45 = vadd.f32 %v9779_v43, %v9760_v44 }
 0x65f   : > { %v9799_v46 = vpop.f32.mrf.mxu3 }
 0x660   : > { %v9800_v48 = vadd.f32 %v9799_v46, %v9780_v45 }
 0x666   : > { %v9819_v47 = vpop.f32.mrf.mxu0 }
 0x667   : > { %v9820_v49 = vadd.f32 %v9819_v47, %v9800_v48  ;;  %v9839_v50 = vpop.f32.mrf.mxu1 }
 0x669   : > { %v9840_v52 = vadd.f32 %v9839_v50, %v9820_v49 }
 0x66c   : > { %v9859_v51 = vpop.f32.mrf.mxu2 }
 0x66d   : > { %v9860_v53 = vadd.f32 %v9859_v51, %v9840_v52 }
 0x66e   : > { %v9879_v54 = vpop.f32.mrf.mxu3 }
 0x66f   : > { %v9880_v55 = vadd.f32 %v9879_v54, %v9860_v53 }
 0x676   : > { %v9899_v57 = vpop.f32.mrf.mxu0 }
 0x677   : > { %v9900_v58 = vadd.f32 %v9899_v57, %v9880_v55  ;;  %9908 = sbr.rel (%p10035_p1) target bundleno = 1698 (0x6a2), region = 52 }
 0x679   : > { %v9902_v59 = vadd.f32 %v9900_v58, %v241_v56 }
 0x67b   : > { %9904 = vst.msk [vmem:[#allocation8] sm:$0x3] %vm9903_vm1, %v9902_v59 }
 0x67c   : > { %v10113_v61 = vld [vmem:[#allocation7] ss:$0 sm:$0xff] }
 0x682   : > { %v9909_v60 = vld [vmem:[#allocation8] sm:$0x3] }
 0x683   : > { %v9914_v62 = vadd.f32 %v10113_v61, %v9909_v60 }
 0x685   : > { %v10036_v63 = vmul.f32 -1.442695, %v9914_v62 }
 0x687   : > { %10114 = vpow2.f32 %v10036_v63 }
 0x68d   : > { %v10115_v0 = vpop.eup %10114 }
 0x68e   : > { %v9918_v1 = vadd.f32 1.0, %v10115_v0 }
 0x690   : > { %10116 = vrcp.f32 %v9918_v1  ;;  %v9930_v4 = vand.u32 2147483648, %v9918_v1  ;;  %vm9924_vm2 = vweird.f32 %v9918_v1  ;;  %v9928_v6 = vand.u32 2147483647, %v9918_v1 }
 0x692   : > { %v9931_v8 = vor.u32 1.1754944e-38, %v9930_v4  ;;  %vm9929_vm5 = vcmp.eq.f32.partialorder %v9928_v6, 8.507059e+37 }
 0x696   : > { %v10117_v2 = vpop.eup %10116 }
 0x697   : > { %v9920_v3 = vmul.f32 %v10117_v2, %v9918_v1  ;;  %vm9925_vm3 = vweird.f32 %v10117_v2 }
 0x698   : > { %vm9926_vm4 = vmor %vm9924_vm2, %vm9925_vm3 }
 0x699   : > { %v9921_v5 = vsub.f32 1.0, %v9920_v3 }
 0x69b   : > { %v9922_v7 = vmul.f32 %v10117_v2, %v9921_v5 }
 0x69d   : > { %v9923_v9 = vadd.f32 %v10117_v2, %v9922_v7 }
 0x69f   : > { %v9927_v10 = vsel %vm9926_vm4, %v10117_v2, %v9923_v9 }
 0x6a0   : > { %v9932_v11 = vsel %vm9929_vm5, %v9931_v8, %v9927_v10 }
 0x6a1   : > { %9934 = vst.msk [vmem:[#allocation8] sm:$0x3] %vm9903_vm1, %v9932_v11 }
 0x6a2 PF: > { %p10073_p4 = scmp.eq.s32.totalorder %s10329_s16, 1  ;;  %s10289_s17 = smov [#allocation8]  }
 0x6a3   : > { %s9941_s21 = sshll.u32 %s10289_s17, 4  ;;  %s9943_s20 = sshll.u32 %s11984_s3, 4  ;;  %s9942_s21 = int_to_ptr.vmem [resolvable:$true] %s9941_s21  ;;  %s9944_s20 = int_to_ptr.hbm [resolvable:$true] %s9943_s20 }
 0x6a4   : > { %10056 = dma.vmem_to_hbm [thread:$0]  (%p10073_p4), %s9942_s21, 32, %s9944_s20, [#allocation4]  }
 0x6a5   : > { %10265 = dma.done.wait (%p10073_p4), [#allocation4], 32  }
 0x6a6   : > { %10267 = vsyncadd (%p10073_p4), [#allocation4], 4294967264 }
 0x6a7 PF: > { %p17_p5 = scmp.ge.s32.totalorder %s10354_s24, 4   ;;  %s11988_s12 = smov %s10274_s13 }
 0x6a8   : > { %s11989_s13 = smov %s10278_s14  ;;  %s11990_s14 = smov %s10364_s27 }
 0x6a9   : > { %s11991_s15 = smov %s10354_s24  ;;  %19 = sbr.rel (!%p17_p5) target bundleno = 6 (0x6), region = 95 }
 0x6ae   :  { %9957 = vsyncpa [#allocation3], 1 }
 0x6af   :  { %9959 = vsyncpa [#allocation3 + $0x1], 1 }
 0x6b0   :  { %9960 = vsyncpa [#allocation6], 1 }
 0x6b1   :  { %9962 = vsyncpa [#allocation6 + $0x1], 1 }
 0x6b2   :  { %9963 = vsyncpa [#allocation4], 1 }
 0x6b3   :  { %9965 = vsyncpa [#allocation4 + $0x1], 1 }

</bundles_post_ra>
